<compile_context>
chip_gen: v6e
topology: v6e:2x2x1
jax: 0.10.0
libtpu: 0.0.40
codegen_flags: <defaults>
</compile_context>

<pallas_src>
import jax
import jax.numpy as jnp
from jax.experimental import pallas as pl
from jax.experimental.pallas import tpu as pltpu

D_IN, D_H1, D_H2, D_OUT = 4000, 512, 64, 2
D_IN_PAD = 4096        # 4000 -> 4096: contraction dim becomes lane-aligned
D_H2_PAD = 128         # 64  -> 128 : lane-dense hidden intermediates
D_OUT_PAD = 128        # 2   -> 128 : lane-dense (unmasked) output stores
SUBLANE_ALIGN = 16     # batch-tile alignment (covers bf16 sublane packing)


# ----------------------------------------------------------------------------
# kernel
# ----------------------------------------------------------------------------
def mlp_kernel(x_ref, dnu_ref,
               w1_ref, b1_ref, w2_ref, b2_ref, w3_ref, b3_ref,
               o_ref):
    # fc1: (tb, 4096) @ (4096, 512) on the MXU, f32 accumulation.
    h1 = jnp.dot(x_ref[...], w1_ref[...], preferred_element_type=jnp.float32)
    h1 = jnp.maximum(h1 + b1_ref[...], 0.0)            # bias + ReLU (f32 VPU)

    # fc2: (tb, 512) @ (512, 128); operands in the weight dtype (bf16 fast path,
    # f32 exact path), accumulation in f32.
    h2 = jnp.dot(h1.astype(w2_ref.dtype), w2_ref[...],
                 preferred_element_type=jnp.float32)
    h2 = jnp.maximum(h2 + b2_ref[...], 0.0)

    # torch.add(x, input_dnu.view(-1, 1)) -> broadcast (tb,1) over the 128 cols.
    # (Padded cols 64..127 pick up dnu too, but W3's padded rows are zero, so
    #  the fc3 output is unaffected.)
    h2 = h2 + dnu_ref[...]

    # fc3: (tb, 128) @ (128, 128)  (output cols 2..127 are zero padding)
    o = jnp.dot(h2.astype(w3_ref.dtype), w3_ref[...],
                preferred_element_type=jnp.float32)
    o_ref[...] = (o + b3_ref[...]).astype(o_ref.dtype)


# ----------------------------------------------------------------------------
# one-time parameter preparation (hoisted out of the per-call wrapper)
# ----------------------------------------------------------------------------
def prepare_params(params, *, use_bf16=True):
    """Pad/reshape/cast weights once; reuse the result for every forward call."""
    w1, b1, w2, b2, w3, b3 = params

    w1p = jnp.pad(w1, ((0, D_IN_PAD - D_IN), (0, 0)))                   # (4096, 512)
    w2p = jnp.pad(w2, ((0, 0), (0, D_H2_PAD - D_H2)))                   # (512, 128)
    w3p = jnp.pad(w3, ((0, D_H2_PAD - D_H2), (0, D_OUT_PAD - D_OUT)))   # (128, 128)

    b1r = b1.reshape(1, D_H1).astype(jnp.float32)
    b2r = jnp.pad(b2.reshape(1, D_H2), ((0, 0), (0, D_H2_PAD - D_H2))).astype(jnp.float32)
    b3r = jnp.pad(b3.reshape(1, D_OUT), ((0, 0), (0, D_OUT_PAD - D_OUT))).astype(jnp.float32)

    wdt = jnp.bfloat16 if use_bf16 else jnp.float32
    return (w1p.astype(wdt), b1r, w2p.astype(wdt), b2r, w3p.astype(wdt), b3r)


# ----------------------------------------------------------------------------
# chip introspection (split the grid only when there really are 2 TensorCores)
# ----------------------------------------------------------------------------
def _num_tensorcores_per_chip():
    try:
        info = pltpu.get_tpu_info()
        for attr in ("num_cores", "core_count", "tensorcores_per_chip",
                     "num_tensorcores"):
            v = getattr(info, attr, None)
            if v is not None:
                return int(v)
    except Exception:
        pass
    try:
        kind = jax.devices()[0].device_kind.lower()
        if "v7" in kind:
            return 2
    except Exception:
        pass
    return 1   # safe default: no forced split on single-TC chips


def _ceil_to(x, m):
    return ((x + m - 1) // m) * m


# ----------------------------------------------------------------------------
# forward wrapper
# ----------------------------------------------------------------------------
def simple_linear_layers(x, input_dnu, prepped_params, *, tb=512):
    """x: (B, 4000) f32; input_dnu: (B,) f32. Returns (B, 2) f32.

    `prepped_params` must come from prepare_params() (pre-padded, pre-cast).
    """
    B = x.shape[0]
    w1p, b1r, w2p, b2r, w3p, b3r = prepped_params
    compute_dtype = w1p.dtype

    # ---- batch tiling: big tiles; only force >=2 grid steps on 2-TC chips ----
    b_base = _ceil_to(B, SUBLANE_ALIGN)
    tb_eff = min(tb, b_base)
    if (_num_tensorcores_per_chip() >= 2
            and b_base >= 2 * SUBLANE_ALIGN
            and b_base // tb_eff < 2):
        tb_eff = _ceil_to((b_base + 1) // 2, SUBLANE_ALIGN)
    Bp = _ceil_to(B, tb_eff)

    # ---- activation prep: cast first, pad once (single materialization) ----
    xp = jnp.pad(x.astype(compute_dtype), ((0, Bp - B), (0, D_IN_PAD - D_IN)))
    dnu = jnp.pad(input_dnu.astype(jnp.float32).reshape(-1, 1), ((0, Bp - B), (0, 0)))

    # ---- VMEM budget: actual buffer set + headroom (keeps v7x happy) ----
    itemsize = jnp.dtype(compute_dtype).itemsize
    vmem_need = (2 * tb_eff * D_IN_PAD * itemsize           # x (double-buffered)
                 + D_IN_PAD * D_H1 * itemsize               # W1 (single buffer)
                 + D_H1 * D_H2_PAD * itemsize               # W2
                 + D_H2_PAD * D_OUT_PAD * itemsize          # W3
                 + 2 * tb_eff * D_OUT_PAD * 4               # output (double-buffered)
                 + tb_eff * (D_H1 + 2 * D_H2_PAD) * 4)      # f32 intermediates
    vmem_limit = min(60 * 1024 * 1024, _ceil_to(vmem_need + 8 * 1024 * 1024, 1 << 20))

    full = lambda i: (0, 0)
    single = pl.Buffered(1)   # constant-index weights: single-buffer (no re-DMA)

    out = pl.pallas_call(
        mlp_kernel,
        out_shape=jax.ShapeDtypeStruct((Bp, D_OUT_PAD), jnp.float32),
        grid_spec=pltpu.PrefetchScalarGridSpec(
            num_scalar_prefetch=0,
            grid=(Bp // tb_eff,),
            in_specs=[
                pl.BlockSpec((tb_eff, D_IN_PAD), lambda i: (i, 0)),            # x
                pl.BlockSpec((tb_eff, 1), lambda i: (i, 0)),                   # dnu
                pl.BlockSpec((D_IN_PAD, D_H1), full, pipeline_mode=single),    # W1
                pl.BlockSpec((1, D_H1), full, pipeline_mode=single),           # b1
                pl.BlockSpec((D_H1, D_H2_PAD), full, pipeline_mode=single),    # W2
                pl.BlockSpec((1, D_H2_PAD), full, pipeline_mode=single),       # b2
                pl.BlockSpec((D_H2_PAD, D_OUT_PAD), full, pipeline_mode=single),  # W3
                pl.BlockSpec((1, D_OUT_PAD), full, pipeline_mode=single),      # b3
            ],
            out_specs=pl.BlockSpec((tb_eff, D_OUT_PAD), lambda i: (i, 0)),
        ),
        compiler_params=pltpu.CompilerParams(
            dimension_semantics=("parallel",),
            vmem_limit_bytes=int(vmem_limit),
        ),
    )(xp, dnu, w1p, b1r, w2p, b2r, w3p, b3r)

    # TODO(synk): for the tiny-batch repeated-call regime on v7x, hide the fixed
    # ~4 MiB W1 DMA via a cross-pallas_call prefetch (semaphore + VMEM-ref outputs).
    return out[:B, :D_OUT]


# ----------------------------------------------------------------------------
# init + reference
# ----------------------------------------------------------------------------
def init_params(key):
    """Deterministic init mimicking PyTorch nn.Linear default (U[-1/sqrt(fan_in), +])."""
    ks = jax.random.split(key, 6)

    def linear(kw, kb, fan_in, fan_out):
        bound = 1.0 / (fan_in ** 0.5)
        # stored transposed: (in, out) so kernel computes x @ W
        w = jax.random.uniform(kw, (fan_in, fan_out), jnp.float32, -bound, bound)
        b = jax.random.uniform(kb, (fan_out,), jnp.float32, -bound, bound)
        return w, b

    w1, b1 = linear(ks[0], ks[1], D_IN, D_H1)
    w2, b2 = linear(ks[2], ks[3], D_H1, D_H2)
    w3, b3 = linear(ks[4], ks[5], D_H2, D_OUT)
    return (w1, b1, w2, b2, w3, b3)


def reference_forward(x, input_dnu, params):
    w1, b1, w2, b2, w3, b3 = params
    h = jnp.maximum(x @ w1 + b1, 0.0)
    h = jnp.maximum(h @ w2 + b2, 0.0)
    h = h + input_dnu.reshape(-1, 1)
    return h @ w3 + b3


if __name__ == "__main__":
    key = jax.random.PRNGKey(0)
    kx, kd, kp = jax.random.split(key, 3)

    B = 16
    x = jax.random.normal(kx, (B, D_IN), jnp.float32)
    input_dnu = jax.random.normal(kd, (B,), jnp.float32)
    params = init_params(kp)

    ref = reference_forward(x, input_dnu, params)

    # Exact-precision path (f32 MXU operands): tight tolerance vs f32 reference.
    prepped_f32 = prepare_params(params, use_bf16=False)
    out_f32 = jax.block_until_ready(simple_linear_layers(x, input_dnu, prepped_f32))
    assert out_f32.shape == (B, D_OUT)
    assert jnp.allclose(out_f32, ref, atol=1e-4, rtol=1e-4), "f32 kernel mismatch"

    # Optimized bf16-MXU path (f32 accumulation): bf16-appropriate tolerance.
    prepped_bf16 = prepare_params(params, use_bf16=True)
    out_bf16 = jax.block_until_ready(simple_linear_layers(x, input_dnu, prepped_bf16))
    assert out_bf16.shape == (B, D_OUT)
    assert jnp.allclose(out_bf16, ref, atol=3e-2, rtol=3e-2), "bf16 kernel mismatch"

    print("KERNEL_OK")
</pallas_src>

<mosaic_0001>
module attributes {stable_mosaic.version = 11 : i64} {
  func.func @mlp_kernel(%arg0: i32, %arg1: memref<16x4096xf32, #tpu.memory_space<vmem>>, %arg2: memref<16x1xf32, #tpu.memory_space<vmem>>, %arg3: memref<4096x512xf32, #tpu.memory_space<vmem>>, %arg4: memref<1x512xf32, #tpu.memory_space<vmem>>, %arg5: memref<512x128xf32, #tpu.memory_space<vmem>>, %arg6: memref<1x128xf32, #tpu.memory_space<vmem>>, %arg7: memref<128x128xf32, #tpu.memory_space<vmem>>, %arg8: memref<1x128xf32, #tpu.memory_space<vmem>>, %arg9: memref<16x128xf32, #tpu.memory_space<vmem>>) attributes {dimension_semantics = [#tpu.dimension_semantics<parallel>], iteration_bounds = array<i64: 1>, scalar_prefetch = 0 : i64, scratch_operands = 0 : i64, tpu.core_type = #tpu.core_type<tc>, window_params = [{transform_indices = @transform_0, window_bounds = array<i64: 16, 4096>}, {transform_indices = @transform_1, window_bounds = array<i64: 16, 1>}, {pipeline_mode = #tpu.pipeline_mode<synchronous>, transform_indices = @transform_2, window_bounds = array<i64: 4096, 512>}, {pipeline_mode = #tpu.pipeline_mode<synchronous>, transform_indices = @transform_3, window_bounds = array<i64: 1, 512>}, {pipeline_mode = #tpu.pipeline_mode<synchronous>, transform_indices = @transform_4, window_bounds = array<i64: 512, 128>}, {pipeline_mode = #tpu.pipeline_mode<synchronous>, transform_indices = @transform_5, window_bounds = array<i64: 1, 128>}, {pipeline_mode = #tpu.pipeline_mode<synchronous>, transform_indices = @transform_6, window_bounds = array<i64: 128, 128>}, {pipeline_mode = #tpu.pipeline_mode<synchronous>, transform_indices = @transform_7, window_bounds = array<i64: 1, 128>}, {transform_indices = @transform_8, window_bounds = array<i64: 16, 128>}]} {
    %c0 = arith.constant 0 : index
    %c0_0 = arith.constant 0 : index
    %0 = vector.load %arg1[%c0, %c0_0] : memref<16x4096xf32, #tpu.memory_space<vmem>>, vector<16x4096xf32>
    %c0_1 = arith.constant 0 : index
    %c0_2 = arith.constant 0 : index
    %1 = vector.load %arg3[%c0_1, %c0_2] : memref<4096x512xf32, #tpu.memory_space<vmem>>, vector<4096x512xf32>
    %cst = arith.constant dense<0.000000e+00> : vector<16x512xf32>
    %2 = tpu.matmul %0, %1, %cst {dimension_numbers = #tpu.dot_dimension_numbers<[1], [0], [0], [1], [0, 0, 1, 1], [], []>} : vector<16x4096xf32>, vector<4096x512xf32>, vector<16x512xf32> -> vector<16x512xf32>
    %c0_3 = arith.constant 0 : index
    %c0_4 = arith.constant 0 : index
    %3 = vector.load %arg4[%c0_3, %c0_4] : memref<1x512xf32, #tpu.memory_space<vmem>>, vector<1x512xf32>
    %4 = vector.broadcast %3 : vector<1x512xf32> to vector<16x512xf32>
    %5 = arith.addf %2, %4 : vector<16x512xf32>
    %cst_5 = arith.constant 0.000000e+00 : f32
    %6 = vector.broadcast %cst_5 : f32 to vector<16x512xf32>
    %7 = arith.maximumf %5, %6 : vector<16x512xf32>
    %c0_6 = arith.constant 0 : index
    %c0_7 = arith.constant 0 : index
    %8 = vector.load %arg5[%c0_6, %c0_7] : memref<512x128xf32, #tpu.memory_space<vmem>>, vector<512x128xf32>
    %cst_8 = arith.constant dense<0.000000e+00> : vector<16x128xf32>
    %9 = tpu.matmul %7, %8, %cst_8 {dimension_numbers = #tpu.dot_dimension_numbers<[1], [0], [0], [1], [0, 0, 1, 1], [], []>} : vector<16x512xf32>, vector<512x128xf32>, vector<16x128xf32> -> vector<16x128xf32>
    %c0_9 = arith.constant 0 : index
    %c0_10 = arith.constant 0 : index
    %10 = vector.load %arg6[%c0_9, %c0_10] : memref<1x128xf32, #tpu.memory_space<vmem>>, vector<1x128xf32>
    %11 = vector.broadcast %10 : vector<1x128xf32> to vector<16x128xf32>
    %12 = arith.addf %9, %11 : vector<16x128xf32>
    %cst_11 = arith.constant 0.000000e+00 : f32
    %13 = vector.broadcast %cst_11 : f32 to vector<16x128xf32>
    %14 = arith.maximumf %12, %13 : vector<16x128xf32>
    %c0_12 = arith.constant 0 : index
    %c0_13 = arith.constant 0 : index
    %15 = vector.load %arg2[%c0_12, %c0_13] : memref<16x1xf32, #tpu.memory_space<vmem>>, vector<16x1xf32>
    %16 = vector.broadcast %15 : vector<16x1xf32> to vector<16x128xf32>
    %17 = arith.addf %14, %16 : vector<16x128xf32>
    %c0_14 = arith.constant 0 : index
    %c0_15 = arith.constant 0 : index
    %18 = vector.load %arg7[%c0_14, %c0_15] : memref<128x128xf32, #tpu.memory_space<vmem>>, vector<128x128xf32>
    %cst_16 = arith.constant dense<0.000000e+00> : vector<16x128xf32>
    %19 = tpu.matmul %17, %18, %cst_16 {dimension_numbers = #tpu.dot_dimension_numbers<[1], [0], [0], [1], [0, 0, 1, 1], [], []>} : vector<16x128xf32>, vector<128x128xf32>, vector<16x128xf32> -> vector<16x128xf32>
    %c0_17 = arith.constant 0 : index
    %c0_18 = arith.constant 0 : index
    %20 = vector.load %arg8[%c0_17, %c0_18] : memref<1x128xf32, #tpu.memory_space<vmem>>, vector<1x128xf32>
    %21 = vector.broadcast %20 : vector<1x128xf32> to vector<16x128xf32>
    %22 = arith.addf %19, %21 : vector<16x128xf32>
    %c0_19 = arith.constant 0 : index
    %c0_20 = arith.constant 0 : index
    %23 = vector.load %arg9[%c0_19, %c0_20] : memref<16x128xf32, #tpu.memory_space<vmem>>, vector<16x128xf32>
    tpu.vector_store %arg9[%c0_19, %c0_20], %22 {strides = array<i32>} : memref<16x128xf32, #tpu.memory_space<vmem>>, vector<16x128xf32>,
    return
  }
  func.func @transform_0(%arg0: i32) -> (i32, i32) {
    %c0_i32 = arith.constant 0 : i32
    %c0_i32_0 = arith.constant 0 : i32
    return %arg0, %c0_i32 : i32, i32
  }
  func.func @transform_1(%arg0: i32) -> (i32, i32) {
    %c0_i32 = arith.constant 0 : i32
    %c0_i32_0 = arith.constant 0 : i32
    return %arg0, %c0_i32 : i32, i32
  }
  func.func @transform_2(%arg0: i32) -> (i32, i32) {
    %c0_i32 = arith.constant 0 : i32
    %c0_i32_0 = arith.constant 0 : i32
    %c0_i32_1 = arith.constant 0 : i32
    return %c0_i32, %c0_i32_0 : i32, i32
  }
  func.func @transform_3(%arg0: i32) -> (i32, i32) {
    %c0_i32 = arith.constant 0 : i32
    %c0_i32_0 = arith.constant 0 : i32
    %c0_i32_1 = arith.constant 0 : i32
    return %c0_i32, %c0_i32_0 : i32, i32
  }
  func.func @transform_4(%arg0: i32) -> (i32, i32) {
    %c0_i32 = arith.constant 0 : i32
    %c0_i32_0 = arith.constant 0 : i32
    %c0_i32_1 = arith.constant 0 : i32
    return %c0_i32, %c0_i32_0 : i32, i32
  }
  func.func @transform_5(%arg0: i32) -> (i32, i32) {
    %c0_i32 = arith.constant 0 : i32
    %c0_i32_0 = arith.constant 0 : i32
    %c0_i32_1 = arith.constant 0 : i32
    return %c0_i32, %c0_i32_0 : i32, i32
  }
  func.func @transform_6(%arg0: i32) -> (i32, i32) {
    %c0_i32 = arith.constant 0 : i32
    %c0_i32_0 = arith.constant 0 : i32
    %c0_i32_1 = arith.constant 0 : i32
    return %c0_i32, %c0_i32_0 : i32, i32
  }
  func.func @transform_7(%arg0: i32) -> (i32, i32) {
    %c0_i32 = arith.constant 0 : i32
    %c0_i32_0 = arith.constant 0 : i32
    %c0_i32_1 = arith.constant 0 : i32
    return %c0_i32, %c0_i32_0 : i32, i32
  }
  func.func @transform_8(%arg0: i32) -> (i32, i32) {
    %c0_i32 = arith.constant 0 : i32
    %c0_i32_0 = arith.constant 0 : i32
    return %arg0, %c0_i32 : i32, i32
  }
}

</mosaic_0001>

<bundles_post_ra>
// kernel: tpu_custom_call.1
= control target key start
LH: loop header
LB: loop body
LE: loop exit
PB: predicated region body
PF: predicated region fallthrough
CT: control target
= control target key end

     0   :  { %13 = vsyncpa [#allocation3], 0  ;;  %s5781_s0 = inlined_call_operand.hbm [shape: f32[16,4096], index: 0, kind: input, shape index: {}]   ;;  %s5782_s1 = inlined_call_operand.vmem [shape: f32[16,1], index: 1, kind: input, shape index: {}]   ;;  %s5783_s2 = inlined_call_operand.hbm [shape: f32[4096,512], index: 2, kind: input, shape index: {}]   ;;  %s5784_s3 = inlined_call_operand.hbm [shape: f32[1,512], index: 3, kind: input, shape index: {}]   ;;  %s5785_s4 = inlined_call_operand.hbm [shape: f32[512,128], index: 4, kind: input, shape index: {}]   ;;  %s5786_s5 = inlined_call_operand.hbm [shape: f32[1,128], index: 5, kind: input, shape index: {}]   ;;  %s5787_s6 = inlined_call_operand.hbm [shape: f32[128,128], index: 6, kind: input, shape index: {}]   ;;  %s5788_s7 = inlined_call_operand.hbm [shape: f32[1,128], index: 7, kind: input, shape index: {}]   ;;  %s5789_s8 = inlined_call_operand.hbm [shape: f32[16,128], index: 8, kind: output, shape index: {}]  }
   0x1   :  { %14 = vsyncpa [#allocation6], 0 }
   0x2   :  { %15 = vsyncpa [#allocation9], 0 }
   0x3   :  { %16 = vsyncpa [#allocation12], 0 }
   0x4   :  { %17 = vsyncpa [#allocation4], 0  ;;  %s5464_s27 = smov [#allocation5]  }
   0x5   :  { %s37_s28 = sshll.u32 %s5464_s27, 4  ;;  %s38_s28 = int_to_ptr.vmem [resolvable:$true] %s37_s28 }
   0x6   :  { %s5302_s29 = scalar_lea.vmem %s38_s28, 262144  ;;  %p5307_p1 = scmp.lt.s32.totalorder %s38_s28, %s38_s28 }
   0x7   :  { %p5303_p0 = scmp.ne.s32.totalorder %s38_s28, %s5302_s29  ;;  %p5308_p2 = scmp.lt.s32.totalorder %s5302_s29, %s5302_s29 }
   0x9   :  { %p5309_p3 = por %p5308_p2, %p5307_p1 }
   0xb   :  { %p5310_p4 = pnand %p5309_p3, %p5303_p0 }
   0xd   :  { %5313 = shalt.err (!%p5310_p4)
}
   0xe   :  { %s5465_s30 = smov 512   ;;  %s5466_s9 = smov 32  }
   0xf   :  { %43 = dma.hbm_to_vmem [thread:$0]  %s5783_s2, 262144, %s38_s28, [#allocation6], %s5465_s30, %s5465_s30, %s5466_s9  }
  0x10   :  { %s5467_s12 = smov [#allocation8]  }
  0x11   :  { %s59_s13 = sshll.u32 %s5467_s12, 4  ;;  %s60_s13 = int_to_ptr.vmem [resolvable:$true] %s59_s13 }
  0x12   :  { %s5322_s14 = scalar_lea.vmem %s60_s13, 8192  ;;  %p5327_p6 = scmp.lt.s32.totalorder %s60_s13, %s60_s13 }
  0x13   :  { %p5323_p5 = scmp.ne.s32.totalorder %s60_s13, %s5322_s14  ;;  %p5328_p7 = scmp.lt.s32.totalorder %s5322_s14, %s5322_s14 }
  0x15   :  { %p5329_p8 = por %p5328_p7, %p5327_p6 }
  0x17   :  { %p5330_p9 = pnand %p5329_p8, %p5323_p5 }
  0x19   :  { %5333 = shalt.err (!%p5330_p9)
}
  0x1a   :  { %s5468_s15 = smov 128   ;;  %s5469_s16 = smov 8  }
  0x1b   :  { %65 = dma.hbm_to_vmem [thread:$0]  %s5785_s4, 8192, %s60_s13, [#allocation9], %s5468_s15, %s5468_s15, %s5469_s16  }
  0x1c   :  { %s5470_s2 = smov [#allocation11]   ;;  %s5471_s20 = smov [#allocation2]  }
  0x1d   :  { %s81_s19 = sshll.u32 %s5470_s2, 4  ;;  %s23_s21 = sshll.u32 %s5471_s20, 4  ;;  %s82_s19 = int_to_ptr.vmem [resolvable:$true] %s81_s19  ;;  %s24_s21 = int_to_ptr.vmem [resolvable:$true] %s23_s21 }
  0x1e   :  { %s5342_s22 = scalar_lea.vmem %s82_s19, 2048  ;;  %p5347_p11 = scmp.lt.s32.totalorder %s82_s19, %s82_s19 }
  0x1f   :  { %p5343_p10 = scmp.ne.s32.totalorder %s82_s19, %s5342_s22  ;;  %p5348_p12 = scmp.lt.s32.totalorder %s5342_s22, %s5342_s22 }
  0x21   :  { %p5349_p13 = por %p5348_p12, %p5347_p11 }
  0x23   :  { %p5350_p0 = pnand %p5349_p13, %p5343_p10 }
  0x25   :  { %5353 = shalt.err (!%p5350_p0)
}
  0x26   :  { %87 = dma.hbm_to_vmem [thread:$0]  %s5787_s6, 2048, %s82_s19, [#allocation12], %s5468_s15, %s5468_s15, %s5469_s16  }
  0x27   :  { %s5362_s4 = scalar_lea.vmem %s24_s21, 8192  ;;  %p5367_p2 = scmp.lt.s32.totalorder %s24_s21, %s24_s21 }
  0x28   :  { %p5363_p1 = scmp.ne.s32.totalorder %s24_s21, %s5362_s4  ;;  %p5368_p3 = scmp.lt.s32.totalorder %s5362_s4, %s5362_s4 }
  0x2a   :  { %p5369_p4 = por %p5368_p3, %p5367_p2 }
  0x2c   :  { %p5370_p5 = pnand %p5369_p4, %p5363_p1 }
  0x2e   :  { %5373 = shalt.err (!%p5370_p5)
}
  0x2f   :  { %s5472_s25 = smov 4096   ;;  %s5473_s26 = smov 256  }
  0x30   :  { %29 = dma.hbm_to_vmem [thread:$0]  %s5781_s0, 8192, %s24_s21, [#allocation3], %s5472_s25, %s5472_s25, %s5473_s26  }
  0x31   :  { %s5474_s29 = smov [#allocation7]   ;;  %s5475_s9 = smov [#allocation10]  }
  0x32   :  { %s50_s30 = sshll.u32 %s5474_s29, 4  ;;  %s72_s10 = sshll.u32 %s5475_s9, 4  ;;  %s51_s30 = int_to_ptr.vmem [resolvable:$true] %s50_s30  ;;  %s73_s10 = int_to_ptr.vmem [resolvable:$true] %s72_s10 }
  0x33   :  { %s5382_s6 = scalar_lea.vmem %s51_s30, 64  ;;  %p5387_p7 = scmp.lt.s32.totalorder %s51_s30, %s51_s30 }
  0x34   :  { %p5383_p6 = scmp.ne.s32.totalorder %s51_s30, %s5382_s6  ;;  %p5388_p8 = scmp.lt.s32.totalorder %s5382_s6, %s5382_s6 }
  0x36   :  { %p5389_p9 = por %p5388_p8, %p5387_p7 }
  0x38   :  { %p5390_p10 = pnand %p5389_p9, %p5383_p6 }
  0x3a   :  { %5393 = shalt.err (!%p5390_p10)
}
  0x3b   :  { %53 = dma.hbm_to_vmem [thread:$0]  %s5784_s3, 64, %s51_s30, [#allocation6]  }
  0x3c   :  { %s5402_s13 = scalar_lea.vmem %s73_s10, 16  ;;  %s5406_s0 = scalar_lea.vmem %s73_s10, 32 }
  0x3d   :  { %p5403_p11 = scmp.ne.s32.totalorder %s73_s10, %s5402_s13  ;;  %p5407_p12 = scmp.lt.s32.totalorder %s73_s10, %s73_s10 }
  0x3e   :  { %p5408_p13 = scmp.lt.s32.totalorder %s5406_s0, %s5402_s13 }
  0x40   :  { %p5409_p0 = por %p5408_p13, %p5407_p12 }
  0x42   :  { %p5410_p1 = pnand %p5409_p0, %p5403_p11 }
  0x44   :  { %5413 = shalt.err (!%p5410_p1)
}
  0x45   :  { %75 = dma.hbm_to_vmem [thread:$0]  %s5786_s5, 16, %s73_s10, [#allocation9]  }
  0x46   :  { %s5476_s18 = smov [#allocation13]  }
  0x47   :  { %s94_s2 = sshll.u32 %s5476_s18, 4  ;;  %s95_s2 = int_to_ptr.vmem [resolvable:$true] %s94_s2 }
  0x48   :  { %s5422_s19 = scalar_lea.vmem %s95_s2, 16  ;;  %s5426_s20 = scalar_lea.vmem %s95_s2, 32 }
  0x49   :  { %p5423_p2 = scmp.ne.s32.totalorder %s95_s2, %s5422_s19  ;;  %p5427_p3 = scmp.lt.s32.totalorder %s95_s2, %s95_s2 }
  0x4a   :  { %p5428_p4 = scmp.lt.s32.totalorder %s5426_s20, %s5422_s19 }
  0x4c   :  { %p5429_p5 = por %p5428_p4, %p5427_p3 }
  0x4e   :  { %p5430_p6 = pnand %p5429_p5, %p5423_p2 }
  0x50   :  { %5433 = shalt.err (!%p5430_p6)
}
  0x51   :  { %97 = dma.hbm_to_vmem [thread:$0]  %s5788_s7, 16, %s95_s2, [#allocation12]  }
  0x52   :  { %5454 = dma.done.wait [#allocation3], 8192  }
  0x53   :  { %5455 = vsyncadd [#allocation3], 4294959104 }
  0x54   :  { %5456 = dma.done.wait [#allocation6], 262208  }
  0x55   :  { %5457 = vsyncadd [#allocation6], 4294705088 }
  0x56   :  { %5458 = dma.done.wait [#allocation9], 8208  }
  0x57   :  { %5459 = vsyncadd [#allocation9], 4294959088 }
  0x58   :  { %5460 = dma.done.wait [#allocation12], 2064  }
  0x59   :  { %5461 = vsyncadd [#allocation12], 4294965232  ;;  %v244_v0 = vld [vmem:[#allocation5 + $0x1e8] sm:$0xff]  ;;  %v243_v2 = vld [vmem:[#allocation5 + $0x1e0] sm:$0xff] }
  0x5a   :  { %v372_v1 = vld [vmem:[#allocation5 + $0x5e8] sm:$0xff]  ;;  %2253 = vmatprep.subr.mxu0 %v244_v0  ;;  %v371_v3 = vld [vmem:[#allocation5 + $0x5e0] sm:$0xff] }
  0x5b   :  { %2330 = vmatprep.subr.mxu1 %v372_v1  ;;  %v240_v4 = vld [vmem:[#allocation5 + $0x1c8] sm:$0xff]  ;;  %2254 = vmatpush1.msra.mxu0 %v243_v2  ;;  %v239_v6 = vld [vmem:[#allocation5 + $0x1c0] sm:$0xff] }
  0x5c   :  { %v368_v5 = vld [vmem:[#allocation5 + $0x5c8] sm:$0xff]  ;;  %2331 = vmatpush1.msra.mxu1 %v371_v3  ;;  %v367_v7 = vld [vmem:[#allocation5 + $0x5c0] sm:$0xff]  ;;  %2255 = vmatprep.subr.mxu0 %v240_v4 }
  0x5d   :  { %v236_v8 = vld [vmem:[#allocation5 + $0x1a8] sm:$0xff]  ;;  %2332 = vmatprep.subr.mxu1 %v368_v5  ;;  %v235_v10 = vld [vmem:[#allocation5 + $0x1a0] sm:$0xff]  ;;  %2256 = vmatpush1.msra.mxu0 %v239_v6 }
  0x5e   :  { %v364_v9 = vld [vmem:[#allocation5 + $0x5a8] sm:$0xff]  ;;  %v363_v11 = vld [vmem:[#allocation5 + $0x5a0] sm:$0xff]  ;;  %2333 = vmatpush1.msra.mxu1 %v367_v7  ;;  %2257 = vmatprep.subr.mxu0 %v236_v8 }
  0x5f   :  { %v232_v12 = vld [vmem:[#allocation5 + $0x188] sm:$0xff]  ;;  %2334 = vmatprep.subr.mxu1 %v364_v9  ;;  %v231_v14 = vld [vmem:[#allocation5 + $0x180] sm:$0xff]  ;;  %2258 = vmatpush1.msra.mxu0 %v235_v10 }
  0x60   :  { %v360_v13 = vld [vmem:[#allocation5 + $0x588] sm:$0xff]  ;;  %v359_v15 = vld [vmem:[#allocation5 + $0x580] sm:$0xff]  ;;  %2335 = vmatpush1.msra.mxu1 %v363_v11  ;;  %2259 = vmatprep.subr.mxu0 %v232_v12 }
  0x61   :  { %v228_v16 = vld [vmem:[#allocation5 + $0x168] sm:$0xff]  ;;  %2336 = vmatprep.subr.mxu1 %v360_v13  ;;  %v227_v18 = vld [vmem:[#allocation5 + $0x160] sm:$0xff]  ;;  %2260 = vmatpush1.msra.mxu0 %v231_v14 }
  0x62   :  { %v356_v17 = vld [vmem:[#allocation5 + $0x568] sm:$0xff]  ;;  %v355_v19 = vld [vmem:[#allocation5 + $0x560] sm:$0xff]  ;;  %2337 = vmatpush1.msra.mxu1 %v359_v15  ;;  %2261 = vmatprep.subr.mxu0 %v228_v16 }
  0x63   :  { %v224_v20 = vld [vmem:[#allocation5 + $0x148] sm:$0xff]  ;;  %2338 = vmatprep.subr.mxu1 %v356_v17  ;;  %v223_v22 = vld [vmem:[#allocation5 + $0x140] sm:$0xff]  ;;  %2262 = vmatpush1.msra.mxu0 %v227_v18 }
  0x64   :  { %v352_v21 = vld [vmem:[#allocation5 + $0x548] sm:$0xff]  ;;  %v351_v23 = vld [vmem:[#allocation5 + $0x540] sm:$0xff]  ;;  %2339 = vmatpush1.msra.mxu1 %v355_v19  ;;  %2263 = vmatprep.subr.mxu0 %v224_v20 }
  0x65   :  { %v220_v24 = vld [vmem:[#allocation5 + $0x128] sm:$0xff]  ;;  %2340 = vmatprep.subr.mxu1 %v352_v21  ;;  %v219_v26 = vld [vmem:[#allocation5 + $0x120] sm:$0xff]  ;;  %2264 = vmatpush1.msra.mxu0 %v223_v22 }
  0x66   :  { %v348_v25 = vld [vmem:[#allocation5 + $0x528] sm:$0xff]  ;;  %v347_v27 = vld [vmem:[#allocation5 + $0x520] sm:$0xff]  ;;  %2341 = vmatpush1.msra.mxu1 %v351_v23  ;;  %2265 = vmatprep.subr.mxu0 %v220_v24 }
  0x67   :  { %v216_v28 = vld [vmem:[#allocation5 + $0x108] sm:$0xff]  ;;  %2342 = vmatprep.subr.mxu1 %v348_v25  ;;  %v215_v30 = vld [vmem:[#allocation5 + $0x100] sm:$0xff]  ;;  %2266 = vmatpush1.msra.mxu0 %v219_v26 }
  0x68   :  { %v344_v29 = vld [vmem:[#allocation5 + $0x508] sm:$0xff]  ;;  %v343_v31 = vld [vmem:[#allocation5 + $0x500] sm:$0xff]  ;;  %2343 = vmatpush1.msra.mxu1 %v347_v27  ;;  %2267 = vmatprep.subr.mxu0 %v216_v28 }
  0x69   :  { %v212_v32 = vld [vmem:[#allocation5 + $0xe8] sm:$0xff]  ;;  %2344 = vmatprep.subr.mxu1 %v344_v29  ;;  %v211_v34 = vld [vmem:[#allocation5 + $0xe0] sm:$0xff]  ;;  %2268 = vmatpush1.msra.mxu0 %v215_v30 }
  0x6a   :  { %v340_v33 = vld [vmem:[#allocation5 + $0x4e8] sm:$0xff]  ;;  %v339_v35 = vld [vmem:[#allocation5 + $0x4e0] sm:$0xff]  ;;  %2345 = vmatpush1.msra.mxu1 %v343_v31  ;;  %2269 = vmatprep.subr.mxu0 %v212_v32 }
  0x6b   :  { %v208_v36 = vld [vmem:[#allocation5 + $0xc8] sm:$0xff]  ;;  %2346 = vmatprep.subr.mxu1 %v340_v33  ;;  %v207_v38 = vld [vmem:[#allocation5 + $0xc0] sm:$0xff]  ;;  %2270 = vmatpush1.msra.mxu0 %v211_v34 }
  0x6c   :  { %v336_v37 = vld [vmem:[#allocation5 + $0x4c8] sm:$0xff]  ;;  %v335_v39 = vld [vmem:[#allocation5 + $0x4c0] sm:$0xff]  ;;  %2347 = vmatpush1.msra.mxu1 %v339_v35  ;;  %2271 = vmatprep.subr.mxu0 %v208_v36 }
  0x6d   :  { %v204_v40 = vld [vmem:[#allocation5 + $0xa8] sm:$0xff]  ;;  %2348 = vmatprep.subr.mxu1 %v336_v37  ;;  %v203_v42 = vld [vmem:[#allocation5 + $0xa0] sm:$0xff]  ;;  %2272 = vmatpush1.msra.mxu0 %v207_v38 }
  0x6e   :  { %v332_v41 = vld [vmem:[#allocation5 + $0x4a8] sm:$0xff]  ;;  %v331_v43 = vld [vmem:[#allocation5 + $0x4a0] sm:$0xff]  ;;  %2349 = vmatpush1.msra.mxu1 %v335_v39  ;;  %2273 = vmatprep.subr.mxu0 %v204_v40 }
  0x6f   :  { %v200_v44 = vld [vmem:[#allocation5 + $0x88] sm:$0xff]  ;;  %2350 = vmatprep.subr.mxu1 %v332_v41  ;;  %v199_v46 = vld [vmem:[#allocation5 + $0x80] sm:$0xff]  ;;  %2274 = vmatpush1.msra.mxu0 %v203_v42 }
  0x70   :  { %v328_v45 = vld [vmem:[#allocation5 + $0x488] sm:$0xff]  ;;  %v327_v47 = vld [vmem:[#allocation5 + $0x480] sm:$0xff]  ;;  %2351 = vmatpush1.msra.mxu1 %v331_v43  ;;  %2275 = vmatprep.subr.mxu0 %v200_v44 }
  0x71   :  { %v196_v48 = vld [vmem:[#allocation5 + $0x68] sm:$0xff]  ;;  %2352 = vmatprep.subr.mxu1 %v328_v45  ;;  %v195_v50 = vld [vmem:[#allocation5 + $0x60] sm:$0xff]  ;;  %2276 = vmatpush1.msra.mxu0 %v199_v46 }
  0x72   :  { %v324_v49 = vld [vmem:[#allocation5 + $0x468] sm:$0xff]  ;;  %v323_v51 = vld [vmem:[#allocation5 + $0x460] sm:$0xff]  ;;  %2353 = vmatpush1.msra.mxu1 %v327_v47  ;;  %2277 = vmatprep.subr.mxu0 %v196_v48 }
  0x73   :  { %v192_v52 = vld [vmem:[#allocation5 + $0x48] sm:$0xff]  ;;  %2354 = vmatprep.subr.mxu1 %v324_v49  ;;  %v191_v54 = vld [vmem:[#allocation5 + $0x40] sm:$0xff]  ;;  %2278 = vmatpush1.msra.mxu0 %v195_v50 }
  0x74   :  { %v320_v53 = vld [vmem:[#allocation5 + $0x448] sm:$0xff]  ;;  %v319_v55 = vld [vmem:[#allocation5 + $0x440] sm:$0xff]  ;;  %2355 = vmatpush1.msra.mxu1 %v323_v51  ;;  %2279 = vmatprep.subr.mxu0 %v192_v52 }
  0x75   :  { %v188_v56 = vld [vmem:[#allocation5 + $0x28] sm:$0xff]  ;;  %2356 = vmatprep.subr.mxu1 %v320_v53  ;;  %v187_v58 = vld [vmem:[#allocation5 + $0x20] sm:$0xff]  ;;  %2280 = vmatpush1.msra.mxu0 %v191_v54 }
  0x76   :  { %v316_v57 = vld [vmem:[#allocation5 + $0x428] sm:$0xff]  ;;  %v315_v59 = vld [vmem:[#allocation5 + $0x420] sm:$0xff]  ;;  %2357 = vmatpush1.msra.mxu1 %v319_v55  ;;  %2281 = vmatprep.subr.mxu0 %v188_v56 }
  0x77   :  { %v184_v60 = vld [vmem:[#allocation5 + $0x8] sm:$0xff]  ;;  %2358 = vmatprep.subr.mxu1 %v316_v57  ;;  %v183_v62 = vld [vmem:[#allocation5] sm:$0xff]  ;;  %2282 = vmatpush1.msra.mxu0 %v187_v58 }
  0x78   :  { %v312_v61 = vld [vmem:[#allocation5 + $0x408] sm:$0xff]  ;;  %v311_v63 = vld [vmem:[#allocation5 + $0x400] sm:$0xff]  ;;  %2359 = vmatpush1.msra.mxu1 %v315_v59  ;;  %2283 = vmatprep.subr.mxu0 %v184_v60 }
  0x79   :  { %v308_v0 = vld [vmem:[#allocation5 + $0x3e8] sm:$0xff]  ;;  %2360 = vmatprep.subr.mxu1 %v312_v61  ;;  %v307_v2 = vld [vmem:[#allocation5 + $0x3e0] sm:$0xff]  ;;  %2284 = vmatpush1.msra.mxu0 %v183_v62 }
  0x7a   :  { %v436_v1 = vld [vmem:[#allocation5 + $0x7e8] sm:$0xff]  ;;  %v435_v3 = vld [vmem:[#allocation5 + $0x7e0] sm:$0xff]  ;;  %2361 = vmatpush1.msra.mxu1 %v311_v63  ;;  %2285 = vmatprep.subr.mxu0 %v308_v0 }
  0x7b   :  { %v304_v4 = vld [vmem:[#allocation5 + $0x3c8] sm:$0xff]  ;;  %2362 = vmatprep.subr.mxu1 %v436_v1  ;;  %v303_v6 = vld [vmem:[#allocation5 + $0x3c0] sm:$0xff]  ;;  %2286 = vmatpush2.msra.mxu0 %v307_v2  ;;  %v122_v2 = vld [vmem:[#allocation2 + $0x18] sm:$0xff] }
  0x7c   :  { %v432_v5 = vld [vmem:[#allocation5 + $0x7c8] sm:$0xff]  ;;  %v431_v7 = vld [vmem:[#allocation5 + $0x7c0] sm:$0xff]  ;;  %2363 = vmatpush2.msra.mxu1 %v435_v3  ;;  %2287 = vmatprep.subr.mxu0 %v304_v4 }
  0x7d   :  { %v300_v8 = vld [vmem:[#allocation5 + $0x3a8] sm:$0xff]  ;;  %2364 = vmatprep.subr.mxu1 %v432_v5  ;;  %v299_v10 = vld [vmem:[#allocation5 + $0x3a0] sm:$0xff]  ;;  %2288 = vmatpush2.msra.mxu0 %v303_v6  ;;  %v121_v5 = vld [vmem:[#allocation2 + $0x10] sm:$0xff] }
  0x7e   :  { %v428_v9 = vld [vmem:[#allocation5 + $0x7a8] sm:$0xff]  ;;  %v427_v11 = vld [vmem:[#allocation5 + $0x7a0] sm:$0xff]  ;;  %2365 = vmatpush2.msra.mxu1 %v431_v7  ;;  %2289 = vmatprep.subr.mxu0 %v300_v8 }
  0x7f   :  { %v296_v12 = vld [vmem:[#allocation5 + $0x388] sm:$0xff]  ;;  %2366 = vmatprep.subr.mxu1 %v428_v9  ;;  %v295_v14 = vld [vmem:[#allocation5 + $0x380] sm:$0xff]  ;;  %2290 = vmatpush2.msra.mxu0 %v299_v10 }
  0x80   :  { %v424_v13 = vld [vmem:[#allocation5 + $0x788] sm:$0xff]  ;;  %v423_v15 = vld [vmem:[#allocation5 + $0x780] sm:$0xff]  ;;  %2367 = vmatpush2.msra.mxu1 %v427_v11  ;;  %2291 = vmatprep.subr.mxu0 %v296_v12 }
  0x81   :  { %v292_v16 = vld [vmem:[#allocation5 + $0x368] sm:$0xff]  ;;  %2368 = vmatprep.subr.mxu1 %v424_v13  ;;  %v291_v18 = vld [vmem:[#allocation5 + $0x360] sm:$0xff]  ;;  %2292 = vmatpush2.msra.mxu0 %v295_v14 }
  0x82   :  { %v420_v17 = vld [vmem:[#allocation5 + $0x768] sm:$0xff]  ;;  %v419_v19 = vld [vmem:[#allocation5 + $0x760] sm:$0xff]  ;;  %2369 = vmatpush2.msra.mxu1 %v423_v15  ;;  %2293 = vmatprep.subr.mxu0 %v292_v16 }
  0x83   :  { %v288_v20 = vld [vmem:[#allocation5 + $0x348] sm:$0xff]  ;;  %2370 = vmatprep.subr.mxu1 %v420_v17  ;;  %v287_v22 = vld [vmem:[#allocation5 + $0x340] sm:$0xff]  ;;  %2294 = vmatpush2.msra.mxu0 %v291_v18 }
  0x84   :  { %v416_v21 = vld [vmem:[#allocation5 + $0x748] sm:$0xff]  ;;  %v415_v23 = vld [vmem:[#allocation5 + $0x740] sm:$0xff]  ;;  %2371 = vmatpush2.msra.mxu1 %v419_v19  ;;  %2295 = vmatprep.subr.mxu0 %v288_v20 }
  0x85   :  { %v284_v24 = vld [vmem:[#allocation5 + $0x328] sm:$0xff]  ;;  %2372 = vmatprep.subr.mxu1 %v416_v21  ;;  %v283_v26 = vld [vmem:[#allocation5 + $0x320] sm:$0xff]  ;;  %2296 = vmatpush2.msra.mxu0 %v287_v22 }
  0x86   :  { %v412_v25 = vld [vmem:[#allocation5 + $0x728] sm:$0xff]  ;;  %v411_v27 = vld [vmem:[#allocation5 + $0x720] sm:$0xff]  ;;  %2373 = vmatpush2.msra.mxu1 %v415_v23  ;;  %2297 = vmatprep.subr.mxu0 %v284_v24 }
  0x87   :  { %v280_v28 = vld [vmem:[#allocation5 + $0x308] sm:$0xff]  ;;  %2374 = vmatprep.subr.mxu1 %v412_v25  ;;  %v279_v30 = vld [vmem:[#allocation5 + $0x300] sm:$0xff]  ;;  %2298 = vmatpush2.msra.mxu0 %v283_v26 }
  0x88   :  { %v408_v29 = vld [vmem:[#allocation5 + $0x708] sm:$0xff]  ;;  %v407_v31 = vld [vmem:[#allocation5 + $0x700] sm:$0xff]  ;;  %2375 = vmatpush2.msra.mxu1 %v411_v27  ;;  %2299 = vmatprep.subr.mxu0 %v280_v28 }
  0x89   :  { %v276_v32 = vld [vmem:[#allocation5 + $0x2e8] sm:$0xff]  ;;  %2376 = vmatprep.subr.mxu1 %v408_v29  ;;  %v275_v34 = vld [vmem:[#allocation5 + $0x2e0] sm:$0xff]  ;;  %2300 = vmatpush2.msra.mxu0 %v279_v30 }
  0x8a   :  { %v404_v33 = vld [vmem:[#allocation5 + $0x6e8] sm:$0xff]  ;;  %v403_v35 = vld [vmem:[#allocation5 + $0x6e0] sm:$0xff]  ;;  %2377 = vmatpush2.msra.mxu1 %v407_v31  ;;  %2301 = vmatprep.subr.mxu0 %v276_v32 }
  0x8b   :  { %v272_v36 = vld [vmem:[#allocation5 + $0x2c8] sm:$0xff]  ;;  %2378 = vmatprep.subr.mxu1 %v404_v33  ;;  %v271_v38 = vld [vmem:[#allocation5 + $0x2c0] sm:$0xff]  ;;  %2302 = vmatpush2.msra.mxu0 %v275_v34 }
  0x8c   :  { %v400_v37 = vld [vmem:[#allocation5 + $0x6c8] sm:$0xff]  ;;  %v399_v39 = vld [vmem:[#allocation5 + $0x6c0] sm:$0xff]  ;;  %2379 = vmatpush2.msra.mxu1 %v403_v35  ;;  %2303 = vmatprep.subr.mxu0 %v272_v36 }
  0x8d   :  { %v268_v40 = vld [vmem:[#allocation5 + $0x2a8] sm:$0xff]  ;;  %2380 = vmatprep.subr.mxu1 %v400_v37  ;;  %v267_v42 = vld [vmem:[#allocation5 + $0x2a0] sm:$0xff]  ;;  %2304 = vmatpush2.msra.mxu0 %v271_v38 }
  0x8e   :  { %v396_v41 = vld [vmem:[#allocation5 + $0x6a8] sm:$0xff]  ;;  %v395_v43 = vld [vmem:[#allocation5 + $0x6a0] sm:$0xff]  ;;  %2381 = vmatpush2.msra.mxu1 %v399_v39  ;;  %2305 = vmatprep.subr.mxu0 %v268_v40 }
  0x8f   :  { %v264_v44 = vld [vmem:[#allocation5 + $0x288] sm:$0xff]  ;;  %2382 = vmatprep.subr.mxu1 %v396_v41  ;;  %v263_v46 = vld [vmem:[#allocation5 + $0x280] sm:$0xff]  ;;  %2306 = vmatpush2.msra.mxu0 %v267_v42 }
  0x90   :  { %v392_v45 = vld [vmem:[#allocation5 + $0x688] sm:$0xff]  ;;  %v391_v47 = vld [vmem:[#allocation5 + $0x680] sm:$0xff]  ;;  %2383 = vmatpush2.msra.mxu1 %v395_v43  ;;  %2307 = vmatprep.subr.mxu0 %v264_v44 }
  0x91   :  { %v260_v48 = vld [vmem:[#allocation5 + $0x268] sm:$0xff]  ;;  %2384 = vmatprep.subr.mxu1 %v392_v45  ;;  %v259_v50 = vld [vmem:[#allocation5 + $0x260] sm:$0xff]  ;;  %2308 = vmatpush2.msra.mxu0 %v263_v46 }
  0x92   :  { %v388_v49 = vld [vmem:[#allocation5 + $0x668] sm:$0xff]  ;;  %v387_v51 = vld [vmem:[#allocation5 + $0x660] sm:$0xff]  ;;  %2385 = vmatpush2.msra.mxu1 %v391_v47  ;;  %2309 = vmatprep.subr.mxu0 %v260_v48 }
  0x93   :  { %v256_v52 = vld [vmem:[#allocation5 + $0x248] sm:$0xff]  ;;  %2386 = vmatprep.subr.mxu1 %v388_v49  ;;  %v255_v54 = vld [vmem:[#allocation5 + $0x240] sm:$0xff]  ;;  %2310 = vmatpush2.msra.mxu0 %v259_v50 }
  0x94   :  { %v384_v53 = vld [vmem:[#allocation5 + $0x648] sm:$0xff]  ;;  %v383_v55 = vld [vmem:[#allocation5 + $0x640] sm:$0xff]  ;;  %2387 = vmatpush2.msra.mxu1 %v387_v51  ;;  %2311 = vmatprep.subr.mxu0 %v256_v52 }
  0x95   :  { %v252_v56 = vld [vmem:[#allocation5 + $0x228] sm:$0xff]  ;;  %2388 = vmatprep.subr.mxu1 %v384_v53  ;;  %v251_v58 = vld [vmem:[#allocation5 + $0x220] sm:$0xff]  ;;  %2312 = vmatpush2.msra.mxu0 %v255_v54 }
  0x96   :  { %v380_v57 = vld [vmem:[#allocation5 + $0x628] sm:$0xff]  ;;  %v379_v59 = vld [vmem:[#allocation5 + $0x620] sm:$0xff]  ;;  %2389 = vmatpush2.msra.mxu1 %v383_v55  ;;  %2313 = vmatprep.subr.mxu0 %v252_v56 }
  0x97   :  { %v248_v60 = vld [vmem:[#allocation5 + $0x208] sm:$0xff]  ;;  %2390 = vmatprep.subr.mxu1 %v380_v57  ;;  %v247_v62 = vld [vmem:[#allocation5 + $0x200] sm:$0xff]  ;;  %2314 = vmatpush2.msra.mxu0 %v251_v58 }
  0x98   :  { %v376_v61 = vld [vmem:[#allocation5 + $0x608] sm:$0xff]  ;;  %2391 = vmatpush2.msra.mxu1 %v379_v59  ;;  %v375_v0 = vld [vmem:[#allocation5 + $0x600] sm:$0xff]  ;;  %2315 = vmatprep.subr.mxu0 %v248_v60 }
  0x99   :  { %v120_v63 = vld [vmem:[#allocation2 + $0x8] sm:$0xff]  ;;  %v119_v1 = vld [vmem:[#allocation2] sm:$0xff]  ;;  %2392 = vmatprep.subr.mxu1 %v376_v61  ;;  %2316 = vmatpush2.msra.mxu0 %v247_v62 }
  0x9a   :  { %v500_v3 = vld [vmem:[#allocation5 + $0x9e8] sm:$0xff]  ;;  %2317 = vmatprep.mubr.f32.mxu0 %v120_v63  ;;  %2393 = vmatpush2.msra.mxu1 %v375_v0  ;;  %v499_v6 = vld [vmem:[#allocation5 + $0x9e0] sm:$0xff] }
  0x9b   :  { %v628_v4 = vld [vmem:[#allocation5 + $0xde8] sm:$0xff]  ;;  %2318 = vmatmul.mubr.f32.vlgmr.msra.gmra.mxu0 %v119_v1  ;;  %v627_v7 = vld [vmem:[#allocation5 + $0xde0] sm:$0xff]  ;;  %2394 = vmatprep.mubr.f32.mxu1 %v122_v2 }
  0x9c   :  { %2407 = vmatprep.subr.mxu0 %v500_v3  ;;  %v496_v8 = vld [vmem:[#allocation5 + $0x9c8] sm:$0xff]  ;;  %2484 = vmatprep.subr.mxu1 %v628_v4  ;;  %v495_v10 = vld [vmem:[#allocation5 + $0x9c0] sm:$0xff] }
  0x9d   :  { %v624_v9 = vld [vmem:[#allocation5 + $0xdc8] sm:$0xff]  ;;  %2395 = vmatmul.mubr.f32.vlgmr.msra.gmra.mxu1 %v121_v5  ;;  %v623_v11 = vld [vmem:[#allocation5 + $0xdc0] sm:$0xff]  ;;  %2408 = vmatpush1.msra.mxu0 %v499_v6 }
  0x9e   :  { %2485 = vmatpush1.msra.mxu1 %v627_v7  ;;  %v492_v12 = vld [vmem:[#allocation5 + $0x9a8] sm:$0xff]  ;;  %2409 = vmatprep.subr.mxu0 %v496_v8  ;;  %v491_v14 = vld [vmem:[#allocation5 + $0x9a0] sm:$0xff] }
  0x9f   :  { %v620_v13 = vld [vmem:[#allocation5 + $0xda8] sm:$0xff]  ;;  %2486 = vmatprep.subr.mxu1 %v624_v9  ;;  %v619_v15 = vld [vmem:[#allocation5 + $0xda0] sm:$0xff]  ;;  %2410 = vmatpush1.msra.mxu0 %v495_v10 }
  0xa0   :  { %2487 = vmatpush1.msra.mxu1 %v623_v11  ;;  %v488_v16 = vld [vmem:[#allocation5 + $0x988] sm:$0xff]  ;;  %2411 = vmatprep.subr.mxu0 %v492_v12  ;;  %v487_v18 = vld [vmem:[#allocation5 + $0x980] sm:$0xff] }
  0xa1   :  { %v616_v17 = vld [vmem:[#allocation5 + $0xd88] sm:$0xff]  ;;  %2488 = vmatprep.subr.mxu1 %v620_v13  ;;  %v615_v19 = vld [vmem:[#allocation5 + $0xd80] sm:$0xff]  ;;  %2412 = vmatpush1.msra.mxu0 %v491_v14 }
  0xa2   :  { %2489 = vmatpush1.msra.mxu1 %v619_v15  ;;  %v484_v20 = vld [vmem:[#allocation5 + $0x968] sm:$0xff]  ;;  %2413 = vmatprep.subr.mxu0 %v488_v16  ;;  %v483_v22 = vld [vmem:[#allocation5 + $0x960] sm:$0xff] }
  0xa3   :  { %v612_v21 = vld [vmem:[#allocation5 + $0xd68] sm:$0xff]  ;;  %2490 = vmatprep.subr.mxu1 %v616_v17  ;;  %v611_v23 = vld [vmem:[#allocation5 + $0xd60] sm:$0xff]  ;;  %2414 = vmatpush1.msra.mxu0 %v487_v18 }
  0xa4   :  { %2491 = vmatpush1.msra.mxu1 %v615_v19  ;;  %v480_v24 = vld [vmem:[#allocation5 + $0x948] sm:$0xff]  ;;  %2415 = vmatprep.subr.mxu0 %v484_v20  ;;  %v479_v26 = vld [vmem:[#allocation5 + $0x940] sm:$0xff] }
  0xa5   :  { %v608_v25 = vld [vmem:[#allocation5 + $0xd48] sm:$0xff]  ;;  %2492 = vmatprep.subr.mxu1 %v612_v21  ;;  %v607_v27 = vld [vmem:[#allocation5 + $0xd40] sm:$0xff]  ;;  %2416 = vmatpush1.msra.mxu0 %v483_v22 }
  0xa6   :  { %2493 = vmatpush1.msra.mxu1 %v611_v23  ;;  %v476_v28 = vld [vmem:[#allocation5 + $0x928] sm:$0xff]  ;;  %2417 = vmatprep.subr.mxu0 %v480_v24  ;;  %v475_v30 = vld [vmem:[#allocation5 + $0x920] sm:$0xff] }
  0xa7   :  { %v604_v29 = vld [vmem:[#allocation5 + $0xd28] sm:$0xff]  ;;  %2494 = vmatprep.subr.mxu1 %v608_v25  ;;  %v603_v31 = vld [vmem:[#allocation5 + $0xd20] sm:$0xff]  ;;  %2418 = vmatpush1.msra.mxu0 %v479_v26 }
  0xa8   :  { %2495 = vmatpush1.msra.mxu1 %v607_v27  ;;  %v472_v32 = vld [vmem:[#allocation5 + $0x908] sm:$0xff]  ;;  %2419 = vmatprep.subr.mxu0 %v476_v28  ;;  %v471_v34 = vld [vmem:[#allocation5 + $0x900] sm:$0xff] }
  0xa9   :  { %v600_v33 = vld [vmem:[#allocation5 + $0xd08] sm:$0xff]  ;;  %2496 = vmatprep.subr.mxu1 %v604_v29  ;;  %v599_v35 = vld [vmem:[#allocation5 + $0xd00] sm:$0xff]  ;;  %2420 = vmatpush1.msra.mxu0 %v475_v30 }
  0xaa   :  { %2497 = vmatpush1.msra.mxu1 %v603_v31  ;;  %v468_v36 = vld [vmem:[#allocation5 + $0x8e8] sm:$0xff]  ;;  %2421 = vmatprep.subr.mxu0 %v472_v32  ;;  %v467_v38 = vld [vmem:[#allocation5 + $0x8e0] sm:$0xff] }
  0xab   :  { %v596_v37 = vld [vmem:[#allocation5 + $0xce8] sm:$0xff]  ;;  %2498 = vmatprep.subr.mxu1 %v600_v33  ;;  %v595_v39 = vld [vmem:[#allocation5 + $0xce0] sm:$0xff]  ;;  %2422 = vmatpush1.msra.mxu0 %v471_v34 }
  0xac   :  { %2499 = vmatpush1.msra.mxu1 %v599_v35  ;;  %v464_v40 = vld [vmem:[#allocation5 + $0x8c8] sm:$0xff]  ;;  %2423 = vmatprep.subr.mxu0 %v468_v36  ;;  %v463_v42 = vld [vmem:[#allocation5 + $0x8c0] sm:$0xff] }
  0xad   :  { %v592_v41 = vld [vmem:[#allocation5 + $0xcc8] sm:$0xff]  ;;  %2500 = vmatprep.subr.mxu1 %v596_v37  ;;  %v591_v43 = vld [vmem:[#allocation5 + $0xcc0] sm:$0xff]  ;;  %2424 = vmatpush1.msra.mxu0 %v467_v38 }
  0xae   :  { %2501 = vmatpush1.msra.mxu1 %v595_v39  ;;  %v460_v44 = vld [vmem:[#allocation5 + $0x8a8] sm:$0xff]  ;;  %2425 = vmatprep.subr.mxu0 %v464_v40  ;;  %v459_v46 = vld [vmem:[#allocation5 + $0x8a0] sm:$0xff] }
  0xaf   :  { %v588_v45 = vld [vmem:[#allocation5 + $0xca8] sm:$0xff]  ;;  %2502 = vmatprep.subr.mxu1 %v592_v41  ;;  %v587_v47 = vld [vmem:[#allocation5 + $0xca0] sm:$0xff]  ;;  %2426 = vmatpush1.msra.mxu0 %v463_v42 }
  0xb0   :  { %2503 = vmatpush1.msra.mxu1 %v591_v43  ;;  %v456_v48 = vld [vmem:[#allocation5 + $0x888] sm:$0xff]  ;;  %2427 = vmatprep.subr.mxu0 %v460_v44  ;;  %v455_v50 = vld [vmem:[#allocation5 + $0x880] sm:$0xff] }
  0xb1   :  { %v584_v49 = vld [vmem:[#allocation5 + $0xc88] sm:$0xff]  ;;  %2504 = vmatprep.subr.mxu1 %v588_v45  ;;  %v583_v51 = vld [vmem:[#allocation5 + $0xc80] sm:$0xff]  ;;  %2428 = vmatpush1.msra.mxu0 %v459_v46 }
  0xb2   :  { %2505 = vmatpush1.msra.mxu1 %v587_v47  ;;  %v452_v52 = vld [vmem:[#allocation5 + $0x868] sm:$0xff]  ;;  %2429 = vmatprep.subr.mxu0 %v456_v48  ;;  %v451_v54 = vld [vmem:[#allocation5 + $0x860] sm:$0xff] }
  0xb3   :  { %v580_v53 = vld [vmem:[#allocation5 + $0xc68] sm:$0xff]  ;;  %2506 = vmatprep.subr.mxu1 %v584_v49  ;;  %v579_v55 = vld [vmem:[#allocation5 + $0xc60] sm:$0xff]  ;;  %2430 = vmatpush1.msra.mxu0 %v455_v50 }
  0xb4   :  { %2507 = vmatpush1.msra.mxu1 %v583_v51  ;;  %v448_v56 = vld [vmem:[#allocation5 + $0x848] sm:$0xff]  ;;  %2431 = vmatprep.subr.mxu0 %v452_v52  ;;  %v447_v58 = vld [vmem:[#allocation5 + $0x840] sm:$0xff] }
  0xb5   :  { %v576_v57 = vld [vmem:[#allocation5 + $0xc48] sm:$0xff]  ;;  %2508 = vmatprep.subr.mxu1 %v580_v53  ;;  %v575_v59 = vld [vmem:[#allocation5 + $0xc40] sm:$0xff]  ;;  %2432 = vmatpush1.msra.mxu0 %v451_v54 }
  0xb6   :  { %2509 = vmatpush1.msra.mxu1 %v579_v55  ;;  %v444_v60 = vld [vmem:[#allocation5 + $0x828] sm:$0xff]  ;;  %2433 = vmatprep.subr.mxu0 %v448_v56  ;;  %v443_v62 = vld [vmem:[#allocation5 + $0x820] sm:$0xff] }
  0xb7   :  { %v572_v61 = vld [vmem:[#allocation5 + $0xc28] sm:$0xff]  ;;  %2510 = vmatprep.subr.mxu1 %v576_v57  ;;  %v571_v63 = vld [vmem:[#allocation5 + $0xc20] sm:$0xff]  ;;  %2434 = vmatpush1.msra.mxu0 %v447_v58 }
  0xb8   :  { %2511 = vmatpush1.msra.mxu1 %v575_v59  ;;  %v440_v0 = vld [vmem:[#allocation5 + $0x808] sm:$0xff]  ;;  %2435 = vmatprep.subr.mxu0 %v444_v60  ;;  %v439_v2 = vld [vmem:[#allocation5 + $0x800] sm:$0xff] }
  0xb9   :  { %v568_v1 = vld [vmem:[#allocation5 + $0xc08] sm:$0xff]  ;;  %2512 = vmatprep.subr.mxu1 %v572_v61  ;;  %v567_v3 = vld [vmem:[#allocation5 + $0xc00] sm:$0xff]  ;;  %2436 = vmatpush1.msra.mxu0 %v443_v62  ;;  %v154_v62 = vld [vmem:[#allocation2 + $0x118] sm:$0xff] }
  0xba   :  { %2513 = vmatpush1.msra.mxu1 %v571_v63  ;;  %v564_v4 = vld [vmem:[#allocation5 + $0xbe8] sm:$0xff]  ;;  %2437 = vmatprep.subr.mxu0 %v440_v0  ;;  %v563_v6 = vld [vmem:[#allocation5 + $0xbe0] sm:$0xff] }
  0xbb   :  { %v692_v5 = vld [vmem:[#allocation5 + $0xfe8] sm:$0xff]  ;;  %2514 = vmatprep.subr.mxu1 %v568_v1  ;;  %v691_v7 = vld [vmem:[#allocation5 + $0xfe0] sm:$0xff]  ;;  %2438 = vmatpush1.msra.mxu0 %v439_v2  ;;  %v153_v1 = vld [vmem:[#allocation2 + $0x110] sm:$0xff] }
  0xbc   :  { %2515 = vmatpush1.msra.mxu1 %v567_v3  ;;  %v560_v8 = vld [vmem:[#allocation5 + $0xbc8] sm:$0xff]  ;;  %2439 = vmatprep.subr.mxu0 %v564_v4  ;;  %v559_v10 = vld [vmem:[#allocation5 + $0xbc0] sm:$0xff] }
  0xbd   :  { %v688_v9 = vld [vmem:[#allocation5 + $0xfc8] sm:$0xff]  ;;  %2516 = vmatprep.subr.mxu1 %v692_v5  ;;  %v687_v11 = vld [vmem:[#allocation5 + $0xfc0] sm:$0xff]  ;;  %2440 = vmatpush2.msra.mxu0 %v563_v6 }
  0xbe   :  { %2517 = vmatpush2.msra.mxu1 %v691_v7  ;;  %v556_v12 = vld [vmem:[#allocation5 + $0xba8] sm:$0xff]  ;;  %2441 = vmatprep.subr.mxu0 %v560_v8  ;;  %v555_v14 = vld [vmem:[#allocation5 + $0xba0] sm:$0xff] }
  0xbf   :  { %v684_v13 = vld [vmem:[#allocation5 + $0xfa8] sm:$0xff]  ;;  %2518 = vmatprep.subr.mxu1 %v688_v9  ;;  %v683_v15 = vld [vmem:[#allocation5 + $0xfa0] sm:$0xff]  ;;  %2442 = vmatpush2.msra.mxu0 %v559_v10  ;;  %v126_v10 = vld [vmem:[#allocation2 + $0x38] sm:$0xff] }
  0xc0   :  { %2519 = vmatpush2.msra.mxu1 %v687_v11  ;;  %v552_v16 = vld [vmem:[#allocation5 + $0xb88] sm:$0xff]  ;;  %2443 = vmatprep.subr.mxu0 %v556_v12  ;;  %v551_v18 = vld [vmem:[#allocation5 + $0xb80] sm:$0xff] }
  0xc1   :  { %v680_v17 = vld [vmem:[#allocation5 + $0xf88] sm:$0xff]  ;;  %2520 = vmatprep.subr.mxu1 %v684_v13  ;;  %v679_v19 = vld [vmem:[#allocation5 + $0xf80] sm:$0xff]  ;;  %2444 = vmatpush2.msra.mxu0 %v555_v14  ;;  %v125_v13 = vld [vmem:[#allocation2 + $0x30] sm:$0xff] }
  0xc2   :  { %2521 = vmatpush2.msra.mxu1 %v683_v15  ;;  %v548_v20 = vld [vmem:[#allocation5 + $0xb68] sm:$0xff]  ;;  %2445 = vmatprep.subr.mxu0 %v552_v16  ;;  %v547_v22 = vld [vmem:[#allocation5 + $0xb60] sm:$0xff] }
  0xc3   :  { %v676_v21 = vld [vmem:[#allocation5 + $0xf68] sm:$0xff]  ;;  %2522 = vmatprep.subr.mxu1 %v680_v17  ;;  %v675_v23 = vld [vmem:[#allocation5 + $0xf60] sm:$0xff]  ;;  %2446 = vmatpush2.msra.mxu0 %v551_v18 }
  0xc4   :  { %2523 = vmatpush2.msra.mxu1 %v679_v19  ;;  %v544_v24 = vld [vmem:[#allocation5 + $0xb48] sm:$0xff]  ;;  %2447 = vmatprep.subr.mxu0 %v548_v20  ;;  %v543_v26 = vld [vmem:[#allocation5 + $0xb40] sm:$0xff] }
  0xc5   :  { %v672_v25 = vld [vmem:[#allocation5 + $0xf48] sm:$0xff]  ;;  %2524 = vmatprep.subr.mxu1 %v676_v21  ;;  %v671_v27 = vld [vmem:[#allocation5 + $0xf40] sm:$0xff]  ;;  %2448 = vmatpush2.msra.mxu0 %v547_v22 }
  0xc6   :  { %2525 = vmatpush2.msra.mxu1 %v675_v23  ;;  %v540_v28 = vld [vmem:[#allocation5 + $0xb28] sm:$0xff]  ;;  %2449 = vmatprep.subr.mxu0 %v544_v24  ;;  %v539_v30 = vld [vmem:[#allocation5 + $0xb20] sm:$0xff]  ;;  %v158_v24 = vld [vmem:[#allocation2 + $0x138] sm:$0xff] }
  0xc7   :  { %v668_v29 = vld [vmem:[#allocation5 + $0xf28] sm:$0xff]  ;;  %2526 = vmatprep.subr.mxu1 %v672_v25  ;;  %v667_v31 = vld [vmem:[#allocation5 + $0xf20] sm:$0xff]  ;;  %2450 = vmatpush2.msra.mxu0 %v543_v26 }
  0xc8   :  { %2527 = vmatpush2.msra.mxu1 %v671_v27  ;;  %v536_v32 = vld [vmem:[#allocation5 + $0xb08] sm:$0xff]  ;;  %2451 = vmatprep.subr.mxu0 %v540_v28  ;;  %v535_v34 = vld [vmem:[#allocation5 + $0xb00] sm:$0xff]  ;;  %v157_v28 = vld [vmem:[#allocation2 + $0x130] sm:$0xff] }
  0xc9   :  { %v664_v33 = vld [vmem:[#allocation5 + $0xf08] sm:$0xff]  ;;  %2528 = vmatprep.subr.mxu1 %v668_v29  ;;  %v663_v35 = vld [vmem:[#allocation5 + $0xf00] sm:$0xff]  ;;  %2452 = vmatpush2.msra.mxu0 %v539_v30 }
  0xca   :  { %2529 = vmatpush2.msra.mxu1 %v667_v31  ;;  %v532_v36 = vld [vmem:[#allocation5 + $0xae8] sm:$0xff]  ;;  %2453 = vmatprep.subr.mxu0 %v536_v32  ;;  %v531_v38 = vld [vmem:[#allocation5 + $0xae0] sm:$0xff] }
  0xcb   :  { %v660_v37 = vld [vmem:[#allocation5 + $0xee8] sm:$0xff]  ;;  %2530 = vmatprep.subr.mxu1 %v664_v33  ;;  %v659_v39 = vld [vmem:[#allocation5 + $0xee0] sm:$0xff]  ;;  %2454 = vmatpush2.msra.mxu0 %v535_v34 }
  0xcc   :  { %2531 = vmatpush2.msra.mxu1 %v663_v35  ;;  %v528_v40 = vld [vmem:[#allocation5 + $0xac8] sm:$0xff]  ;;  %2455 = vmatprep.subr.mxu0 %v532_v36  ;;  %v527_v42 = vld [vmem:[#allocation5 + $0xac0] sm:$0xff] }
  0xcd   :  { %v656_v41 = vld [vmem:[#allocation5 + $0xec8] sm:$0xff]  ;;  %2532 = vmatprep.subr.mxu1 %v660_v37  ;;  %v655_v43 = vld [vmem:[#allocation5 + $0xec0] sm:$0xff]  ;;  %2456 = vmatpush2.msra.mxu0 %v531_v38 }
  0xce   :  { %2533 = vmatpush2.msra.mxu1 %v659_v39  ;;  %v524_v44 = vld [vmem:[#allocation5 + $0xaa8] sm:$0xff]  ;;  %2457 = vmatprep.subr.mxu0 %v528_v40  ;;  %v523_v46 = vld [vmem:[#allocation5 + $0xaa0] sm:$0xff] }
  0xcf   :  { %v652_v45 = vld [vmem:[#allocation5 + $0xea8] sm:$0xff]  ;;  %2534 = vmatprep.subr.mxu1 %v656_v41  ;;  %v651_v47 = vld [vmem:[#allocation5 + $0xea0] sm:$0xff]  ;;  %2458 = vmatpush2.msra.mxu0 %v527_v42 }
  0xd0   :  { %2535 = vmatpush2.msra.mxu1 %v655_v43  ;;  %v520_v48 = vld [vmem:[#allocation5 + $0xa88] sm:$0xff]  ;;  %2459 = vmatprep.subr.mxu0 %v524_v44  ;;  %v519_v50 = vld [vmem:[#allocation5 + $0xa80] sm:$0xff] }
  0xd1   :  { %v648_v49 = vld [vmem:[#allocation5 + $0xe88] sm:$0xff]  ;;  %2536 = vmatprep.subr.mxu1 %v652_v45  ;;  %v647_v51 = vld [vmem:[#allocation5 + $0xe80] sm:$0xff]  ;;  %2460 = vmatpush2.msra.mxu0 %v523_v46 }
  0xd2   :  { %2537 = vmatpush2.msra.mxu1 %v651_v47  ;;  %v516_v52 = vld [vmem:[#allocation5 + $0xa68] sm:$0xff]  ;;  %2461 = vmatprep.subr.mxu0 %v520_v48  ;;  %v515_v54 = vld [vmem:[#allocation5 + $0xa60] sm:$0xff] }
  0xd3   :  { %v644_v53 = vld [vmem:[#allocation5 + $0xe68] sm:$0xff]  ;;  %2538 = vmatprep.subr.mxu1 %v648_v49  ;;  %v643_v55 = vld [vmem:[#allocation5 + $0xe60] sm:$0xff]  ;;  %2462 = vmatpush2.msra.mxu0 %v519_v50 }
  0xd4   :  { %2539 = vmatpush2.msra.mxu1 %v647_v51  ;;  %v152_v56 = vld [vmem:[#allocation2 + $0x108] sm:$0xff]  ;;  %2463 = vmatprep.subr.mxu0 %v516_v52  ;;  %v151_v59 = vld [vmem:[#allocation2 + $0x100] sm:$0xff] }
  0xd5   :  { %v512_v57 = vld [vmem:[#allocation5 + $0xa48] sm:$0xff]  ;;  %2540 = vmatprep.subr.mxu1 %v644_v53  ;;  %2464 = vmatpush2.msra.mxu0 %v515_v54  ;;  %v511_v60 = vld [vmem:[#allocation5 + $0xa40] sm:$0xff] }
  0xd6   :  { %v640_v58 = vld [vmem:[#allocation5 + $0xe48] sm:$0xff]  ;;  %2541 = vmatpush2.msra.mxu1 %v643_v55  ;;  %v639_v61 = vld [vmem:[#allocation5 + $0xe40] sm:$0xff]  ;;  %2323 = vmatprep.mubr.f32.mxu0 %v152_v56 }
  0xd7   :  { %2465 = vmatprep.subr.mxu0 %v512_v57  ;;  %v508_v63 = vld [vmem:[#allocation5 + $0xa28] sm:$0xff]  ;;  %2542 = vmatprep.subr.mxu1 %v640_v58  ;;  %v507_v2 = vld [vmem:[#allocation5 + $0xa20] sm:$0xff] }
  0xd8   :  { %2324 = vmatmul.mubr.f32.gmra.mxu0 %v151_v59  ;;  %v636_v0 = vld [vmem:[#allocation5 + $0xe28] sm:$0xff]  ;;  %2543 = vmatpush2.msra.mxu1 %v639_v61  ;;  %v635_v3 = vld [vmem:[#allocation5 + $0xe20] sm:$0xff] }
  0xd9   :  { %2466 = vmatpush2.msra.mxu0 %v511_v60  ;;  %2400 = vmatprep.mubr.f32.mxu1 %v154_v62  ;;  %v504_v4 = vld [vmem:[#allocation5 + $0xa08] sm:$0xff]  ;;  %v503_v6 = vld [vmem:[#allocation5 + $0xa00] sm:$0xff] }
  0xda   :  { %2467 = vmatprep.subr.mxu0 %v508_v63  ;;  %v632_v5 = vld [vmem:[#allocation5 + $0xe08] sm:$0xff]  ;;  %2544 = vmatprep.subr.mxu1 %v636_v0  ;;  %v631_v8 = vld [vmem:[#allocation5 + $0xe00] sm:$0xff] }
  0xdb   :  { %2401 = vmatmul.mubr.f32.gmra.mxu1 %v153_v1  ;;  %v124_v7 = vld [vmem:[#allocation2 + $0x28] sm:$0xff]  ;;  %2468 = vmatpush2.msra.mxu0 %v507_v2  ;;  %v123_v9 = vld [vmem:[#allocation2 + $0x20] sm:$0xff] }
  0xdc   :  { %2545 = vmatpush2.msra.mxu1 %v635_v3  ;;  %2469 = vmatprep.subr.mxu0 %v504_v4  ;;  %v756_v11 = vld [vmem:[#allocation5 + $0x11e8] sm:$0xff]  ;;  %v755_v14 = vld [vmem:[#allocation5 + $0x11e0] sm:$0xff] }
  0xdd   :  { %2546 = vmatprep.subr.mxu1 %v632_v5  ;;  %2470 = vmatpush2.msra.mxu0 %v503_v6  ;;  %v884_v12 = vld [vmem:[#allocation5 + $0x15e8] sm:$0xff]  ;;  %v883_v15 = vld [vmem:[#allocation5 + $0x15e0] sm:$0xff] }
  0xde   :  { %2471 = vmatprep.mubr.f32.mxu0 %v124_v7  ;;  %2547 = vmatpush2.msra.mxu1 %v631_v8  ;;  %v752_v16 = vld [vmem:[#allocation5 + $0x11c8] sm:$0xff]  ;;  %v751_v19 = vld [vmem:[#allocation5 + $0x11c0] sm:$0xff] }
  0xdf   :  { %2472 = vmatmul.mubr.f32.vlgmr.msra.gmra.mxu0 %v123_v9  ;;  %2548 = vmatprep.mubr.f32.mxu1 %v126_v10  ;;  %v880_v17 = vld [vmem:[#allocation5 + $0x15c8] sm:$0xff]  ;;  %v879_v20 = vld [vmem:[#allocation5 + $0x15c0] sm:$0xff] }
  0xe0   :  { %2561 = vmatprep.subr.mxu0 %v756_v11  ;;  %2638 = vmatprep.subr.mxu1 %v884_v12  ;;  %v156_v18 = vld [vmem:[#allocation2 + $0x128] sm:$0xff]  ;;  %v155_v21 = vld [vmem:[#allocation2 + $0x120] sm:$0xff] }
  0xe1   :  { %2549 = vmatmul.mubr.f32.vlgmr.msra.gmra.mxu1 %v125_v13  ;;  %2562 = vmatpush1.msra.mxu0 %v755_v14  ;;  %v748_v22 = vld [vmem:[#allocation5 + $0x11a8] sm:$0xff]  ;;  %v747_v25 = vld [vmem:[#allocation5 + $0x11a0] sm:$0xff] }
  0xe2   :  { %2639 = vmatpush1.msra.mxu1 %v883_v15  ;;  %2563 = vmatprep.subr.mxu0 %v752_v16  ;;  %v876_v23 = vld [vmem:[#allocation5 + $0x15a8] sm:$0xff]  ;;  %v875_v26 = vld [vmem:[#allocation5 + $0x15a0] sm:$0xff] }
  0xe3   :  { %2640 = vmatprep.subr.mxu1 %v880_v17  ;;  %2477 = vmatprep.mubr.f32.mxu0 %v156_v18  ;;  %v744_v27 = vld [vmem:[#allocation5 + $0x1188] sm:$0xff]  ;;  %v743_v30 = vld [vmem:[#allocation5 + $0x1180] sm:$0xff] }
  0xe4   :  { %2564 = vmatpush1.msra.mxu0 %v751_v19  ;;  %2641 = vmatpush1.msra.mxu1 %v879_v20  ;;  %v872_v29 = vld [vmem:[#allocation5 + $0x1588] sm:$0xff]  ;;  %v871_v31 = vld [vmem:[#allocation5 + $0x1580] sm:$0xff] }
  0xe5   :  { %2478 = vmatmul.mubr.f32.gmra.mxu0 %v155_v21  ;;  %2565 = vmatprep.subr.mxu0 %v748_v22  ;;  %v740_v32 = vld [vmem:[#allocation5 + $0x1168] sm:$0xff]  ;;  %v739_v34 = vld [vmem:[#allocation5 + $0x1160] sm:$0xff] }
  0xe6   :  { %2642 = vmatprep.subr.mxu1 %v876_v23  ;;  %2554 = vmatprep.mubr.f32.mxu1 %v158_v24  ;;  %v868_v33 = vld [vmem:[#allocation5 + $0x1568] sm:$0xff]  ;;  %v867_v35 = vld [vmem:[#allocation5 + $0x1560] sm:$0xff] }
  0xe7   :  { %2566 = vmatpush1.msra.mxu0 %v747_v25  ;;  %2643 = vmatpush1.msra.mxu1 %v875_v26  ;;  %v736_v36 = vld [vmem:[#allocation5 + $0x1148] sm:$0xff]  ;;  %v735_v38 = vld [vmem:[#allocation5 + $0x1140] sm:$0xff] }
  0xe8   :  { %2567 = vmatprep.subr.mxu0 %v744_v27  ;;  %2555 = vmatmul.mubr.f32.gmra.mxu1 %v157_v28  ;;  %v864_v37 = vld [vmem:[#allocation5 + $0x1548] sm:$0xff]  ;;  %v863_v39 = vld [vmem:[#allocation5 + $0x1540] sm:$0xff] }
  0xe9   :  { %2644 = vmatprep.subr.mxu1 %v872_v29  ;;  %2568 = vmatpush1.msra.mxu0 %v743_v30  ;;  %v732_v40 = vld [vmem:[#allocation5 + $0x1128] sm:$0xff]  ;;  %v731_v42 = vld [vmem:[#allocation5 + $0x1120] sm:$0xff] }
  0xea   :  { %2645 = vmatpush1.msra.mxu1 %v871_v31  ;;  %2569 = vmatprep.subr.mxu0 %v740_v32  ;;  %v860_v41 = vld [vmem:[#allocation5 + $0x1528] sm:$0xff]  ;;  %v859_v43 = vld [vmem:[#allocation5 + $0x1520] sm:$0xff] }
  0xeb   :  { %2646 = vmatprep.subr.mxu1 %v868_v33  ;;  %2570 = vmatpush1.msra.mxu0 %v739_v34  ;;  %v728_v44 = vld [vmem:[#allocation5 + $0x1108] sm:$0xff]  ;;  %v727_v46 = vld [vmem:[#allocation5 + $0x1100] sm:$0xff] }
  0xec   :  { %2647 = vmatpush1.msra.mxu1 %v867_v35  ;;  %2571 = vmatprep.subr.mxu0 %v736_v36  ;;  %v856_v45 = vld [vmem:[#allocation5 + $0x1508] sm:$0xff]  ;;  %v855_v47 = vld [vmem:[#allocation5 + $0x1500] sm:$0xff] }
  0xed   :  { %2648 = vmatprep.subr.mxu1 %v864_v37  ;;  %2572 = vmatpush1.msra.mxu0 %v735_v38  ;;  %v724_v48 = vld [vmem:[#allocation5 + $0x10e8] sm:$0xff]  ;;  %v723_v50 = vld [vmem:[#allocation5 + $0x10e0] sm:$0xff] }
  0xee   :  { %2649 = vmatpush1.msra.mxu1 %v863_v39  ;;  %2573 = vmatprep.subr.mxu0 %v732_v40  ;;  %v852_v49 = vld [vmem:[#allocation5 + $0x14e8] sm:$0xff]  ;;  %v851_v51 = vld [vmem:[#allocation5 + $0x14e0] sm:$0xff] }
  0xef   :  { %2650 = vmatprep.subr.mxu1 %v860_v41  ;;  %2574 = vmatpush1.msra.mxu0 %v731_v42  ;;  %v720_v52 = vld [vmem:[#allocation5 + $0x10c8] sm:$0xff]  ;;  %v719_v54 = vld [vmem:[#allocation5 + $0x10c0] sm:$0xff] }
  0xf0   :  { %2651 = vmatpush1.msra.mxu1 %v859_v43  ;;  %2575 = vmatprep.subr.mxu0 %v728_v44  ;;  %v848_v53 = vld [vmem:[#allocation5 + $0x14c8] sm:$0xff]  ;;  %v847_v55 = vld [vmem:[#allocation5 + $0x14c0] sm:$0xff] }
  0xf1   :  { %2652 = vmatprep.subr.mxu1 %v856_v45  ;;  %2576 = vmatpush1.msra.mxu0 %v727_v46  ;;  %v716_v56 = vld [vmem:[#allocation5 + $0x10a8] sm:$0xff]  ;;  %v715_v58 = vld [vmem:[#allocation5 + $0x10a0] sm:$0xff] }
  0xf2   :  { %2653 = vmatpush1.msra.mxu1 %v855_v47  ;;  %2577 = vmatprep.subr.mxu0 %v724_v48  ;;  %v844_v57 = vld [vmem:[#allocation5 + $0x14a8] sm:$0xff]  ;;  %v843_v59 = vld [vmem:[#allocation5 + $0x14a0] sm:$0xff] }
  0xf3   :  { %2654 = vmatprep.subr.mxu1 %v852_v49  ;;  %2578 = vmatpush1.msra.mxu0 %v723_v50  ;;  %v712_v60 = vld [vmem:[#allocation5 + $0x1088] sm:$0xff]  ;;  %v711_v62 = vld [vmem:[#allocation5 + $0x1080] sm:$0xff] }
  0xf4   :  { %2655 = vmatpush1.msra.mxu1 %v851_v51  ;;  %2579 = vmatprep.subr.mxu0 %v720_v52  ;;  %v840_v61 = vld [vmem:[#allocation5 + $0x1488] sm:$0xff]  ;;  %v839_v63 = vld [vmem:[#allocation5 + $0x1480] sm:$0xff] }
  0xf5   :  { %2656 = vmatprep.subr.mxu1 %v848_v53  ;;  %2580 = vmatpush1.msra.mxu0 %v719_v54  ;;  %v708_v0 = vld [vmem:[#allocation5 + $0x1068] sm:$0xff]  ;;  %v707_v2 = vld [vmem:[#allocation5 + $0x1060] sm:$0xff] }
  0xf6   :  { %2657 = vmatpush1.msra.mxu1 %v847_v55  ;;  %2581 = vmatprep.subr.mxu0 %v716_v56  ;;  %v836_v1 = vld [vmem:[#allocation5 + $0x1468] sm:$0xff]  ;;  %v835_v3 = vld [vmem:[#allocation5 + $0x1460] sm:$0xff] }
  0xf7   :  { %2658 = vmatprep.subr.mxu1 %v844_v57  ;;  %2582 = vmatpush1.msra.mxu0 %v715_v58  ;;  %v704_v4 = vld [vmem:[#allocation5 + $0x1048] sm:$0xff]  ;;  %v703_v6 = vld [vmem:[#allocation5 + $0x1040] sm:$0xff] }
  0xf8   :  { %2659 = vmatpush1.msra.mxu1 %v843_v59  ;;  %2583 = vmatprep.subr.mxu0 %v712_v60  ;;  %v832_v5 = vld [vmem:[#allocation5 + $0x1448] sm:$0xff]  ;;  %v831_v7 = vld [vmem:[#allocation5 + $0x1440] sm:$0xff] }
  0xf9   :  { %2660 = vmatprep.subr.mxu1 %v840_v61  ;;  %2584 = vmatpush1.msra.mxu0 %v711_v62  ;;  %v700_v8 = vld [vmem:[#allocation5 + $0x1028] sm:$0xff]  ;;  %v699_v10 = vld [vmem:[#allocation5 + $0x1020] sm:$0xff] }
  0xfa   :  { %2661 = vmatpush1.msra.mxu1 %v839_v63  ;;  %2585 = vmatprep.subr.mxu0 %v708_v0  ;;  %v828_v9 = vld [vmem:[#allocation5 + $0x1428] sm:$0xff]  ;;  %v827_v11 = vld [vmem:[#allocation5 + $0x1420] sm:$0xff] }
  0xfb   :  { %2662 = vmatprep.subr.mxu1 %v836_v1  ;;  %2586 = vmatpush1.msra.mxu0 %v707_v2  ;;  %v696_v12 = vld [vmem:[#allocation5 + $0x1008] sm:$0xff]  ;;  %v695_v14 = vld [vmem:[#allocation5 + $0x1000] sm:$0xff] }
  0xfc   :  { %2663 = vmatpush1.msra.mxu1 %v835_v3  ;;  %2587 = vmatprep.subr.mxu0 %v704_v4  ;;  %v824_v13 = vld [vmem:[#allocation5 + $0x1408] sm:$0xff]  ;;  %v823_v15 = vld [vmem:[#allocation5 + $0x1400] sm:$0xff] }
  0xfd   :  { %2664 = vmatprep.subr.mxu1 %v832_v5  ;;  %2588 = vmatpush1.msra.mxu0 %v703_v6  ;;  %v820_v16 = vld [vmem:[#allocation5 + $0x13e8] sm:$0xff]  ;;  %v819_v18 = vld [vmem:[#allocation5 + $0x13e0] sm:$0xff] }
  0xfe   :  { %2665 = vmatpush1.msra.mxu1 %v831_v7  ;;  %2589 = vmatprep.subr.mxu0 %v700_v8  ;;  %v948_v17 = vld [vmem:[#allocation5 + $0x17e8] sm:$0xff]  ;;  %v947_v19 = vld [vmem:[#allocation5 + $0x17e0] sm:$0xff] }
  0xff   :  { %2666 = vmatprep.subr.mxu1 %v828_v9  ;;  %2590 = vmatpush1.msra.mxu0 %v699_v10  ;;  %v816_v20 = vld [vmem:[#allocation5 + $0x13c8] sm:$0xff]  ;;  %v815_v22 = vld [vmem:[#allocation5 + $0x13c0] sm:$0xff] }
 0x100   :  { %2667 = vmatpush1.msra.mxu1 %v827_v11  ;;  %2591 = vmatprep.subr.mxu0 %v696_v12  ;;  %v944_v21 = vld [vmem:[#allocation5 + $0x17c8] sm:$0xff]  ;;  %v943_v23 = vld [vmem:[#allocation5 + $0x17c0] sm:$0xff] }
 0x101   :  { %2668 = vmatprep.subr.mxu1 %v824_v13  ;;  %2592 = vmatpush1.msra.mxu0 %v695_v14  ;;  %v812_v24 = vld [vmem:[#allocation5 + $0x13a8] sm:$0xff]  ;;  %v811_v26 = vld [vmem:[#allocation5 + $0x13a0] sm:$0xff] }
 0x102   :  { %2669 = vmatpush1.msra.mxu1 %v823_v15  ;;  %2593 = vmatprep.subr.mxu0 %v820_v16  ;;  %v940_v25 = vld [vmem:[#allocation5 + $0x17a8] sm:$0xff]  ;;  %v939_v27 = vld [vmem:[#allocation5 + $0x17a0] sm:$0xff] }
 0x103   :  { %2670 = vmatprep.subr.mxu1 %v948_v17  ;;  %2594 = vmatpush2.msra.mxu0 %v819_v18  ;;  %v808_v28 = vld [vmem:[#allocation5 + $0x1388] sm:$0xff]  ;;  %v807_v30 = vld [vmem:[#allocation5 + $0x1380] sm:$0xff]  ;;  %v130_v18 = vld [vmem:[#allocation2 + $0x58] sm:$0xff] }
 0x104   :  { %2671 = vmatpush2.msra.mxu1 %v947_v19  ;;  %2595 = vmatprep.subr.mxu0 %v816_v20  ;;  %v936_v29 = vld [vmem:[#allocation5 + $0x1788] sm:$0xff]  ;;  %v935_v31 = vld [vmem:[#allocation5 + $0x1780] sm:$0xff] }
 0x105   :  { %2672 = vmatprep.subr.mxu1 %v944_v21  ;;  %2596 = vmatpush2.msra.mxu0 %v815_v22  ;;  %v804_v32 = vld [vmem:[#allocation5 + $0x1368] sm:$0xff]  ;;  %v803_v34 = vld [vmem:[#allocation5 + $0x1360] sm:$0xff]  ;;  %v129_v21 = vld [vmem:[#allocation2 + $0x50] sm:$0xff] }
 0x106   :  { %2673 = vmatpush2.msra.mxu1 %v943_v23  ;;  %2597 = vmatprep.subr.mxu0 %v812_v24  ;;  %v932_v33 = vld [vmem:[#allocation5 + $0x1768] sm:$0xff]  ;;  %v931_v35 = vld [vmem:[#allocation5 + $0x1760] sm:$0xff] }
 0x107   :  { %2674 = vmatprep.subr.mxu1 %v940_v25  ;;  %2598 = vmatpush2.msra.mxu0 %v811_v26  ;;  %v800_v36 = vld [vmem:[#allocation5 + $0x1348] sm:$0xff]  ;;  %v799_v38 = vld [vmem:[#allocation5 + $0x1340] sm:$0xff] }
 0x108   :  { %2675 = vmatpush2.msra.mxu1 %v939_v27  ;;  %2599 = vmatprep.subr.mxu0 %v808_v28  ;;  %v928_v37 = vld [vmem:[#allocation5 + $0x1748] sm:$0xff]  ;;  %v927_v39 = vld [vmem:[#allocation5 + $0x1740] sm:$0xff] }
 0x109   :  { %2676 = vmatprep.subr.mxu1 %v936_v29  ;;  %2600 = vmatpush2.msra.mxu0 %v807_v30  ;;  %v796_v40 = vld [vmem:[#allocation5 + $0x1328] sm:$0xff]  ;;  %v795_v42 = vld [vmem:[#allocation5 + $0x1320] sm:$0xff] }
 0x10a   :  { %2677 = vmatpush2.msra.mxu1 %v935_v31  ;;  %2601 = vmatprep.subr.mxu0 %v804_v32  ;;  %v924_v41 = vld [vmem:[#allocation5 + $0x1728] sm:$0xff]  ;;  %v923_v43 = vld [vmem:[#allocation5 + $0x1720] sm:$0xff]  ;;  %v162_v32 = vld [vmem:[#allocation2 + $0x158] sm:$0xff] }
 0x10b   :  { %2678 = vmatprep.subr.mxu1 %v932_v33  ;;  %2602 = vmatpush2.msra.mxu0 %v803_v34  ;;  %v792_v44 = vld [vmem:[#allocation5 + $0x1308] sm:$0xff]  ;;  %v791_v46 = vld [vmem:[#allocation5 + $0x1300] sm:$0xff] }
 0x10c   :  { %2679 = vmatpush2.msra.mxu1 %v931_v35  ;;  %2603 = vmatprep.subr.mxu0 %v800_v36  ;;  %v920_v45 = vld [vmem:[#allocation5 + $0x1708] sm:$0xff]  ;;  %v919_v47 = vld [vmem:[#allocation5 + $0x1700] sm:$0xff]  ;;  %v161_v36 = vld [vmem:[#allocation2 + $0x150] sm:$0xff] }
 0x10d   :  { %2680 = vmatprep.subr.mxu1 %v928_v37  ;;  %2604 = vmatpush2.msra.mxu0 %v799_v38  ;;  %v788_v48 = vld [vmem:[#allocation5 + $0x12e8] sm:$0xff]  ;;  %v787_v50 = vld [vmem:[#allocation5 + $0x12e0] sm:$0xff] }
 0x10e   :  { %2681 = vmatpush2.msra.mxu1 %v927_v39  ;;  %2605 = vmatprep.subr.mxu0 %v796_v40  ;;  %v916_v49 = vld [vmem:[#allocation5 + $0x16e8] sm:$0xff]  ;;  %v915_v51 = vld [vmem:[#allocation5 + $0x16e0] sm:$0xff] }
 0x10f   :  { %2682 = vmatprep.subr.mxu1 %v924_v41  ;;  %2606 = vmatpush2.msra.mxu0 %v795_v42  ;;  %v784_v52 = vld [vmem:[#allocation5 + $0x12c8] sm:$0xff]  ;;  %v783_v54 = vld [vmem:[#allocation5 + $0x12c0] sm:$0xff] }
 0x110   :  { %2683 = vmatpush2.msra.mxu1 %v923_v43  ;;  %2607 = vmatprep.subr.mxu0 %v792_v44  ;;  %v912_v53 = vld [vmem:[#allocation5 + $0x16c8] sm:$0xff]  ;;  %v911_v55 = vld [vmem:[#allocation5 + $0x16c0] sm:$0xff] }
 0x111   :  { %2684 = vmatprep.subr.mxu1 %v920_v45  ;;  %2608 = vmatpush2.msra.mxu0 %v791_v46  ;;  %v780_v56 = vld [vmem:[#allocation5 + $0x12a8] sm:$0xff]  ;;  %v779_v58 = vld [vmem:[#allocation5 + $0x12a0] sm:$0xff] }
 0x112   :  { %2685 = vmatpush2.msra.mxu1 %v919_v47  ;;  %2609 = vmatprep.subr.mxu0 %v788_v48  ;;  %v908_v57 = vld [vmem:[#allocation5 + $0x16a8] sm:$0xff]  ;;  %v907_v59 = vld [vmem:[#allocation5 + $0x16a0] sm:$0xff] }
 0x113   :  { %2686 = vmatprep.subr.mxu1 %v916_v49  ;;  %2610 = vmatpush2.msra.mxu0 %v787_v50  ;;  %v776_v60 = vld [vmem:[#allocation5 + $0x1288] sm:$0xff]  ;;  %v775_v62 = vld [vmem:[#allocation5 + $0x1280] sm:$0xff] }
 0x114   :  { %2687 = vmatpush2.msra.mxu1 %v915_v51  ;;  %2611 = vmatprep.subr.mxu0 %v784_v52  ;;  %v904_v61 = vld [vmem:[#allocation5 + $0x1688] sm:$0xff]  ;;  %v903_v63 = vld [vmem:[#allocation5 + $0x1680] sm:$0xff] }
 0x115   :  { %2688 = vmatprep.subr.mxu1 %v912_v53  ;;  %2612 = vmatpush2.msra.mxu0 %v783_v54  ;;  %v772_v0 = vld [vmem:[#allocation5 + $0x1268] sm:$0xff]  ;;  %v771_v2 = vld [vmem:[#allocation5 + $0x1260] sm:$0xff] }
 0x116   :  { %2689 = vmatpush2.msra.mxu1 %v911_v55  ;;  %2613 = vmatprep.subr.mxu0 %v780_v56  ;;  %v900_v1 = vld [vmem:[#allocation5 + $0x1668] sm:$0xff]  ;;  %v899_v3 = vld [vmem:[#allocation5 + $0x1660] sm:$0xff] }
 0x117   :  { %2690 = vmatprep.subr.mxu1 %v908_v57  ;;  %2614 = vmatpush2.msra.mxu0 %v779_v58  ;;  %v768_v4 = vld [vmem:[#allocation5 + $0x1248] sm:$0xff]  ;;  %v767_v6 = vld [vmem:[#allocation5 + $0x1240] sm:$0xff] }
 0x118   :  { %2691 = vmatpush2.msra.mxu1 %v907_v59  ;;  %2615 = vmatprep.subr.mxu0 %v776_v60  ;;  %v896_v5 = vld [vmem:[#allocation5 + $0x1648] sm:$0xff]  ;;  %v895_v7 = vld [vmem:[#allocation5 + $0x1640] sm:$0xff] }
 0x119   :  { %2692 = vmatprep.subr.mxu1 %v904_v61  ;;  %2616 = vmatpush2.msra.mxu0 %v775_v62  ;;  %v764_v8 = vld [vmem:[#allocation5 + $0x1228] sm:$0xff]  ;;  %v763_v10 = vld [vmem:[#allocation5 + $0x1220] sm:$0xff] }
 0x11a   :  { %2693 = vmatpush2.msra.mxu1 %v903_v63  ;;  %2617 = vmatprep.subr.mxu0 %v772_v0  ;;  %v892_v9 = vld [vmem:[#allocation5 + $0x1628] sm:$0xff]  ;;  %v891_v11 = vld [vmem:[#allocation5 + $0x1620] sm:$0xff] }
 0x11b   :  { %2694 = vmatprep.subr.mxu1 %v900_v1  ;;  %2618 = vmatpush2.msra.mxu0 %v771_v2  ;;  %v760_v12 = vld [vmem:[#allocation5 + $0x1208] sm:$0xff]  ;;  %v759_v14 = vld [vmem:[#allocation5 + $0x1200] sm:$0xff] }
 0x11c   :  { %2695 = vmatpush2.msra.mxu1 %v899_v3  ;;  %2619 = vmatprep.subr.mxu0 %v768_v4  ;;  %v888_v13 = vld [vmem:[#allocation5 + $0x1608] sm:$0xff]  ;;  %v887_v16 = vld [vmem:[#allocation5 + $0x1600] sm:$0xff] }
 0x11d   :  { %2696 = vmatprep.subr.mxu1 %v896_v5  ;;  %2620 = vmatpush2.msra.mxu0 %v767_v6  ;;  %v128_v15 = vld [vmem:[#allocation2 + $0x48] sm:$0xff]  ;;  %v127_v17 = vld [vmem:[#allocation2 + $0x40] sm:$0xff] }
 0x11e   :  { %2697 = vmatpush2.msra.mxu1 %v895_v7  ;;  %2621 = vmatprep.subr.mxu0 %v764_v8  ;;  %v1012_v19 = vld [vmem:[#allocation5 + $0x19e8] sm:$0xff]  ;;  %v1011_v22 = vld [vmem:[#allocation5 + $0x19e0] sm:$0xff] }
 0x11f   :  { %2698 = vmatprep.subr.mxu1 %v892_v9  ;;  %2622 = vmatpush2.msra.mxu0 %v763_v10  ;;  %v1140_v20 = vld [vmem:[#allocation5 + $0x1de8] sm:$0xff]  ;;  %v1139_v23 = vld [vmem:[#allocation5 + $0x1de0] sm:$0xff] }
 0x120   :  { %2699 = vmatpush2.msra.mxu1 %v891_v11  ;;  %2623 = vmatprep.subr.mxu0 %v760_v12  ;;  %v1008_v24 = vld [vmem:[#allocation5 + $0x19c8] sm:$0xff]  ;;  %v1007_v27 = vld [vmem:[#allocation5 + $0x19c0] sm:$0xff] }
 0x121   :  { %2700 = vmatprep.subr.mxu1 %v888_v13  ;;  %2624 = vmatpush2.msra.mxu0 %v759_v14  ;;  %v1136_v25 = vld [vmem:[#allocation5 + $0x1dc8] sm:$0xff]  ;;  %v1135_v28 = vld [vmem:[#allocation5 + $0x1dc0] sm:$0xff] }
 0x122   :  { %2625 = vmatprep.mubr.f32.mxu0 %v128_v15  ;;  %2701 = vmatpush2.msra.mxu1 %v887_v16  ;;  %v160_v26 = vld [vmem:[#allocation2 + $0x148] sm:$0xff]  ;;  %v159_v29 = vld [vmem:[#allocation2 + $0x140] sm:$0xff] }
 0x123   :  { %2626 = vmatmul.mubr.f32.vlgmr.msra.gmra.mxu0 %v127_v17  ;;  %2702 = vmatprep.mubr.f32.mxu1 %v130_v18  ;;  %v1004_v30 = vld [vmem:[#allocation5 + $0x19a8] sm:$0xff]  ;;  %v1003_v33 = vld [vmem:[#allocation5 + $0x19a0] sm:$0xff] }
 0x124   :  { %2715 = vmatprep.subr.mxu0 %v1012_v19  ;;  %2792 = vmatprep.subr.mxu1 %v1140_v20  ;;  %v1132_v31 = vld [vmem:[#allocation5 + $0x1da8] sm:$0xff]  ;;  %v1131_v34 = vld [vmem:[#allocation5 + $0x1da0] sm:$0xff] }
 0x125   :  { %2703 = vmatmul.mubr.f32.vlgmr.msra.gmra.mxu1 %v129_v21  ;;  %2716 = vmatpush1.msra.mxu0 %v1011_v22  ;;  %v1000_v35 = vld [vmem:[#allocation5 + $0x1988] sm:$0xff]  ;;  %v999_v38 = vld [vmem:[#allocation5 + $0x1980] sm:$0xff] }
 0x126   :  { %2793 = vmatpush1.msra.mxu1 %v1139_v23  ;;  %2717 = vmatprep.subr.mxu0 %v1008_v24  ;;  %v1128_v37 = vld [vmem:[#allocation5 + $0x1d88] sm:$0xff]  ;;  %v1127_v39 = vld [vmem:[#allocation5 + $0x1d80] sm:$0xff] }
 0x127   :  { %2794 = vmatprep.subr.mxu1 %v1136_v25  ;;  %2631 = vmatprep.mubr.f32.mxu0 %v160_v26  ;;  %v996_v40 = vld [vmem:[#allocation5 + $0x1968] sm:$0xff]  ;;  %v995_v42 = vld [vmem:[#allocation5 + $0x1960] sm:$0xff] }
 0x128   :  { %2718 = vmatpush1.msra.mxu0 %v1007_v27  ;;  %2795 = vmatpush1.msra.mxu1 %v1135_v28  ;;  %v1124_v41 = vld [vmem:[#allocation5 + $0x1d68] sm:$0xff]  ;;  %v1123_v43 = vld [vmem:[#allocation5 + $0x1d60] sm:$0xff] }
 0x129   :  { %2632 = vmatmul.mubr.f32.gmra.mxu0 %v159_v29  ;;  %2719 = vmatprep.subr.mxu0 %v1004_v30  ;;  %v992_v44 = vld [vmem:[#allocation5 + $0x1948] sm:$0xff]  ;;  %v991_v46 = vld [vmem:[#allocation5 + $0x1940] sm:$0xff] }
 0x12a   :  { %2796 = vmatprep.subr.mxu1 %v1132_v31  ;;  %2708 = vmatprep.mubr.f32.mxu1 %v162_v32  ;;  %v1120_v45 = vld [vmem:[#allocation5 + $0x1d48] sm:$0xff]  ;;  %v1119_v47 = vld [vmem:[#allocation5 + $0x1d40] sm:$0xff] }
 0x12b   :  { %2720 = vmatpush1.msra.mxu0 %v1003_v33  ;;  %2797 = vmatpush1.msra.mxu1 %v1131_v34  ;;  %v988_v48 = vld [vmem:[#allocation5 + $0x1928] sm:$0xff]  ;;  %v987_v50 = vld [vmem:[#allocation5 + $0x1920] sm:$0xff] }
 0x12c   :  { %2721 = vmatprep.subr.mxu0 %v1000_v35  ;;  %2709 = vmatmul.mubr.f32.gmra.mxu1 %v161_v36  ;;  %v1116_v49 = vld [vmem:[#allocation5 + $0x1d28] sm:$0xff]  ;;  %v1115_v51 = vld [vmem:[#allocation5 + $0x1d20] sm:$0xff] }
 0x12d   :  { %2798 = vmatprep.subr.mxu1 %v1128_v37  ;;  %2722 = vmatpush1.msra.mxu0 %v999_v38  ;;  %v984_v52 = vld [vmem:[#allocation5 + $0x1908] sm:$0xff]  ;;  %v983_v54 = vld [vmem:[#allocation5 + $0x1900] sm:$0xff] }
 0x12e   :  { %2799 = vmatpush1.msra.mxu1 %v1127_v39  ;;  %2723 = vmatprep.subr.mxu0 %v996_v40  ;;  %v1112_v53 = vld [vmem:[#allocation5 + $0x1d08] sm:$0xff]  ;;  %v1111_v55 = vld [vmem:[#allocation5 + $0x1d00] sm:$0xff] }
 0x12f   :  { %2800 = vmatprep.subr.mxu1 %v1124_v41  ;;  %2724 = vmatpush1.msra.mxu0 %v995_v42  ;;  %v980_v56 = vld [vmem:[#allocation5 + $0x18e8] sm:$0xff]  ;;  %v979_v58 = vld [vmem:[#allocation5 + $0x18e0] sm:$0xff] }
 0x130   :  { %2801 = vmatpush1.msra.mxu1 %v1123_v43  ;;  %2725 = vmatprep.subr.mxu0 %v992_v44  ;;  %v1108_v57 = vld [vmem:[#allocation5 + $0x1ce8] sm:$0xff]  ;;  %v1107_v59 = vld [vmem:[#allocation5 + $0x1ce0] sm:$0xff] }
 0x131   :  { %2802 = vmatprep.subr.mxu1 %v1120_v45  ;;  %2726 = vmatpush1.msra.mxu0 %v991_v46  ;;  %v976_v60 = vld [vmem:[#allocation5 + $0x18c8] sm:$0xff]  ;;  %v975_v62 = vld [vmem:[#allocation5 + $0x18c0] sm:$0xff] }
 0x132   :  { %2803 = vmatpush1.msra.mxu1 %v1119_v47  ;;  %2727 = vmatprep.subr.mxu0 %v988_v48  ;;  %v1104_v61 = vld [vmem:[#allocation5 + $0x1cc8] sm:$0xff]  ;;  %v1103_v63 = vld [vmem:[#allocation5 + $0x1cc0] sm:$0xff] }
 0x133   :  { %2804 = vmatprep.subr.mxu1 %v1116_v49  ;;  %2728 = vmatpush1.msra.mxu0 %v987_v50  ;;  %v972_v0 = vld [vmem:[#allocation5 + $0x18a8] sm:$0xff]  ;;  %v971_v2 = vld [vmem:[#allocation5 + $0x18a0] sm:$0xff] }
 0x134   :  { %2805 = vmatpush1.msra.mxu1 %v1115_v51  ;;  %2729 = vmatprep.subr.mxu0 %v984_v52  ;;  %v1100_v1 = vld [vmem:[#allocation5 + $0x1ca8] sm:$0xff]  ;;  %v1099_v3 = vld [vmem:[#allocation5 + $0x1ca0] sm:$0xff] }
 0x135   :  { %2806 = vmatprep.subr.mxu1 %v1112_v53  ;;  %2730 = vmatpush1.msra.mxu0 %v983_v54  ;;  %v968_v4 = vld [vmem:[#allocation5 + $0x1888] sm:$0xff]  ;;  %v967_v6 = vld [vmem:[#allocation5 + $0x1880] sm:$0xff] }
 0x136   :  { %2807 = vmatpush1.msra.mxu1 %v1111_v55  ;;  %2731 = vmatprep.subr.mxu0 %v980_v56  ;;  %v1096_v5 = vld [vmem:[#allocation5 + $0x1c88] sm:$0xff]  ;;  %v1095_v7 = vld [vmem:[#allocation5 + $0x1c80] sm:$0xff] }
 0x137   :  { %2808 = vmatprep.subr.mxu1 %v1108_v57  ;;  %2732 = vmatpush1.msra.mxu0 %v979_v58  ;;  %v964_v8 = vld [vmem:[#allocation5 + $0x1868] sm:$0xff]  ;;  %v963_v10 = vld [vmem:[#allocation5 + $0x1860] sm:$0xff] }
 0x138   :  { %2809 = vmatpush1.msra.mxu1 %v1107_v59  ;;  %2733 = vmatprep.subr.mxu0 %v976_v60  ;;  %v1092_v9 = vld [vmem:[#allocation5 + $0x1c68] sm:$0xff]  ;;  %v1091_v11 = vld [vmem:[#allocation5 + $0x1c60] sm:$0xff] }
 0x139   :  { %2810 = vmatprep.subr.mxu1 %v1104_v61  ;;  %2734 = vmatpush1.msra.mxu0 %v975_v62  ;;  %v960_v12 = vld [vmem:[#allocation5 + $0x1848] sm:$0xff]  ;;  %v959_v14 = vld [vmem:[#allocation5 + $0x1840] sm:$0xff] }
 0x13a   :  { %2811 = vmatpush1.msra.mxu1 %v1103_v63  ;;  %2735 = vmatprep.subr.mxu0 %v972_v0  ;;  %v1088_v13 = vld [vmem:[#allocation5 + $0x1c48] sm:$0xff]  ;;  %v1087_v15 = vld [vmem:[#allocation5 + $0x1c40] sm:$0xff] }
 0x13b   :  { %2812 = vmatprep.subr.mxu1 %v1100_v1  ;;  %2736 = vmatpush1.msra.mxu0 %v971_v2  ;;  %v956_v16 = vld [vmem:[#allocation5 + $0x1828] sm:$0xff]  ;;  %v955_v18 = vld [vmem:[#allocation5 + $0x1820] sm:$0xff] }
 0x13c   :  { %2813 = vmatpush1.msra.mxu1 %v1099_v3  ;;  %2737 = vmatprep.subr.mxu0 %v968_v4  ;;  %v1084_v17 = vld [vmem:[#allocation5 + $0x1c28] sm:$0xff]  ;;  %v1083_v19 = vld [vmem:[#allocation5 + $0x1c20] sm:$0xff] }
 0x13d   :  { %2814 = vmatprep.subr.mxu1 %v1096_v5  ;;  %2738 = vmatpush1.msra.mxu0 %v967_v6  ;;  %v952_v20 = vld [vmem:[#allocation5 + $0x1808] sm:$0xff]  ;;  %v951_v22 = vld [vmem:[#allocation5 + $0x1800] sm:$0xff] }
 0x13e   :  { %2815 = vmatpush1.msra.mxu1 %v1095_v7  ;;  %2739 = vmatprep.subr.mxu0 %v964_v8  ;;  %v1080_v21 = vld [vmem:[#allocation5 + $0x1c08] sm:$0xff]  ;;  %v1079_v23 = vld [vmem:[#allocation5 + $0x1c00] sm:$0xff] }
 0x13f   :  { %2816 = vmatprep.subr.mxu1 %v1092_v9  ;;  %2740 = vmatpush1.msra.mxu0 %v963_v10  ;;  %v1076_v24 = vld [vmem:[#allocation5 + $0x1be8] sm:$0xff]  ;;  %v1075_v26 = vld [vmem:[#allocation5 + $0x1be0] sm:$0xff] }
 0x140   :  { %2817 = vmatpush1.msra.mxu1 %v1091_v11  ;;  %2741 = vmatprep.subr.mxu0 %v960_v12  ;;  %v1204_v25 = vld [vmem:[#allocation5 + $0x1fe8] sm:$0xff]  ;;  %v1203_v27 = vld [vmem:[#allocation5 + $0x1fe0] sm:$0xff] }
 0x141   :  { %2818 = vmatprep.subr.mxu1 %v1088_v13  ;;  %2742 = vmatpush1.msra.mxu0 %v959_v14  ;;  %v1072_v28 = vld [vmem:[#allocation5 + $0x1bc8] sm:$0xff]  ;;  %v1071_v30 = vld [vmem:[#allocation5 + $0x1bc0] sm:$0xff] }
 0x142   :  { %2819 = vmatpush1.msra.mxu1 %v1087_v15  ;;  %2743 = vmatprep.subr.mxu0 %v956_v16  ;;  %v1200_v29 = vld [vmem:[#allocation5 + $0x1fc8] sm:$0xff]  ;;  %v1199_v31 = vld [vmem:[#allocation5 + $0x1fc0] sm:$0xff] }
 0x143   :  { %2820 = vmatprep.subr.mxu1 %v1084_v17  ;;  %2744 = vmatpush1.msra.mxu0 %v955_v18  ;;  %v1068_v32 = vld [vmem:[#allocation5 + $0x1ba8] sm:$0xff]  ;;  %v1067_v34 = vld [vmem:[#allocation5 + $0x1ba0] sm:$0xff] }
 0x144   :  { %2821 = vmatpush1.msra.mxu1 %v1083_v19  ;;  %2745 = vmatprep.subr.mxu0 %v952_v20  ;;  %v1196_v33 = vld [vmem:[#allocation5 + $0x1fa8] sm:$0xff]  ;;  %v1195_v35 = vld [vmem:[#allocation5 + $0x1fa0] sm:$0xff] }
 0x145   :  { %2822 = vmatprep.subr.mxu1 %v1080_v21  ;;  %2746 = vmatpush1.msra.mxu0 %v951_v22  ;;  %v1064_v36 = vld [vmem:[#allocation5 + $0x1b88] sm:$0xff]  ;;  %v1063_v38 = vld [vmem:[#allocation5 + $0x1b80] sm:$0xff] }
 0x146   :  { %2823 = vmatpush1.msra.mxu1 %v1079_v23  ;;  %2747 = vmatprep.subr.mxu0 %v1076_v24  ;;  %v1192_v37 = vld [vmem:[#allocation5 + $0x1f88] sm:$0xff]  ;;  %v1191_v39 = vld [vmem:[#allocation5 + $0x1f80] sm:$0xff] }
 0x147   :  { %2824 = vmatprep.subr.mxu1 %v1204_v25  ;;  %2748 = vmatpush2.msra.mxu0 %v1075_v26  ;;  %v1060_v40 = vld [vmem:[#allocation5 + $0x1b68] sm:$0xff]  ;;  %v1059_v42 = vld [vmem:[#allocation5 + $0x1b60] sm:$0xff]  ;;  %v134_v26 = vld [vmem:[#allocation2 + $0x78] sm:$0xff] }
 0x148   :  { %2825 = vmatpush2.msra.mxu1 %v1203_v27  ;;  %2749 = vmatprep.subr.mxu0 %v1072_v28  ;;  %v1188_v41 = vld [vmem:[#allocation5 + $0x1f68] sm:$0xff]  ;;  %v1187_v43 = vld [vmem:[#allocation5 + $0x1f60] sm:$0xff] }
 0x149   :  { %2826 = vmatprep.subr.mxu1 %v1200_v29  ;;  %2750 = vmatpush2.msra.mxu0 %v1071_v30  ;;  %v1056_v44 = vld [vmem:[#allocation5 + $0x1b48] sm:$0xff]  ;;  %v1055_v46 = vld [vmem:[#allocation5 + $0x1b40] sm:$0xff]  ;;  %v133_v29 = vld [vmem:[#allocation2 + $0x70] sm:$0xff] }
 0x14a   :  { %2827 = vmatpush2.msra.mxu1 %v1199_v31  ;;  %2751 = vmatprep.subr.mxu0 %v1068_v32  ;;  %v1184_v45 = vld [vmem:[#allocation5 + $0x1f48] sm:$0xff]  ;;  %v1183_v47 = vld [vmem:[#allocation5 + $0x1f40] sm:$0xff] }
 0x14b   :  { %2828 = vmatprep.subr.mxu1 %v1196_v33  ;;  %2752 = vmatpush2.msra.mxu0 %v1067_v34  ;;  %v1052_v48 = vld [vmem:[#allocation5 + $0x1b28] sm:$0xff]  ;;  %v1051_v50 = vld [vmem:[#allocation5 + $0x1b20] sm:$0xff] }
 0x14c   :  { %2829 = vmatpush2.msra.mxu1 %v1195_v35  ;;  %2753 = vmatprep.subr.mxu0 %v1064_v36  ;;  %v1180_v49 = vld [vmem:[#allocation5 + $0x1f28] sm:$0xff]  ;;  %v1179_v51 = vld [vmem:[#allocation5 + $0x1f20] sm:$0xff] }
 0x14d   :  { %2830 = vmatprep.subr.mxu1 %v1192_v37  ;;  %2754 = vmatpush2.msra.mxu0 %v1063_v38  ;;  %v1048_v52 = vld [vmem:[#allocation5 + $0x1b08] sm:$0xff]  ;;  %v1047_v54 = vld [vmem:[#allocation5 + $0x1b00] sm:$0xff] }
 0x14e   :  { %2831 = vmatpush2.msra.mxu1 %v1191_v39  ;;  %2755 = vmatprep.subr.mxu0 %v1060_v40  ;;  %v1176_v53 = vld [vmem:[#allocation5 + $0x1f08] sm:$0xff]  ;;  %v1175_v55 = vld [vmem:[#allocation5 + $0x1f00] sm:$0xff]  ;;  %v166_v40 = vld [vmem:[#allocation2 + $0x178] sm:$0xff] }
 0x14f   :  { %2832 = vmatprep.subr.mxu1 %v1188_v41  ;;  %2756 = vmatpush2.msra.mxu0 %v1059_v42  ;;  %v1044_v56 = vld [vmem:[#allocation5 + $0x1ae8] sm:$0xff]  ;;  %v1043_v58 = vld [vmem:[#allocation5 + $0x1ae0] sm:$0xff] }
 0x150   :  { %2833 = vmatpush2.msra.mxu1 %v1187_v43  ;;  %2757 = vmatprep.subr.mxu0 %v1056_v44  ;;  %v1172_v57 = vld [vmem:[#allocation5 + $0x1ee8] sm:$0xff]  ;;  %v1171_v59 = vld [vmem:[#allocation5 + $0x1ee0] sm:$0xff]  ;;  %v165_v44 = vld [vmem:[#allocation2 + $0x170] sm:$0xff] }
 0x151   :  { %2834 = vmatprep.subr.mxu1 %v1184_v45  ;;  %2758 = vmatpush2.msra.mxu0 %v1055_v46  ;;  %v1040_v60 = vld [vmem:[#allocation5 + $0x1ac8] sm:$0xff]  ;;  %v1039_v62 = vld [vmem:[#allocation5 + $0x1ac0] sm:$0xff] }
 0x152   :  { %2835 = vmatpush2.msra.mxu1 %v1183_v47  ;;  %2759 = vmatprep.subr.mxu0 %v1052_v48  ;;  %v1168_v61 = vld [vmem:[#allocation5 + $0x1ec8] sm:$0xff]  ;;  %v1167_v63 = vld [vmem:[#allocation5 + $0x1ec0] sm:$0xff] }
 0x153   :  { %2836 = vmatprep.subr.mxu1 %v1180_v49  ;;  %2760 = vmatpush2.msra.mxu0 %v1051_v50  ;;  %v1036_v0 = vld [vmem:[#allocation5 + $0x1aa8] sm:$0xff]  ;;  %v1035_v2 = vld [vmem:[#allocation5 + $0x1aa0] sm:$0xff] }
 0x154   :  { %2837 = vmatpush2.msra.mxu1 %v1179_v51  ;;  %2761 = vmatprep.subr.mxu0 %v1048_v52  ;;  %v1164_v1 = vld [vmem:[#allocation5 + $0x1ea8] sm:$0xff]  ;;  %v1163_v3 = vld [vmem:[#allocation5 + $0x1ea0] sm:$0xff] }
 0x155   :  { %2838 = vmatprep.subr.mxu1 %v1176_v53  ;;  %2762 = vmatpush2.msra.mxu0 %v1047_v54  ;;  %v1032_v4 = vld [vmem:[#allocation5 + $0x1a88] sm:$0xff]  ;;  %v1031_v6 = vld [vmem:[#allocation5 + $0x1a80] sm:$0xff] }
 0x156   :  { %2839 = vmatpush2.msra.mxu1 %v1175_v55  ;;  %2763 = vmatprep.subr.mxu0 %v1044_v56  ;;  %v1160_v5 = vld [vmem:[#allocation5 + $0x1e88] sm:$0xff]  ;;  %v1159_v7 = vld [vmem:[#allocation5 + $0x1e80] sm:$0xff] }
 0x157   :  { %2840 = vmatprep.subr.mxu1 %v1172_v57  ;;  %2764 = vmatpush2.msra.mxu0 %v1043_v58  ;;  %v1028_v8 = vld [vmem:[#allocation5 + $0x1a68] sm:$0xff]  ;;  %v1027_v10 = vld [vmem:[#allocation5 + $0x1a60] sm:$0xff] }
 0x158   :  { %2841 = vmatpush2.msra.mxu1 %v1171_v59  ;;  %2765 = vmatprep.subr.mxu0 %v1040_v60  ;;  %v1156_v9 = vld [vmem:[#allocation5 + $0x1e68] sm:$0xff]  ;;  %v1155_v11 = vld [vmem:[#allocation5 + $0x1e60] sm:$0xff] }
 0x159   :  { %2842 = vmatprep.subr.mxu1 %v1168_v61  ;;  %2766 = vmatpush2.msra.mxu0 %v1039_v62  ;;  %v1024_v12 = vld [vmem:[#allocation5 + $0x1a48] sm:$0xff]  ;;  %v1023_v14 = vld [vmem:[#allocation5 + $0x1a40] sm:$0xff] }
 0x15a   :  { %2843 = vmatpush2.msra.mxu1 %v1167_v63  ;;  %2767 = vmatprep.subr.mxu0 %v1036_v0  ;;  %v1152_v13 = vld [vmem:[#allocation5 + $0x1e48] sm:$0xff]  ;;  %v1151_v15 = vld [vmem:[#allocation5 + $0x1e40] sm:$0xff] }
 0x15b   :  { %2844 = vmatprep.subr.mxu1 %v1164_v1  ;;  %2768 = vmatpush2.msra.mxu0 %v1035_v2  ;;  %v1020_v16 = vld [vmem:[#allocation5 + $0x1a28] sm:$0xff]  ;;  %v1019_v18 = vld [vmem:[#allocation5 + $0x1a20] sm:$0xff] }
 0x15c   :  { %2845 = vmatpush2.msra.mxu1 %v1163_v3  ;;  %2769 = vmatprep.subr.mxu0 %v1032_v4  ;;  %v1148_v17 = vld [vmem:[#allocation5 + $0x1e28] sm:$0xff]  ;;  %v1147_v19 = vld [vmem:[#allocation5 + $0x1e20] sm:$0xff] }
 0x15d   :  { %2846 = vmatprep.subr.mxu1 %v1160_v5  ;;  %2770 = vmatpush2.msra.mxu0 %v1031_v6  ;;  %v1016_v20 = vld [vmem:[#allocation5 + $0x1a08] sm:$0xff]  ;;  %v1015_v22 = vld [vmem:[#allocation5 + $0x1a00] sm:$0xff] }
 0x15e   :  { %2847 = vmatpush2.msra.mxu1 %v1159_v7  ;;  %2771 = vmatprep.subr.mxu0 %v1028_v8  ;;  %v1144_v21 = vld [vmem:[#allocation5 + $0x1e08] sm:$0xff]  ;;  %v1143_v24 = vld [vmem:[#allocation5 + $0x1e00] sm:$0xff] }
 0x15f   :  { %2848 = vmatprep.subr.mxu1 %v1156_v9  ;;  %2772 = vmatpush2.msra.mxu0 %v1027_v10  ;;  %v132_v23 = vld [vmem:[#allocation2 + $0x68] sm:$0xff]  ;;  %v131_v25 = vld [vmem:[#allocation2 + $0x60] sm:$0xff] }
 0x160   :  { %2849 = vmatpush2.msra.mxu1 %v1155_v11  ;;  %2773 = vmatprep.subr.mxu0 %v1024_v12  ;;  %v1268_v27 = vld [vmem:[#allocation5 + $0x21e8] sm:$0xff]  ;;  %v1267_v30 = vld [vmem:[#allocation5 + $0x21e0] sm:$0xff] }
 0x161   :  { %2850 = vmatprep.subr.mxu1 %v1152_v13  ;;  %2774 = vmatpush2.msra.mxu0 %v1023_v14  ;;  %v1396_v28 = vld [vmem:[#allocation5 + $0x25e8] sm:$0xff]  ;;  %v1395_v31 = vld [vmem:[#allocation5 + $0x25e0] sm:$0xff] }
 0x162   :  { %2851 = vmatpush2.msra.mxu1 %v1151_v15  ;;  %2775 = vmatprep.subr.mxu0 %v1020_v16  ;;  %v1264_v32 = vld [vmem:[#allocation5 + $0x21c8] sm:$0xff]  ;;  %v1263_v35 = vld [vmem:[#allocation5 + $0x21c0] sm:$0xff] }
 0x163   :  { %2852 = vmatprep.subr.mxu1 %v1148_v17  ;;  %2776 = vmatpush2.msra.mxu0 %v1019_v18  ;;  %v1392_v33 = vld [vmem:[#allocation5 + $0x25c8] sm:$0xff]  ;;  %v1391_v36 = vld [vmem:[#allocation5 + $0x25c0] sm:$0xff] }
 0x164   :  { %2853 = vmatpush2.msra.mxu1 %v1147_v19  ;;  %2777 = vmatprep.subr.mxu0 %v1016_v20  ;;  %v164_v34 = vld [vmem:[#allocation2 + $0x168] sm:$0xff]  ;;  %v163_v37 = vld [vmem:[#allocation2 + $0x160] sm:$0xff] }
 0x165   :  { %2854 = vmatprep.subr.mxu1 %v1144_v21  ;;  %2778 = vmatpush2.msra.mxu0 %v1015_v22  ;;  %v1260_v38 = vld [vmem:[#allocation5 + $0x21a8] sm:$0xff]  ;;  %v1259_v41 = vld [vmem:[#allocation5 + $0x21a0] sm:$0xff] }
 0x166   :  { %2779 = vmatprep.mubr.f32.mxu0 %v132_v23  ;;  %2855 = vmatpush2.msra.mxu1 %v1143_v24  ;;  %v1388_v39 = vld [vmem:[#allocation5 + $0x25a8] sm:$0xff]  ;;  %v1387_v42 = vld [vmem:[#allocation5 + $0x25a0] sm:$0xff] }
 0x167   :  { %2780 = vmatmul.mubr.f32.vlgmr.msra.gmra.mxu0 %v131_v25  ;;  %2856 = vmatprep.mubr.f32.mxu1 %v134_v26  ;;  %v1256_v43 = vld [vmem:[#allocation5 + $0x2188] sm:$0xff]  ;;  %v1255_v46 = vld [vmem:[#allocation5 + $0x2180] sm:$0xff] }
 0x168   :  { %2869 = vmatprep.subr.mxu0 %v1268_v27  ;;  %2946 = vmatprep.subr.mxu1 %v1396_v28  ;;  %v1384_v45 = vld [vmem:[#allocation5 + $0x2588] sm:$0xff]  ;;  %v1383_v47 = vld [vmem:[#allocation5 + $0x2580] sm:$0xff] }
 0x169   :  { %2857 = vmatmul.mubr.f32.vlgmr.msra.gmra.mxu1 %v133_v29  ;;  %2870 = vmatpush1.msra.mxu0 %v1267_v30  ;;  %v1252_v48 = vld [vmem:[#allocation5 + $0x2168] sm:$0xff]  ;;  %v1251_v50 = vld [vmem:[#allocation5 + $0x2160] sm:$0xff] }
 0x16a   :  { %2947 = vmatpush1.msra.mxu1 %v1395_v31  ;;  %2871 = vmatprep.subr.mxu0 %v1264_v32  ;;  %v1380_v49 = vld [vmem:[#allocation5 + $0x2568] sm:$0xff]  ;;  %v1379_v51 = vld [vmem:[#allocation5 + $0x2560] sm:$0xff] }
 0x16b   :  { %2948 = vmatprep.subr.mxu1 %v1392_v33  ;;  %2785 = vmatprep.mubr.f32.mxu0 %v164_v34  ;;  %v1248_v52 = vld [vmem:[#allocation5 + $0x2148] sm:$0xff]  ;;  %v1247_v54 = vld [vmem:[#allocation5 + $0x2140] sm:$0xff] }
 0x16c   :  { %2872 = vmatpush1.msra.mxu0 %v1263_v35  ;;  %2949 = vmatpush1.msra.mxu1 %v1391_v36  ;;  %v1376_v53 = vld [vmem:[#allocation5 + $0x2548] sm:$0xff]  ;;  %v1375_v55 = vld [vmem:[#allocation5 + $0x2540] sm:$0xff] }
 0x16d   :  { %2786 = vmatmul.mubr.f32.gmra.mxu0 %v163_v37  ;;  %2873 = vmatprep.subr.mxu0 %v1260_v38  ;;  %v1244_v56 = vld [vmem:[#allocation5 + $0x2128] sm:$0xff]  ;;  %v1243_v58 = vld [vmem:[#allocation5 + $0x2120] sm:$0xff] }
 0x16e   :  { %2950 = vmatprep.subr.mxu1 %v1388_v39  ;;  %2862 = vmatprep.mubr.f32.mxu1 %v166_v40  ;;  %v1372_v57 = vld [vmem:[#allocation5 + $0x2528] sm:$0xff]  ;;  %v1371_v59 = vld [vmem:[#allocation5 + $0x2520] sm:$0xff] }
 0x16f   :  { %2874 = vmatpush1.msra.mxu0 %v1259_v41  ;;  %2951 = vmatpush1.msra.mxu1 %v1387_v42  ;;  %v1240_v60 = vld [vmem:[#allocation5 + $0x2108] sm:$0xff]  ;;  %v1239_v62 = vld [vmem:[#allocation5 + $0x2100] sm:$0xff] }
 0x170   :  { %2875 = vmatprep.subr.mxu0 %v1256_v43  ;;  %2863 = vmatmul.mubr.f32.gmra.mxu1 %v165_v44  ;;  %v1368_v61 = vld [vmem:[#allocation5 + $0x2508] sm:$0xff]  ;;  %v1367_v63 = vld [vmem:[#allocation5 + $0x2500] sm:$0xff] }
 0x171   :  { %2952 = vmatprep.subr.mxu1 %v1384_v45  ;;  %2876 = vmatpush1.msra.mxu0 %v1255_v46  ;;  %v1236_v0 = vld [vmem:[#allocation5 + $0x20e8] sm:$0xff]  ;;  %v1235_v2 = vld [vmem:[#allocation5 + $0x20e0] sm:$0xff] }
 0x172   :  { %2953 = vmatpush1.msra.mxu1 %v1383_v47  ;;  %2877 = vmatprep.subr.mxu0 %v1252_v48  ;;  %v1364_v1 = vld [vmem:[#allocation5 + $0x24e8] sm:$0xff]  ;;  %v1363_v3 = vld [vmem:[#allocation5 + $0x24e0] sm:$0xff] }
 0x173   :  { %2954 = vmatprep.subr.mxu1 %v1380_v49  ;;  %2878 = vmatpush1.msra.mxu0 %v1251_v50  ;;  %v1232_v4 = vld [vmem:[#allocation5 + $0x20c8] sm:$0xff]  ;;  %v1231_v6 = vld [vmem:[#allocation5 + $0x20c0] sm:$0xff] }
 0x174   :  { %2955 = vmatpush1.msra.mxu1 %v1379_v51  ;;  %2879 = vmatprep.subr.mxu0 %v1248_v52  ;;  %v1360_v5 = vld [vmem:[#allocation5 + $0x24c8] sm:$0xff]  ;;  %v1359_v7 = vld [vmem:[#allocation5 + $0x24c0] sm:$0xff] }
 0x175   :  { %2956 = vmatprep.subr.mxu1 %v1376_v53  ;;  %2880 = vmatpush1.msra.mxu0 %v1247_v54  ;;  %v1228_v8 = vld [vmem:[#allocation5 + $0x20a8] sm:$0xff]  ;;  %v1227_v10 = vld [vmem:[#allocation5 + $0x20a0] sm:$0xff] }
 0x176   :  { %2957 = vmatpush1.msra.mxu1 %v1375_v55  ;;  %2881 = vmatprep.subr.mxu0 %v1244_v56  ;;  %v1356_v9 = vld [vmem:[#allocation5 + $0x24a8] sm:$0xff]  ;;  %v1355_v11 = vld [vmem:[#allocation5 + $0x24a0] sm:$0xff] }
 0x177   :  { %2958 = vmatprep.subr.mxu1 %v1372_v57  ;;  %2882 = vmatpush1.msra.mxu0 %v1243_v58  ;;  %v1224_v12 = vld [vmem:[#allocation5 + $0x2088] sm:$0xff]  ;;  %v1223_v14 = vld [vmem:[#allocation5 + $0x2080] sm:$0xff] }
 0x178   :  { %2959 = vmatpush1.msra.mxu1 %v1371_v59  ;;  %2883 = vmatprep.subr.mxu0 %v1240_v60  ;;  %v1352_v13 = vld [vmem:[#allocation5 + $0x2488] sm:$0xff]  ;;  %v1351_v15 = vld [vmem:[#allocation5 + $0x2480] sm:$0xff] }
 0x179   :  { %2960 = vmatprep.subr.mxu1 %v1368_v61  ;;  %2884 = vmatpush1.msra.mxu0 %v1239_v62  ;;  %v1220_v16 = vld [vmem:[#allocation5 + $0x2068] sm:$0xff]  ;;  %v1219_v18 = vld [vmem:[#allocation5 + $0x2060] sm:$0xff] }
 0x17a   :  { %2961 = vmatpush1.msra.mxu1 %v1367_v63  ;;  %2885 = vmatprep.subr.mxu0 %v1236_v0  ;;  %v1348_v17 = vld [vmem:[#allocation5 + $0x2468] sm:$0xff]  ;;  %v1347_v19 = vld [vmem:[#allocation5 + $0x2460] sm:$0xff] }
 0x17b   :  { %2962 = vmatprep.subr.mxu1 %v1364_v1  ;;  %2886 = vmatpush1.msra.mxu0 %v1235_v2  ;;  %v1216_v20 = vld [vmem:[#allocation5 + $0x2048] sm:$0xff]  ;;  %v1215_v22 = vld [vmem:[#allocation5 + $0x2040] sm:$0xff] }
 0x17c   :  { %2963 = vmatpush1.msra.mxu1 %v1363_v3  ;;  %2887 = vmatprep.subr.mxu0 %v1232_v4  ;;  %v1344_v21 = vld [vmem:[#allocation5 + $0x2448] sm:$0xff]  ;;  %v1343_v23 = vld [vmem:[#allocation5 + $0x2440] sm:$0xff] }
 0x17d   :  { %2964 = vmatprep.subr.mxu1 %v1360_v5  ;;  %2888 = vmatpush1.msra.mxu0 %v1231_v6  ;;  %v1212_v24 = vld [vmem:[#allocation5 + $0x2028] sm:$0xff]  ;;  %v1211_v26 = vld [vmem:[#allocation5 + $0x2020] sm:$0xff] }
 0x17e   :  { %2965 = vmatpush1.msra.mxu1 %v1359_v7  ;;  %2889 = vmatprep.subr.mxu0 %v1228_v8  ;;  %v1340_v25 = vld [vmem:[#allocation5 + $0x2428] sm:$0xff]  ;;  %v1339_v27 = vld [vmem:[#allocation5 + $0x2420] sm:$0xff] }
 0x17f   :  { %2966 = vmatprep.subr.mxu1 %v1356_v9  ;;  %2890 = vmatpush1.msra.mxu0 %v1227_v10  ;;  %v1208_v28 = vld [vmem:[#allocation5 + $0x2008] sm:$0xff]  ;;  %v1207_v30 = vld [vmem:[#allocation5 + $0x2000] sm:$0xff] }
 0x180   :  { %2967 = vmatpush1.msra.mxu1 %v1355_v11  ;;  %2891 = vmatprep.subr.mxu0 %v1224_v12  ;;  %v1336_v29 = vld [vmem:[#allocation5 + $0x2408] sm:$0xff]  ;;  %v1335_v31 = vld [vmem:[#allocation5 + $0x2400] sm:$0xff] }
 0x181   :  { %2968 = vmatprep.subr.mxu1 %v1352_v13  ;;  %2892 = vmatpush1.msra.mxu0 %v1223_v14  ;;  %v1332_v32 = vld [vmem:[#allocation5 + $0x23e8] sm:$0xff]  ;;  %v1331_v34 = vld [vmem:[#allocation5 + $0x23e0] sm:$0xff] }
 0x182   :  { %2969 = vmatpush1.msra.mxu1 %v1351_v15  ;;  %2893 = vmatprep.subr.mxu0 %v1220_v16  ;;  %v1460_v33 = vld [vmem:[#allocation5 + $0x27e8] sm:$0xff]  ;;  %v1459_v35 = vld [vmem:[#allocation5 + $0x27e0] sm:$0xff] }
 0x183   :  { %2970 = vmatprep.subr.mxu1 %v1348_v17  ;;  %2894 = vmatpush1.msra.mxu0 %v1219_v18  ;;  %v1328_v36 = vld [vmem:[#allocation5 + $0x23c8] sm:$0xff]  ;;  %v1327_v38 = vld [vmem:[#allocation5 + $0x23c0] sm:$0xff] }
 0x184   :  { %2971 = vmatpush1.msra.mxu1 %v1347_v19  ;;  %2895 = vmatprep.subr.mxu0 %v1216_v20  ;;  %v1456_v37 = vld [vmem:[#allocation5 + $0x27c8] sm:$0xff]  ;;  %v1455_v39 = vld [vmem:[#allocation5 + $0x27c0] sm:$0xff] }
 0x185   :  { %2972 = vmatprep.subr.mxu1 %v1344_v21  ;;  %2896 = vmatpush1.msra.mxu0 %v1215_v22  ;;  %v1324_v40 = vld [vmem:[#allocation5 + $0x23a8] sm:$0xff]  ;;  %v1323_v42 = vld [vmem:[#allocation5 + $0x23a0] sm:$0xff] }
 0x186   :  { %2973 = vmatpush1.msra.mxu1 %v1343_v23  ;;  %2897 = vmatprep.subr.mxu0 %v1212_v24  ;;  %v1452_v41 = vld [vmem:[#allocation5 + $0x27a8] sm:$0xff]  ;;  %v1451_v43 = vld [vmem:[#allocation5 + $0x27a0] sm:$0xff] }
 0x187   :  { %2974 = vmatprep.subr.mxu1 %v1340_v25  ;;  %2898 = vmatpush1.msra.mxu0 %v1211_v26  ;;  %v1320_v44 = vld [vmem:[#allocation5 + $0x2388] sm:$0xff]  ;;  %v1319_v46 = vld [vmem:[#allocation5 + $0x2380] sm:$0xff] }
 0x188   :  { %2975 = vmatpush1.msra.mxu1 %v1339_v27  ;;  %2899 = vmatprep.subr.mxu0 %v1208_v28  ;;  %v1448_v45 = vld [vmem:[#allocation5 + $0x2788] sm:$0xff]  ;;  %v1447_v47 = vld [vmem:[#allocation5 + $0x2780] sm:$0xff] }
 0x189   :  { %2976 = vmatprep.subr.mxu1 %v1336_v29  ;;  %2900 = vmatpush1.msra.mxu0 %v1207_v30  ;;  %v1316_v48 = vld [vmem:[#allocation5 + $0x2368] sm:$0xff]  ;;  %v1315_v50 = vld [vmem:[#allocation5 + $0x2360] sm:$0xff] }
 0x18a   :  { %2977 = vmatpush1.msra.mxu1 %v1335_v31  ;;  %2901 = vmatprep.subr.mxu0 %v1332_v32  ;;  %v1444_v49 = vld [vmem:[#allocation5 + $0x2768] sm:$0xff]  ;;  %v1443_v51 = vld [vmem:[#allocation5 + $0x2760] sm:$0xff] }
 0x18b   :  { %2978 = vmatprep.subr.mxu1 %v1460_v33  ;;  %2902 = vmatpush2.msra.mxu0 %v1331_v34  ;;  %v1312_v52 = vld [vmem:[#allocation5 + $0x2348] sm:$0xff]  ;;  %v1311_v54 = vld [vmem:[#allocation5 + $0x2340] sm:$0xff]  ;;  %v138_v34 = vld [vmem:[#allocation2 + $0x98] sm:$0xff] }
 0x18c   :  { %2979 = vmatpush2.msra.mxu1 %v1459_v35  ;;  %2903 = vmatprep.subr.mxu0 %v1328_v36  ;;  %v1440_v53 = vld [vmem:[#allocation5 + $0x2748] sm:$0xff]  ;;  %v1439_v55 = vld [vmem:[#allocation5 + $0x2740] sm:$0xff] }
 0x18d   :  { %2980 = vmatprep.subr.mxu1 %v1456_v37  ;;  %2904 = vmatpush2.msra.mxu0 %v1327_v38  ;;  %v1308_v56 = vld [vmem:[#allocation5 + $0x2328] sm:$0xff]  ;;  %v1307_v58 = vld [vmem:[#allocation5 + $0x2320] sm:$0xff]  ;;  %v137_v37 = vld [vmem:[#allocation2 + $0x90] sm:$0xff] }
 0x18e   :  { %2981 = vmatpush2.msra.mxu1 %v1455_v39  ;;  %2905 = vmatprep.subr.mxu0 %v1324_v40  ;;  %v1436_v57 = vld [vmem:[#allocation5 + $0x2728] sm:$0xff]  ;;  %v1435_v59 = vld [vmem:[#allocation5 + $0x2720] sm:$0xff] }
 0x18f   :  { %2982 = vmatprep.subr.mxu1 %v1452_v41  ;;  %2906 = vmatpush2.msra.mxu0 %v1323_v42  ;;  %v1304_v60 = vld [vmem:[#allocation5 + $0x2308] sm:$0xff]  ;;  %v1303_v62 = vld [vmem:[#allocation5 + $0x2300] sm:$0xff] }
 0x190   :  { %2983 = vmatpush2.msra.mxu1 %v1451_v43  ;;  %2907 = vmatprep.subr.mxu0 %v1320_v44  ;;  %v1432_v61 = vld [vmem:[#allocation5 + $0x2708] sm:$0xff]  ;;  %v1431_v63 = vld [vmem:[#allocation5 + $0x2700] sm:$0xff] }
 0x191   :  { %2984 = vmatprep.subr.mxu1 %v1448_v45  ;;  %2908 = vmatpush2.msra.mxu0 %v1319_v46  ;;  %v1300_v0 = vld [vmem:[#allocation5 + $0x22e8] sm:$0xff]  ;;  %v1299_v2 = vld [vmem:[#allocation5 + $0x22e0] sm:$0xff] }
 0x192   :  { %2985 = vmatpush2.msra.mxu1 %v1447_v47  ;;  %2909 = vmatprep.subr.mxu0 %v1316_v48  ;;  %v1428_v1 = vld [vmem:[#allocation5 + $0x26e8] sm:$0xff]  ;;  %v1427_v3 = vld [vmem:[#allocation5 + $0x26e0] sm:$0xff]  ;;  %v170_v48 = vld [vmem:[#allocation2 + $0x198] sm:$0xff] }
 0x193   :  { %2986 = vmatprep.subr.mxu1 %v1444_v49  ;;  %2910 = vmatpush2.msra.mxu0 %v1315_v50  ;;  %v1296_v4 = vld [vmem:[#allocation5 + $0x22c8] sm:$0xff]  ;;  %v1295_v6 = vld [vmem:[#allocation5 + $0x22c0] sm:$0xff] }
 0x194   :  { %2987 = vmatpush2.msra.mxu1 %v1443_v51  ;;  %2911 = vmatprep.subr.mxu0 %v1312_v52  ;;  %v1424_v5 = vld [vmem:[#allocation5 + $0x26c8] sm:$0xff]  ;;  %v1423_v7 = vld [vmem:[#allocation5 + $0x26c0] sm:$0xff]  ;;  %v169_v52 = vld [vmem:[#allocation2 + $0x190] sm:$0xff] }
 0x195   :  { %2988 = vmatprep.subr.mxu1 %v1440_v53  ;;  %2912 = vmatpush2.msra.mxu0 %v1311_v54  ;;  %v1292_v8 = vld [vmem:[#allocation5 + $0x22a8] sm:$0xff]  ;;  %v1291_v10 = vld [vmem:[#allocation5 + $0x22a0] sm:$0xff] }
 0x196   :  { %2989 = vmatpush2.msra.mxu1 %v1439_v55  ;;  %2913 = vmatprep.subr.mxu0 %v1308_v56  ;;  %v1420_v9 = vld [vmem:[#allocation5 + $0x26a8] sm:$0xff]  ;;  %v1419_v11 = vld [vmem:[#allocation5 + $0x26a0] sm:$0xff] }
 0x197   :  { %2990 = vmatprep.subr.mxu1 %v1436_v57  ;;  %2914 = vmatpush2.msra.mxu0 %v1307_v58  ;;  %v1288_v12 = vld [vmem:[#allocation5 + $0x2288] sm:$0xff]  ;;  %v1287_v14 = vld [vmem:[#allocation5 + $0x2280] sm:$0xff] }
 0x198   :  { %2991 = vmatpush2.msra.mxu1 %v1435_v59  ;;  %2915 = vmatprep.subr.mxu0 %v1304_v60  ;;  %v1416_v13 = vld [vmem:[#allocation5 + $0x2688] sm:$0xff]  ;;  %v1415_v15 = vld [vmem:[#allocation5 + $0x2680] sm:$0xff] }
 0x199   :  { %2992 = vmatprep.subr.mxu1 %v1432_v61  ;;  %2916 = vmatpush2.msra.mxu0 %v1303_v62  ;;  %v1284_v16 = vld [vmem:[#allocation5 + $0x2268] sm:$0xff]  ;;  %v1283_v18 = vld [vmem:[#allocation5 + $0x2260] sm:$0xff] }
 0x19a   :  { %2993 = vmatpush2.msra.mxu1 %v1431_v63  ;;  %2917 = vmatprep.subr.mxu0 %v1300_v0  ;;  %v1412_v17 = vld [vmem:[#allocation5 + $0x2668] sm:$0xff]  ;;  %v1411_v19 = vld [vmem:[#allocation5 + $0x2660] sm:$0xff] }
 0x19b   :  { %2994 = vmatprep.subr.mxu1 %v1428_v1  ;;  %2918 = vmatpush2.msra.mxu0 %v1299_v2  ;;  %v1280_v20 = vld [vmem:[#allocation5 + $0x2248] sm:$0xff]  ;;  %v1279_v22 = vld [vmem:[#allocation5 + $0x2240] sm:$0xff] }
 0x19c   :  { %2995 = vmatpush2.msra.mxu1 %v1427_v3  ;;  %2919 = vmatprep.subr.mxu0 %v1296_v4  ;;  %v1408_v21 = vld [vmem:[#allocation5 + $0x2648] sm:$0xff]  ;;  %v1407_v23 = vld [vmem:[#allocation5 + $0x2640] sm:$0xff] }
 0x19d   :  { %2996 = vmatprep.subr.mxu1 %v1424_v5  ;;  %2920 = vmatpush2.msra.mxu0 %v1295_v6  ;;  %v1276_v24 = vld [vmem:[#allocation5 + $0x2228] sm:$0xff]  ;;  %v1275_v26 = vld [vmem:[#allocation5 + $0x2220] sm:$0xff] }
 0x19e   :  { %2997 = vmatpush2.msra.mxu1 %v1423_v7  ;;  %2921 = vmatprep.subr.mxu0 %v1292_v8  ;;  %v1404_v25 = vld [vmem:[#allocation5 + $0x2628] sm:$0xff]  ;;  %v1403_v27 = vld [vmem:[#allocation5 + $0x2620] sm:$0xff] }
 0x19f   :  { %2998 = vmatprep.subr.mxu1 %v1420_v9  ;;  %2922 = vmatpush2.msra.mxu0 %v1291_v10  ;;  %v1272_v28 = vld [vmem:[#allocation5 + $0x2208] sm:$0xff]  ;;  %v1271_v30 = vld [vmem:[#allocation5 + $0x2200] sm:$0xff] }
 0x1a0   :  { %2999 = vmatpush2.msra.mxu1 %v1419_v11  ;;  %2923 = vmatprep.subr.mxu0 %v1288_v12  ;;  %v1400_v29 = vld [vmem:[#allocation5 + $0x2608] sm:$0xff]  ;;  %v1399_v32 = vld [vmem:[#allocation5 + $0x2600] sm:$0xff] }
 0x1a1   :  { %3000 = vmatprep.subr.mxu1 %v1416_v13  ;;  %2924 = vmatpush2.msra.mxu0 %v1287_v14  ;;  %v136_v31 = vld [vmem:[#allocation2 + $0x88] sm:$0xff]  ;;  %v135_v33 = vld [vmem:[#allocation2 + $0x80] sm:$0xff] }
 0x1a2   :  { %3001 = vmatpush2.msra.mxu1 %v1415_v15  ;;  %2925 = vmatprep.subr.mxu0 %v1284_v16  ;;  %v1524_v35 = vld [vmem:[#allocation5 + $0x29e8] sm:$0xff]  ;;  %v1523_v38 = vld [vmem:[#allocation5 + $0x29e0] sm:$0xff] }
 0x1a3   :  { %3002 = vmatprep.subr.mxu1 %v1412_v17  ;;  %2926 = vmatpush2.msra.mxu0 %v1283_v18  ;;  %v1652_v36 = vld [vmem:[#allocation5 + $0x2de8] sm:$0xff]  ;;  %v1651_v39 = vld [vmem:[#allocation5 + $0x2de0] sm:$0xff] }
 0x1a4   :  { %3003 = vmatpush2.msra.mxu1 %v1411_v19  ;;  %2927 = vmatprep.subr.mxu0 %v1280_v20  ;;  %v1520_v40 = vld [vmem:[#allocation5 + $0x29c8] sm:$0xff]  ;;  %v1519_v43 = vld [vmem:[#allocation5 + $0x29c0] sm:$0xff] }
 0x1a5   :  { %3004 = vmatprep.subr.mxu1 %v1408_v21  ;;  %2928 = vmatpush2.msra.mxu0 %v1279_v22  ;;  %v1648_v41 = vld [vmem:[#allocation5 + $0x2dc8] sm:$0xff]  ;;  %v1647_v44 = vld [vmem:[#allocation5 + $0x2dc0] sm:$0xff] }
 0x1a6   :  { %3005 = vmatpush2.msra.mxu1 %v1407_v23  ;;  %2929 = vmatprep.subr.mxu0 %v1276_v24  ;;  %v168_v42 = vld [vmem:[#allocation2 + $0x188] sm:$0xff]  ;;  %v167_v45 = vld [vmem:[#allocation2 + $0x180] sm:$0xff] }
 0x1a7   :  { %3006 = vmatprep.subr.mxu1 %v1404_v25  ;;  %2930 = vmatpush2.msra.mxu0 %v1275_v26  ;;  %v1516_v46 = vld [vmem:[#allocation5 + $0x29a8] sm:$0xff]  ;;  %v1515_v49 = vld [vmem:[#allocation5 + $0x29a0] sm:$0xff] }
 0x1a8   :  { %3007 = vmatpush2.msra.mxu1 %v1403_v27  ;;  %2931 = vmatprep.subr.mxu0 %v1272_v28  ;;  %v1644_v47 = vld [vmem:[#allocation5 + $0x2da8] sm:$0xff]  ;;  %v1643_v50 = vld [vmem:[#allocation5 + $0x2da0] sm:$0xff] }
 0x1a9   :  { %3008 = vmatprep.subr.mxu1 %v1400_v29  ;;  %2932 = vmatpush2.msra.mxu0 %v1271_v30  ;;  %v1512_v51 = vld [vmem:[#allocation5 + $0x2988] sm:$0xff]  ;;  %v1511_v54 = vld [vmem:[#allocation5 + $0x2980] sm:$0xff] }
 0x1aa   :  { %2933 = vmatprep.mubr.f32.mxu0 %v136_v31  ;;  %3009 = vmatpush2.msra.mxu1 %v1399_v32  ;;  %v1640_v53 = vld [vmem:[#allocation5 + $0x2d88] sm:$0xff]  ;;  %v1639_v55 = vld [vmem:[#allocation5 + $0x2d80] sm:$0xff] }
 0x1ab   :  { %2934 = vmatmul.mubr.f32.vlgmr.msra.gmra.mxu0 %v135_v33  ;;  %3010 = vmatprep.mubr.f32.mxu1 %v138_v34  ;;  %v1508_v56 = vld [vmem:[#allocation5 + $0x2968] sm:$0xff]  ;;  %v1507_v58 = vld [vmem:[#allocation5 + $0x2960] sm:$0xff] }
 0x1ac   :  { %3023 = vmatprep.subr.mxu0 %v1524_v35  ;;  %3100 = vmatprep.subr.mxu1 %v1652_v36  ;;  %v1636_v57 = vld [vmem:[#allocation5 + $0x2d68] sm:$0xff]  ;;  %v1635_v59 = vld [vmem:[#allocation5 + $0x2d60] sm:$0xff] }
 0x1ad   :  { %3011 = vmatmul.mubr.f32.vlgmr.msra.gmra.mxu1 %v137_v37  ;;  %3024 = vmatpush1.msra.mxu0 %v1523_v38  ;;  %v1504_v60 = vld [vmem:[#allocation5 + $0x2948] sm:$0xff]  ;;  %v1503_v62 = vld [vmem:[#allocation5 + $0x2940] sm:$0xff] }
 0x1ae   :  { %3101 = vmatpush1.msra.mxu1 %v1651_v39  ;;  %3025 = vmatprep.subr.mxu0 %v1520_v40  ;;  %v1632_v61 = vld [vmem:[#allocation5 + $0x2d48] sm:$0xff]  ;;  %v1631_v63 = vld [vmem:[#allocation5 + $0x2d40] sm:$0xff] }
 0x1af   :  { %3102 = vmatprep.subr.mxu1 %v1648_v41  ;;  %2939 = vmatprep.mubr.f32.mxu0 %v168_v42  ;;  %v1500_v0 = vld [vmem:[#allocation5 + $0x2928] sm:$0xff]  ;;  %v1499_v2 = vld [vmem:[#allocation5 + $0x2920] sm:$0xff] }
 0x1b0   :  { %3026 = vmatpush1.msra.mxu0 %v1519_v43  ;;  %3103 = vmatpush1.msra.mxu1 %v1647_v44  ;;  %v1628_v1 = vld [vmem:[#allocation5 + $0x2d28] sm:$0xff]  ;;  %v1627_v3 = vld [vmem:[#allocation5 + $0x2d20] sm:$0xff] }
 0x1b1   :  { %2940 = vmatmul.mubr.f32.gmra.mxu0 %v167_v45  ;;  %3027 = vmatprep.subr.mxu0 %v1516_v46  ;;  %v1496_v4 = vld [vmem:[#allocation5 + $0x2908] sm:$0xff]  ;;  %v1495_v6 = vld [vmem:[#allocation5 + $0x2900] sm:$0xff] }
 0x1b2   :  { %3104 = vmatprep.subr.mxu1 %v1644_v47  ;;  %3016 = vmatprep.mubr.f32.mxu1 %v170_v48  ;;  %v1624_v5 = vld [vmem:[#allocation5 + $0x2d08] sm:$0xff]  ;;  %v1623_v7 = vld [vmem:[#allocation5 + $0x2d00] sm:$0xff] }
 0x1b3   :  { %3028 = vmatpush1.msra.mxu0 %v1515_v49  ;;  %3105 = vmatpush1.msra.mxu1 %v1643_v50  ;;  %v1492_v8 = vld [vmem:[#allocation5 + $0x28e8] sm:$0xff]  ;;  %v1491_v10 = vld [vmem:[#allocation5 + $0x28e0] sm:$0xff] }
 0x1b4   :  { %3029 = vmatprep.subr.mxu0 %v1512_v51  ;;  %3017 = vmatmul.mubr.f32.gmra.mxu1 %v169_v52  ;;  %v1620_v9 = vld [vmem:[#allocation5 + $0x2ce8] sm:$0xff]  ;;  %v1619_v11 = vld [vmem:[#allocation5 + $0x2ce0] sm:$0xff] }
 0x1b5   :  { %3106 = vmatprep.subr.mxu1 %v1640_v53  ;;  %3030 = vmatpush1.msra.mxu0 %v1511_v54  ;;  %v1488_v12 = vld [vmem:[#allocation5 + $0x28c8] sm:$0xff]  ;;  %v1487_v14 = vld [vmem:[#allocation5 + $0x28c0] sm:$0xff] }
 0x1b6   :  { %3107 = vmatpush1.msra.mxu1 %v1639_v55  ;;  %3031 = vmatprep.subr.mxu0 %v1508_v56  ;;  %v1616_v13 = vld [vmem:[#allocation5 + $0x2cc8] sm:$0xff]  ;;  %v1615_v15 = vld [vmem:[#allocation5 + $0x2cc0] sm:$0xff] }
 0x1b7   :  { %3108 = vmatprep.subr.mxu1 %v1636_v57  ;;  %3032 = vmatpush1.msra.mxu0 %v1507_v58  ;;  %v1484_v16 = vld [vmem:[#allocation5 + $0x28a8] sm:$0xff]  ;;  %v1483_v18 = vld [vmem:[#allocation5 + $0x28a0] sm:$0xff] }
 0x1b8   :  { %3109 = vmatpush1.msra.mxu1 %v1635_v59  ;;  %3033 = vmatprep.subr.mxu0 %v1504_v60  ;;  %v1612_v17 = vld [vmem:[#allocation5 + $0x2ca8] sm:$0xff]  ;;  %v1611_v19 = vld [vmem:[#allocation5 + $0x2ca0] sm:$0xff] }
 0x1b9   :  { %3110 = vmatprep.subr.mxu1 %v1632_v61  ;;  %3034 = vmatpush1.msra.mxu0 %v1503_v62  ;;  %v1480_v20 = vld [vmem:[#allocation5 + $0x2888] sm:$0xff]  ;;  %v1479_v22 = vld [vmem:[#allocation5 + $0x2880] sm:$0xff] }
 0x1ba   :  { %3111 = vmatpush1.msra.mxu1 %v1631_v63  ;;  %3035 = vmatprep.subr.mxu0 %v1500_v0  ;;  %v1608_v21 = vld [vmem:[#allocation5 + $0x2c88] sm:$0xff]  ;;  %v1607_v23 = vld [vmem:[#allocation5 + $0x2c80] sm:$0xff] }
 0x1bb   :  { %3112 = vmatprep.subr.mxu1 %v1628_v1  ;;  %3036 = vmatpush1.msra.mxu0 %v1499_v2  ;;  %v1476_v24 = vld [vmem:[#allocation5 + $0x2868] sm:$0xff]  ;;  %v1475_v26 = vld [vmem:[#allocation5 + $0x2860] sm:$0xff] }
 0x1bc   :  { %3113 = vmatpush1.msra.mxu1 %v1627_v3  ;;  %3037 = vmatprep.subr.mxu0 %v1496_v4  ;;  %v1604_v25 = vld [vmem:[#allocation5 + $0x2c68] sm:$0xff]  ;;  %v1603_v27 = vld [vmem:[#allocation5 + $0x2c60] sm:$0xff] }
 0x1bd   :  { %3114 = vmatprep.subr.mxu1 %v1624_v5  ;;  %3038 = vmatpush1.msra.mxu0 %v1495_v6  ;;  %v1472_v28 = vld [vmem:[#allocation5 + $0x2848] sm:$0xff]  ;;  %v1471_v30 = vld [vmem:[#allocation5 + $0x2840] sm:$0xff] }
 0x1be   :  { %3115 = vmatpush1.msra.mxu1 %v1623_v7  ;;  %3039 = vmatprep.subr.mxu0 %v1492_v8  ;;  %v1600_v29 = vld [vmem:[#allocation5 + $0x2c48] sm:$0xff]  ;;  %v1599_v31 = vld [vmem:[#allocation5 + $0x2c40] sm:$0xff] }
 0x1bf   :  { %3116 = vmatprep.subr.mxu1 %v1620_v9  ;;  %3040 = vmatpush1.msra.mxu0 %v1491_v10  ;;  %v1468_v32 = vld [vmem:[#allocation5 + $0x2828] sm:$0xff]  ;;  %v1467_v34 = vld [vmem:[#allocation5 + $0x2820] sm:$0xff] }
 0x1c0   :  { %3117 = vmatpush1.msra.mxu1 %v1619_v11  ;;  %3041 = vmatprep.subr.mxu0 %v1488_v12  ;;  %v1596_v33 = vld [vmem:[#allocation5 + $0x2c28] sm:$0xff]  ;;  %v1595_v35 = vld [vmem:[#allocation5 + $0x2c20] sm:$0xff] }
 0x1c1   :  { %3118 = vmatprep.subr.mxu1 %v1616_v13  ;;  %3042 = vmatpush1.msra.mxu0 %v1487_v14  ;;  %v1464_v36 = vld [vmem:[#allocation5 + $0x2808] sm:$0xff]  ;;  %v1463_v38 = vld [vmem:[#allocation5 + $0x2800] sm:$0xff] }
 0x1c2   :  { %3119 = vmatpush1.msra.mxu1 %v1615_v15  ;;  %3043 = vmatprep.subr.mxu0 %v1484_v16  ;;  %v1592_v37 = vld [vmem:[#allocation5 + $0x2c08] sm:$0xff]  ;;  %v1591_v39 = vld [vmem:[#allocation5 + $0x2c00] sm:$0xff] }
 0x1c3   :  { %3120 = vmatprep.subr.mxu1 %v1612_v17  ;;  %3044 = vmatpush1.msra.mxu0 %v1483_v18  ;;  %v1588_v40 = vld [vmem:[#allocation5 + $0x2be8] sm:$0xff]  ;;  %v1587_v42 = vld [vmem:[#allocation5 + $0x2be0] sm:$0xff] }
 0x1c4   :  { %3121 = vmatpush1.msra.mxu1 %v1611_v19  ;;  %3045 = vmatprep.subr.mxu0 %v1480_v20  ;;  %v1716_v41 = vld [vmem:[#allocation5 + $0x2fe8] sm:$0xff]  ;;  %v1715_v43 = vld [vmem:[#allocation5 + $0x2fe0] sm:$0xff] }
 0x1c5   :  { %3122 = vmatprep.subr.mxu1 %v1608_v21  ;;  %3046 = vmatpush1.msra.mxu0 %v1479_v22  ;;  %v1584_v44 = vld [vmem:[#allocation5 + $0x2bc8] sm:$0xff]  ;;  %v1583_v46 = vld [vmem:[#allocation5 + $0x2bc0] sm:$0xff] }
 0x1c6   :  { %3123 = vmatpush1.msra.mxu1 %v1607_v23  ;;  %3047 = vmatprep.subr.mxu0 %v1476_v24  ;;  %v1712_v45 = vld [vmem:[#allocation5 + $0x2fc8] sm:$0xff]  ;;  %v1711_v47 = vld [vmem:[#allocation5 + $0x2fc0] sm:$0xff] }
 0x1c7   :  { %3124 = vmatprep.subr.mxu1 %v1604_v25  ;;  %3048 = vmatpush1.msra.mxu0 %v1475_v26  ;;  %v1580_v48 = vld [vmem:[#allocation5 + $0x2ba8] sm:$0xff]  ;;  %v1579_v50 = vld [vmem:[#allocation5 + $0x2ba0] sm:$0xff] }
 0x1c8   :  { %3125 = vmatpush1.msra.mxu1 %v1603_v27  ;;  %3049 = vmatprep.subr.mxu0 %v1472_v28  ;;  %v1708_v49 = vld [vmem:[#allocation5 + $0x2fa8] sm:$0xff]  ;;  %v1707_v51 = vld [vmem:[#allocation5 + $0x2fa0] sm:$0xff] }
 0x1c9   :  { %3126 = vmatprep.subr.mxu1 %v1600_v29  ;;  %3050 = vmatpush1.msra.mxu0 %v1471_v30  ;;  %v1576_v52 = vld [vmem:[#allocation5 + $0x2b88] sm:$0xff]  ;;  %v1575_v54 = vld [vmem:[#allocation5 + $0x2b80] sm:$0xff] }
 0x1ca   :  { %3127 = vmatpush1.msra.mxu1 %v1599_v31  ;;  %3051 = vmatprep.subr.mxu0 %v1468_v32  ;;  %v1704_v53 = vld [vmem:[#allocation5 + $0x2f88] sm:$0xff]  ;;  %v1703_v55 = vld [vmem:[#allocation5 + $0x2f80] sm:$0xff] }
 0x1cb   :  { %3128 = vmatprep.subr.mxu1 %v1596_v33  ;;  %3052 = vmatpush1.msra.mxu0 %v1467_v34  ;;  %v1572_v56 = vld [vmem:[#allocation5 + $0x2b68] sm:$0xff]  ;;  %v1571_v58 = vld [vmem:[#allocation5 + $0x2b60] sm:$0xff] }
 0x1cc   :  { %3129 = vmatpush1.msra.mxu1 %v1595_v35  ;;  %3053 = vmatprep.subr.mxu0 %v1464_v36  ;;  %v1700_v57 = vld [vmem:[#allocation5 + $0x2f68] sm:$0xff]  ;;  %v1699_v59 = vld [vmem:[#allocation5 + $0x2f60] sm:$0xff] }
 0x1cd   :  { %3130 = vmatprep.subr.mxu1 %v1592_v37  ;;  %3054 = vmatpush1.msra.mxu0 %v1463_v38  ;;  %v1568_v60 = vld [vmem:[#allocation5 + $0x2b48] sm:$0xff]  ;;  %v1567_v62 = vld [vmem:[#allocation5 + $0x2b40] sm:$0xff] }
 0x1ce   :  { %3131 = vmatpush1.msra.mxu1 %v1591_v39  ;;  %3055 = vmatprep.subr.mxu0 %v1588_v40  ;;  %v1696_v61 = vld [vmem:[#allocation5 + $0x2f48] sm:$0xff]  ;;  %v1695_v63 = vld [vmem:[#allocation5 + $0x2f40] sm:$0xff] }
 0x1cf   :  { %3132 = vmatprep.subr.mxu1 %v1716_v41  ;;  %3056 = vmatpush2.msra.mxu0 %v1587_v42  ;;  %v1564_v0 = vld [vmem:[#allocation5 + $0x2b28] sm:$0xff]  ;;  %v1563_v2 = vld [vmem:[#allocation5 + $0x2b20] sm:$0xff]  ;;  %v142_v42 = vld [vmem:[#allocation2 + $0xb8] sm:$0xff] }
 0x1d0   :  { %3133 = vmatpush2.msra.mxu1 %v1715_v43  ;;  %3057 = vmatprep.subr.mxu0 %v1584_v44  ;;  %v1692_v1 = vld [vmem:[#allocation5 + $0x2f28] sm:$0xff]  ;;  %v1691_v3 = vld [vmem:[#allocation5 + $0x2f20] sm:$0xff] }
 0x1d1   :  { %3134 = vmatprep.subr.mxu1 %v1712_v45  ;;  %3058 = vmatpush2.msra.mxu0 %v1583_v46  ;;  %v1560_v4 = vld [vmem:[#allocation5 + $0x2b08] sm:$0xff]  ;;  %v1559_v6 = vld [vmem:[#allocation5 + $0x2b00] sm:$0xff]  ;;  %v141_v45 = vld [vmem:[#allocation2 + $0xb0] sm:$0xff] }
 0x1d2   :  { %3135 = vmatpush2.msra.mxu1 %v1711_v47  ;;  %3059 = vmatprep.subr.mxu0 %v1580_v48  ;;  %v1688_v5 = vld [vmem:[#allocation5 + $0x2f08] sm:$0xff]  ;;  %v1687_v7 = vld [vmem:[#allocation5 + $0x2f00] sm:$0xff] }
 0x1d3   :  { %3136 = vmatprep.subr.mxu1 %v1708_v49  ;;  %3060 = vmatpush2.msra.mxu0 %v1579_v50  ;;  %v1556_v8 = vld [vmem:[#allocation5 + $0x2ae8] sm:$0xff]  ;;  %v1555_v10 = vld [vmem:[#allocation5 + $0x2ae0] sm:$0xff] }
 0x1d4   :  { %3137 = vmatpush2.msra.mxu1 %v1707_v51  ;;  %3061 = vmatprep.subr.mxu0 %v1576_v52  ;;  %v1684_v9 = vld [vmem:[#allocation5 + $0x2ee8] sm:$0xff]  ;;  %v1683_v11 = vld [vmem:[#allocation5 + $0x2ee0] sm:$0xff] }
 0x1d5   :  { %3138 = vmatprep.subr.mxu1 %v1704_v53  ;;  %3062 = vmatpush2.msra.mxu0 %v1575_v54  ;;  %v1552_v12 = vld [vmem:[#allocation5 + $0x2ac8] sm:$0xff]  ;;  %v1551_v14 = vld [vmem:[#allocation5 + $0x2ac0] sm:$0xff] }
 0x1d6   :  { %3139 = vmatpush2.msra.mxu1 %v1703_v55  ;;  %3063 = vmatprep.subr.mxu0 %v1572_v56  ;;  %v1680_v13 = vld [vmem:[#allocation5 + $0x2ec8] sm:$0xff]  ;;  %v1679_v15 = vld [vmem:[#allocation5 + $0x2ec0] sm:$0xff]  ;;  %v174_v56 = vld [vmem:[#allocation2 + $0x1b8] sm:$0xff] }
 0x1d7   :  { %3140 = vmatprep.subr.mxu1 %v1700_v57  ;;  %3064 = vmatpush2.msra.mxu0 %v1571_v58  ;;  %v1548_v16 = vld [vmem:[#allocation5 + $0x2aa8] sm:$0xff]  ;;  %v1547_v18 = vld [vmem:[#allocation5 + $0x2aa0] sm:$0xff] }
 0x1d8   :  { %3141 = vmatpush2.msra.mxu1 %v1699_v59  ;;  %3065 = vmatprep.subr.mxu0 %v1568_v60  ;;  %v1676_v17 = vld [vmem:[#allocation5 + $0x2ea8] sm:$0xff]  ;;  %v1675_v19 = vld [vmem:[#allocation5 + $0x2ea0] sm:$0xff]  ;;  %v173_v60 = vld [vmem:[#allocation2 + $0x1b0] sm:$0xff] }
 0x1d9   :  { %3142 = vmatprep.subr.mxu1 %v1696_v61  ;;  %3066 = vmatpush2.msra.mxu0 %v1567_v62  ;;  %v1544_v20 = vld [vmem:[#allocation5 + $0x2a88] sm:$0xff]  ;;  %v1543_v22 = vld [vmem:[#allocation5 + $0x2a80] sm:$0xff] }
 0x1da   :  { %3143 = vmatpush2.msra.mxu1 %v1695_v63  ;;  %3067 = vmatprep.subr.mxu0 %v1564_v0  ;;  %v1672_v21 = vld [vmem:[#allocation5 + $0x2e88] sm:$0xff]  ;;  %v1671_v23 = vld [vmem:[#allocation5 + $0x2e80] sm:$0xff] }
 0x1db   :  { %3144 = vmatprep.subr.mxu1 %v1692_v1  ;;  %3068 = vmatpush2.msra.mxu0 %v1563_v2  ;;  %v1540_v24 = vld [vmem:[#allocation5 + $0x2a68] sm:$0xff]  ;;  %v1539_v26 = vld [vmem:[#allocation5 + $0x2a60] sm:$0xff] }
 0x1dc   :  { %3145 = vmatpush2.msra.mxu1 %v1691_v3  ;;  %3069 = vmatprep.subr.mxu0 %v1560_v4  ;;  %v1668_v25 = vld [vmem:[#allocation5 + $0x2e68] sm:$0xff]  ;;  %v1667_v27 = vld [vmem:[#allocation5 + $0x2e60] sm:$0xff] }
 0x1dd   :  { %3146 = vmatprep.subr.mxu1 %v1688_v5  ;;  %3070 = vmatpush2.msra.mxu0 %v1559_v6  ;;  %v1536_v28 = vld [vmem:[#allocation5 + $0x2a48] sm:$0xff]  ;;  %v1535_v30 = vld [vmem:[#allocation5 + $0x2a40] sm:$0xff] }
 0x1de   :  { %3147 = vmatpush2.msra.mxu1 %v1687_v7  ;;  %3071 = vmatprep.subr.mxu0 %v1556_v8  ;;  %v1664_v29 = vld [vmem:[#allocation5 + $0x2e48] sm:$0xff]  ;;  %v1663_v31 = vld [vmem:[#allocation5 + $0x2e40] sm:$0xff] }
 0x1df   :  { %3148 = vmatprep.subr.mxu1 %v1684_v9  ;;  %3072 = vmatpush2.msra.mxu0 %v1555_v10  ;;  %v1532_v32 = vld [vmem:[#allocation5 + $0x2a28] sm:$0xff]  ;;  %v1531_v34 = vld [vmem:[#allocation5 + $0x2a20] sm:$0xff] }
 0x1e0   :  { %3149 = vmatpush2.msra.mxu1 %v1683_v11  ;;  %3073 = vmatprep.subr.mxu0 %v1552_v12  ;;  %v1660_v33 = vld [vmem:[#allocation5 + $0x2e28] sm:$0xff]  ;;  %v1659_v35 = vld [vmem:[#allocation5 + $0x2e20] sm:$0xff] }
 0x1e1   :  { %3150 = vmatprep.subr.mxu1 %v1680_v13  ;;  %3074 = vmatpush2.msra.mxu0 %v1551_v14  ;;  %v1528_v36 = vld [vmem:[#allocation5 + $0x2a08] sm:$0xff]  ;;  %v1527_v38 = vld [vmem:[#allocation5 + $0x2a00] sm:$0xff] }
 0x1e2   :  { %3151 = vmatpush2.msra.mxu1 %v1679_v15  ;;  %3075 = vmatprep.subr.mxu0 %v1548_v16  ;;  %v1656_v37 = vld [vmem:[#allocation5 + $0x2e08] sm:$0xff]  ;;  %v1655_v40 = vld [vmem:[#allocation5 + $0x2e00] sm:$0xff] }
 0x1e3   :  { %3152 = vmatprep.subr.mxu1 %v1676_v17  ;;  %3076 = vmatpush2.msra.mxu0 %v1547_v18  ;;  %v140_v39 = vld [vmem:[#allocation2 + $0xa8] sm:$0xff]  ;;  %v139_v41 = vld [vmem:[#allocation2 + $0xa0] sm:$0xff] }
 0x1e4   :  { %3153 = vmatpush2.msra.mxu1 %v1675_v19  ;;  %3077 = vmatprep.subr.mxu0 %v1544_v20  ;;  %v1780_v43 = vld [vmem:[#allocation5 + $0x31e8] sm:$0xff]  ;;  %v1779_v46 = vld [vmem:[#allocation5 + $0x31e0] sm:$0xff] }
 0x1e5   :  { %3154 = vmatprep.subr.mxu1 %v1672_v21  ;;  %3078 = vmatpush2.msra.mxu0 %v1543_v22  ;;  %v1908_v44 = vld [vmem:[#allocation5 + $0x35e8] sm:$0xff]  ;;  %v1907_v47 = vld [vmem:[#allocation5 + $0x35e0] sm:$0xff] }
 0x1e6   :  { %3155 = vmatpush2.msra.mxu1 %v1671_v23  ;;  %3079 = vmatprep.subr.mxu0 %v1540_v24  ;;  %v1776_v48 = vld [vmem:[#allocation5 + $0x31c8] sm:$0xff]  ;;  %v1775_v51 = vld [vmem:[#allocation5 + $0x31c0] sm:$0xff] }
 0x1e7   :  { %3156 = vmatprep.subr.mxu1 %v1668_v25  ;;  %3080 = vmatpush2.msra.mxu0 %v1539_v26  ;;  %v1904_v49 = vld [vmem:[#allocation5 + $0x35c8] sm:$0xff]  ;;  %v1903_v52 = vld [vmem:[#allocation5 + $0x35c0] sm:$0xff] }
 0x1e8   :  { %3157 = vmatpush2.msra.mxu1 %v1667_v27  ;;  %3081 = vmatprep.subr.mxu0 %v1536_v28  ;;  %v172_v50 = vld [vmem:[#allocation2 + $0x1a8] sm:$0xff]  ;;  %v171_v53 = vld [vmem:[#allocation2 + $0x1a0] sm:$0xff] }
 0x1e9   :  { %3158 = vmatprep.subr.mxu1 %v1664_v29  ;;  %3082 = vmatpush2.msra.mxu0 %v1535_v30  ;;  %v1772_v54 = vld [vmem:[#allocation5 + $0x31a8] sm:$0xff]  ;;  %v1771_v57 = vld [vmem:[#allocation5 + $0x31a0] sm:$0xff] }
 0x1ea   :  { %3159 = vmatpush2.msra.mxu1 %v1663_v31  ;;  %3083 = vmatprep.subr.mxu0 %v1532_v32  ;;  %v1900_v55 = vld [vmem:[#allocation5 + $0x35a8] sm:$0xff]  ;;  %v1899_v58 = vld [vmem:[#allocation5 + $0x35a0] sm:$0xff] }
 0x1eb   :  { %3160 = vmatprep.subr.mxu1 %v1660_v33  ;;  %3084 = vmatpush2.msra.mxu0 %v1531_v34  ;;  %v1768_v59 = vld [vmem:[#allocation5 + $0x3188] sm:$0xff]  ;;  %v1767_v62 = vld [vmem:[#allocation5 + $0x3180] sm:$0xff] }
 0x1ec   :  { %3161 = vmatpush2.msra.mxu1 %v1659_v35  ;;  %3085 = vmatprep.subr.mxu0 %v1528_v36  ;;  %v1896_v61 = vld [vmem:[#allocation5 + $0x3588] sm:$0xff]  ;;  %v1895_v63 = vld [vmem:[#allocation5 + $0x3580] sm:$0xff] }
 0x1ed   :  { %3162 = vmatprep.subr.mxu1 %v1656_v37  ;;  %3086 = vmatpush2.msra.mxu0 %v1527_v38  ;;  %v1764_v0 = vld [vmem:[#allocation5 + $0x3168] sm:$0xff]  ;;  %v1763_v2 = vld [vmem:[#allocation5 + $0x3160] sm:$0xff] }
 0x1ee   :  { %3087 = vmatprep.mubr.f32.mxu0 %v140_v39  ;;  %3163 = vmatpush2.msra.mxu1 %v1655_v40  ;;  %v1892_v1 = vld [vmem:[#allocation5 + $0x3568] sm:$0xff]  ;;  %v1891_v3 = vld [vmem:[#allocation5 + $0x3560] sm:$0xff] }
 0x1ef   :  { %3088 = vmatmul.mubr.f32.vlgmr.msra.gmra.mxu0 %v139_v41  ;;  %3164 = vmatprep.mubr.f32.mxu1 %v142_v42  ;;  %v1760_v4 = vld [vmem:[#allocation5 + $0x3148] sm:$0xff]  ;;  %v1759_v6 = vld [vmem:[#allocation5 + $0x3140] sm:$0xff] }
 0x1f0   :  { %3177 = vmatprep.subr.mxu0 %v1780_v43  ;;  %3254 = vmatprep.subr.mxu1 %v1908_v44  ;;  %v1888_v5 = vld [vmem:[#allocation5 + $0x3548] sm:$0xff]  ;;  %v1887_v7 = vld [vmem:[#allocation5 + $0x3540] sm:$0xff] }
 0x1f1   :  { %3165 = vmatmul.mubr.f32.vlgmr.msra.gmra.mxu1 %v141_v45  ;;  %3178 = vmatpush1.msra.mxu0 %v1779_v46  ;;  %v1756_v8 = vld [vmem:[#allocation5 + $0x3128] sm:$0xff]  ;;  %v1755_v10 = vld [vmem:[#allocation5 + $0x3120] sm:$0xff] }
 0x1f2   :  { %3255 = vmatpush1.msra.mxu1 %v1907_v47  ;;  %3179 = vmatprep.subr.mxu0 %v1776_v48  ;;  %v1884_v9 = vld [vmem:[#allocation5 + $0x3528] sm:$0xff]  ;;  %v1883_v11 = vld [vmem:[#allocation5 + $0x3520] sm:$0xff] }
 0x1f3   :  { %3256 = vmatprep.subr.mxu1 %v1904_v49  ;;  %3093 = vmatprep.mubr.f32.mxu0 %v172_v50  ;;  %v1752_v12 = vld [vmem:[#allocation5 + $0x3108] sm:$0xff]  ;;  %v1751_v14 = vld [vmem:[#allocation5 + $0x3100] sm:$0xff] }
 0x1f4   :  { %3180 = vmatpush1.msra.mxu0 %v1775_v51  ;;  %3257 = vmatpush1.msra.mxu1 %v1903_v52  ;;  %v1880_v13 = vld [vmem:[#allocation5 + $0x3508] sm:$0xff]  ;;  %v1879_v15 = vld [vmem:[#allocation5 + $0x3500] sm:$0xff] }
 0x1f5   :  { %3094 = vmatmul.mubr.f32.gmra.mxu0 %v171_v53  ;;  %3181 = vmatprep.subr.mxu0 %v1772_v54  ;;  %v1748_v16 = vld [vmem:[#allocation5 + $0x30e8] sm:$0xff]  ;;  %v1747_v18 = vld [vmem:[#allocation5 + $0x30e0] sm:$0xff] }
 0x1f6   :  { %3258 = vmatprep.subr.mxu1 %v1900_v55  ;;  %3170 = vmatprep.mubr.f32.mxu1 %v174_v56  ;;  %v1876_v17 = vld [vmem:[#allocation5 + $0x34e8] sm:$0xff]  ;;  %v1875_v19 = vld [vmem:[#allocation5 + $0x34e0] sm:$0xff] }
 0x1f7   :  { %3182 = vmatpush1.msra.mxu0 %v1771_v57  ;;  %3259 = vmatpush1.msra.mxu1 %v1899_v58  ;;  %v1744_v20 = vld [vmem:[#allocation5 + $0x30c8] sm:$0xff]  ;;  %v1743_v22 = vld [vmem:[#allocation5 + $0x30c0] sm:$0xff] }
 0x1f8   :  { %3183 = vmatprep.subr.mxu0 %v1768_v59  ;;  %3171 = vmatmul.mubr.f32.gmra.mxu1 %v173_v60  ;;  %v1872_v21 = vld [vmem:[#allocation5 + $0x34c8] sm:$0xff]  ;;  %v1871_v23 = vld [vmem:[#allocation5 + $0x34c0] sm:$0xff] }
 0x1f9   :  { %3260 = vmatprep.subr.mxu1 %v1896_v61  ;;  %3184 = vmatpush1.msra.mxu0 %v1767_v62  ;;  %v1740_v24 = vld [vmem:[#allocation5 + $0x30a8] sm:$0xff]  ;;  %v1739_v26 = vld [vmem:[#allocation5 + $0x30a0] sm:$0xff] }
 0x1fa   :  { %3261 = vmatpush1.msra.mxu1 %v1895_v63  ;;  %3185 = vmatprep.subr.mxu0 %v1764_v0  ;;  %v1868_v25 = vld [vmem:[#allocation5 + $0x34a8] sm:$0xff]  ;;  %v1867_v27 = vld [vmem:[#allocation5 + $0x34a0] sm:$0xff] }
 0x1fb   :  { %3262 = vmatprep.subr.mxu1 %v1892_v1  ;;  %3186 = vmatpush1.msra.mxu0 %v1763_v2  ;;  %v1736_v28 = vld [vmem:[#allocation5 + $0x3088] sm:$0xff]  ;;  %v1735_v30 = vld [vmem:[#allocation5 + $0x3080] sm:$0xff] }
 0x1fc   :  { %3263 = vmatpush1.msra.mxu1 %v1891_v3  ;;  %3187 = vmatprep.subr.mxu0 %v1760_v4  ;;  %v1864_v29 = vld [vmem:[#allocation5 + $0x3488] sm:$0xff]  ;;  %v1863_v31 = vld [vmem:[#allocation5 + $0x3480] sm:$0xff] }
 0x1fd   :  { %3264 = vmatprep.subr.mxu1 %v1888_v5  ;;  %3188 = vmatpush1.msra.mxu0 %v1759_v6  ;;  %v1732_v32 = vld [vmem:[#allocation5 + $0x3068] sm:$0xff]  ;;  %v1731_v34 = vld [vmem:[#allocation5 + $0x3060] sm:$0xff] }
 0x1fe   :  { %3265 = vmatpush1.msra.mxu1 %v1887_v7  ;;  %3189 = vmatprep.subr.mxu0 %v1756_v8  ;;  %v1860_v33 = vld [vmem:[#allocation5 + $0x3468] sm:$0xff]  ;;  %v1859_v35 = vld [vmem:[#allocation5 + $0x3460] sm:$0xff] }
 0x1ff   :  { %3266 = vmatprep.subr.mxu1 %v1884_v9  ;;  %3190 = vmatpush1.msra.mxu0 %v1755_v10  ;;  %v1728_v36 = vld [vmem:[#allocation5 + $0x3048] sm:$0xff]  ;;  %v1727_v38 = vld [vmem:[#allocation5 + $0x3040] sm:$0xff] }
 0x200   :  { %3267 = vmatpush1.msra.mxu1 %v1883_v11  ;;  %3191 = vmatprep.subr.mxu0 %v1752_v12  ;;  %v1856_v37 = vld [vmem:[#allocation5 + $0x3448] sm:$0xff]  ;;  %v1855_v39 = vld [vmem:[#allocation5 + $0x3440] sm:$0xff] }
 0x201   :  { %3268 = vmatprep.subr.mxu1 %v1880_v13  ;;  %3192 = vmatpush1.msra.mxu0 %v1751_v14  ;;  %v1724_v40 = vld [vmem:[#allocation5 + $0x3028] sm:$0xff]  ;;  %v1723_v42 = vld [vmem:[#allocation5 + $0x3020] sm:$0xff] }
 0x202   :  { %3269 = vmatpush1.msra.mxu1 %v1879_v15  ;;  %3193 = vmatprep.subr.mxu0 %v1748_v16  ;;  %v1852_v41 = vld [vmem:[#allocation5 + $0x3428] sm:$0xff]  ;;  %v1851_v43 = vld [vmem:[#allocation5 + $0x3420] sm:$0xff] }
 0x203   :  { %3270 = vmatprep.subr.mxu1 %v1876_v17  ;;  %3194 = vmatpush1.msra.mxu0 %v1747_v18  ;;  %v1720_v44 = vld [vmem:[#allocation5 + $0x3008] sm:$0xff]  ;;  %v1719_v46 = vld [vmem:[#allocation5 + $0x3000] sm:$0xff] }
 0x204   :  { %3271 = vmatpush1.msra.mxu1 %v1875_v19  ;;  %3195 = vmatprep.subr.mxu0 %v1744_v20  ;;  %v1848_v45 = vld [vmem:[#allocation5 + $0x3408] sm:$0xff]  ;;  %v1847_v47 = vld [vmem:[#allocation5 + $0x3400] sm:$0xff] }
 0x205   :  { %3272 = vmatprep.subr.mxu1 %v1872_v21  ;;  %3196 = vmatpush1.msra.mxu0 %v1743_v22  ;;  %v1844_v48 = vld [vmem:[#allocation5 + $0x33e8] sm:$0xff]  ;;  %v1843_v50 = vld [vmem:[#allocation5 + $0x33e0] sm:$0xff] }
 0x206   :  { %3273 = vmatpush1.msra.mxu1 %v1871_v23  ;;  %3197 = vmatprep.subr.mxu0 %v1740_v24  ;;  %v1972_v49 = vld [vmem:[#allocation5 + $0x37e8] sm:$0xff]  ;;  %v1971_v51 = vld [vmem:[#allocation5 + $0x37e0] sm:$0xff] }
 0x207   :  { %3274 = vmatprep.subr.mxu1 %v1868_v25  ;;  %3198 = vmatpush1.msra.mxu0 %v1739_v26  ;;  %v1840_v52 = vld [vmem:[#allocation5 + $0x33c8] sm:$0xff]  ;;  %v1839_v54 = vld [vmem:[#allocation5 + $0x33c0] sm:$0xff] }
 0x208   :  { %3275 = vmatpush1.msra.mxu1 %v1867_v27  ;;  %3199 = vmatprep.subr.mxu0 %v1736_v28  ;;  %v1968_v53 = vld [vmem:[#allocation5 + $0x37c8] sm:$0xff]  ;;  %v1967_v55 = vld [vmem:[#allocation5 + $0x37c0] sm:$0xff] }
 0x209   :  { %3276 = vmatprep.subr.mxu1 %v1864_v29  ;;  %3200 = vmatpush1.msra.mxu0 %v1735_v30  ;;  %v1836_v56 = vld [vmem:[#allocation5 + $0x33a8] sm:$0xff]  ;;  %v1835_v58 = vld [vmem:[#allocation5 + $0x33a0] sm:$0xff] }
 0x20a   :  { %3277 = vmatpush1.msra.mxu1 %v1863_v31  ;;  %3201 = vmatprep.subr.mxu0 %v1732_v32  ;;  %v1964_v57 = vld [vmem:[#allocation5 + $0x37a8] sm:$0xff]  ;;  %v1963_v59 = vld [vmem:[#allocation5 + $0x37a0] sm:$0xff] }
 0x20b   :  { %3278 = vmatprep.subr.mxu1 %v1860_v33  ;;  %3202 = vmatpush1.msra.mxu0 %v1731_v34  ;;  %v1832_v60 = vld [vmem:[#allocation5 + $0x3388] sm:$0xff]  ;;  %v1831_v62 = vld [vmem:[#allocation5 + $0x3380] sm:$0xff] }
 0x20c   :  { %3279 = vmatpush1.msra.mxu1 %v1859_v35  ;;  %3203 = vmatprep.subr.mxu0 %v1728_v36  ;;  %v1960_v61 = vld [vmem:[#allocation5 + $0x3788] sm:$0xff]  ;;  %v1959_v63 = vld [vmem:[#allocation5 + $0x3780] sm:$0xff] }
 0x20d   :  { %3280 = vmatprep.subr.mxu1 %v1856_v37  ;;  %3204 = vmatpush1.msra.mxu0 %v1727_v38  ;;  %v1828_v0 = vld [vmem:[#allocation5 + $0x3368] sm:$0xff]  ;;  %v1827_v2 = vld [vmem:[#allocation5 + $0x3360] sm:$0xff] }
 0x20e   :  { %3281 = vmatpush1.msra.mxu1 %v1855_v39  ;;  %3205 = vmatprep.subr.mxu0 %v1724_v40  ;;  %v1956_v1 = vld [vmem:[#allocation5 + $0x3768] sm:$0xff]  ;;  %v1955_v3 = vld [vmem:[#allocation5 + $0x3760] sm:$0xff] }
 0x20f   :  { %3282 = vmatprep.subr.mxu1 %v1852_v41  ;;  %3206 = vmatpush1.msra.mxu0 %v1723_v42  ;;  %v1824_v4 = vld [vmem:[#allocation5 + $0x3348] sm:$0xff]  ;;  %v1823_v6 = vld [vmem:[#allocation5 + $0x3340] sm:$0xff] }
 0x210   :  { %3283 = vmatpush1.msra.mxu1 %v1851_v43  ;;  %3207 = vmatprep.subr.mxu0 %v1720_v44  ;;  %v1952_v5 = vld [vmem:[#allocation5 + $0x3748] sm:$0xff]  ;;  %v1951_v7 = vld [vmem:[#allocation5 + $0x3740] sm:$0xff] }
 0x211   :  { %3284 = vmatprep.subr.mxu1 %v1848_v45  ;;  %3208 = vmatpush1.msra.mxu0 %v1719_v46  ;;  %v1820_v8 = vld [vmem:[#allocation5 + $0x3328] sm:$0xff]  ;;  %v1819_v10 = vld [vmem:[#allocation5 + $0x3320] sm:$0xff] }
 0x212   :  { %3285 = vmatpush1.msra.mxu1 %v1847_v47  ;;  %3209 = vmatprep.subr.mxu0 %v1844_v48  ;;  %v1948_v9 = vld [vmem:[#allocation5 + $0x3728] sm:$0xff]  ;;  %v1947_v11 = vld [vmem:[#allocation5 + $0x3720] sm:$0xff] }
 0x213   :  { %3286 = vmatprep.subr.mxu1 %v1972_v49  ;;  %3210 = vmatpush2.msra.mxu0 %v1843_v50  ;;  %v1816_v12 = vld [vmem:[#allocation5 + $0x3308] sm:$0xff]  ;;  %v1815_v14 = vld [vmem:[#allocation5 + $0x3300] sm:$0xff]  ;;  %v146_v50 = vld [vmem:[#allocation2 + $0xd8] sm:$0xff] }
 0x214   :  { %3287 = vmatpush2.msra.mxu1 %v1971_v51  ;;  %3211 = vmatprep.subr.mxu0 %v1840_v52  ;;  %v1944_v13 = vld [vmem:[#allocation5 + $0x3708] sm:$0xff]  ;;  %v1943_v15 = vld [vmem:[#allocation5 + $0x3700] sm:$0xff] }
 0x215   :  { %3288 = vmatprep.subr.mxu1 %v1968_v53  ;;  %3212 = vmatpush2.msra.mxu0 %v1839_v54  ;;  %v1812_v16 = vld [vmem:[#allocation5 + $0x32e8] sm:$0xff]  ;;  %v1811_v18 = vld [vmem:[#allocation5 + $0x32e0] sm:$0xff]  ;;  %v145_v53 = vld [vmem:[#allocation2 + $0xd0] sm:$0xff] }
 0x216   :  { %3289 = vmatpush2.msra.mxu1 %v1967_v55  ;;  %3213 = vmatprep.subr.mxu0 %v1836_v56  ;;  %v1940_v17 = vld [vmem:[#allocation5 + $0x36e8] sm:$0xff]  ;;  %v1939_v19 = vld [vmem:[#allocation5 + $0x36e0] sm:$0xff] }
 0x217   :  { %3290 = vmatprep.subr.mxu1 %v1964_v57  ;;  %3214 = vmatpush2.msra.mxu0 %v1835_v58  ;;  %v1808_v20 = vld [vmem:[#allocation5 + $0x32c8] sm:$0xff]  ;;  %v1807_v22 = vld [vmem:[#allocation5 + $0x32c0] sm:$0xff] }
 0x218   :  { %3291 = vmatpush2.msra.mxu1 %v1963_v59  ;;  %3215 = vmatprep.subr.mxu0 %v1832_v60  ;;  %v1936_v21 = vld [vmem:[#allocation5 + $0x36c8] sm:$0xff]  ;;  %v1935_v23 = vld [vmem:[#allocation5 + $0x36c0] sm:$0xff] }
 0x219   :  { %3292 = vmatprep.subr.mxu1 %v1960_v61  ;;  %3216 = vmatpush2.msra.mxu0 %v1831_v62  ;;  %v1804_v24 = vld [vmem:[#allocation5 + $0x32a8] sm:$0xff]  ;;  %v1803_v26 = vld [vmem:[#allocation5 + $0x32a0] sm:$0xff] }
 0x21a   :  { %3293 = vmatpush2.msra.mxu1 %v1959_v63  ;;  %3217 = vmatprep.subr.mxu0 %v1828_v0  ;;  %v1932_v25 = vld [vmem:[#allocation5 + $0x36a8] sm:$0xff]  ;;  %v1931_v27 = vld [vmem:[#allocation5 + $0x36a0] sm:$0xff]  ;;  %v178_v0 = vld [vmem:[#allocation2 + $0x1d8] sm:$0xff] }
 0x21b   :  { %3294 = vmatprep.subr.mxu1 %v1956_v1  ;;  %3218 = vmatpush2.msra.mxu0 %v1827_v2  ;;  %v1800_v28 = vld [vmem:[#allocation5 + $0x3288] sm:$0xff]  ;;  %v1799_v30 = vld [vmem:[#allocation5 + $0x3280] sm:$0xff] }
 0x21c   :  { %3295 = vmatpush2.msra.mxu1 %v1955_v3  ;;  %3219 = vmatprep.subr.mxu0 %v1824_v4  ;;  %v1928_v29 = vld [vmem:[#allocation5 + $0x3688] sm:$0xff]  ;;  %v1927_v31 = vld [vmem:[#allocation5 + $0x3680] sm:$0xff]  ;;  %v177_v4 = vld [vmem:[#allocation2 + $0x1d0] sm:$0xff] }
 0x21d   :  { %3296 = vmatprep.subr.mxu1 %v1952_v5  ;;  %3220 = vmatpush2.msra.mxu0 %v1823_v6  ;;  %v1796_v32 = vld [vmem:[#allocation5 + $0x3268] sm:$0xff]  ;;  %v1795_v34 = vld [vmem:[#allocation5 + $0x3260] sm:$0xff] }
 0x21e   :  { %3297 = vmatpush2.msra.mxu1 %v1951_v7  ;;  %3221 = vmatprep.subr.mxu0 %v1820_v8  ;;  %v1924_v33 = vld [vmem:[#allocation5 + $0x3668] sm:$0xff]  ;;  %v1923_v35 = vld [vmem:[#allocation5 + $0x3660] sm:$0xff] }
 0x21f   :  { %3298 = vmatprep.subr.mxu1 %v1948_v9  ;;  %3222 = vmatpush2.msra.mxu0 %v1819_v10  ;;  %v1792_v36 = vld [vmem:[#allocation5 + $0x3248] sm:$0xff]  ;;  %v1791_v38 = vld [vmem:[#allocation5 + $0x3240] sm:$0xff] }
 0x220   :  { %3299 = vmatpush2.msra.mxu1 %v1947_v11  ;;  %3223 = vmatprep.subr.mxu0 %v1816_v12  ;;  %v1920_v37 = vld [vmem:[#allocation5 + $0x3648] sm:$0xff]  ;;  %v1919_v39 = vld [vmem:[#allocation5 + $0x3640] sm:$0xff] }
 0x221   :  { %3300 = vmatprep.subr.mxu1 %v1944_v13  ;;  %3224 = vmatpush2.msra.mxu0 %v1815_v14  ;;  %v1788_v40 = vld [vmem:[#allocation5 + $0x3228] sm:$0xff]  ;;  %v1787_v42 = vld [vmem:[#allocation5 + $0x3220] sm:$0xff] }
 0x222   :  { %3301 = vmatpush2.msra.mxu1 %v1943_v15  ;;  %3225 = vmatprep.subr.mxu0 %v1812_v16  ;;  %v1916_v41 = vld [vmem:[#allocation5 + $0x3628] sm:$0xff]  ;;  %v1915_v43 = vld [vmem:[#allocation5 + $0x3620] sm:$0xff] }
 0x223   :  { %3302 = vmatprep.subr.mxu1 %v1940_v17  ;;  %3226 = vmatpush2.msra.mxu0 %v1811_v18  ;;  %v1784_v44 = vld [vmem:[#allocation5 + $0x3208] sm:$0xff]  ;;  %v1783_v46 = vld [vmem:[#allocation5 + $0x3200] sm:$0xff] }
 0x224   :  { %3303 = vmatpush2.msra.mxu1 %v1939_v19  ;;  %3227 = vmatprep.subr.mxu0 %v1808_v20  ;;  %v1912_v45 = vld [vmem:[#allocation5 + $0x3608] sm:$0xff]  ;;  %v1911_v48 = vld [vmem:[#allocation5 + $0x3600] sm:$0xff] }
 0x225   :  { %3304 = vmatprep.subr.mxu1 %v1936_v21  ;;  %3228 = vmatpush2.msra.mxu0 %v1807_v22  ;;  %v144_v47 = vld [vmem:[#allocation2 + $0xc8] sm:$0xff]  ;;  %v143_v49 = vld [vmem:[#allocation2 + $0xc0] sm:$0xff] }
 0x226   :  { %3305 = vmatpush2.msra.mxu1 %v1935_v23  ;;  %3229 = vmatprep.subr.mxu0 %v1804_v24  ;;  %v2036_v51 = vld [vmem:[#allocation5 + $0x39e8] sm:$0xff]  ;;  %v2035_v54 = vld [vmem:[#allocation5 + $0x39e0] sm:$0xff] }
 0x227   :  { %3306 = vmatprep.subr.mxu1 %v1932_v25  ;;  %3230 = vmatpush2.msra.mxu0 %v1803_v26  ;;  %v2164_v52 = vld [vmem:[#allocation5 + $0x3de8] sm:$0xff]  ;;  %v2163_v55 = vld [vmem:[#allocation5 + $0x3de0] sm:$0xff] }
 0x228   :  { %3307 = vmatpush2.msra.mxu1 %v1931_v27  ;;  %3231 = vmatprep.subr.mxu0 %v1800_v28  ;;  %v2032_v56 = vld [vmem:[#allocation5 + $0x39c8] sm:$0xff]  ;;  %v2031_v59 = vld [vmem:[#allocation5 + $0x39c0] sm:$0xff] }
 0x229   :  { %3308 = vmatprep.subr.mxu1 %v1928_v29  ;;  %3232 = vmatpush2.msra.mxu0 %v1799_v30  ;;  %v2160_v57 = vld [vmem:[#allocation5 + $0x3dc8] sm:$0xff]  ;;  %v2159_v60 = vld [vmem:[#allocation5 + $0x3dc0] sm:$0xff] }
 0x22a   :  { %3309 = vmatpush2.msra.mxu1 %v1927_v31  ;;  %3233 = vmatprep.subr.mxu0 %v1796_v32  ;;  %v176_v58 = vld [vmem:[#allocation2 + $0x1c8] sm:$0xff]  ;;  %v175_v61 = vld [vmem:[#allocation2 + $0x1c0] sm:$0xff] }
 0x22b   :  { %3310 = vmatprep.subr.mxu1 %v1924_v33  ;;  %3234 = vmatpush2.msra.mxu0 %v1795_v34  ;;  %v2028_v62 = vld [vmem:[#allocation5 + $0x39a8] sm:$0xff]  ;;  %v2027_v1 = vld [vmem:[#allocation5 + $0x39a0] sm:$0xff] }
 0x22c   :  { %3311 = vmatpush2.msra.mxu1 %v1923_v35  ;;  %3235 = vmatprep.subr.mxu0 %v1792_v36  ;;  %v2156_v63 = vld [vmem:[#allocation5 + $0x3da8] sm:$0xff]  ;;  %v2155_v2 = vld [vmem:[#allocation5 + $0x3da0] sm:$0xff] }
 0x22d   :  { %3312 = vmatprep.subr.mxu1 %v1920_v37  ;;  %3236 = vmatpush2.msra.mxu0 %v1791_v38  ;;  %v2024_v3 = vld [vmem:[#allocation5 + $0x3988] sm:$0xff]  ;;  %v2023_v6 = vld [vmem:[#allocation5 + $0x3980] sm:$0xff] }
 0x22e   :  { %3313 = vmatpush2.msra.mxu1 %v1919_v39  ;;  %3237 = vmatprep.subr.mxu0 %v1788_v40  ;;  %v2152_v5 = vld [vmem:[#allocation5 + $0x3d88] sm:$0xff]  ;;  %v2151_v7 = vld [vmem:[#allocation5 + $0x3d80] sm:$0xff] }
 0x22f   :  { %3314 = vmatprep.subr.mxu1 %v1916_v41  ;;  %3238 = vmatpush2.msra.mxu0 %v1787_v42  ;;  %v2020_v8 = vld [vmem:[#allocation5 + $0x3968] sm:$0xff]  ;;  %v2019_v10 = vld [vmem:[#allocation5 + $0x3960] sm:$0xff] }
 0x230   :  { %3315 = vmatpush2.msra.mxu1 %v1915_v43  ;;  %3239 = vmatprep.subr.mxu0 %v1784_v44  ;;  %v2148_v9 = vld [vmem:[#allocation5 + $0x3d68] sm:$0xff]  ;;  %v2147_v11 = vld [vmem:[#allocation5 + $0x3d60] sm:$0xff] }
 0x231   :  { %3316 = vmatprep.subr.mxu1 %v1912_v45  ;;  %3240 = vmatpush2.msra.mxu0 %v1783_v46  ;;  %v2016_v12 = vld [vmem:[#allocation5 + $0x3948] sm:$0xff]  ;;  %v2015_v14 = vld [vmem:[#allocation5 + $0x3940] sm:$0xff] }
 0x232   :  { %3241 = vmatprep.mubr.f32.mxu0 %v144_v47  ;;  %3317 = vmatpush2.msra.mxu1 %v1911_v48  ;;  %v2144_v13 = vld [vmem:[#allocation5 + $0x3d48] sm:$0xff]  ;;  %v2143_v15 = vld [vmem:[#allocation5 + $0x3d40] sm:$0xff] }
 0x233   :  { %3242 = vmatmul.mubr.f32.vlgmr.msra.gmra.mxu0 %v143_v49  ;;  %3318 = vmatprep.mubr.f32.mxu1 %v146_v50  ;;  %v2012_v16 = vld [vmem:[#allocation5 + $0x3928] sm:$0xff]  ;;  %v2011_v18 = vld [vmem:[#allocation5 + $0x3920] sm:$0xff] }
 0x234   :  { %3331 = vmatprep.subr.mxu0 %v2036_v51  ;;  %3408 = vmatprep.subr.mxu1 %v2164_v52  ;;  %v2140_v17 = vld [vmem:[#allocation5 + $0x3d28] sm:$0xff]  ;;  %v2139_v19 = vld [vmem:[#allocation5 + $0x3d20] sm:$0xff] }
 0x235   :  { %3319 = vmatmul.mubr.f32.vlgmr.msra.gmra.mxu1 %v145_v53  ;;  %3332 = vmatpush1.msra.mxu0 %v2035_v54  ;;  %v2008_v20 = vld [vmem:[#allocation5 + $0x3908] sm:$0xff]  ;;  %v2007_v22 = vld [vmem:[#allocation5 + $0x3900] sm:$0xff] }
 0x236   :  { %3409 = vmatpush1.msra.mxu1 %v2163_v55  ;;  %3333 = vmatprep.subr.mxu0 %v2032_v56  ;;  %v2136_v21 = vld [vmem:[#allocation5 + $0x3d08] sm:$0xff]  ;;  %v2135_v23 = vld [vmem:[#allocation5 + $0x3d00] sm:$0xff] }
 0x237   :  { %3410 = vmatprep.subr.mxu1 %v2160_v57  ;;  %3247 = vmatprep.mubr.f32.mxu0 %v176_v58  ;;  %v2004_v24 = vld [vmem:[#allocation5 + $0x38e8] sm:$0xff]  ;;  %v2003_v26 = vld [vmem:[#allocation5 + $0x38e0] sm:$0xff] }
 0x238   :  { %3334 = vmatpush1.msra.mxu0 %v2031_v59  ;;  %3411 = vmatpush1.msra.mxu1 %v2159_v60  ;;  %v2132_v25 = vld [vmem:[#allocation5 + $0x3ce8] sm:$0xff]  ;;  %v2131_v27 = vld [vmem:[#allocation5 + $0x3ce0] sm:$0xff] }
 0x239   :  { %3248 = vmatmul.mubr.f32.gmra.mxu0 %v175_v61  ;;  %3335 = vmatprep.subr.mxu0 %v2028_v62  ;;  %v2000_v28 = vld [vmem:[#allocation5 + $0x38c8] sm:$0xff]  ;;  %v1999_v30 = vld [vmem:[#allocation5 + $0x38c0] sm:$0xff] }
 0x23a   :  { %3412 = vmatprep.subr.mxu1 %v2156_v63  ;;  %3324 = vmatprep.mubr.f32.mxu1 %v178_v0  ;;  %v2128_v29 = vld [vmem:[#allocation5 + $0x3cc8] sm:$0xff]  ;;  %v2127_v31 = vld [vmem:[#allocation5 + $0x3cc0] sm:$0xff] }
 0x23b   :  { %3336 = vmatpush1.msra.mxu0 %v2027_v1  ;;  %3413 = vmatpush1.msra.mxu1 %v2155_v2  ;;  %v1996_v32 = vld [vmem:[#allocation5 + $0x38a8] sm:$0xff]  ;;  %v1995_v34 = vld [vmem:[#allocation5 + $0x38a0] sm:$0xff] }
 0x23c   :  { %3337 = vmatprep.subr.mxu0 %v2024_v3  ;;  %3325 = vmatmul.mubr.f32.gmra.mxu1 %v177_v4  ;;  %v2124_v33 = vld [vmem:[#allocation5 + $0x3ca8] sm:$0xff]  ;;  %v2123_v35 = vld [vmem:[#allocation5 + $0x3ca0] sm:$0xff] }
 0x23d   :  { %3414 = vmatprep.subr.mxu1 %v2152_v5  ;;  %3338 = vmatpush1.msra.mxu0 %v2023_v6  ;;  %v1992_v36 = vld [vmem:[#allocation5 + $0x3888] sm:$0xff]  ;;  %v1991_v38 = vld [vmem:[#allocation5 + $0x3880] sm:$0xff] }
 0x23e   :  { %3415 = vmatpush1.msra.mxu1 %v2151_v7  ;;  %3339 = vmatprep.subr.mxu0 %v2020_v8  ;;  %v2120_v37 = vld [vmem:[#allocation5 + $0x3c88] sm:$0xff]  ;;  %v2119_v39 = vld [vmem:[#allocation5 + $0x3c80] sm:$0xff] }
 0x23f   :  { %3416 = vmatprep.subr.mxu1 %v2148_v9  ;;  %3340 = vmatpush1.msra.mxu0 %v2019_v10  ;;  %v1988_v40 = vld [vmem:[#allocation5 + $0x3868] sm:$0xff]  ;;  %v1987_v42 = vld [vmem:[#allocation5 + $0x3860] sm:$0xff] }
 0x240   :  { %3417 = vmatpush1.msra.mxu1 %v2147_v11  ;;  %3341 = vmatprep.subr.mxu0 %v2016_v12  ;;  %v2116_v41 = vld [vmem:[#allocation5 + $0x3c68] sm:$0xff]  ;;  %v2115_v43 = vld [vmem:[#allocation5 + $0x3c60] sm:$0xff] }
 0x241   :  { %3418 = vmatprep.subr.mxu1 %v2144_v13  ;;  %3342 = vmatpush1.msra.mxu0 %v2015_v14  ;;  %v1984_v44 = vld [vmem:[#allocation5 + $0x3848] sm:$0xff]  ;;  %v1983_v46 = vld [vmem:[#allocation5 + $0x3840] sm:$0xff] }
 0x242   :  { %3419 = vmatpush1.msra.mxu1 %v2143_v15  ;;  %3343 = vmatprep.subr.mxu0 %v2012_v16  ;;  %v2112_v45 = vld [vmem:[#allocation5 + $0x3c48] sm:$0xff]  ;;  %v2111_v47 = vld [vmem:[#allocation5 + $0x3c40] sm:$0xff] }
 0x243   :  { %3420 = vmatprep.subr.mxu1 %v2140_v17  ;;  %3344 = vmatpush1.msra.mxu0 %v2011_v18  ;;  %v1980_v48 = vld [vmem:[#allocation5 + $0x3828] sm:$0xff]  ;;  %v1979_v50 = vld [vmem:[#allocation5 + $0x3820] sm:$0xff] }
 0x244   :  { %3421 = vmatpush1.msra.mxu1 %v2139_v19  ;;  %3345 = vmatprep.subr.mxu0 %v2008_v20  ;;  %v2108_v49 = vld [vmem:[#allocation5 + $0x3c28] sm:$0xff]  ;;  %v2107_v51 = vld [vmem:[#allocation5 + $0x3c20] sm:$0xff] }
 0x245   :  { %3422 = vmatprep.subr.mxu1 %v2136_v21  ;;  %3346 = vmatpush1.msra.mxu0 %v2007_v22  ;;  %v1976_v52 = vld [vmem:[#allocation5 + $0x3808] sm:$0xff]  ;;  %v1975_v54 = vld [vmem:[#allocation5 + $0x3800] sm:$0xff] }
 0x246   :  { %3423 = vmatpush1.msra.mxu1 %v2135_v23  ;;  %3347 = vmatprep.subr.mxu0 %v2004_v24  ;;  %v2104_v53 = vld [vmem:[#allocation5 + $0x3c08] sm:$0xff]  ;;  %v2103_v55 = vld [vmem:[#allocation5 + $0x3c00] sm:$0xff] }
 0x247   :  { %3424 = vmatprep.subr.mxu1 %v2132_v25  ;;  %3348 = vmatpush1.msra.mxu0 %v2003_v26  ;;  %v2100_v56 = vld [vmem:[#allocation5 + $0x3be8] sm:$0xff]  ;;  %v2099_v58 = vld [vmem:[#allocation5 + $0x3be0] sm:$0xff] }
 0x248   :  { %3425 = vmatpush1.msra.mxu1 %v2131_v27  ;;  %3349 = vmatprep.subr.mxu0 %v2000_v28  ;;  %v2228_v57 = vld [vmem:[#allocation5 + $0x3fe8] sm:$0xff]  ;;  %v2227_v59 = vld [vmem:[#allocation5 + $0x3fe0] sm:$0xff] }
 0x249   :  { %3426 = vmatprep.subr.mxu1 %v2128_v29  ;;  %3350 = vmatpush1.msra.mxu0 %v1999_v30  ;;  %v2096_v60 = vld [vmem:[#allocation5 + $0x3bc8] sm:$0xff]  ;;  %v2095_v62 = vld [vmem:[#allocation5 + $0x3bc0] sm:$0xff] }
 0x24a   :  { %3427 = vmatpush1.msra.mxu1 %v2127_v31  ;;  %3351 = vmatprep.subr.mxu0 %v1996_v32  ;;  %v2224_v61 = vld [vmem:[#allocation5 + $0x3fc8] sm:$0xff]  ;;  %v2223_v63 = vld [vmem:[#allocation5 + $0x3fc0] sm:$0xff] }
 0x24b   :  { %3428 = vmatprep.subr.mxu1 %v2124_v33  ;;  %3352 = vmatpush1.msra.mxu0 %v1995_v34  ;;  %v2092_v0 = vld [vmem:[#allocation5 + $0x3ba8] sm:$0xff]  ;;  %v2091_v2 = vld [vmem:[#allocation5 + $0x3ba0] sm:$0xff] }
 0x24c   :  { %3429 = vmatpush1.msra.mxu1 %v2123_v35  ;;  %3353 = vmatprep.subr.mxu0 %v1992_v36  ;;  %v2220_v1 = vld [vmem:[#allocation5 + $0x3fa8] sm:$0xff]  ;;  %v2219_v3 = vld [vmem:[#allocation5 + $0x3fa0] sm:$0xff] }
 0x24d   :  { %3430 = vmatprep.subr.mxu1 %v2120_v37  ;;  %3354 = vmatpush1.msra.mxu0 %v1991_v38  ;;  %v2088_v4 = vld [vmem:[#allocation5 + $0x3b88] sm:$0xff]  ;;  %v2087_v6 = vld [vmem:[#allocation5 + $0x3b80] sm:$0xff] }
 0x24e   :  { %3431 = vmatpush1.msra.mxu1 %v2119_v39  ;;  %3355 = vmatprep.subr.mxu0 %v1988_v40  ;;  %v2216_v5 = vld [vmem:[#allocation5 + $0x3f88] sm:$0xff]  ;;  %v2215_v7 = vld [vmem:[#allocation5 + $0x3f80] sm:$0xff] }
 0x24f   :  { %3432 = vmatprep.subr.mxu1 %v2116_v41  ;;  %3356 = vmatpush1.msra.mxu0 %v1987_v42  ;;  %v2084_v8 = vld [vmem:[#allocation5 + $0x3b68] sm:$0xff]  ;;  %v2083_v10 = vld [vmem:[#allocation5 + $0x3b60] sm:$0xff] }
 0x250   :  { %3433 = vmatpush1.msra.mxu1 %v2115_v43  ;;  %3357 = vmatprep.subr.mxu0 %v1984_v44  ;;  %v2212_v9 = vld [vmem:[#allocation5 + $0x3f68] sm:$0xff]  ;;  %v2211_v11 = vld [vmem:[#allocation5 + $0x3f60] sm:$0xff] }
 0x251   :  { %3434 = vmatprep.subr.mxu1 %v2112_v45  ;;  %3358 = vmatpush1.msra.mxu0 %v1983_v46  ;;  %v2080_v12 = vld [vmem:[#allocation5 + $0x3b48] sm:$0xff]  ;;  %v2079_v14 = vld [vmem:[#allocation5 + $0x3b40] sm:$0xff] }
 0x252   :  { %3435 = vmatpush1.msra.mxu1 %v2111_v47  ;;  %3359 = vmatprep.subr.mxu0 %v1980_v48  ;;  %v2208_v13 = vld [vmem:[#allocation5 + $0x3f48] sm:$0xff]  ;;  %v2207_v15 = vld [vmem:[#allocation5 + $0x3f40] sm:$0xff] }
 0x253   :  { %3436 = vmatprep.subr.mxu1 %v2108_v49  ;;  %3360 = vmatpush1.msra.mxu0 %v1979_v50  ;;  %v2076_v16 = vld [vmem:[#allocation5 + $0x3b28] sm:$0xff]  ;;  %v2075_v18 = vld [vmem:[#allocation5 + $0x3b20] sm:$0xff] }
 0x254   :  { %3437 = vmatpush1.msra.mxu1 %v2107_v51  ;;  %3361 = vmatprep.subr.mxu0 %v1976_v52  ;;  %v2204_v17 = vld [vmem:[#allocation5 + $0x3f28] sm:$0xff]  ;;  %v2203_v19 = vld [vmem:[#allocation5 + $0x3f20] sm:$0xff] }
 0x255   :  { %3438 = vmatprep.subr.mxu1 %v2104_v53  ;;  %3362 = vmatpush1.msra.mxu0 %v1975_v54  ;;  %v2072_v20 = vld [vmem:[#allocation5 + $0x3b08] sm:$0xff]  ;;  %v2071_v22 = vld [vmem:[#allocation5 + $0x3b00] sm:$0xff] }
 0x256   :  { %3439 = vmatpush1.msra.mxu1 %v2103_v55  ;;  %3363 = vmatprep.subr.mxu0 %v2100_v56  ;;  %v2200_v21 = vld [vmem:[#allocation5 + $0x3f08] sm:$0xff]  ;;  %v2199_v23 = vld [vmem:[#allocation5 + $0x3f00] sm:$0xff] }
 0x257   :  { %3440 = vmatprep.subr.mxu1 %v2228_v57  ;;  %3364 = vmatpush2.msra.mxu0 %v2099_v58  ;;  %v2068_v24 = vld [vmem:[#allocation5 + $0x3ae8] sm:$0xff]  ;;  %v2067_v26 = vld [vmem:[#allocation5 + $0x3ae0] sm:$0xff]  ;;  %v150_v58 = vld [vmem:[#allocation2 + $0xf8] sm:$0xff] }
 0x258   :  { %3441 = vmatpush2.msra.mxu1 %v2227_v59  ;;  %3365 = vmatprep.subr.mxu0 %v2096_v60  ;;  %v2196_v25 = vld [vmem:[#allocation5 + $0x3ee8] sm:$0xff]  ;;  %v2195_v27 = vld [vmem:[#allocation5 + $0x3ee0] sm:$0xff]  ;;  %v246_v59 = vld [vmem:[#allocation5 + $0x1f8] sm:$0xff] }
 0x259   :  { %3442 = vmatprep.subr.mxu1 %v2224_v61  ;;  %3366 = vmatpush2.msra.mxu0 %v2095_v62  ;;  %v2064_v28 = vld [vmem:[#allocation5 + $0x3ac8] sm:$0xff]  ;;  %v2063_v30 = vld [vmem:[#allocation5 + $0x3ac0] sm:$0xff]  ;;  %v374_v60 = vld [vmem:[#allocation5 + $0x5f8] sm:$0xff] }
 0x25a   :  { %3443 = vmatpush2.msra.mxu1 %v2223_v63  ;;  %3367 = vmatprep.subr.mxu0 %v2092_v0  ;;  %v2192_v29 = vld [vmem:[#allocation5 + $0x3ec8] sm:$0xff]  ;;  %v2191_v31 = vld [vmem:[#allocation5 + $0x3ec0] sm:$0xff]  ;;  %v149_v61 = vld [vmem:[#allocation2 + $0xf0] sm:$0xff] }
 0x25b   :  { %3444 = vmatprep.subr.mxu1 %v2220_v1  ;;  %3368 = vmatpush2.msra.mxu0 %v2091_v2  ;;  %v2060_v32 = vld [vmem:[#allocation5 + $0x3aa8] sm:$0xff]  ;;  %v2059_v34 = vld [vmem:[#allocation5 + $0x3aa0] sm:$0xff]  ;;  %v245_v62 = vld [vmem:[#allocation5 + $0x1f0] sm:$0xff] }
 0x25c   :  { %3445 = vmatpush2.msra.mxu1 %v2219_v3  ;;  %3369 = vmatprep.subr.mxu0 %v2088_v4  ;;  %v2188_v33 = vld [vmem:[#allocation5 + $0x3ea8] sm:$0xff]  ;;  %v2187_v35 = vld [vmem:[#allocation5 + $0x3ea0] sm:$0xff]  ;;  %v373_v63 = vld [vmem:[#allocation5 + $0x5f0] sm:$0xff] }
 0x25d   :  { %3446 = vmatprep.subr.mxu1 %v2216_v5  ;;  %3370 = vmatpush2.msra.mxu0 %v2087_v6  ;;  %v2056_v36 = vld [vmem:[#allocation5 + $0x3a88] sm:$0xff]  ;;  %v2055_v38 = vld [vmem:[#allocation5 + $0x3a80] sm:$0xff]  ;;  %v242_v0 = vld [vmem:[#allocation5 + $0x1d8] sm:$0xff] }
 0x25e   :  { %3447 = vmatpush2.msra.mxu1 %v2215_v7  ;;  %3371 = vmatprep.subr.mxu0 %v2084_v8  ;;  %v2184_v37 = vld [vmem:[#allocation5 + $0x3e88] sm:$0xff]  ;;  %v2183_v39 = vld [vmem:[#allocation5 + $0x3e80] sm:$0xff]  ;;  %v370_v1 = vld [vmem:[#allocation5 + $0x5d8] sm:$0xff] }
 0x25f   :  { %3448 = vmatprep.subr.mxu1 %v2212_v9  ;;  %3372 = vmatpush2.msra.mxu0 %v2083_v10  ;;  %v2052_v40 = vld [vmem:[#allocation5 + $0x3a68] sm:$0xff]  ;;  %v2051_v42 = vld [vmem:[#allocation5 + $0x3a60] sm:$0xff]  ;;  %v241_v3 = vld [vmem:[#allocation5 + $0x1d0] sm:$0xff] }
 0x260   :  { %3449 = vmatpush2.msra.mxu1 %v2211_v11  ;;  %3373 = vmatprep.subr.mxu0 %v2080_v12  ;;  %v2180_v41 = vld [vmem:[#allocation5 + $0x3e68] sm:$0xff]  ;;  %v2179_v43 = vld [vmem:[#allocation5 + $0x3e60] sm:$0xff]  ;;  %v369_v4 = vld [vmem:[#allocation5 + $0x5d0] sm:$0xff] }
 0x261   :  { %3450 = vmatprep.subr.mxu1 %v2208_v13  ;;  %3374 = vmatpush2.msra.mxu0 %v2079_v14  ;;  %v2048_v44 = vld [vmem:[#allocation5 + $0x3a48] sm:$0xff]  ;;  %v2047_v46 = vld [vmem:[#allocation5 + $0x3a40] sm:$0xff]  ;;  %v238_v6 = vld [vmem:[#allocation5 + $0x1b8] sm:$0xff] }
 0x262   :  { %3451 = vmatpush2.msra.mxu1 %v2207_v15  ;;  %3375 = vmatprep.subr.mxu0 %v2076_v16  ;;  %v2176_v45 = vld [vmem:[#allocation5 + $0x3e48] sm:$0xff]  ;;  %v2175_v47 = vld [vmem:[#allocation5 + $0x3e40] sm:$0xff]  ;;  %v366_v7 = vld [vmem:[#allocation5 + $0x5b8] sm:$0xff] }
 0x263   :  { %3452 = vmatprep.subr.mxu1 %v2204_v17  ;;  %3376 = vmatpush2.msra.mxu0 %v2075_v18  ;;  %v2044_v48 = vld [vmem:[#allocation5 + $0x3a28] sm:$0xff]  ;;  %v2043_v50 = vld [vmem:[#allocation5 + $0x3a20] sm:$0xff]  ;;  %v182_v8 = vld [vmem:[#allocation2 + $0x1f8] sm:$0xff] }
 0x264   :  { %3453 = vmatpush2.msra.mxu1 %v2203_v19  ;;  %3377 = vmatprep.subr.mxu0 %v2072_v20  ;;  %v2172_v49 = vld [vmem:[#allocation5 + $0x3e28] sm:$0xff]  ;;  %v2171_v51 = vld [vmem:[#allocation5 + $0x3e20] sm:$0xff]  ;;  %v237_v9 = vld [vmem:[#allocation5 + $0x1b0] sm:$0xff] }
 0x265   :  { %3454 = vmatprep.subr.mxu1 %v2200_v21  ;;  %3378 = vmatpush2.msra.mxu0 %v2071_v22  ;;  %v2040_v52 = vld [vmem:[#allocation5 + $0x3a08] sm:$0xff]  ;;  %v2039_v54 = vld [vmem:[#allocation5 + $0x3a00] sm:$0xff]  ;;  %v365_v10 = vld [vmem:[#allocation5 + $0x5b0] sm:$0xff] }
 0x266   :  { %3455 = vmatpush2.msra.mxu1 %v2199_v23  ;;  %3379 = vmatprep.subr.mxu0 %v2068_v24  ;;  %v2168_v53 = vld [vmem:[#allocation5 + $0x3e08] sm:$0xff]  ;;  %v2167_v56 = vld [vmem:[#allocation5 + $0x3e00] sm:$0xff]  ;;  %v234_v11 = vld [vmem:[#allocation5 + $0x198] sm:$0xff] }
 0x267   :  { %3456 = vmatprep.subr.mxu1 %v2196_v25  ;;  %3380 = vmatpush2.msra.mxu0 %v2067_v26  ;;  %v148_v55 = vld [vmem:[#allocation2 + $0xe8] sm:$0xff]  ;;  %v147_v57 = vld [vmem:[#allocation2 + $0xe0] sm:$0xff]  ;;  %v181_v12 = vld [vmem:[#allocation2 + $0x1f0] sm:$0xff] }
 0x268   :  { %3457 = vmatpush2.msra.mxu1 %v2195_v27  ;;  %3381 = vmatprep.subr.mxu0 %v2064_v28  ;;  %v180_v2 = vld [vmem:[#allocation2 + $0x1e8] sm:$0xff]  ;;  %v179_v5 = vld [vmem:[#allocation2 + $0x1e0] sm:$0xff]  ;;  %v362_v13 = vld [vmem:[#allocation5 + $0x598] sm:$0xff] }
 0x269   :  { %3458 = vmatprep.subr.mxu1 %v2192_v29  ;;  %3382 = vmatpush2.msra.mxu0 %v2063_v30  ;;  %v233_v14 = vld [vmem:[#allocation5 + $0x190] sm:$0xff]  ;;  %v230_v16 = vld [vmem:[#allocation5 + $0x178] sm:$0xff] }
 0x26a   :  { %3459 = vmatpush2.msra.mxu1 %v2191_v31  ;;  %3383 = vmatprep.subr.mxu0 %v2060_v32  ;;  %v361_v15 = vld [vmem:[#allocation5 + $0x590] sm:$0xff]  ;;  %v358_v17 = vld [vmem:[#allocation5 + $0x578] sm:$0xff] }
 0x26b   :  { %3460 = vmatprep.subr.mxu1 %v2188_v33  ;;  %3384 = vmatpush2.msra.mxu0 %v2059_v34  ;;  %v229_v18 = vld [vmem:[#allocation5 + $0x170] sm:$0xff]  ;;  %v226_v20 = vld [vmem:[#allocation5 + $0x158] sm:$0xff] }
 0x26c   :  { %3461 = vmatpush2.msra.mxu1 %v2187_v35  ;;  %3385 = vmatprep.subr.mxu0 %v2056_v36  ;;  %v357_v19 = vld [vmem:[#allocation5 + $0x570] sm:$0xff]  ;;  %v354_v21 = vld [vmem:[#allocation5 + $0x558] sm:$0xff] }
 0x26d   :  { %3462 = vmatprep.subr.mxu1 %v2184_v37  ;;  %3386 = vmatpush2.msra.mxu0 %v2055_v38  ;;  %v225_v22 = vld [vmem:[#allocation5 + $0x150] sm:$0xff]  ;;  %v222_v24 = vld [vmem:[#allocation5 + $0x138] sm:$0xff] }
 0x26e   :  { %3463 = vmatpush2.msra.mxu1 %v2183_v39  ;;  %3387 = vmatprep.subr.mxu0 %v2052_v40  ;;  %v353_v23 = vld [vmem:[#allocation5 + $0x550] sm:$0xff]  ;;  %v350_v25 = vld [vmem:[#allocation5 + $0x538] sm:$0xff] }
 0x26f   :  { %3464 = vmatprep.subr.mxu1 %v2180_v41  ;;  %3388 = vmatpush2.msra.mxu0 %v2051_v42  ;;  %v221_v26 = vld [vmem:[#allocation5 + $0x130] sm:$0xff]  ;;  %v218_v28 = vld [vmem:[#allocation5 + $0x118] sm:$0xff] }
 0x270   :  { %3465 = vmatpush2.msra.mxu1 %v2179_v43  ;;  %3389 = vmatprep.subr.mxu0 %v2048_v44  ;;  %v349_v27 = vld [vmem:[#allocation5 + $0x530] sm:$0xff]  ;;  %v346_v29 = vld [vmem:[#allocation5 + $0x518] sm:$0xff] }
 0x271   :  { %3466 = vmatprep.subr.mxu1 %v2176_v45  ;;  %3390 = vmatpush2.msra.mxu0 %v2047_v46  ;;  %v217_v30 = vld [vmem:[#allocation5 + $0x110] sm:$0xff]  ;;  %v214_v32 = vld [vmem:[#allocation5 + $0xf8] sm:$0xff] }
 0x272   :  { %3467 = vmatpush2.msra.mxu1 %v2175_v47  ;;  %3391 = vmatprep.subr.mxu0 %v2044_v48  ;;  %v345_v31 = vld [vmem:[#allocation5 + $0x510] sm:$0xff]  ;;  %v342_v33 = vld [vmem:[#allocation5 + $0x4f8] sm:$0xff] }
 0x273   :  { %3468 = vmatprep.subr.mxu1 %v2172_v49  ;;  %3392 = vmatpush2.msra.mxu0 %v2043_v50  ;;  %v213_v34 = vld [vmem:[#allocation5 + $0xf0] sm:$0xff]  ;;  %v210_v36 = vld [vmem:[#allocation5 + $0xd8] sm:$0xff] }
 0x274   :  { %3469 = vmatpush2.msra.mxu1 %v2171_v51  ;;  %3393 = vmatprep.subr.mxu0 %v2040_v52  ;;  %v341_v35 = vld [vmem:[#allocation5 + $0x4f0] sm:$0xff]  ;;  %v338_v37 = vld [vmem:[#allocation5 + $0x4d8] sm:$0xff] }
 0x275   :  { %3470 = vmatprep.subr.mxu1 %v2168_v53  ;;  %3394 = vmatpush2.msra.mxu0 %v2039_v54  ;;  %v209_v38 = vld [vmem:[#allocation5 + $0xd0] sm:$0xff]  ;;  %v206_v40 = vld [vmem:[#allocation5 + $0xb8] sm:$0xff] }
 0x276   :  { %3395 = vmatprep.mubr.f32.mxu0 %v148_v55  ;;  %3471 = vmatpush2.msra.mxu1 %v2167_v56  ;;  %v337_v39 = vld [vmem:[#allocation5 + $0x4d0] sm:$0xff]  ;;  %v334_v41 = vld [vmem:[#allocation5 + $0x4b8] sm:$0xff] }
 0x277   :  { %3396 = vmatmul.mubr.f32.vlgmr.msra.gmra.mxu0 %v147_v57  ;;  %3472 = vmatprep.mubr.f32.mxu1 %v150_v58  ;;  %v205_v42 = vld [vmem:[#allocation5 + $0xb0] sm:$0xff]  ;;  %v202_v44 = vld [vmem:[#allocation5 + $0x98] sm:$0xff] }
 0x278   :  { %3485 = vmatprep.subr.mxu0 %v246_v59  ;;  %3562 = vmatprep.subr.mxu1 %v374_v60  ;;  %v333_v43 = vld [vmem:[#allocation5 + $0x4b0] sm:$0xff]  ;;  %v330_v45 = vld [vmem:[#allocation5 + $0x498] sm:$0xff] }
 0x279   :  { %3473 = vmatmul.mubr.f32.vlgmr.msra.gmra.mxu1 %v149_v61  ;;  %3486 = vmatpush1.msra.mxu0 %v245_v62  ;;  %v201_v46 = vld [vmem:[#allocation5 + $0x90] sm:$0xff]  ;;  %v198_v48 = vld [vmem:[#allocation5 + $0x78] sm:$0xff] }
 0x27a   :  { %3563 = vmatpush1.msra.mxu1 %v373_v63  ;;  %3487 = vmatprep.subr.mxu0 %v242_v0  ;;  %v329_v47 = vld [vmem:[#allocation5 + $0x490] sm:$0xff]  ;;  %v326_v49 = vld [vmem:[#allocation5 + $0x478] sm:$0xff] }
 0x27b   :  { %3564 = vmatprep.subr.mxu1 %v370_v1  ;;  %3401 = vmatprep.mubr.f32.mxu0 %v180_v2  ;;  %v197_v50 = vld [vmem:[#allocation5 + $0x70] sm:$0xff]  ;;  %v194_v52 = vld [vmem:[#allocation5 + $0x58] sm:$0xff] }
 0x27c   :  { %3488 = vmatpush1.msra.mxu0 %v241_v3  ;;  %3565 = vmatpush1.msra.mxu1 %v369_v4  ;;  %v325_v51 = vld [vmem:[#allocation5 + $0x470] sm:$0xff]  ;;  %v322_v53 = vld [vmem:[#allocation5 + $0x458] sm:$0xff] }
 0x27d   :  { %3402 = vmatmul.mubr.f32.gmra.mxu0 %v179_v5  ;;  %3489 = vmatprep.subr.mxu0 %v238_v6  ;;  %v193_v54 = vld [vmem:[#allocation5 + $0x50] sm:$0xff]  ;;  %v190_v56 = vld [vmem:[#allocation5 + $0x38] sm:$0xff] }
 0x27e   :  { %3566 = vmatprep.subr.mxu1 %v366_v7  ;;  %3478 = vmatprep.mubr.f32.mxu1 %v182_v8  ;;  %v321_v55 = vld [vmem:[#allocation5 + $0x450] sm:$0xff]  ;;  %v318_v57 = vld [vmem:[#allocation5 + $0x438] sm:$0xff] }
 0x27f   :  { %3490 = vmatpush1.msra.mxu0 %v237_v9  ;;  %3567 = vmatpush1.msra.mxu1 %v365_v10  ;;  %v189_v58 = vld [vmem:[#allocation5 + $0x30] sm:$0xff]  ;;  %v186_v60 = vld [vmem:[#allocation5 + $0x18] sm:$0xff] }
 0x280   :  { %3491 = vmatprep.subr.mxu0 %v234_v11  ;;  %3479 = vmatmul.mubr.f32.gmra.mxu1 %v181_v12  ;;  %v317_v59 = vld [vmem:[#allocation5 + $0x430] sm:$0xff]  ;;  %v314_v61 = vld [vmem:[#allocation5 + $0x418] sm:$0xff] }
 0x281   :  { %3568 = vmatprep.subr.mxu1 %v362_v13  ;;  %3492 = vmatpush1.msra.mxu0 %v233_v14  ;;  %v185_v62 = vld [vmem:[#allocation5 + $0x10] sm:$0xff]  ;;  %v310_v0 = vld [vmem:[#allocation5 + $0x3f8] sm:$0xff] }
 0x282   :  { %3569 = vmatpush1.msra.mxu1 %v361_v15  ;;  %3493 = vmatprep.subr.mxu0 %v230_v16  ;;  %v313_v63 = vld [vmem:[#allocation5 + $0x410] sm:$0xff]  ;;  %v438_v1 = vld [vmem:[#allocation5 + $0x7f8] sm:$0xff] }
 0x283   :  { %3570 = vmatprep.subr.mxu1 %v358_v17  ;;  %3494 = vmatpush1.msra.mxu0 %v229_v18  ;;  %v309_v2 = vld [vmem:[#allocation5 + $0x3f0] sm:$0xff]  ;;  %v306_v4 = vld [vmem:[#allocation5 + $0x3d8] sm:$0xff] }
 0x284   :  { %3571 = vmatpush1.msra.mxu1 %v357_v19  ;;  %3495 = vmatprep.subr.mxu0 %v226_v20  ;;  %v437_v3 = vld [vmem:[#allocation5 + $0x7f0] sm:$0xff]  ;;  %v434_v5 = vld [vmem:[#allocation5 + $0x7d8] sm:$0xff] }
 0x285   :  { %3572 = vmatprep.subr.mxu1 %v354_v21  ;;  %3496 = vmatpush1.msra.mxu0 %v225_v22  ;;  %v305_v6 = vld [vmem:[#allocation5 + $0x3d0] sm:$0xff]  ;;  %v302_v8 = vld [vmem:[#allocation5 + $0x3b8] sm:$0xff] }
 0x286   :  { %3573 = vmatpush1.msra.mxu1 %v353_v23  ;;  %3497 = vmatprep.subr.mxu0 %v222_v24  ;;  %v433_v7 = vld [vmem:[#allocation5 + $0x7d0] sm:$0xff]  ;;  %v430_v9 = vld [vmem:[#allocation5 + $0x7b8] sm:$0xff] }
 0x287   :  { %3574 = vmatprep.subr.mxu1 %v350_v25  ;;  %3498 = vmatpush1.msra.mxu0 %v221_v26  ;;  %v301_v10 = vld [vmem:[#allocation5 + $0x3b0] sm:$0xff]  ;;  %v298_v12 = vld [vmem:[#allocation5 + $0x398] sm:$0xff] }
 0x288   :  { %3575 = vmatpush1.msra.mxu1 %v349_v27  ;;  %3499 = vmatprep.subr.mxu0 %v218_v28  ;;  %v429_v11 = vld [vmem:[#allocation5 + $0x7b0] sm:$0xff]  ;;  %v426_v13 = vld [vmem:[#allocation5 + $0x798] sm:$0xff] }
 0x289   :  { %3576 = vmatprep.subr.mxu1 %v346_v29  ;;  %3500 = vmatpush1.msra.mxu0 %v217_v30  ;;  %v297_v14 = vld [vmem:[#allocation5 + $0x390] sm:$0xff]  ;;  %v294_v16 = vld [vmem:[#allocation5 + $0x378] sm:$0xff] }
 0x28a   :  { %3577 = vmatpush1.msra.mxu1 %v345_v31  ;;  %3501 = vmatprep.subr.mxu0 %v214_v32  ;;  %v425_v15 = vld [vmem:[#allocation5 + $0x790] sm:$0xff]  ;;  %v422_v17 = vld [vmem:[#allocation5 + $0x778] sm:$0xff] }
 0x28b   :  { %3578 = vmatprep.subr.mxu1 %v342_v33  ;;  %3502 = vmatpush1.msra.mxu0 %v213_v34  ;;  %v293_v18 = vld [vmem:[#allocation5 + $0x370] sm:$0xff]  ;;  %v290_v20 = vld [vmem:[#allocation5 + $0x358] sm:$0xff] }
 0x28c   :  { %3579 = vmatpush1.msra.mxu1 %v341_v35  ;;  %3503 = vmatprep.subr.mxu0 %v210_v36  ;;  %v421_v19 = vld [vmem:[#allocation5 + $0x770] sm:$0xff]  ;;  %v418_v21 = vld [vmem:[#allocation5 + $0x758] sm:$0xff] }
 0x28d   :  { %3580 = vmatprep.subr.mxu1 %v338_v37  ;;  %3504 = vmatpush1.msra.mxu0 %v209_v38  ;;  %v289_v22 = vld [vmem:[#allocation5 + $0x350] sm:$0xff]  ;;  %v286_v24 = vld [vmem:[#allocation5 + $0x338] sm:$0xff] }
 0x28e   :  { %3581 = vmatpush1.msra.mxu1 %v337_v39  ;;  %3505 = vmatprep.subr.mxu0 %v206_v40  ;;  %v417_v23 = vld [vmem:[#allocation5 + $0x750] sm:$0xff]  ;;  %v414_v25 = vld [vmem:[#allocation5 + $0x738] sm:$0xff] }
 0x28f   :  { %3582 = vmatprep.subr.mxu1 %v334_v41  ;;  %3506 = vmatpush1.msra.mxu0 %v205_v42  ;;  %v285_v26 = vld [vmem:[#allocation5 + $0x330] sm:$0xff]  ;;  %v282_v28 = vld [vmem:[#allocation5 + $0x318] sm:$0xff] }
 0x290   :  { %3583 = vmatpush1.msra.mxu1 %v333_v43  ;;  %3507 = vmatprep.subr.mxu0 %v202_v44  ;;  %v413_v27 = vld [vmem:[#allocation5 + $0x730] sm:$0xff]  ;;  %v410_v29 = vld [vmem:[#allocation5 + $0x718] sm:$0xff] }
 0x291   :  { %3584 = vmatprep.subr.mxu1 %v330_v45  ;;  %3508 = vmatpush1.msra.mxu0 %v201_v46  ;;  %v281_v30 = vld [vmem:[#allocation5 + $0x310] sm:$0xff]  ;;  %v278_v32 = vld [vmem:[#allocation5 + $0x2f8] sm:$0xff] }
 0x292   :  { %3585 = vmatpush1.msra.mxu1 %v329_v47  ;;  %3509 = vmatprep.subr.mxu0 %v198_v48  ;;  %v409_v31 = vld [vmem:[#allocation5 + $0x710] sm:$0xff]  ;;  %v406_v33 = vld [vmem:[#allocation5 + $0x6f8] sm:$0xff] }
 0x293   :  { %3586 = vmatprep.subr.mxu1 %v326_v49  ;;  %3510 = vmatpush1.msra.mxu0 %v197_v50  ;;  %v277_v34 = vld [vmem:[#allocation5 + $0x2f0] sm:$0xff]  ;;  %v274_v36 = vld [vmem:[#allocation5 + $0x2d8] sm:$0xff] }
 0x294   :  { %3587 = vmatpush1.msra.mxu1 %v325_v51  ;;  %3511 = vmatprep.subr.mxu0 %v194_v52  ;;  %v405_v35 = vld [vmem:[#allocation5 + $0x6f0] sm:$0xff]  ;;  %v402_v37 = vld [vmem:[#allocation5 + $0x6d8] sm:$0xff] }
 0x295   :  { %3588 = vmatprep.subr.mxu1 %v322_v53  ;;  %3512 = vmatpush1.msra.mxu0 %v193_v54  ;;  %v273_v38 = vld [vmem:[#allocation5 + $0x2d0] sm:$0xff]  ;;  %v270_v40 = vld [vmem:[#allocation5 + $0x2b8] sm:$0xff] }
 0x296   :  { %3589 = vmatpush1.msra.mxu1 %v321_v55  ;;  %3513 = vmatprep.subr.mxu0 %v190_v56  ;;  %v401_v39 = vld [vmem:[#allocation5 + $0x6d0] sm:$0xff]  ;;  %v398_v41 = vld [vmem:[#allocation5 + $0x6b8] sm:$0xff] }
 0x297   :  { %3590 = vmatprep.subr.mxu1 %v318_v57  ;;  %3514 = vmatpush1.msra.mxu0 %v189_v58  ;;  %v269_v42 = vld [vmem:[#allocation5 + $0x2b0] sm:$0xff]  ;;  %v266_v44 = vld [vmem:[#allocation5 + $0x298] sm:$0xff] }
 0x298   :  { %3591 = vmatpush1.msra.mxu1 %v317_v59  ;;  %3515 = vmatprep.subr.mxu0 %v186_v60  ;;  %v397_v43 = vld [vmem:[#allocation5 + $0x6b0] sm:$0xff]  ;;  %v394_v45 = vld [vmem:[#allocation5 + $0x698] sm:$0xff] }
 0x299   :  { %3592 = vmatprep.subr.mxu1 %v314_v61  ;;  %3516 = vmatpush1.msra.mxu0 %v185_v62  ;;  %v265_v46 = vld [vmem:[#allocation5 + $0x290] sm:$0xff]  ;;  %v262_v48 = vld [vmem:[#allocation5 + $0x278] sm:$0xff] }
 0x29a   :  { %3593 = vmatpush1.msra.mxu1 %v313_v63  ;;  %3517 = vmatprep.subr.mxu0 %v310_v0  ;;  %v393_v47 = vld [vmem:[#allocation5 + $0x690] sm:$0xff]  ;;  %v390_v49 = vld [vmem:[#allocation5 + $0x678] sm:$0xff] }
 0x29b   :  { %3594 = vmatprep.subr.mxu1 %v438_v1  ;;  %3518 = vmatpush2.msra.mxu0 %v309_v2  ;;  %v261_v50 = vld [vmem:[#allocation5 + $0x270] sm:$0xff]  ;;  %v258_v52 = vld [vmem:[#allocation5 + $0x258] sm:$0xff]  ;;  %v5229_v1 = vld [vmem:[#allocation2 + $0x8] sm:$0xff] }
 0x29c   :  { %3595 = vmatpush2.msra.mxu1 %v437_v3  ;;  %3519 = vmatprep.subr.mxu0 %v306_v4  ;;  %v389_v51 = vld [vmem:[#allocation5 + $0x670] sm:$0xff]  ;;  %v386_v53 = vld [vmem:[#allocation5 + $0x658] sm:$0xff]  ;;  %v5230_v3 = vld [vmem:[#allocation2] sm:$0xff] }
 0x29d   :  { %3596 = vmatprep.subr.mxu1 %v434_v5  ;;  %3520 = vmatpush2.msra.mxu0 %v305_v6  ;;  %v257_v54 = vld [vmem:[#allocation5 + $0x250] sm:$0xff]  ;;  %v254_v56 = vld [vmem:[#allocation5 + $0x238] sm:$0xff] }
 0x29e   :  { %3597 = vmatpush2.msra.mxu1 %v433_v7  ;;  %3521 = vmatprep.subr.mxu0 %v302_v8  ;;  %v385_v55 = vld [vmem:[#allocation5 + $0x650] sm:$0xff]  ;;  %v382_v57 = vld [vmem:[#allocation5 + $0x638] sm:$0xff] }
 0x29f   :  { %3598 = vmatprep.subr.mxu1 %v430_v9  ;;  %3522 = vmatpush2.msra.mxu0 %v301_v10  ;;  %v253_v58 = vld [vmem:[#allocation5 + $0x230] sm:$0xff]  ;;  %v250_v60 = vld [vmem:[#allocation5 + $0x218] sm:$0xff] }
 0x2a0   :  { %3599 = vmatpush2.msra.mxu1 %v429_v11  ;;  %3523 = vmatprep.subr.mxu0 %v298_v12  ;;  %v381_v59 = vld [vmem:[#allocation5 + $0x630] sm:$0xff]  ;;  %v378_v61 = vld [vmem:[#allocation5 + $0x618] sm:$0xff] }
 0x2a1   :  { %3600 = vmatprep.subr.mxu1 %v426_v13  ;;  %3524 = vmatpush2.msra.mxu0 %v297_v14  ;;  %v249_v62 = vld [vmem:[#allocation5 + $0x210] sm:$0xff]  ;;  %v502_v0 = vld [vmem:[#allocation5 + $0x9f8] sm:$0xff] }
 0x2a2   :  { %3601 = vmatpush2.msra.mxu1 %v425_v15  ;;  %3525 = vmatprep.subr.mxu0 %v294_v16  ;;  %v377_v63 = vld [vmem:[#allocation5 + $0x610] sm:$0xff]  ;;  %v630_v2 = vld [vmem:[#allocation5 + $0xdf8] sm:$0xff] }
 0x2a3   :  { %3602 = vmatprep.subr.mxu1 %v422_v17  ;;  %3526 = vmatpush2.msra.mxu0 %v293_v18  ;;  %v501_v4 = vld [vmem:[#allocation5 + $0x9f0] sm:$0xff]  ;;  %v5231_v6 = vld [vmem:[#allocation2 + $0x18] sm:$0xff] }
 0x2a4   :  { %3603 = vmatpush2.msra.mxu1 %v421_v19  ;;  %3527 = vmatprep.subr.mxu0 %v290_v20  ;;  %v629_v5 = vld [vmem:[#allocation5 + $0xdf0] sm:$0xff]  ;;  %v498_v7 = vld [vmem:[#allocation5 + $0x9d8] sm:$0xff] }
 0x2a5   :  { %3604 = vmatprep.subr.mxu1 %v418_v21  ;;  %3528 = vmatpush2.msra.mxu0 %v289_v22  ;;  %v626_v8 = vld [vmem:[#allocation5 + $0xdd8] sm:$0xff]  ;;  %v5232_v9 = vld [vmem:[#allocation2 + $0x10] sm:$0xff] }
 0x2a6   :  { %3605 = vmatpush2.msra.mxu1 %v417_v23  ;;  %3529 = vmatprep.subr.mxu0 %v286_v24  ;;  %v497_v10 = vld [vmem:[#allocation5 + $0x9d0] sm:$0xff]  ;;  %v494_v12 = vld [vmem:[#allocation5 + $0x9b8] sm:$0xff] }
 0x2a7   :  { %3606 = vmatprep.subr.mxu1 %v414_v25  ;;  %3530 = vmatpush2.msra.mxu0 %v285_v26  ;;  %v625_v11 = vld [vmem:[#allocation5 + $0xdd0] sm:$0xff]  ;;  %v622_v13 = vld [vmem:[#allocation5 + $0xdb8] sm:$0xff] }
 0x2a8   :  { %3607 = vmatpush2.msra.mxu1 %v413_v27  ;;  %3531 = vmatprep.subr.mxu0 %v282_v28  ;;  %v493_v14 = vld [vmem:[#allocation5 + $0x9b0] sm:$0xff]  ;;  %v490_v16 = vld [vmem:[#allocation5 + $0x998] sm:$0xff] }
 0x2a9   :  { %3608 = vmatprep.subr.mxu1 %v410_v29  ;;  %3532 = vmatpush2.msra.mxu0 %v281_v30  ;;  %v621_v15 = vld [vmem:[#allocation5 + $0xdb0] sm:$0xff]  ;;  %v618_v17 = vld [vmem:[#allocation5 + $0xd98] sm:$0xff] }
 0x2aa   :  { %3609 = vmatpush2.msra.mxu1 %v409_v31  ;;  %3533 = vmatprep.subr.mxu0 %v278_v32  ;;  %v489_v18 = vld [vmem:[#allocation5 + $0x990] sm:$0xff]  ;;  %v486_v20 = vld [vmem:[#allocation5 + $0x978] sm:$0xff] }
 0x2ab   :  { %3610 = vmatprep.subr.mxu1 %v406_v33  ;;  %3534 = vmatpush2.msra.mxu0 %v277_v34  ;;  %v617_v19 = vld [vmem:[#allocation5 + $0xd90] sm:$0xff]  ;;  %v614_v21 = vld [vmem:[#allocation5 + $0xd78] sm:$0xff] }
 0x2ac   :  { %3611 = vmatpush2.msra.mxu1 %v405_v35  ;;  %3535 = vmatprep.subr.mxu0 %v274_v36  ;;  %v485_v22 = vld [vmem:[#allocation5 + $0x970] sm:$0xff]  ;;  %v482_v24 = vld [vmem:[#allocation5 + $0x958] sm:$0xff] }
 0x2ad   :  { %3612 = vmatprep.subr.mxu1 %v402_v37  ;;  %3536 = vmatpush2.msra.mxu0 %v273_v38  ;;  %v613_v23 = vld [vmem:[#allocation5 + $0xd70] sm:$0xff]  ;;  %v610_v25 = vld [vmem:[#allocation5 + $0xd58] sm:$0xff] }
 0x2ae   :  { %3613 = vmatpush2.msra.mxu1 %v401_v39  ;;  %3537 = vmatprep.subr.mxu0 %v270_v40  ;;  %v481_v26 = vld [vmem:[#allocation5 + $0x950] sm:$0xff]  ;;  %v478_v28 = vld [vmem:[#allocation5 + $0x938] sm:$0xff] }
 0x2af   :  { %3614 = vmatprep.subr.mxu1 %v398_v41  ;;  %3538 = vmatpush2.msra.mxu0 %v269_v42  ;;  %v609_v27 = vld [vmem:[#allocation5 + $0xd50] sm:$0xff]  ;;  %v606_v29 = vld [vmem:[#allocation5 + $0xd38] sm:$0xff] }
 0x2b0   :  { %3615 = vmatpush2.msra.mxu1 %v397_v43  ;;  %3539 = vmatprep.subr.mxu0 %v266_v44  ;;  %v477_v30 = vld [vmem:[#allocation5 + $0x930] sm:$0xff]  ;;  %v474_v32 = vld [vmem:[#allocation5 + $0x918] sm:$0xff] }
 0x2b1   :  { %3616 = vmatprep.subr.mxu1 %v394_v45  ;;  %3540 = vmatpush2.msra.mxu0 %v265_v46  ;;  %v605_v31 = vld [vmem:[#allocation5 + $0xd30] sm:$0xff]  ;;  %v602_v33 = vld [vmem:[#allocation5 + $0xd18] sm:$0xff] }
 0x2b2   :  { %3617 = vmatpush2.msra.mxu1 %v393_v47  ;;  %3541 = vmatprep.subr.mxu0 %v262_v48  ;;  %v473_v34 = vld [vmem:[#allocation5 + $0x910] sm:$0xff]  ;;  %v470_v36 = vld [vmem:[#allocation5 + $0x8f8] sm:$0xff] }
 0x2b3   :  { %3618 = vmatprep.subr.mxu1 %v390_v49  ;;  %3542 = vmatpush2.msra.mxu0 %v261_v50  ;;  %v601_v35 = vld [vmem:[#allocation5 + $0xd10] sm:$0xff]  ;;  %v598_v37 = vld [vmem:[#allocation5 + $0xcf8] sm:$0xff] }
 0x2b4   :  { %3619 = vmatpush2.msra.mxu1 %v389_v51  ;;  %3543 = vmatprep.subr.mxu0 %v258_v52  ;;  %v469_v38 = vld [vmem:[#allocation5 + $0x8f0] sm:$0xff]  ;;  %v466_v40 = vld [vmem:[#allocation5 + $0x8d8] sm:$0xff] }
 0x2b5   :  { %3620 = vmatprep.subr.mxu1 %v386_v53  ;;  %3544 = vmatpush2.msra.mxu0 %v257_v54  ;;  %v597_v39 = vld [vmem:[#allocation5 + $0xcf0] sm:$0xff]  ;;  %v594_v41 = vld [vmem:[#allocation5 + $0xcd8] sm:$0xff] }
 0x2b6   :  { %3621 = vmatpush2.msra.mxu1 %v385_v55  ;;  %3545 = vmatprep.subr.mxu0 %v254_v56  ;;  %v465_v42 = vld [vmem:[#allocation5 + $0x8d0] sm:$0xff]  ;;  %v462_v44 = vld [vmem:[#allocation5 + $0x8b8] sm:$0xff] }
 0x2b7   :  { %3622 = vmatprep.subr.mxu1 %v382_v57  ;;  %3546 = vmatpush2.msra.mxu0 %v253_v58  ;;  %v593_v43 = vld [vmem:[#allocation5 + $0xcd0] sm:$0xff]  ;;  %v590_v45 = vld [vmem:[#allocation5 + $0xcb8] sm:$0xff] }
 0x2b8   :  { %3623 = vmatpush2.msra.mxu1 %v381_v59  ;;  %3547 = vmatprep.subr.mxu0 %v250_v60  ;;  %v461_v46 = vld [vmem:[#allocation5 + $0x8b0] sm:$0xff]  ;;  %v458_v48 = vld [vmem:[#allocation5 + $0x898] sm:$0xff] }
 0x2b9   :  { %3624 = vmatprep.subr.mxu1 %v378_v61  ;;  %3548 = vmatpush2.msra.mxu0 %v249_v62  ;;  %v589_v47 = vld [vmem:[#allocation5 + $0xcb0] sm:$0xff]  ;;  %v586_v49 = vld [vmem:[#allocation5 + $0xc98] sm:$0xff] }
 0x2ba   :  { %3549 = vmatprep.mubr.f32.mxu0 %v5229_v1  ;;  %3625 = vmatpush2.msra.mxu1 %v377_v63  ;;  %v457_v50 = vld [vmem:[#allocation5 + $0x890] sm:$0xff]  ;;  %v454_v52 = vld [vmem:[#allocation5 + $0x878] sm:$0xff] }
 0x2bb   :  { %3550 = vmatmul.mubr.f32.vlgmr.msra.gmra.mxu0 %v5230_v3  ;;  %3626 = vmatprep.mubr.f32.mxu1 %v5231_v6  ;;  %v585_v51 = vld [vmem:[#allocation5 + $0xc90] sm:$0xff]  ;;  %v582_v53 = vld [vmem:[#allocation5 + $0xc78] sm:$0xff] }
 0x2bc   :  { %3639 = vmatprep.subr.mxu0 %v502_v0  ;;  %3716 = vmatprep.subr.mxu1 %v630_v2  ;;  %v453_v54 = vld [vmem:[#allocation5 + $0x870] sm:$0xff]  ;;  %v450_v56 = vld [vmem:[#allocation5 + $0x858] sm:$0xff] }
 0x2bd   :  { %3627 = vmatmul.mubr.f32.vlgmr.msra.gmra.mxu1 %v5232_v9  ;;  %3640 = vmatpush1.msra.mxu0 %v501_v4  ;;  %v581_v55 = vld [vmem:[#allocation5 + $0xc70] sm:$0xff]  ;;  %v578_v57 = vld [vmem:[#allocation5 + $0xc58] sm:$0xff] }
 0x2be   :  { %3717 = vmatpush1.msra.mxu1 %v629_v5  ;;  %3641 = vmatprep.subr.mxu0 %v498_v7  ;;  %v449_v58 = vld [vmem:[#allocation5 + $0x850] sm:$0xff]  ;;  %v446_v60 = vld [vmem:[#allocation5 + $0x838] sm:$0xff] }
 0x2bf   :  { %3718 = vmatprep.subr.mxu1 %v626_v8  ;;  %3642 = vmatpush1.msra.mxu0 %v497_v10  ;;  %v577_v59 = vld [vmem:[#allocation5 + $0xc50] sm:$0xff]  ;;  %v574_v61 = vld [vmem:[#allocation5 + $0xc38] sm:$0xff] }
 0x2c0   :  { %3719 = vmatpush1.msra.mxu1 %v625_v11  ;;  %3643 = vmatprep.subr.mxu0 %v494_v12  ;;  %v445_v62 = vld [vmem:[#allocation5 + $0x830] sm:$0xff]  ;;  %v442_v0 = vld [vmem:[#allocation5 + $0x818] sm:$0xff] }
 0x2c1   :  { %3720 = vmatprep.subr.mxu1 %v622_v13  ;;  %3644 = vmatpush1.msra.mxu0 %v493_v14  ;;  %v573_v63 = vld [vmem:[#allocation5 + $0xc30] sm:$0xff]  ;;  %v570_v1 = vld [vmem:[#allocation5 + $0xc18] sm:$0xff] }
 0x2c2   :  { %3721 = vmatpush1.msra.mxu1 %v621_v15  ;;  %3645 = vmatprep.subr.mxu0 %v490_v16  ;;  %v441_v2 = vld [vmem:[#allocation5 + $0x810] sm:$0xff]  ;;  %v566_v4 = vld [vmem:[#allocation5 + $0xbf8] sm:$0xff] }
 0x2c3   :  { %3722 = vmatprep.subr.mxu1 %v618_v17  ;;  %3646 = vmatpush1.msra.mxu0 %v489_v18  ;;  %v569_v3 = vld [vmem:[#allocation5 + $0xc10] sm:$0xff]  ;;  %v694_v5 = vld [vmem:[#allocation5 + $0xff8] sm:$0xff] }
 0x2c4   :  { %3723 = vmatpush1.msra.mxu1 %v617_v19  ;;  %3647 = vmatprep.subr.mxu0 %v486_v20  ;;  %v565_v6 = vld [vmem:[#allocation5 + $0xbf0] sm:$0xff]  ;;  %v562_v8 = vld [vmem:[#allocation5 + $0xbd8] sm:$0xff] }
 0x2c5   :  { %3724 = vmatprep.subr.mxu1 %v614_v21  ;;  %3648 = vmatpush1.msra.mxu0 %v485_v22  ;;  %v693_v7 = vld [vmem:[#allocation5 + $0xff0] sm:$0xff]  ;;  %v690_v9 = vld [vmem:[#allocation5 + $0xfd8] sm:$0xff] }
 0x2c6   :  { %3725 = vmatpush1.msra.mxu1 %v613_v23  ;;  %3649 = vmatprep.subr.mxu0 %v482_v24  ;;  %v561_v10 = vld [vmem:[#allocation5 + $0xbd0] sm:$0xff]  ;;  %v558_v12 = vld [vmem:[#allocation5 + $0xbb8] sm:$0xff] }
 0x2c7   :  { %3726 = vmatprep.subr.mxu1 %v610_v25  ;;  %3650 = vmatpush1.msra.mxu0 %v481_v26  ;;  %v689_v11 = vld [vmem:[#allocation5 + $0xfd0] sm:$0xff]  ;;  %v686_v13 = vld [vmem:[#allocation5 + $0xfb8] sm:$0xff] }
 0x2c8   :  { %3727 = vmatpush1.msra.mxu1 %v609_v27  ;;  %3651 = vmatprep.subr.mxu0 %v478_v28  ;;  %v557_v14 = vld [vmem:[#allocation5 + $0xbb0] sm:$0xff]  ;;  %v554_v16 = vld [vmem:[#allocation5 + $0xb98] sm:$0xff] }
 0x2c9   :  { %3728 = vmatprep.subr.mxu1 %v606_v29  ;;  %3652 = vmatpush1.msra.mxu0 %v477_v30  ;;  %v685_v15 = vld [vmem:[#allocation5 + $0xfb0] sm:$0xff]  ;;  %v682_v17 = vld [vmem:[#allocation5 + $0xf98] sm:$0xff] }
 0x2ca   :  { %3729 = vmatpush1.msra.mxu1 %v605_v31  ;;  %3653 = vmatprep.subr.mxu0 %v474_v32  ;;  %v553_v18 = vld [vmem:[#allocation5 + $0xb90] sm:$0xff]  ;;  %v550_v20 = vld [vmem:[#allocation5 + $0xb78] sm:$0xff] }
 0x2cb   :  { %3730 = vmatprep.subr.mxu1 %v602_v33  ;;  %3654 = vmatpush1.msra.mxu0 %v473_v34  ;;  %v681_v19 = vld [vmem:[#allocation5 + $0xf90] sm:$0xff]  ;;  %v678_v21 = vld [vmem:[#allocation5 + $0xf78] sm:$0xff] }
 0x2cc   :  { %3731 = vmatpush1.msra.mxu1 %v601_v35  ;;  %3655 = vmatprep.subr.mxu0 %v470_v36  ;;  %v549_v22 = vld [vmem:[#allocation5 + $0xb70] sm:$0xff]  ;;  %v546_v24 = vld [vmem:[#allocation5 + $0xb58] sm:$0xff] }
 0x2cd   :  { %3732 = vmatprep.subr.mxu1 %v598_v37  ;;  %3656 = vmatpush1.msra.mxu0 %v469_v38  ;;  %v677_v23 = vld [vmem:[#allocation5 + $0xf70] sm:$0xff]  ;;  %v674_v25 = vld [vmem:[#allocation5 + $0xf58] sm:$0xff] }
 0x2ce   :  { %3733 = vmatpush1.msra.mxu1 %v597_v39  ;;  %3657 = vmatprep.subr.mxu0 %v466_v40  ;;  %v545_v26 = vld [vmem:[#allocation5 + $0xb50] sm:$0xff]  ;;  %v542_v28 = vld [vmem:[#allocation5 + $0xb38] sm:$0xff] }
 0x2cf   :  { %3734 = vmatprep.subr.mxu1 %v594_v41  ;;  %3658 = vmatpush1.msra.mxu0 %v465_v42  ;;  %v673_v27 = vld [vmem:[#allocation5 + $0xf50] sm:$0xff]  ;;  %v670_v29 = vld [vmem:[#allocation5 + $0xf38] sm:$0xff] }
 0x2d0   :  { %3735 = vmatpush1.msra.mxu1 %v593_v43  ;;  %3659 = vmatprep.subr.mxu0 %v462_v44  ;;  %v541_v30 = vld [vmem:[#allocation5 + $0xb30] sm:$0xff]  ;;  %v538_v32 = vld [vmem:[#allocation5 + $0xb18] sm:$0xff] }
 0x2d1   :  { %3736 = vmatprep.subr.mxu1 %v590_v45  ;;  %3660 = vmatpush1.msra.mxu0 %v461_v46  ;;  %v669_v31 = vld [vmem:[#allocation5 + $0xf30] sm:$0xff]  ;;  %v666_v33 = vld [vmem:[#allocation5 + $0xf18] sm:$0xff] }
 0x2d2   :  { %3737 = vmatpush1.msra.mxu1 %v589_v47  ;;  %3661 = vmatprep.subr.mxu0 %v458_v48  ;;  %v537_v34 = vld [vmem:[#allocation5 + $0xb10] sm:$0xff]  ;;  %v534_v36 = vld [vmem:[#allocation5 + $0xaf8] sm:$0xff] }
 0x2d3   :  { %3738 = vmatprep.subr.mxu1 %v586_v49  ;;  %3662 = vmatpush1.msra.mxu0 %v457_v50  ;;  %v665_v35 = vld [vmem:[#allocation5 + $0xf10] sm:$0xff]  ;;  %v662_v37 = vld [vmem:[#allocation5 + $0xef8] sm:$0xff] }
 0x2d4   :  { %3739 = vmatpush1.msra.mxu1 %v585_v51  ;;  %3663 = vmatprep.subr.mxu0 %v454_v52  ;;  %v533_v38 = vld [vmem:[#allocation5 + $0xaf0] sm:$0xff]  ;;  %v530_v40 = vld [vmem:[#allocation5 + $0xad8] sm:$0xff] }
 0x2d5   :  { %3740 = vmatprep.subr.mxu1 %v582_v53  ;;  %3664 = vmatpush1.msra.mxu0 %v453_v54  ;;  %v661_v39 = vld [vmem:[#allocation5 + $0xef0] sm:$0xff]  ;;  %v658_v41 = vld [vmem:[#allocation5 + $0xed8] sm:$0xff] }
 0x2d6   :  { %3741 = vmatpush1.msra.mxu1 %v581_v55  ;;  %3665 = vmatprep.subr.mxu0 %v450_v56  ;;  %v529_v42 = vld [vmem:[#allocation5 + $0xad0] sm:$0xff]  ;;  %v526_v44 = vld [vmem:[#allocation5 + $0xab8] sm:$0xff] }
 0x2d7   :  { %3742 = vmatprep.subr.mxu1 %v578_v57  ;;  %3666 = vmatpush1.msra.mxu0 %v449_v58  ;;  %v657_v43 = vld [vmem:[#allocation5 + $0xed0] sm:$0xff]  ;;  %v654_v45 = vld [vmem:[#allocation5 + $0xeb8] sm:$0xff] }
 0x2d8   :  { %3743 = vmatpush1.msra.mxu1 %v577_v59  ;;  %3667 = vmatprep.subr.mxu0 %v446_v60  ;;  %v525_v46 = vld [vmem:[#allocation5 + $0xab0] sm:$0xff]  ;;  %v522_v48 = vld [vmem:[#allocation5 + $0xa98] sm:$0xff]  ;;  %v5233_v60 = vld [vmem:[#allocation2 + $0x108] sm:$0xff] }
 0x2d9   :  { %3744 = vmatprep.subr.mxu1 %v574_v61  ;;  %3668 = vmatpush1.msra.mxu0 %v445_v62  ;;  %v653_v47 = vld [vmem:[#allocation5 + $0xeb0] sm:$0xff]  ;;  %v650_v49 = vld [vmem:[#allocation5 + $0xe98] sm:$0xff]  ;;  %v5234_v62 = vld [vmem:[#allocation2 + $0x100] sm:$0xff] }
 0x2da   :  { %3745 = vmatpush1.msra.mxu1 %v573_v63  ;;  %3669 = vmatprep.subr.mxu0 %v442_v0  ;;  %v521_v50 = vld [vmem:[#allocation5 + $0xa90] sm:$0xff]  ;;  %v518_v52 = vld [vmem:[#allocation5 + $0xa78] sm:$0xff] }
 0x2db   :  { %3746 = vmatprep.subr.mxu1 %v570_v1  ;;  %3670 = vmatpush1.msra.mxu0 %v441_v2  ;;  %v649_v51 = vld [vmem:[#allocation5 + $0xe90] sm:$0xff]  ;;  %v646_v53 = vld [vmem:[#allocation5 + $0xe78] sm:$0xff] }
 0x2dc   :  { %3747 = vmatpush1.msra.mxu1 %v569_v3  ;;  %3671 = vmatprep.subr.mxu0 %v566_v4  ;;  %v517_v54 = vld [vmem:[#allocation5 + $0xa70] sm:$0xff]  ;;  %v514_v56 = vld [vmem:[#allocation5 + $0xa58] sm:$0xff] }
 0x2dd   :  { %3748 = vmatprep.subr.mxu1 %v694_v5  ;;  %3672 = vmatpush2.msra.mxu0 %v565_v6  ;;  %v645_v55 = vld [vmem:[#allocation5 + $0xe70] sm:$0xff]  ;;  %v642_v57 = vld [vmem:[#allocation5 + $0xe58] sm:$0xff] }
 0x2de   :  { %3749 = vmatpush2.msra.mxu1 %v693_v7  ;;  %3673 = vmatprep.subr.mxu0 %v562_v8  ;;  %v513_v58 = vld [vmem:[#allocation5 + $0xa50] sm:$0xff]  ;;  %v510_v61 = vld [vmem:[#allocation5 + $0xa38] sm:$0xff] }
 0x2df   :  { %3750 = vmatprep.subr.mxu1 %v690_v9  ;;  %3674 = vmatpush2.msra.mxu0 %v561_v10  ;;  %v641_v59 = vld [vmem:[#allocation5 + $0xe50] sm:$0xff]  ;;  %v638_v63 = vld [vmem:[#allocation5 + $0xe38] sm:$0xff]  ;;  %v5237_v9 = vld [vmem:[#allocation2 + $0x28] sm:$0xff] }
 0x2e0   :  { %3751 = vmatpush2.msra.mxu1 %v689_v11  ;;  %3675 = vmatprep.subr.mxu0 %v558_v12  ;;  %v509_v0 = vld [vmem:[#allocation5 + $0xa30] sm:$0xff]  ;;  %v5235_v2 = vld [vmem:[#allocation2 + $0x118] sm:$0xff]  ;;  %v5238_v11 = vld [vmem:[#allocation2 + $0x20] sm:$0xff] }
 0x2e1   :  { %3752 = vmatprep.subr.mxu1 %v686_v13  ;;  %3676 = vmatpush2.msra.mxu0 %v557_v14  ;;  %v637_v1 = vld [vmem:[#allocation5 + $0xe30] sm:$0xff]  ;;  %v506_v3 = vld [vmem:[#allocation5 + $0xa18] sm:$0xff] }
 0x2e2   :  { %3753 = vmatpush2.msra.mxu1 %v685_v15  ;;  %3677 = vmatprep.subr.mxu0 %v554_v16  ;;  %v634_v4 = vld [vmem:[#allocation5 + $0xe18] sm:$0xff]  ;;  %v5236_v5 = vld [vmem:[#allocation2 + $0x110] sm:$0xff] }
 0x2e3   :  { %3754 = vmatprep.subr.mxu1 %v682_v17  ;;  %3678 = vmatpush2.msra.mxu0 %v553_v18  ;;  %v505_v6 = vld [vmem:[#allocation5 + $0xa10] sm:$0xff]  ;;  %v758_v8 = vld [vmem:[#allocation5 + $0x11f8] sm:$0xff] }
 0x2e4   :  { %3755 = vmatpush2.msra.mxu1 %v681_v19  ;;  %3679 = vmatprep.subr.mxu0 %v550_v20  ;;  %v633_v7 = vld [vmem:[#allocation5 + $0xe10] sm:$0xff]  ;;  %v886_v10 = vld [vmem:[#allocation5 + $0x15f8] sm:$0xff] }
 0x2e5   :  { %3756 = vmatprep.subr.mxu1 %v678_v21  ;;  %3680 = vmatpush2.msra.mxu0 %v549_v22  ;;  %v757_v12 = vld [vmem:[#allocation5 + $0x11f0] sm:$0xff]  ;;  %v5239_v14 = vld [vmem:[#allocation2 + $0x38] sm:$0xff]  ;;  %v5241_v22 = vld [vmem:[#allocation2 + $0x128] sm:$0xff] }
 0x2e6   :  { %3757 = vmatpush2.msra.mxu1 %v677_v23  ;;  %3681 = vmatprep.subr.mxu0 %v546_v24  ;;  %v885_v13 = vld [vmem:[#allocation5 + $0x15f0] sm:$0xff]  ;;  %v754_v15 = vld [vmem:[#allocation5 + $0x11d8] sm:$0xff]  ;;  %v5242_v24 = vld [vmem:[#allocation2 + $0x120] sm:$0xff] }
 0x2e7   :  { %3758 = vmatprep.subr.mxu1 %v674_v25  ;;  %3682 = vmatpush2.msra.mxu0 %v545_v26  ;;  %v882_v16 = vld [vmem:[#allocation5 + $0x15d8] sm:$0xff]  ;;  %v5240_v17 = vld [vmem:[#allocation2 + $0x30] sm:$0xff] }
 0x2e8   :  { %3759 = vmatpush2.msra.mxu1 %v673_v27  ;;  %3683 = vmatprep.subr.mxu0 %v542_v28  ;;  %v753_v18 = vld [vmem:[#allocation5 + $0x11d0] sm:$0xff]  ;;  %v750_v20 = vld [vmem:[#allocation5 + $0x11b8] sm:$0xff] }
 0x2e9   :  { %3760 = vmatprep.subr.mxu1 %v670_v29  ;;  %3684 = vmatpush2.msra.mxu0 %v541_v30  ;;  %v881_v19 = vld [vmem:[#allocation5 + $0x15d0] sm:$0xff]  ;;  %v878_v21 = vld [vmem:[#allocation5 + $0x15b8] sm:$0xff] }
 0x2ea   :  { %3761 = vmatpush2.msra.mxu1 %v669_v31  ;;  %3685 = vmatprep.subr.mxu0 %v538_v32  ;;  %v749_v23 = vld [vmem:[#allocation5 + $0x11b0] sm:$0xff]  ;;  %v746_v26 = vld [vmem:[#allocation5 + $0x1198] sm:$0xff] }
 0x2eb   :  { %3762 = vmatprep.subr.mxu1 %v666_v33  ;;  %3686 = vmatpush2.msra.mxu0 %v537_v34  ;;  %v877_v25 = vld [vmem:[#allocation5 + $0x15b0] sm:$0xff]  ;;  %v874_v27 = vld [vmem:[#allocation5 + $0x1598] sm:$0xff] }
 0x2ec   :  { %3763 = vmatpush2.msra.mxu1 %v665_v35  ;;  %3687 = vmatprep.subr.mxu0 %v534_v36  ;;  %v5243_v28 = vld [vmem:[#allocation2 + $0x138] sm:$0xff]  ;;  %v745_v29 = vld [vmem:[#allocation5 + $0x1190] sm:$0xff] }
 0x2ed   :  { %3764 = vmatprep.subr.mxu1 %v662_v37  ;;  %3688 = vmatpush2.msra.mxu0 %v533_v38  ;;  %v873_v30 = vld [vmem:[#allocation5 + $0x1590] sm:$0xff]  ;;  %v742_v31 = vld [vmem:[#allocation5 + $0x1178] sm:$0xff] }
 0x2ee   :  { %3765 = vmatpush2.msra.mxu1 %v661_v39  ;;  %3689 = vmatprep.subr.mxu0 %v530_v40  ;;  %v870_v32 = vld [vmem:[#allocation5 + $0x1578] sm:$0xff]  ;;  %v5244_v33 = vld [vmem:[#allocation2 + $0x130] sm:$0xff] }
 0x2ef   :  { %3766 = vmatprep.subr.mxu1 %v658_v41  ;;  %3690 = vmatpush2.msra.mxu0 %v529_v42  ;;  %v741_v34 = vld [vmem:[#allocation5 + $0x1170] sm:$0xff]  ;;  %v738_v36 = vld [vmem:[#allocation5 + $0x1158] sm:$0xff] }
 0x2f0   :  { %3767 = vmatpush2.msra.mxu1 %v657_v43  ;;  %3691 = vmatprep.subr.mxu0 %v526_v44  ;;  %v869_v35 = vld [vmem:[#allocation5 + $0x1570] sm:$0xff]  ;;  %v866_v37 = vld [vmem:[#allocation5 + $0x1558] sm:$0xff] }
 0x2f1   :  { %3768 = vmatprep.subr.mxu1 %v654_v45  ;;  %3692 = vmatpush2.msra.mxu0 %v525_v46  ;;  %v737_v38 = vld [vmem:[#allocation5 + $0x1150] sm:$0xff]  ;;  %v734_v40 = vld [vmem:[#allocation5 + $0x1138] sm:$0xff] }
 0x2f2   :  { %3769 = vmatpush2.msra.mxu1 %v653_v47  ;;  %3693 = vmatprep.subr.mxu0 %v522_v48  ;;  %v865_v39 = vld [vmem:[#allocation5 + $0x1550] sm:$0xff]  ;;  %v862_v41 = vld [vmem:[#allocation5 + $0x1538] sm:$0xff] }
 0x2f3   :  { %3770 = vmatprep.subr.mxu1 %v650_v49  ;;  %3694 = vmatpush2.msra.mxu0 %v521_v50  ;;  %v733_v42 = vld [vmem:[#allocation5 + $0x1130] sm:$0xff]  ;;  %v730_v44 = vld [vmem:[#allocation5 + $0x1118] sm:$0xff] }
 0x2f4   :  { %3771 = vmatpush2.msra.mxu1 %v649_v51  ;;  %3695 = vmatprep.subr.mxu0 %v518_v52  ;;  %v861_v43 = vld [vmem:[#allocation5 + $0x1530] sm:$0xff]  ;;  %v858_v45 = vld [vmem:[#allocation5 + $0x1518] sm:$0xff] }
 0x2f5   :  { %3772 = vmatprep.subr.mxu1 %v646_v53  ;;  %3696 = vmatpush2.msra.mxu0 %v517_v54  ;;  %v729_v46 = vld [vmem:[#allocation5 + $0x1110] sm:$0xff]  ;;  %v726_v48 = vld [vmem:[#allocation5 + $0x10f8] sm:$0xff] }
 0x2f6   :  { %3773 = vmatpush2.msra.mxu1 %v645_v55  ;;  %3555 = vmatprep.mubr.f32.mxu0 %v5233_v60  ;;  %v857_v47 = vld [vmem:[#allocation5 + $0x1510] sm:$0xff]  ;;  %v854_v49 = vld [vmem:[#allocation5 + $0x14f8] sm:$0xff] }
 0x2f7   :  { %3697 = vmatprep.subr.mxu0 %v514_v56  ;;  %3774 = vmatprep.subr.mxu1 %v642_v57  ;;  %v725_v50 = vld [vmem:[#allocation5 + $0x10f0] sm:$0xff]  ;;  %v722_v52 = vld [vmem:[#allocation5 + $0x10d8] sm:$0xff] }
 0x2f8   :  { %3556 = vmatmul.mubr.f32.gmra.mxu0 %v5234_v62  ;;  %3775 = vmatpush2.msra.mxu1 %v641_v59  ;;  %v853_v51 = vld [vmem:[#allocation5 + $0x14f0] sm:$0xff]  ;;  %v850_v53 = vld [vmem:[#allocation5 + $0x14d8] sm:$0xff] }
 0x2f9   :  { %3698 = vmatpush2.msra.mxu0 %v513_v58  ;;  %3632 = vmatprep.mubr.f32.mxu1 %v5235_v2  ;;  %v721_v54 = vld [vmem:[#allocation5 + $0x10d0] sm:$0xff]  ;;  %v718_v56 = vld [vmem:[#allocation5 + $0x10b8] sm:$0xff] }
 0x2fa   :  { %3699 = vmatprep.subr.mxu0 %v510_v61  ;;  %3776 = vmatprep.subr.mxu1 %v638_v63  ;;  %v849_v55 = vld [vmem:[#allocation5 + $0x14d0] sm:$0xff]  ;;  %v846_v57 = vld [vmem:[#allocation5 + $0x14b8] sm:$0xff] }
 0x2fb   :  { %3633 = vmatmul.mubr.f32.gmra.mxu1 %v5236_v5  ;;  %3700 = vmatpush2.msra.mxu0 %v509_v0  ;;  %v717_v58 = vld [vmem:[#allocation5 + $0x10b0] sm:$0xff]  ;;  %v714_v60 = vld [vmem:[#allocation5 + $0x1098] sm:$0xff] }
 0x2fc   :  { %3777 = vmatpush2.msra.mxu1 %v637_v1  ;;  %3701 = vmatprep.subr.mxu0 %v506_v3  ;;  %v845_v59 = vld [vmem:[#allocation5 + $0x14b0] sm:$0xff]  ;;  %v842_v61 = vld [vmem:[#allocation5 + $0x1498] sm:$0xff] }
 0x2fd   :  { %3778 = vmatprep.subr.mxu1 %v634_v4  ;;  %3702 = vmatpush2.msra.mxu0 %v505_v6  ;;  %v713_v62 = vld [vmem:[#allocation5 + $0x1090] sm:$0xff]  ;;  %v710_v0 = vld [vmem:[#allocation5 + $0x1078] sm:$0xff] }
 0x2fe   :  { %3703 = vmatprep.mubr.f32.mxu0 %v5237_v9  ;;  %3779 = vmatpush2.msra.mxu1 %v633_v7  ;;  %v841_v63 = vld [vmem:[#allocation5 + $0x1490] sm:$0xff]  ;;  %v838_v1 = vld [vmem:[#allocation5 + $0x1478] sm:$0xff] }
 0x2ff   :  { %3704 = vmatmul.mubr.f32.vlgmr.msra.gmra.mxu0 %v5238_v11  ;;  %3780 = vmatprep.mubr.f32.mxu1 %v5239_v14  ;;  %v709_v2 = vld [vmem:[#allocation5 + $0x1070] sm:$0xff]  ;;  %v706_v4 = vld [vmem:[#allocation5 + $0x1058] sm:$0xff] }
 0x300   :  { %3793 = vmatprep.subr.mxu0 %v758_v8  ;;  %3870 = vmatprep.subr.mxu1 %v886_v10  ;;  %v837_v3 = vld [vmem:[#allocation5 + $0x1470] sm:$0xff]  ;;  %v834_v5 = vld [vmem:[#allocation5 + $0x1458] sm:$0xff] }
 0x301   :  { %3781 = vmatmul.mubr.f32.vlgmr.msra.gmra.mxu1 %v5240_v17  ;;  %3794 = vmatpush1.msra.mxu0 %v757_v12  ;;  %v705_v6 = vld [vmem:[#allocation5 + $0x1050] sm:$0xff]  ;;  %v702_v8 = vld [vmem:[#allocation5 + $0x1038] sm:$0xff] }
 0x302   :  { %3871 = vmatpush1.msra.mxu1 %v885_v13  ;;  %3795 = vmatprep.subr.mxu0 %v754_v15  ;;  %v833_v7 = vld [vmem:[#allocation5 + $0x1450] sm:$0xff]  ;;  %v830_v9 = vld [vmem:[#allocation5 + $0x1438] sm:$0xff] }
 0x303   :  { %3872 = vmatprep.subr.mxu1 %v882_v16  ;;  %3709 = vmatprep.mubr.f32.mxu0 %v5241_v22  ;;  %v701_v10 = vld [vmem:[#allocation5 + $0x1030] sm:$0xff]  ;;  %v698_v12 = vld [vmem:[#allocation5 + $0x1018] sm:$0xff] }
 0x304   :  { %3796 = vmatpush1.msra.mxu0 %v753_v18  ;;  %3873 = vmatpush1.msra.mxu1 %v881_v19  ;;  %v829_v11 = vld [vmem:[#allocation5 + $0x1430] sm:$0xff]  ;;  %v826_v13 = vld [vmem:[#allocation5 + $0x1418] sm:$0xff] }
 0x305   :  { %3710 = vmatmul.mubr.f32.gmra.mxu0 %v5242_v24  ;;  %3797 = vmatprep.subr.mxu0 %v750_v20  ;;  %v697_v14 = vld [vmem:[#allocation5 + $0x1010] sm:$0xff]  ;;  %v822_v16 = vld [vmem:[#allocation5 + $0x13f8] sm:$0xff] }
 0x306   :  { %3874 = vmatprep.subr.mxu1 %v878_v21  ;;  %3786 = vmatprep.mubr.f32.mxu1 %v5243_v28  ;;  %v825_v15 = vld [vmem:[#allocation5 + $0x1410] sm:$0xff]  ;;  %v950_v17 = vld [vmem:[#allocation5 + $0x17f8] sm:$0xff] }
 0x307   :  { %3798 = vmatpush1.msra.mxu0 %v749_v23  ;;  %3875 = vmatpush1.msra.mxu1 %v877_v25  ;;  %v821_v18 = vld [vmem:[#allocation5 + $0x13f0] sm:$0xff]  ;;  %v818_v20 = vld [vmem:[#allocation5 + $0x13d8] sm:$0xff] }
 0x308   :  { %3799 = vmatprep.subr.mxu0 %v746_v26  ;;  %3787 = vmatmul.mubr.f32.gmra.mxu1 %v5244_v33  ;;  %v949_v19 = vld [vmem:[#allocation5 + $0x17f0] sm:$0xff]  ;;  %v946_v21 = vld [vmem:[#allocation5 + $0x17d8] sm:$0xff] }
 0x309   :  { %3876 = vmatprep.subr.mxu1 %v874_v27  ;;  %3800 = vmatpush1.msra.mxu0 %v745_v29  ;;  %v817_v22 = vld [vmem:[#allocation5 + $0x13d0] sm:$0xff]  ;;  %v814_v24 = vld [vmem:[#allocation5 + $0x13b8] sm:$0xff] }
 0x30a   :  { %3877 = vmatpush1.msra.mxu1 %v873_v30  ;;  %3801 = vmatprep.subr.mxu0 %v742_v31  ;;  %v945_v23 = vld [vmem:[#allocation5 + $0x17d0] sm:$0xff]  ;;  %v942_v25 = vld [vmem:[#allocation5 + $0x17b8] sm:$0xff] }
 0x30b   :  { %3878 = vmatprep.subr.mxu1 %v870_v32  ;;  %3802 = vmatpush1.msra.mxu0 %v741_v34  ;;  %v813_v26 = vld [vmem:[#allocation5 + $0x13b0] sm:$0xff]  ;;  %v810_v28 = vld [vmem:[#allocation5 + $0x1398] sm:$0xff] }
 0x30c   :  { %3879 = vmatpush1.msra.mxu1 %v869_v35  ;;  %3803 = vmatprep.subr.mxu0 %v738_v36  ;;  %v941_v27 = vld [vmem:[#allocation5 + $0x17b0] sm:$0xff]  ;;  %v938_v29 = vld [vmem:[#allocation5 + $0x1798] sm:$0xff] }
 0x30d   :  { %3880 = vmatprep.subr.mxu1 %v866_v37  ;;  %3804 = vmatpush1.msra.mxu0 %v737_v38  ;;  %v809_v30 = vld [vmem:[#allocation5 + $0x1390] sm:$0xff]  ;;  %v806_v32 = vld [vmem:[#allocation5 + $0x1378] sm:$0xff] }
 0x30e   :  { %3881 = vmatpush1.msra.mxu1 %v865_v39  ;;  %3805 = vmatprep.subr.mxu0 %v734_v40  ;;  %v937_v31 = vld [vmem:[#allocation5 + $0x1790] sm:$0xff]  ;;  %v934_v33 = vld [vmem:[#allocation5 + $0x1778] sm:$0xff] }
 0x30f   :  { %3882 = vmatprep.subr.mxu1 %v862_v41  ;;  %3806 = vmatpush1.msra.mxu0 %v733_v42  ;;  %v805_v34 = vld [vmem:[#allocation5 + $0x1370] sm:$0xff]  ;;  %v802_v36 = vld [vmem:[#allocation5 + $0x1358] sm:$0xff] }
 0x310   :  { %3883 = vmatpush1.msra.mxu1 %v861_v43  ;;  %3807 = vmatprep.subr.mxu0 %v730_v44  ;;  %v933_v35 = vld [vmem:[#allocation5 + $0x1770] sm:$0xff]  ;;  %v930_v37 = vld [vmem:[#allocation5 + $0x1758] sm:$0xff] }
 0x311   :  { %3884 = vmatprep.subr.mxu1 %v858_v45  ;;  %3808 = vmatpush1.msra.mxu0 %v729_v46  ;;  %v801_v38 = vld [vmem:[#allocation5 + $0x1350] sm:$0xff]  ;;  %v798_v40 = vld [vmem:[#allocation5 + $0x1338] sm:$0xff] }
 0x312   :  { %3885 = vmatpush1.msra.mxu1 %v857_v47  ;;  %3809 = vmatprep.subr.mxu0 %v726_v48  ;;  %v929_v39 = vld [vmem:[#allocation5 + $0x1750] sm:$0xff]  ;;  %v926_v41 = vld [vmem:[#allocation5 + $0x1738] sm:$0xff] }
 0x313   :  { %3886 = vmatprep.subr.mxu1 %v854_v49  ;;  %3810 = vmatpush1.msra.mxu0 %v725_v50  ;;  %v797_v42 = vld [vmem:[#allocation5 + $0x1330] sm:$0xff]  ;;  %v794_v44 = vld [vmem:[#allocation5 + $0x1318] sm:$0xff] }
 0x314   :  { %3887 = vmatpush1.msra.mxu1 %v853_v51  ;;  %3811 = vmatprep.subr.mxu0 %v722_v52  ;;  %v925_v43 = vld [vmem:[#allocation5 + $0x1730] sm:$0xff]  ;;  %v922_v45 = vld [vmem:[#allocation5 + $0x1718] sm:$0xff] }
 0x315   :  { %3888 = vmatprep.subr.mxu1 %v850_v53  ;;  %3812 = vmatpush1.msra.mxu0 %v721_v54  ;;  %v793_v46 = vld [vmem:[#allocation5 + $0x1310] sm:$0xff]  ;;  %v790_v48 = vld [vmem:[#allocation5 + $0x12f8] sm:$0xff] }
 0x316   :  { %3889 = vmatpush1.msra.mxu1 %v849_v55  ;;  %3813 = vmatprep.subr.mxu0 %v718_v56  ;;  %v921_v47 = vld [vmem:[#allocation5 + $0x1710] sm:$0xff]  ;;  %v918_v49 = vld [vmem:[#allocation5 + $0x16f8] sm:$0xff] }
 0x317   :  { %3890 = vmatprep.subr.mxu1 %v846_v57  ;;  %3814 = vmatpush1.msra.mxu0 %v717_v58  ;;  %v789_v50 = vld [vmem:[#allocation5 + $0x12f0] sm:$0xff]  ;;  %v786_v52 = vld [vmem:[#allocation5 + $0x12d8] sm:$0xff] }
 0x318   :  { %3891 = vmatpush1.msra.mxu1 %v845_v59  ;;  %3815 = vmatprep.subr.mxu0 %v714_v60  ;;  %v917_v51 = vld [vmem:[#allocation5 + $0x16f0] sm:$0xff]  ;;  %v914_v53 = vld [vmem:[#allocation5 + $0x16d8] sm:$0xff] }
 0x319   :  { %3892 = vmatprep.subr.mxu1 %v842_v61  ;;  %3816 = vmatpush1.msra.mxu0 %v713_v62  ;;  %v785_v54 = vld [vmem:[#allocation5 + $0x12d0] sm:$0xff]  ;;  %v782_v56 = vld [vmem:[#allocation5 + $0x12b8] sm:$0xff] }
 0x31a   :  { %3893 = vmatpush1.msra.mxu1 %v841_v63  ;;  %3817 = vmatprep.subr.mxu0 %v710_v0  ;;  %v913_v55 = vld [vmem:[#allocation5 + $0x16d0] sm:$0xff]  ;;  %v910_v57 = vld [vmem:[#allocation5 + $0x16b8] sm:$0xff] }
 0x31b   :  { %3894 = vmatprep.subr.mxu1 %v838_v1  ;;  %3818 = vmatpush1.msra.mxu0 %v709_v2  ;;  %v781_v58 = vld [vmem:[#allocation5 + $0x12b0] sm:$0xff]  ;;  %v778_v60 = vld [vmem:[#allocation5 + $0x1298] sm:$0xff] }
 0x31c   :  { %3895 = vmatpush1.msra.mxu1 %v837_v3  ;;  %3819 = vmatprep.subr.mxu0 %v706_v4  ;;  %v909_v59 = vld [vmem:[#allocation5 + $0x16b0] sm:$0xff]  ;;  %v906_v61 = vld [vmem:[#allocation5 + $0x1698] sm:$0xff] }
 0x31d   :  { %3896 = vmatprep.subr.mxu1 %v834_v5  ;;  %3820 = vmatpush1.msra.mxu0 %v705_v6  ;;  %v777_v62 = vld [vmem:[#allocation5 + $0x1290] sm:$0xff]  ;;  %v774_v0 = vld [vmem:[#allocation5 + $0x1278] sm:$0xff] }
 0x31e   :  { %3897 = vmatpush1.msra.mxu1 %v833_v7  ;;  %3821 = vmatprep.subr.mxu0 %v702_v8  ;;  %v905_v63 = vld [vmem:[#allocation5 + $0x1690] sm:$0xff]  ;;  %v902_v1 = vld [vmem:[#allocation5 + $0x1678] sm:$0xff] }
 0x31f   :  { %3898 = vmatprep.subr.mxu1 %v830_v9  ;;  %3822 = vmatpush1.msra.mxu0 %v701_v10  ;;  %v773_v2 = vld [vmem:[#allocation5 + $0x1270] sm:$0xff]  ;;  %v770_v4 = vld [vmem:[#allocation5 + $0x1258] sm:$0xff] }
 0x320   :  { %3899 = vmatpush1.msra.mxu1 %v829_v11  ;;  %3823 = vmatprep.subr.mxu0 %v698_v12  ;;  %v901_v3 = vld [vmem:[#allocation5 + $0x1670] sm:$0xff]  ;;  %v898_v5 = vld [vmem:[#allocation5 + $0x1658] sm:$0xff] }
 0x321   :  { %3900 = vmatprep.subr.mxu1 %v826_v13  ;;  %3824 = vmatpush1.msra.mxu0 %v697_v14  ;;  %v769_v6 = vld [vmem:[#allocation5 + $0x1250] sm:$0xff]  ;;  %v766_v8 = vld [vmem:[#allocation5 + $0x1238] sm:$0xff] }
 0x322   :  { %3901 = vmatpush1.msra.mxu1 %v825_v15  ;;  %3825 = vmatprep.subr.mxu0 %v822_v16  ;;  %v897_v7 = vld [vmem:[#allocation5 + $0x1650] sm:$0xff]  ;;  %v894_v9 = vld [vmem:[#allocation5 + $0x1638] sm:$0xff] }
 0x323   :  { %3902 = vmatprep.subr.mxu1 %v950_v17  ;;  %3826 = vmatpush2.msra.mxu0 %v821_v18  ;;  %v765_v10 = vld [vmem:[#allocation5 + $0x1230] sm:$0xff]  ;;  %v762_v12 = vld [vmem:[#allocation5 + $0x1218] sm:$0xff]  ;;  %v5245_v17 = vld [vmem:[#allocation2 + $0x48] sm:$0xff] }
 0x324   :  { %3903 = vmatpush2.msra.mxu1 %v949_v19  ;;  %3827 = vmatprep.subr.mxu0 %v818_v20  ;;  %v893_v11 = vld [vmem:[#allocation5 + $0x1630] sm:$0xff]  ;;  %v890_v13 = vld [vmem:[#allocation5 + $0x1618] sm:$0xff]  ;;  %v5246_v19 = vld [vmem:[#allocation2 + $0x40] sm:$0xff] }
 0x325   :  { %3904 = vmatprep.subr.mxu1 %v946_v21  ;;  %3828 = vmatpush2.msra.mxu0 %v817_v22  ;;  %v761_v14 = vld [vmem:[#allocation5 + $0x1210] sm:$0xff]  ;;  %v1014_v16 = vld [vmem:[#allocation5 + $0x19f8] sm:$0xff] }
 0x326   :  { %3905 = vmatpush2.msra.mxu1 %v945_v23  ;;  %3829 = vmatprep.subr.mxu0 %v814_v24  ;;  %v889_v15 = vld [vmem:[#allocation5 + $0x1610] sm:$0xff]  ;;  %v1142_v18 = vld [vmem:[#allocation5 + $0x1df8] sm:$0xff] }
 0x327   :  { %3906 = vmatprep.subr.mxu1 %v942_v25  ;;  %3830 = vmatpush2.msra.mxu0 %v813_v26  ;;  %v1013_v20 = vld [vmem:[#allocation5 + $0x19f0] sm:$0xff]  ;;  %v5247_v22 = vld [vmem:[#allocation2 + $0x58] sm:$0xff] }
 0x328   :  { %3907 = vmatpush2.msra.mxu1 %v941_v27  ;;  %3831 = vmatprep.subr.mxu0 %v810_v28  ;;  %v1141_v21 = vld [vmem:[#allocation5 + $0x1df0] sm:$0xff]  ;;  %v1010_v23 = vld [vmem:[#allocation5 + $0x19d8] sm:$0xff] }
 0x329   :  { %3908 = vmatprep.subr.mxu1 %v938_v29  ;;  %3832 = vmatpush2.msra.mxu0 %v809_v30  ;;  %v1138_v24 = vld [vmem:[#allocation5 + $0x1dd8] sm:$0xff]  ;;  %v5248_v25 = vld [vmem:[#allocation2 + $0x50] sm:$0xff]  ;;  %v5249_v30 = vld [vmem:[#allocation2 + $0x148] sm:$0xff] }
 0x32a   :  { %3909 = vmatpush2.msra.mxu1 %v937_v31  ;;  %3833 = vmatprep.subr.mxu0 %v806_v32  ;;  %v1009_v26 = vld [vmem:[#allocation5 + $0x19d0] sm:$0xff]  ;;  %v1006_v28 = vld [vmem:[#allocation5 + $0x19b8] sm:$0xff]  ;;  %v5250_v32 = vld [vmem:[#allocation2 + $0x140] sm:$0xff] }
 0x32b   :  { %3910 = vmatprep.subr.mxu1 %v934_v33  ;;  %3834 = vmatpush2.msra.mxu0 %v805_v34  ;;  %v1137_v27 = vld [vmem:[#allocation5 + $0x1dd0] sm:$0xff]  ;;  %v1134_v29 = vld [vmem:[#allocation5 + $0x1db8] sm:$0xff] }
 0x32c   :  { %3911 = vmatpush2.msra.mxu1 %v933_v35  ;;  %3835 = vmatprep.subr.mxu0 %v802_v36  ;;  %v1005_v31 = vld [vmem:[#allocation5 + $0x19b0] sm:$0xff]  ;;  %v1002_v34 = vld [vmem:[#allocation5 + $0x1998] sm:$0xff] }
 0x32d   :  { %3912 = vmatprep.subr.mxu1 %v930_v37  ;;  %3836 = vmatpush2.msra.mxu0 %v801_v38  ;;  %v1133_v33 = vld [vmem:[#allocation5 + $0x1db0] sm:$0xff]  ;;  %v1130_v35 = vld [vmem:[#allocation5 + $0x1d98] sm:$0xff] }
 0x32e   :  { %3913 = vmatpush2.msra.mxu1 %v929_v39  ;;  %3837 = vmatprep.subr.mxu0 %v798_v40  ;;  %v5251_v36 = vld [vmem:[#allocation2 + $0x158] sm:$0xff]  ;;  %v1001_v37 = vld [vmem:[#allocation5 + $0x1990] sm:$0xff] }
 0x32f   :  { %3914 = vmatprep.subr.mxu1 %v926_v41  ;;  %3838 = vmatpush2.msra.mxu0 %v797_v42  ;;  %v1129_v38 = vld [vmem:[#allocation5 + $0x1d90] sm:$0xff]  ;;  %v998_v39 = vld [vmem:[#allocation5 + $0x1978] sm:$0xff] }
 0x330   :  { %3915 = vmatpush2.msra.mxu1 %v925_v43  ;;  %3839 = vmatprep.subr.mxu0 %v794_v44  ;;  %v1126_v40 = vld [vmem:[#allocation5 + $0x1d78] sm:$0xff]  ;;  %v5252_v41 = vld [vmem:[#allocation2 + $0x150] sm:$0xff] }
 0x331   :  { %3916 = vmatprep.subr.mxu1 %v922_v45  ;;  %3840 = vmatpush2.msra.mxu0 %v793_v46  ;;  %v997_v42 = vld [vmem:[#allocation5 + $0x1970] sm:$0xff]  ;;  %v994_v44 = vld [vmem:[#allocation5 + $0x1958] sm:$0xff] }
 0x332   :  { %3917 = vmatpush2.msra.mxu1 %v921_v47  ;;  %3841 = vmatprep.subr.mxu0 %v790_v48  ;;  %v1125_v43 = vld [vmem:[#allocation5 + $0x1d70] sm:$0xff]  ;;  %v1122_v45 = vld [vmem:[#allocation5 + $0x1d58] sm:$0xff] }
 0x333   :  { %3918 = vmatprep.subr.mxu1 %v918_v49  ;;  %3842 = vmatpush2.msra.mxu0 %v789_v50  ;;  %v993_v46 = vld [vmem:[#allocation5 + $0x1950] sm:$0xff]  ;;  %v990_v48 = vld [vmem:[#allocation5 + $0x1938] sm:$0xff] }
 0x334   :  { %3919 = vmatpush2.msra.mxu1 %v917_v51  ;;  %3843 = vmatprep.subr.mxu0 %v786_v52  ;;  %v1121_v47 = vld [vmem:[#allocation5 + $0x1d50] sm:$0xff]  ;;  %v1118_v49 = vld [vmem:[#allocation5 + $0x1d38] sm:$0xff] }
 0x335   :  { %3920 = vmatprep.subr.mxu1 %v914_v53  ;;  %3844 = vmatpush2.msra.mxu0 %v785_v54  ;;  %v989_v50 = vld [vmem:[#allocation5 + $0x1930] sm:$0xff]  ;;  %v986_v52 = vld [vmem:[#allocation5 + $0x1918] sm:$0xff] }
 0x336   :  { %3921 = vmatpush2.msra.mxu1 %v913_v55  ;;  %3845 = vmatprep.subr.mxu0 %v782_v56  ;;  %v1117_v51 = vld [vmem:[#allocation5 + $0x1d30] sm:$0xff]  ;;  %v1114_v53 = vld [vmem:[#allocation5 + $0x1d18] sm:$0xff] }
 0x337   :  { %3922 = vmatprep.subr.mxu1 %v910_v57  ;;  %3846 = vmatpush2.msra.mxu0 %v781_v58  ;;  %v985_v54 = vld [vmem:[#allocation5 + $0x1910] sm:$0xff]  ;;  %v982_v56 = vld [vmem:[#allocation5 + $0x18f8] sm:$0xff] }
 0x338   :  { %3923 = vmatpush2.msra.mxu1 %v909_v59  ;;  %3847 = vmatprep.subr.mxu0 %v778_v60  ;;  %v1113_v55 = vld [vmem:[#allocation5 + $0x1d10] sm:$0xff]  ;;  %v1110_v57 = vld [vmem:[#allocation5 + $0x1cf8] sm:$0xff] }
 0x339   :  { %3924 = vmatprep.subr.mxu1 %v906_v61  ;;  %3848 = vmatpush2.msra.mxu0 %v777_v62  ;;  %v981_v58 = vld [vmem:[#allocation5 + $0x18f0] sm:$0xff]  ;;  %v978_v60 = vld [vmem:[#allocation5 + $0x18d8] sm:$0xff] }
 0x33a   :  { %3925 = vmatpush2.msra.mxu1 %v905_v63  ;;  %3849 = vmatprep.subr.mxu0 %v774_v0  ;;  %v1109_v59 = vld [vmem:[#allocation5 + $0x1cf0] sm:$0xff]  ;;  %v1106_v61 = vld [vmem:[#allocation5 + $0x1cd8] sm:$0xff] }
 0x33b   :  { %3926 = vmatprep.subr.mxu1 %v902_v1  ;;  %3850 = vmatpush2.msra.mxu0 %v773_v2  ;;  %v977_v62 = vld [vmem:[#allocation5 + $0x18d0] sm:$0xff]  ;;  %v974_v0 = vld [vmem:[#allocation5 + $0x18b8] sm:$0xff] }
 0x33c   :  { %3927 = vmatpush2.msra.mxu1 %v901_v3  ;;  %3851 = vmatprep.subr.mxu0 %v770_v4  ;;  %v1105_v63 = vld [vmem:[#allocation5 + $0x1cd0] sm:$0xff]  ;;  %v1102_v1 = vld [vmem:[#allocation5 + $0x1cb8] sm:$0xff] }
 0x33d   :  { %3928 = vmatprep.subr.mxu1 %v898_v5  ;;  %3852 = vmatpush2.msra.mxu0 %v769_v6  ;;  %v973_v2 = vld [vmem:[#allocation5 + $0x18b0] sm:$0xff]  ;;  %v970_v4 = vld [vmem:[#allocation5 + $0x1898] sm:$0xff] }
 0x33e   :  { %3929 = vmatpush2.msra.mxu1 %v897_v7  ;;  %3853 = vmatprep.subr.mxu0 %v766_v8  ;;  %v1101_v3 = vld [vmem:[#allocation5 + $0x1cb0] sm:$0xff]  ;;  %v1098_v5 = vld [vmem:[#allocation5 + $0x1c98] sm:$0xff] }
 0x33f   :  { %3930 = vmatprep.subr.mxu1 %v894_v9  ;;  %3854 = vmatpush2.msra.mxu0 %v765_v10  ;;  %v969_v6 = vld [vmem:[#allocation5 + $0x1890] sm:$0xff]  ;;  %v966_v8 = vld [vmem:[#allocation5 + $0x1878] sm:$0xff] }
 0x340   :  { %3931 = vmatpush2.msra.mxu1 %v893_v11  ;;  %3855 = vmatprep.subr.mxu0 %v762_v12  ;;  %v1097_v7 = vld [vmem:[#allocation5 + $0x1c90] sm:$0xff]  ;;  %v1094_v9 = vld [vmem:[#allocation5 + $0x1c78] sm:$0xff] }
 0x341   :  { %3932 = vmatprep.subr.mxu1 %v890_v13  ;;  %3856 = vmatpush2.msra.mxu0 %v761_v14  ;;  %v965_v10 = vld [vmem:[#allocation5 + $0x1870] sm:$0xff]  ;;  %v962_v12 = vld [vmem:[#allocation5 + $0x1858] sm:$0xff] }
 0x342   :  { %3857 = vmatprep.mubr.f32.mxu0 %v5245_v17  ;;  %3933 = vmatpush2.msra.mxu1 %v889_v15  ;;  %v1093_v11 = vld [vmem:[#allocation5 + $0x1c70] sm:$0xff]  ;;  %v1090_v13 = vld [vmem:[#allocation5 + $0x1c58] sm:$0xff] }
 0x343   :  { %3858 = vmatmul.mubr.f32.vlgmr.msra.gmra.mxu0 %v5246_v19  ;;  %3934 = vmatprep.mubr.f32.mxu1 %v5247_v22  ;;  %v961_v14 = vld [vmem:[#allocation5 + $0x1850] sm:$0xff]  ;;  %v1086_v17 = vld [vmem:[#allocation5 + $0x1c38] sm:$0xff] }
 0x344   :  { %3947 = vmatprep.subr.mxu0 %v1014_v16  ;;  %4024 = vmatprep.subr.mxu1 %v1142_v18  ;;  %v1089_v15 = vld [vmem:[#allocation5 + $0x1c50] sm:$0xff]  ;;  %v958_v16 = vld [vmem:[#allocation5 + $0x1838] sm:$0xff] }
 0x345   :  { %3935 = vmatmul.mubr.f32.vlgmr.msra.gmra.mxu1 %v5248_v25  ;;  %3948 = vmatpush1.msra.mxu0 %v1013_v20  ;;  %v957_v18 = vld [vmem:[#allocation5 + $0x1830] sm:$0xff]  ;;  %v954_v20 = vld [vmem:[#allocation5 + $0x1818] sm:$0xff] }
 0x346   :  { %4025 = vmatpush1.msra.mxu1 %v1141_v21  ;;  %3949 = vmatprep.subr.mxu0 %v1010_v23  ;;  %v1085_v19 = vld [vmem:[#allocation5 + $0x1c30] sm:$0xff]  ;;  %v1082_v21 = vld [vmem:[#allocation5 + $0x1c18] sm:$0xff] }
 0x347   :  { %4026 = vmatprep.subr.mxu1 %v1138_v24  ;;  %3863 = vmatprep.mubr.f32.mxu0 %v5249_v30  ;;  %v953_v22 = vld [vmem:[#allocation5 + $0x1810] sm:$0xff]  ;;  %v1078_v24 = vld [vmem:[#allocation5 + $0x1bf8] sm:$0xff] }
 0x348   :  { %3950 = vmatpush1.msra.mxu0 %v1009_v26  ;;  %4027 = vmatpush1.msra.mxu1 %v1137_v27  ;;  %v1081_v23 = vld [vmem:[#allocation5 + $0x1c10] sm:$0xff]  ;;  %v1206_v25 = vld [vmem:[#allocation5 + $0x1ff8] sm:$0xff] }
 0x349   :  { %3864 = vmatmul.mubr.f32.gmra.mxu0 %v5250_v32  ;;  %3951 = vmatprep.subr.mxu0 %v1006_v28  ;;  %v1077_v26 = vld [vmem:[#allocation5 + $0x1bf0] sm:$0xff]  ;;  %v1074_v28 = vld [vmem:[#allocation5 + $0x1bd8] sm:$0xff] }
 0x34a   :  { %4028 = vmatprep.subr.mxu1 %v1134_v29  ;;  %3940 = vmatprep.mubr.f32.mxu1 %v5251_v36  ;;  %v1205_v27 = vld [vmem:[#allocation5 + $0x1ff0] sm:$0xff]  ;;  %v1202_v29 = vld [vmem:[#allocation5 + $0x1fd8] sm:$0xff] }
 0x34b   :  { %3952 = vmatpush1.msra.mxu0 %v1005_v31  ;;  %4029 = vmatpush1.msra.mxu1 %v1133_v33  ;;  %v1073_v30 = vld [vmem:[#allocation5 + $0x1bd0] sm:$0xff]  ;;  %v1070_v32 = vld [vmem:[#allocation5 + $0x1bb8] sm:$0xff] }
 0x34c   :  { %3953 = vmatprep.subr.mxu0 %v1002_v34  ;;  %3941 = vmatmul.mubr.f32.gmra.mxu1 %v5252_v41  ;;  %v1201_v31 = vld [vmem:[#allocation5 + $0x1fd0] sm:$0xff]  ;;  %v1198_v33 = vld [vmem:[#allocation5 + $0x1fb8] sm:$0xff] }
 0x34d   :  { %4030 = vmatprep.subr.mxu1 %v1130_v35  ;;  %3954 = vmatpush1.msra.mxu0 %v1001_v37  ;;  %v1069_v34 = vld [vmem:[#allocation5 + $0x1bb0] sm:$0xff]  ;;  %v1066_v36 = vld [vmem:[#allocation5 + $0x1b98] sm:$0xff] }
 0x34e   :  { %4031 = vmatpush1.msra.mxu1 %v1129_v38  ;;  %3955 = vmatprep.subr.mxu0 %v998_v39  ;;  %v1197_v35 = vld [vmem:[#allocation5 + $0x1fb0] sm:$0xff]  ;;  %v1194_v37 = vld [vmem:[#allocation5 + $0x1f98] sm:$0xff] }
 0x34f   :  { %4032 = vmatprep.subr.mxu1 %v1126_v40  ;;  %3956 = vmatpush1.msra.mxu0 %v997_v42  ;;  %v1065_v38 = vld [vmem:[#allocation5 + $0x1b90] sm:$0xff]  ;;  %v1062_v40 = vld [vmem:[#allocation5 + $0x1b78] sm:$0xff] }
 0x350   :  { %4033 = vmatpush1.msra.mxu1 %v1125_v43  ;;  %3957 = vmatprep.subr.mxu0 %v994_v44  ;;  %v1193_v39 = vld [vmem:[#allocation5 + $0x1f90] sm:$0xff]  ;;  %v1190_v41 = vld [vmem:[#allocation5 + $0x1f78] sm:$0xff] }
 0x351   :  { %4034 = vmatprep.subr.mxu1 %v1122_v45  ;;  %3958 = vmatpush1.msra.mxu0 %v993_v46  ;;  %v1061_v42 = vld [vmem:[#allocation5 + $0x1b70] sm:$0xff]  ;;  %v1058_v44 = vld [vmem:[#allocation5 + $0x1b58] sm:$0xff] }
 0x352   :  { %4035 = vmatpush1.msra.mxu1 %v1121_v47  ;;  %3959 = vmatprep.subr.mxu0 %v990_v48  ;;  %v1189_v43 = vld [vmem:[#allocation5 + $0x1f70] sm:$0xff]  ;;  %v1186_v45 = vld [vmem:[#allocation5 + $0x1f58] sm:$0xff] }
 0x353   :  { %4036 = vmatprep.subr.mxu1 %v1118_v49  ;;  %3960 = vmatpush1.msra.mxu0 %v989_v50  ;;  %v1057_v46 = vld [vmem:[#allocation5 + $0x1b50] sm:$0xff]  ;;  %v1054_v48 = vld [vmem:[#allocation5 + $0x1b38] sm:$0xff] }
 0x354   :  { %4037 = vmatpush1.msra.mxu1 %v1117_v51  ;;  %3961 = vmatprep.subr.mxu0 %v986_v52  ;;  %v1185_v47 = vld [vmem:[#allocation5 + $0x1f50] sm:$0xff]  ;;  %v1182_v49 = vld [vmem:[#allocation5 + $0x1f38] sm:$0xff] }
 0x355   :  { %4038 = vmatprep.subr.mxu1 %v1114_v53  ;;  %3962 = vmatpush1.msra.mxu0 %v985_v54  ;;  %v1053_v50 = vld [vmem:[#allocation5 + $0x1b30] sm:$0xff]  ;;  %v1050_v52 = vld [vmem:[#allocation5 + $0x1b18] sm:$0xff] }
 0x356   :  { %4039 = vmatpush1.msra.mxu1 %v1113_v55  ;;  %3963 = vmatprep.subr.mxu0 %v982_v56  ;;  %v1181_v51 = vld [vmem:[#allocation5 + $0x1f30] sm:$0xff]  ;;  %v1178_v53 = vld [vmem:[#allocation5 + $0x1f18] sm:$0xff] }
 0x357   :  { %4040 = vmatprep.subr.mxu1 %v1110_v57  ;;  %3964 = vmatpush1.msra.mxu0 %v981_v58  ;;  %v1049_v54 = vld [vmem:[#allocation5 + $0x1b10] sm:$0xff]  ;;  %v1046_v56 = vld [vmem:[#allocation5 + $0x1af8] sm:$0xff] }
 0x358   :  { %4041 = vmatpush1.msra.mxu1 %v1109_v59  ;;  %3965 = vmatprep.subr.mxu0 %v978_v60  ;;  %v1177_v55 = vld [vmem:[#allocation5 + $0x1f10] sm:$0xff]  ;;  %v1174_v57 = vld [vmem:[#allocation5 + $0x1ef8] sm:$0xff] }
 0x359   :  { %4042 = vmatprep.subr.mxu1 %v1106_v61  ;;  %3966 = vmatpush1.msra.mxu0 %v977_v62  ;;  %v1045_v58 = vld [vmem:[#allocation5 + $0x1af0] sm:$0xff]  ;;  %v1042_v60 = vld [vmem:[#allocation5 + $0x1ad8] sm:$0xff] }
 0x35a   :  { %4043 = vmatpush1.msra.mxu1 %v1105_v63  ;;  %3967 = vmatprep.subr.mxu0 %v974_v0  ;;  %v1173_v59 = vld [vmem:[#allocation5 + $0x1ef0] sm:$0xff]  ;;  %v1170_v61 = vld [vmem:[#allocation5 + $0x1ed8] sm:$0xff] }
 0x35b   :  { %4044 = vmatprep.subr.mxu1 %v1102_v1  ;;  %3968 = vmatpush1.msra.mxu0 %v973_v2  ;;  %v1041_v62 = vld [vmem:[#allocation5 + $0x1ad0] sm:$0xff]  ;;  %v1038_v0 = vld [vmem:[#allocation5 + $0x1ab8] sm:$0xff] }
 0x35c   :  { %4045 = vmatpush1.msra.mxu1 %v1101_v3  ;;  %3969 = vmatprep.subr.mxu0 %v970_v4  ;;  %v1169_v63 = vld [vmem:[#allocation5 + $0x1ed0] sm:$0xff]  ;;  %v1166_v1 = vld [vmem:[#allocation5 + $0x1eb8] sm:$0xff] }
 0x35d   :  { %4046 = vmatprep.subr.mxu1 %v1098_v5  ;;  %3970 = vmatpush1.msra.mxu0 %v969_v6  ;;  %v1037_v2 = vld [vmem:[#allocation5 + $0x1ab0] sm:$0xff]  ;;  %v1034_v4 = vld [vmem:[#allocation5 + $0x1a98] sm:$0xff] }
 0x35e   :  { %4047 = vmatpush1.msra.mxu1 %v1097_v7  ;;  %3971 = vmatprep.subr.mxu0 %v966_v8  ;;  %v1165_v3 = vld [vmem:[#allocation5 + $0x1eb0] sm:$0xff]  ;;  %v1162_v5 = vld [vmem:[#allocation5 + $0x1e98] sm:$0xff] }
 0x35f   :  { %4048 = vmatprep.subr.mxu1 %v1094_v9  ;;  %3972 = vmatpush1.msra.mxu0 %v965_v10  ;;  %v1033_v6 = vld [vmem:[#allocation5 + $0x1a90] sm:$0xff]  ;;  %v1030_v8 = vld [vmem:[#allocation5 + $0x1a78] sm:$0xff] }
 0x360   :  { %4049 = vmatpush1.msra.mxu1 %v1093_v11  ;;  %3973 = vmatprep.subr.mxu0 %v962_v12  ;;  %v1161_v7 = vld [vmem:[#allocation5 + $0x1e90] sm:$0xff]  ;;  %v1158_v9 = vld [vmem:[#allocation5 + $0x1e78] sm:$0xff] }
 0x361   :  { %4050 = vmatprep.subr.mxu1 %v1090_v13  ;;  %3974 = vmatpush1.msra.mxu0 %v961_v14  ;;  %v1029_v10 = vld [vmem:[#allocation5 + $0x1a70] sm:$0xff]  ;;  %v1026_v12 = vld [vmem:[#allocation5 + $0x1a58] sm:$0xff] }
 0x362   :  { %4051 = vmatpush1.msra.mxu1 %v1089_v15  ;;  %3975 = vmatprep.subr.mxu0 %v958_v16  ;;  %v1157_v11 = vld [vmem:[#allocation5 + $0x1e70] sm:$0xff]  ;;  %v1154_v13 = vld [vmem:[#allocation5 + $0x1e58] sm:$0xff] }
 0x363   :  { %4052 = vmatprep.subr.mxu1 %v1086_v17  ;;  %3976 = vmatpush1.msra.mxu0 %v957_v18  ;;  %v1025_v14 = vld [vmem:[#allocation5 + $0x1a50] sm:$0xff]  ;;  %v1022_v16 = vld [vmem:[#allocation5 + $0x1a38] sm:$0xff] }
 0x364   :  { %4053 = vmatpush1.msra.mxu1 %v1085_v19  ;;  %3977 = vmatprep.subr.mxu0 %v954_v20  ;;  %v1153_v15 = vld [vmem:[#allocation5 + $0x1e50] sm:$0xff]  ;;  %v1150_v17 = vld [vmem:[#allocation5 + $0x1e38] sm:$0xff] }
 0x365   :  { %4054 = vmatprep.subr.mxu1 %v1082_v21  ;;  %3978 = vmatpush1.msra.mxu0 %v953_v22  ;;  %v1021_v18 = vld [vmem:[#allocation5 + $0x1a30] sm:$0xff]  ;;  %v1018_v20 = vld [vmem:[#allocation5 + $0x1a18] sm:$0xff] }
 0x366   :  { %4055 = vmatpush1.msra.mxu1 %v1081_v23  ;;  %3979 = vmatprep.subr.mxu0 %v1078_v24  ;;  %v1149_v19 = vld [vmem:[#allocation5 + $0x1e30] sm:$0xff]  ;;  %v1146_v21 = vld [vmem:[#allocation5 + $0x1e18] sm:$0xff] }
 0x367   :  { %4056 = vmatprep.subr.mxu1 %v1206_v25  ;;  %3980 = vmatpush2.msra.mxu0 %v1077_v26  ;;  %v1017_v22 = vld [vmem:[#allocation5 + $0x1a10] sm:$0xff]  ;;  %v1270_v24 = vld [vmem:[#allocation5 + $0x21f8] sm:$0xff]  ;;  %v5253_v25 = vld [vmem:[#allocation2 + $0x68] sm:$0xff] }
 0x368   :  { %4057 = vmatpush2.msra.mxu1 %v1205_v27  ;;  %3981 = vmatprep.subr.mxu0 %v1074_v28  ;;  %v1145_v23 = vld [vmem:[#allocation5 + $0x1e10] sm:$0xff]  ;;  %v1398_v26 = vld [vmem:[#allocation5 + $0x25f8] sm:$0xff]  ;;  %v5254_v27 = vld [vmem:[#allocation2 + $0x60] sm:$0xff] }
 0x369   :  { %4058 = vmatprep.subr.mxu1 %v1202_v29  ;;  %3982 = vmatpush2.msra.mxu0 %v1073_v30  ;;  %v1269_v28 = vld [vmem:[#allocation5 + $0x21f0] sm:$0xff]  ;;  %v5255_v30 = vld [vmem:[#allocation2 + $0x78] sm:$0xff] }
 0x36a   :  { %4059 = vmatpush2.msra.mxu1 %v1201_v31  ;;  %3983 = vmatprep.subr.mxu0 %v1070_v32  ;;  %v1397_v29 = vld [vmem:[#allocation5 + $0x25f0] sm:$0xff]  ;;  %v1266_v31 = vld [vmem:[#allocation5 + $0x21d8] sm:$0xff] }
 0x36b   :  { %4060 = vmatprep.subr.mxu1 %v1198_v33  ;;  %3984 = vmatpush2.msra.mxu0 %v1069_v34  ;;  %v1394_v32 = vld [vmem:[#allocation5 + $0x25d8] sm:$0xff]  ;;  %v5256_v33 = vld [vmem:[#allocation2 + $0x70] sm:$0xff] }
 0x36c   :  { %4061 = vmatpush2.msra.mxu1 %v1197_v35  ;;  %3985 = vmatprep.subr.mxu0 %v1066_v36  ;;  %v1265_v34 = vld [vmem:[#allocation5 + $0x21d0] sm:$0xff]  ;;  %v1262_v36 = vld [vmem:[#allocation5 + $0x21b8] sm:$0xff] }
 0x36d   :  { %4062 = vmatprep.subr.mxu1 %v1194_v37  ;;  %3986 = vmatpush2.msra.mxu0 %v1065_v38  ;;  %v1393_v35 = vld [vmem:[#allocation5 + $0x25d0] sm:$0xff]  ;;  %v1390_v37 = vld [vmem:[#allocation5 + $0x25b8] sm:$0xff]  ;;  %v5257_v38 = vld [vmem:[#allocation2 + $0x168] sm:$0xff] }
 0x36e   :  { %4063 = vmatpush2.msra.mxu1 %v1193_v39  ;;  %3987 = vmatprep.subr.mxu0 %v1062_v40  ;;  %v1261_v39 = vld [vmem:[#allocation5 + $0x21b0] sm:$0xff]  ;;  %v5258_v40 = vld [vmem:[#allocation2 + $0x160] sm:$0xff] }
 0x36f   :  { %4064 = vmatprep.subr.mxu1 %v1190_v41  ;;  %3988 = vmatpush2.msra.mxu0 %v1061_v42  ;;  %v1389_v41 = vld [vmem:[#allocation5 + $0x25b0] sm:$0xff]  ;;  %v1258_v42 = vld [vmem:[#allocation5 + $0x2198] sm:$0xff] }
 0x370   :  { %4065 = vmatpush2.msra.mxu1 %v1189_v43  ;;  %3989 = vmatprep.subr.mxu0 %v1058_v44  ;;  %v1386_v43 = vld [vmem:[#allocation5 + $0x2598] sm:$0xff] }
 0x371   :  { %4066 = vmatprep.subr.mxu1 %v1186_v45  ;;  %3990 = vmatpush2.msra.mxu0 %v1057_v46  ;;  %v5259_v44 = vld [vmem:[#allocation2 + $0x178] sm:$0xff]  ;;  %v1257_v45 = vld [vmem:[#allocation5 + $0x2190] sm:$0xff] }
 0x372   :  { %4067 = vmatpush2.msra.mxu1 %v1185_v47  ;;  %3991 = vmatprep.subr.mxu0 %v1054_v48  ;;  %v1385_v46 = vld [vmem:[#allocation5 + $0x2590] sm:$0xff]  ;;  %v1254_v47 = vld [vmem:[#allocation5 + $0x2178] sm:$0xff] }
 0x373   :  { %4068 = vmatprep.subr.mxu1 %v1182_v49  ;;  %3992 = vmatpush2.msra.mxu0 %v1053_v50  ;;  %v1382_v48 = vld [vmem:[#allocation5 + $0x2578] sm:$0xff]  ;;  %v5260_v49 = vld [vmem:[#allocation2 + $0x170] sm:$0xff] }
 0x374   :  { %4069 = vmatpush2.msra.mxu1 %v1181_v51  ;;  %3993 = vmatprep.subr.mxu0 %v1050_v52  ;;  %v1253_v50 = vld [vmem:[#allocation5 + $0x2170] sm:$0xff]  ;;  %v1250_v52 = vld [vmem:[#allocation5 + $0x2158] sm:$0xff] }
 0x375   :  { %4070 = vmatprep.subr.mxu1 %v1178_v53  ;;  %3994 = vmatpush2.msra.mxu0 %v1049_v54  ;;  %v1381_v51 = vld [vmem:[#allocation5 + $0x2570] sm:$0xff]  ;;  %v1378_v53 = vld [vmem:[#allocation5 + $0x2558] sm:$0xff] }
 0x376   :  { %4071 = vmatpush2.msra.mxu1 %v1177_v55  ;;  %3995 = vmatprep.subr.mxu0 %v1046_v56  ;;  %v1249_v54 = vld [vmem:[#allocation5 + $0x2150] sm:$0xff]  ;;  %v1246_v56 = vld [vmem:[#allocation5 + $0x2138] sm:$0xff] }
 0x377   :  { %4072 = vmatprep.subr.mxu1 %v1174_v57  ;;  %3996 = vmatpush2.msra.mxu0 %v1045_v58  ;;  %v1377_v55 = vld [vmem:[#allocation5 + $0x2550] sm:$0xff]  ;;  %v1374_v57 = vld [vmem:[#allocation5 + $0x2538] sm:$0xff] }
 0x378   :  { %4073 = vmatpush2.msra.mxu1 %v1173_v59  ;;  %3997 = vmatprep.subr.mxu0 %v1042_v60  ;;  %v1245_v58 = vld [vmem:[#allocation5 + $0x2130] sm:$0xff]  ;;  %v1242_v60 = vld [vmem:[#allocation5 + $0x2118] sm:$0xff] }
 0x379   :  { %4074 = vmatprep.subr.mxu1 %v1170_v61  ;;  %3998 = vmatpush2.msra.mxu0 %v1041_v62  ;;  %v1373_v59 = vld [vmem:[#allocation5 + $0x2530] sm:$0xff]  ;;  %v1370_v61 = vld [vmem:[#allocation5 + $0x2518] sm:$0xff] }
 0x37a   :  { %4075 = vmatpush2.msra.mxu1 %v1169_v63  ;;  %3999 = vmatprep.subr.mxu0 %v1038_v0  ;;  %v1241_v62 = vld [vmem:[#allocation5 + $0x2110] sm:$0xff]  ;;  %v1238_v0 = vld [vmem:[#allocation5 + $0x20f8] sm:$0xff] }
 0x37b   :  { %4076 = vmatprep.subr.mxu1 %v1166_v1  ;;  %4000 = vmatpush2.msra.mxu0 %v1037_v2  ;;  %v1369_v63 = vld [vmem:[#allocation5 + $0x2510] sm:$0xff]  ;;  %v1366_v1 = vld [vmem:[#allocation5 + $0x24f8] sm:$0xff] }
 0x37c   :  { %4077 = vmatpush2.msra.mxu1 %v1165_v3  ;;  %4001 = vmatprep.subr.mxu0 %v1034_v4  ;;  %v1237_v2 = vld [vmem:[#allocation5 + $0x20f0] sm:$0xff]  ;;  %v1234_v4 = vld [vmem:[#allocation5 + $0x20d8] sm:$0xff] }
 0x37d   :  { %4078 = vmatprep.subr.mxu1 %v1162_v5  ;;  %4002 = vmatpush2.msra.mxu0 %v1033_v6  ;;  %v1365_v3 = vld [vmem:[#allocation5 + $0x24f0] sm:$0xff]  ;;  %v1362_v5 = vld [vmem:[#allocation5 + $0x24d8] sm:$0xff] }
 0x37e   :  { %4079 = vmatpush2.msra.mxu1 %v1161_v7  ;;  %4003 = vmatprep.subr.mxu0 %v1030_v8  ;;  %v1233_v6 = vld [vmem:[#allocation5 + $0x20d0] sm:$0xff]  ;;  %v1230_v8 = vld [vmem:[#allocation5 + $0x20b8] sm:$0xff] }
 0x37f   :  { %4080 = vmatprep.subr.mxu1 %v1158_v9  ;;  %4004 = vmatpush2.msra.mxu0 %v1029_v10  ;;  %v1361_v7 = vld [vmem:[#allocation5 + $0x24d0] sm:$0xff]  ;;  %v1358_v9 = vld [vmem:[#allocation5 + $0x24b8] sm:$0xff] }
 0x380   :  { %4081 = vmatpush2.msra.mxu1 %v1157_v11  ;;  %4005 = vmatprep.subr.mxu0 %v1026_v12  ;;  %v1229_v10 = vld [vmem:[#allocation5 + $0x20b0] sm:$0xff]  ;;  %v1226_v12 = vld [vmem:[#allocation5 + $0x2098] sm:$0xff] }
 0x381   :  { %4082 = vmatprep.subr.mxu1 %v1154_v13  ;;  %4006 = vmatpush2.msra.mxu0 %v1025_v14  ;;  %v1357_v11 = vld [vmem:[#allocation5 + $0x24b0] sm:$0xff]  ;;  %v1354_v13 = vld [vmem:[#allocation5 + $0x2498] sm:$0xff] }
 0x382   :  { %4083 = vmatpush2.msra.mxu1 %v1153_v15  ;;  %4007 = vmatprep.subr.mxu0 %v1022_v16  ;;  %v1225_v14 = vld [vmem:[#allocation5 + $0x2090] sm:$0xff]  ;;  %v1222_v16 = vld [vmem:[#allocation5 + $0x2078] sm:$0xff] }
 0x383   :  { %4084 = vmatprep.subr.mxu1 %v1150_v17  ;;  %4008 = vmatpush2.msra.mxu0 %v1021_v18  ;;  %v1353_v15 = vld [vmem:[#allocation5 + $0x2490] sm:$0xff]  ;;  %v1350_v17 = vld [vmem:[#allocation5 + $0x2478] sm:$0xff] }
 0x384   :  { %4085 = vmatpush2.msra.mxu1 %v1149_v19  ;;  %4009 = vmatprep.subr.mxu0 %v1018_v20  ;;  %v1221_v18 = vld [vmem:[#allocation5 + $0x2070] sm:$0xff]  ;;  %v1218_v20 = vld [vmem:[#allocation5 + $0x2058] sm:$0xff] }
 0x385   :  { %4086 = vmatprep.subr.mxu1 %v1146_v21  ;;  %4010 = vmatpush2.msra.mxu0 %v1017_v22  ;;  %v1349_v19 = vld [vmem:[#allocation5 + $0x2470] sm:$0xff]  ;;  %v1346_v21 = vld [vmem:[#allocation5 + $0x2458] sm:$0xff] }
 0x386   :  { %4011 = vmatprep.mubr.f32.mxu0 %v5253_v25  ;;  %4087 = vmatpush2.msra.mxu1 %v1145_v23  ;;  %v1217_v22 = vld [vmem:[#allocation5 + $0x2050] sm:$0xff]  ;;  %v1342_v25 = vld [vmem:[#allocation5 + $0x2438] sm:$0xff] }
 0x387   :  { %4012 = vmatmul.mubr.f32.vlgmr.msra.gmra.mxu0 %v5254_v27  ;;  %4088 = vmatprep.mubr.f32.mxu1 %v5255_v30  ;;  %v1345_v23 = vld [vmem:[#allocation5 + $0x2450] sm:$0xff] }
 0x388   :  { %4101 = vmatprep.subr.mxu0 %v1270_v24  ;;  %4178 = vmatprep.subr.mxu1 %v1398_v26  ;;  %v1214_v24 = vld [vmem:[#allocation5 + $0x2038] sm:$0xff]  ;;  %v1213_v26 = vld [vmem:[#allocation5 + $0x2030] sm:$0xff] }
 0x389   :  { %4089 = vmatmul.mubr.f32.vlgmr.msra.gmra.mxu1 %v5256_v33  ;;  %4102 = vmatpush1.msra.mxu0 %v1269_v28  ;;  %v1341_v27 = vld [vmem:[#allocation5 + $0x2430] sm:$0xff]  ;;  %v1210_v28 = vld [vmem:[#allocation5 + $0x2018] sm:$0xff] }
 0x38a   :  { %4179 = vmatpush1.msra.mxu1 %v1397_v29  ;;  %4103 = vmatprep.subr.mxu0 %v1266_v31  ;;  %v1338_v29 = vld [vmem:[#allocation5 + $0x2418] sm:$0xff]  ;;  %v1209_v30 = vld [vmem:[#allocation5 + $0x2010] sm:$0xff] }
 0x38b   :  { %4180 = vmatprep.subr.mxu1 %v1394_v32  ;;  %4017 = vmatprep.mubr.f32.mxu0 %v5257_v38  ;;  %v1337_v31 = vld [vmem:[#allocation5 + $0x2410] sm:$0xff]  ;;  %v1334_v32 = vld [vmem:[#allocation5 + $0x23f8] sm:$0xff] }
 0x38c   :  { %4104 = vmatpush1.msra.mxu0 %v1265_v34  ;;  %4181 = vmatpush1.msra.mxu1 %v1393_v35  ;;  %v1462_v33 = vld [vmem:[#allocation5 + $0x27f8] sm:$0xff]  ;;  %v1333_v34 = vld [vmem:[#allocation5 + $0x23f0] sm:$0xff] }
 0x38d   :  { %4018 = vmatmul.mubr.f32.gmra.mxu0 %v5258_v40  ;;  %4105 = vmatprep.subr.mxu0 %v1262_v36  ;;  %v1461_v35 = vld [vmem:[#allocation5 + $0x27f0] sm:$0xff]  ;;  %v1330_v36 = vld [vmem:[#allocation5 + $0x23d8] sm:$0xff] }
 0x38e   :  { %4182 = vmatprep.subr.mxu1 %v1390_v37  ;;  %4094 = vmatprep.mubr.f32.mxu1 %v5259_v44  ;;  %v1458_v37 = vld [vmem:[#allocation5 + $0x27d8] sm:$0xff]  ;;  %v1329_v38 = vld [vmem:[#allocation5 + $0x23d0] sm:$0xff] }
 0x38f   :  { %4106 = vmatpush1.msra.mxu0 %v1261_v39  ;;  %4183 = vmatpush1.msra.mxu1 %v1389_v41  ;;  %v1457_v39 = vld [vmem:[#allocation5 + $0x27d0] sm:$0xff]  ;;  %v1326_v40 = vld [vmem:[#allocation5 + $0x23b8] sm:$0xff] }
 0x390   :  { %4107 = vmatprep.subr.mxu0 %v1258_v42  ;;  %4095 = vmatmul.mubr.f32.gmra.mxu1 %v5260_v49  ;;  %v1454_v41 = vld [vmem:[#allocation5 + $0x27b8] sm:$0xff]  ;;  %v1325_v42 = vld [vmem:[#allocation5 + $0x23b0] sm:$0xff] }
 0x391   :  { %4184 = vmatprep.subr.mxu1 %v1386_v43  ;;  %4108 = vmatpush1.msra.mxu0 %v1257_v45  ;;  %v1453_v43 = vld [vmem:[#allocation5 + $0x27b0] sm:$0xff]  ;;  %v1322_v44 = vld [vmem:[#allocation5 + $0x2398] sm:$0xff] }
 0x392   :  { %4185 = vmatpush1.msra.mxu1 %v1385_v46  ;;  %4109 = vmatprep.subr.mxu0 %v1254_v47  ;;  %v1450_v45 = vld [vmem:[#allocation5 + $0x2798] sm:$0xff]  ;;  %v1321_v46 = vld [vmem:[#allocation5 + $0x2390] sm:$0xff] }
 0x393   :  { %4186 = vmatprep.subr.mxu1 %v1382_v48  ;;  %4110 = vmatpush1.msra.mxu0 %v1253_v50  ;;  %v1449_v47 = vld [vmem:[#allocation5 + $0x2790] sm:$0xff]  ;;  %v1318_v48 = vld [vmem:[#allocation5 + $0x2378] sm:$0xff] }
 0x394   :  { %4187 = vmatpush1.msra.mxu1 %v1381_v51  ;;  %4111 = vmatprep.subr.mxu0 %v1250_v52  ;;  %v1446_v49 = vld [vmem:[#allocation5 + $0x2778] sm:$0xff]  ;;  %v1317_v50 = vld [vmem:[#allocation5 + $0x2370] sm:$0xff] }
 0x395   :  { %4188 = vmatprep.subr.mxu1 %v1378_v53  ;;  %4112 = vmatpush1.msra.mxu0 %v1249_v54  ;;  %v1445_v51 = vld [vmem:[#allocation5 + $0x2770] sm:$0xff]  ;;  %v1314_v52 = vld [vmem:[#allocation5 + $0x2358] sm:$0xff] }
 0x396   :  { %4189 = vmatpush1.msra.mxu1 %v1377_v55  ;;  %4113 = vmatprep.subr.mxu0 %v1246_v56  ;;  %v1442_v53 = vld [vmem:[#allocation5 + $0x2758] sm:$0xff]  ;;  %v1313_v54 = vld [vmem:[#allocation5 + $0x2350] sm:$0xff] }
 0x397   :  { %4190 = vmatprep.subr.mxu1 %v1374_v57  ;;  %4114 = vmatpush1.msra.mxu0 %v1245_v58  ;;  %v1441_v55 = vld [vmem:[#allocation5 + $0x2750] sm:$0xff]  ;;  %v1310_v56 = vld [vmem:[#allocation5 + $0x2338] sm:$0xff] }
 0x398   :  { %4191 = vmatpush1.msra.mxu1 %v1373_v59  ;;  %4115 = vmatprep.subr.mxu0 %v1242_v60  ;;  %v1438_v57 = vld [vmem:[#allocation5 + $0x2738] sm:$0xff]  ;;  %v1309_v58 = vld [vmem:[#allocation5 + $0x2330] sm:$0xff] }
 0x399   :  { %4192 = vmatprep.subr.mxu1 %v1370_v61  ;;  %4116 = vmatpush1.msra.mxu0 %v1241_v62  ;;  %v1437_v59 = vld [vmem:[#allocation5 + $0x2730] sm:$0xff]  ;;  %v1306_v60 = vld [vmem:[#allocation5 + $0x2318] sm:$0xff] }
 0x39a   :  { %4193 = vmatpush1.msra.mxu1 %v1369_v63  ;;  %4117 = vmatprep.subr.mxu0 %v1238_v0  ;;  %v1434_v61 = vld [vmem:[#allocation5 + $0x2718] sm:$0xff]  ;;  %v1305_v62 = vld [vmem:[#allocation5 + $0x2310] sm:$0xff] }
 0x39b   :  { %4194 = vmatprep.subr.mxu1 %v1366_v1  ;;  %4118 = vmatpush1.msra.mxu0 %v1237_v2  ;;  %v1433_v63 = vld [vmem:[#allocation5 + $0x2710] sm:$0xff]  ;;  %v1302_v0 = vld [vmem:[#allocation5 + $0x22f8] sm:$0xff] }
 0x39c   :  { %4195 = vmatpush1.msra.mxu1 %v1365_v3  ;;  %4119 = vmatprep.subr.mxu0 %v1234_v4  ;;  %v1430_v1 = vld [vmem:[#allocation5 + $0x26f8] sm:$0xff]  ;;  %v1301_v2 = vld [vmem:[#allocation5 + $0x22f0] sm:$0xff] }
 0x39d   :  { %4196 = vmatprep.subr.mxu1 %v1362_v5  ;;  %4120 = vmatpush1.msra.mxu0 %v1233_v6  ;;  %v1429_v3 = vld [vmem:[#allocation5 + $0x26f0] sm:$0xff]  ;;  %v1298_v4 = vld [vmem:[#allocation5 + $0x22d8] sm:$0xff] }
 0x39e   :  { %4197 = vmatpush1.msra.mxu1 %v1361_v7  ;;  %4121 = vmatprep.subr.mxu0 %v1230_v8  ;;  %v1426_v5 = vld [vmem:[#allocation5 + $0x26d8] sm:$0xff]  ;;  %v1297_v6 = vld [vmem:[#allocation5 + $0x22d0] sm:$0xff] }
 0x39f   :  { %4198 = vmatprep.subr.mxu1 %v1358_v9  ;;  %4122 = vmatpush1.msra.mxu0 %v1229_v10  ;;  %v1425_v7 = vld [vmem:[#allocation5 + $0x26d0] sm:$0xff]  ;;  %v1294_v8 = vld [vmem:[#allocation5 + $0x22b8] sm:$0xff] }
 0x3a0   :  { %4199 = vmatpush1.msra.mxu1 %v1357_v11  ;;  %4123 = vmatprep.subr.mxu0 %v1226_v12  ;;  %v1422_v9 = vld [vmem:[#allocation5 + $0x26b8] sm:$0xff]  ;;  %v1293_v10 = vld [vmem:[#allocation5 + $0x22b0] sm:$0xff] }
 0x3a1   :  { %4200 = vmatprep.subr.mxu1 %v1354_v13  ;;  %4124 = vmatpush1.msra.mxu0 %v1225_v14  ;;  %v1421_v11 = vld [vmem:[#allocation5 + $0x26b0] sm:$0xff]  ;;  %v1290_v12 = vld [vmem:[#allocation5 + $0x2298] sm:$0xff] }
 0x3a2   :  { %4201 = vmatpush1.msra.mxu1 %v1353_v15  ;;  %4125 = vmatprep.subr.mxu0 %v1222_v16  ;;  %v1418_v13 = vld [vmem:[#allocation5 + $0x2698] sm:$0xff]  ;;  %v1289_v14 = vld [vmem:[#allocation5 + $0x2290] sm:$0xff] }
 0x3a3   :  { %4202 = vmatprep.subr.mxu1 %v1350_v17  ;;  %4126 = vmatpush1.msra.mxu0 %v1221_v18  ;;  %v1417_v15 = vld [vmem:[#allocation5 + $0x2690] sm:$0xff]  ;;  %v1286_v16 = vld [vmem:[#allocation5 + $0x2278] sm:$0xff] }
 0x3a4   :  { %4203 = vmatpush1.msra.mxu1 %v1349_v19  ;;  %4127 = vmatprep.subr.mxu0 %v1218_v20  ;;  %v1414_v17 = vld [vmem:[#allocation5 + $0x2678] sm:$0xff]  ;;  %v1285_v18 = vld [vmem:[#allocation5 + $0x2270] sm:$0xff] }
 0x3a5   :  { %4204 = vmatprep.subr.mxu1 %v1346_v21  ;;  %4128 = vmatpush1.msra.mxu0 %v1217_v22  ;;  %v1413_v19 = vld [vmem:[#allocation5 + $0x2670] sm:$0xff]  ;;  %v1282_v20 = vld [vmem:[#allocation5 + $0x2258] sm:$0xff] }
 0x3a6   :  { %4205 = vmatpush1.msra.mxu1 %v1345_v23  ;;  %4129 = vmatprep.subr.mxu0 %v1214_v24  ;;  %v1410_v21 = vld [vmem:[#allocation5 + $0x2658] sm:$0xff]  ;;  %v1281_v22 = vld [vmem:[#allocation5 + $0x2250] sm:$0xff] }
 0x3a7   :  { %4206 = vmatprep.subr.mxu1 %v1342_v25  ;;  %4130 = vmatpush1.msra.mxu0 %v1213_v26  ;;  %v1409_v23 = vld [vmem:[#allocation5 + $0x2650] sm:$0xff]  ;;  %v1278_v24 = vld [vmem:[#allocation5 + $0x2238] sm:$0xff] }
 0x3a8   :  { %4207 = vmatpush1.msra.mxu1 %v1341_v27  ;;  %4131 = vmatprep.subr.mxu0 %v1210_v28  ;;  %v1406_v25 = vld [vmem:[#allocation5 + $0x2638] sm:$0xff]  ;;  %v1277_v26 = vld [vmem:[#allocation5 + $0x2230] sm:$0xff] }
 0x3a9   :  { %4208 = vmatprep.subr.mxu1 %v1338_v29  ;;  %4132 = vmatpush1.msra.mxu0 %v1209_v30  ;;  %v1405_v27 = vld [vmem:[#allocation5 + $0x2630] sm:$0xff]  ;;  %v1274_v28 = vld [vmem:[#allocation5 + $0x2218] sm:$0xff] }
 0x3aa   :  { %4209 = vmatpush1.msra.mxu1 %v1337_v31  ;;  %4133 = vmatprep.subr.mxu0 %v1334_v32  ;;  %v1402_v29 = vld [vmem:[#allocation5 + $0x2618] sm:$0xff]  ;;  %v1273_v30 = vld [vmem:[#allocation5 + $0x2210] sm:$0xff] }
 0x3ab   :  { %4210 = vmatprep.subr.mxu1 %v1462_v33  ;;  %4134 = vmatpush2.msra.mxu0 %v1333_v34  ;;  %v1401_v31 = vld [vmem:[#allocation5 + $0x2610] sm:$0xff]  ;;  %v1526_v32 = vld [vmem:[#allocation5 + $0x29f8] sm:$0xff]  ;;  %v5261_v33 = vld [vmem:[#allocation2 + $0x88] sm:$0xff] }
 0x3ac   :  { %4211 = vmatpush2.msra.mxu1 %v1461_v35  ;;  %4135 = vmatprep.subr.mxu0 %v1330_v36  ;;  %v1654_v34 = vld [vmem:[#allocation5 + $0x2df8] sm:$0xff]  ;;  %v5262_v35 = vld [vmem:[#allocation2 + $0x80] sm:$0xff]  ;;  %v1525_v36 = vld [vmem:[#allocation5 + $0x29f0] sm:$0xff] }
 0x3ad   :  { %4212 = vmatprep.subr.mxu1 %v1458_v37  ;;  %4136 = vmatpush2.msra.mxu0 %v1329_v38  ;;  %v1653_v37 = vld [vmem:[#allocation5 + $0x2df0] sm:$0xff]  ;;  %v5263_v38 = vld [vmem:[#allocation2 + $0x98] sm:$0xff] }
 0x3ae   :  { %4213 = vmatpush2.msra.mxu1 %v1457_v39  ;;  %4137 = vmatprep.subr.mxu0 %v1326_v40  ;;  %v1522_v39 = vld [vmem:[#allocation5 + $0x29d8] sm:$0xff] }
 0x3af   :  { %4214 = vmatprep.subr.mxu1 %v1454_v41  ;;  %4138 = vmatpush2.msra.mxu0 %v1325_v42  ;;  %v1650_v40 = vld [vmem:[#allocation5 + $0x2dd8] sm:$0xff]  ;;  %v5264_v41 = vld [vmem:[#allocation2 + $0x90] sm:$0xff] }
 0x3b0   :  { %4215 = vmatpush2.msra.mxu1 %v1453_v43  ;;  %4139 = vmatprep.subr.mxu0 %v1322_v44  ;;  %v1521_v42 = vld [vmem:[#allocation5 + $0x29d0] sm:$0xff]  ;;  %v1518_v44 = vld [vmem:[#allocation5 + $0x29b8] sm:$0xff] }
 0x3b1   :  { %4216 = vmatprep.subr.mxu1 %v1450_v45  ;;  %4140 = vmatpush2.msra.mxu0 %v1321_v46  ;;  %v1649_v43 = vld [vmem:[#allocation5 + $0x2dd0] sm:$0xff]  ;;  %v1646_v45 = vld [vmem:[#allocation5 + $0x2db8] sm:$0xff]  ;;  %v5265_v46 = vld [vmem:[#allocation2 + $0x188] sm:$0xff] }
 0x3b2   :  { %4217 = vmatpush2.msra.mxu1 %v1449_v47  ;;  %4141 = vmatprep.subr.mxu0 %v1318_v48  ;;  %v1517_v47 = vld [vmem:[#allocation5 + $0x29b0] sm:$0xff]  ;;  %v5266_v48 = vld [vmem:[#allocation2 + $0x180] sm:$0xff] }
 0x3b3   :  { %4218 = vmatprep.subr.mxu1 %v1446_v49  ;;  %4142 = vmatpush2.msra.mxu0 %v1317_v50  ;;  %v1645_v49 = vld [vmem:[#allocation5 + $0x2db0] sm:$0xff]  ;;  %v1514_v50 = vld [vmem:[#allocation5 + $0x2998] sm:$0xff] }
 0x3b4   :  { %4219 = vmatpush2.msra.mxu1 %v1445_v51  ;;  %4143 = vmatprep.subr.mxu0 %v1314_v52  ;;  %v1642_v51 = vld [vmem:[#allocation5 + $0x2d98] sm:$0xff] }
 0x3b5   :  { %4220 = vmatprep.subr.mxu1 %v1442_v53  ;;  %4144 = vmatpush2.msra.mxu0 %v1313_v54  ;;  %v5267_v52 = vld [vmem:[#allocation2 + $0x198] sm:$0xff]  ;;  %v1513_v53 = vld [vmem:[#allocation5 + $0x2990] sm:$0xff] }
 0x3b6   :  { %4221 = vmatpush2.msra.mxu1 %v1441_v55  ;;  %4145 = vmatprep.subr.mxu0 %v1310_v56  ;;  %v1641_v54 = vld [vmem:[#allocation5 + $0x2d90] sm:$0xff]  ;;  %v1510_v55 = vld [vmem:[#allocation5 + $0x2978] sm:$0xff] }
 0x3b7   :  { %4222 = vmatprep.subr.mxu1 %v1438_v57  ;;  %4146 = vmatpush2.msra.mxu0 %v1309_v58  ;;  %v1638_v56 = vld [vmem:[#allocation5 + $0x2d78] sm:$0xff]  ;;  %v5268_v57 = vld [vmem:[#allocation2 + $0x190] sm:$0xff] }
 0x3b8   :  { %4223 = vmatpush2.msra.mxu1 %v1437_v59  ;;  %4147 = vmatprep.subr.mxu0 %v1306_v60  ;;  %v1509_v58 = vld [vmem:[#allocation5 + $0x2970] sm:$0xff]  ;;  %v1506_v60 = vld [vmem:[#allocation5 + $0x2958] sm:$0xff] }
 0x3b9   :  { %4224 = vmatprep.subr.mxu1 %v1434_v61  ;;  %4148 = vmatpush2.msra.mxu0 %v1305_v62  ;;  %v1637_v59 = vld [vmem:[#allocation5 + $0x2d70] sm:$0xff]  ;;  %v1634_v61 = vld [vmem:[#allocation5 + $0x2d58] sm:$0xff] }
 0x3ba   :  { %4225 = vmatpush2.msra.mxu1 %v1433_v63  ;;  %4149 = vmatprep.subr.mxu0 %v1302_v0  ;;  %v1505_v62 = vld [vmem:[#allocation5 + $0x2950] sm:$0xff]  ;;  %v1502_v0 = vld [vmem:[#allocation5 + $0x2938] sm:$0xff] }
 0x3bb   :  { %4226 = vmatprep.subr.mxu1 %v1430_v1  ;;  %4150 = vmatpush2.msra.mxu0 %v1301_v2  ;;  %v1633_v63 = vld [vmem:[#allocation5 + $0x2d50] sm:$0xff]  ;;  %v1630_v1 = vld [vmem:[#allocation5 + $0x2d38] sm:$0xff] }
 0x3bc   :  { %4227 = vmatpush2.msra.mxu1 %v1429_v3  ;;  %4151 = vmatprep.subr.mxu0 %v1298_v4  ;;  %v1501_v2 = vld [vmem:[#allocation5 + $0x2930] sm:$0xff]  ;;  %v1498_v4 = vld [vmem:[#allocation5 + $0x2918] sm:$0xff] }
 0x3bd   :  { %4228 = vmatprep.subr.mxu1 %v1426_v5  ;;  %4152 = vmatpush2.msra.mxu0 %v1297_v6  ;;  %v1629_v3 = vld [vmem:[#allocation5 + $0x2d30] sm:$0xff]  ;;  %v1626_v5 = vld [vmem:[#allocation5 + $0x2d18] sm:$0xff] }
 0x3be   :  { %4229 = vmatpush2.msra.mxu1 %v1425_v7  ;;  %4153 = vmatprep.subr.mxu0 %v1294_v8  ;;  %v1497_v6 = vld [vmem:[#allocation5 + $0x2910] sm:$0xff]  ;;  %v1494_v8 = vld [vmem:[#allocation5 + $0x28f8] sm:$0xff] }
 0x3bf   :  { %4230 = vmatprep.subr.mxu1 %v1422_v9  ;;  %4154 = vmatpush2.msra.mxu0 %v1293_v10  ;;  %v1625_v7 = vld [vmem:[#allocation5 + $0x2d10] sm:$0xff]  ;;  %v1622_v9 = vld [vmem:[#allocation5 + $0x2cf8] sm:$0xff] }
 0x3c0   :  { %4231 = vmatpush2.msra.mxu1 %v1421_v11  ;;  %4155 = vmatprep.subr.mxu0 %v1290_v12  ;;  %v1493_v10 = vld [vmem:[#allocation5 + $0x28f0] sm:$0xff]  ;;  %v1490_v12 = vld [vmem:[#allocation5 + $0x28d8] sm:$0xff] }
 0x3c1   :  { %4232 = vmatprep.subr.mxu1 %v1418_v13  ;;  %4156 = vmatpush2.msra.mxu0 %v1289_v14  ;;  %v1621_v11 = vld [vmem:[#allocation5 + $0x2cf0] sm:$0xff]  ;;  %v1618_v13 = vld [vmem:[#allocation5 + $0x2cd8] sm:$0xff] }
 0x3c2   :  { %4233 = vmatpush2.msra.mxu1 %v1417_v15  ;;  %4157 = vmatprep.subr.mxu0 %v1286_v16  ;;  %v1489_v14 = vld [vmem:[#allocation5 + $0x28d0] sm:$0xff]  ;;  %v1486_v16 = vld [vmem:[#allocation5 + $0x28b8] sm:$0xff] }
 0x3c3   :  { %4234 = vmatprep.subr.mxu1 %v1414_v17  ;;  %4158 = vmatpush2.msra.mxu0 %v1285_v18  ;;  %v1617_v15 = vld [vmem:[#allocation5 + $0x2cd0] sm:$0xff]  ;;  %v1614_v17 = vld [vmem:[#allocation5 + $0x2cb8] sm:$0xff] }
 0x3c4   :  { %4235 = vmatpush2.msra.mxu1 %v1413_v19  ;;  %4159 = vmatprep.subr.mxu0 %v1282_v20  ;;  %v1485_v18 = vld [vmem:[#allocation5 + $0x28b0] sm:$0xff]  ;;  %v1482_v20 = vld [vmem:[#allocation5 + $0x2898] sm:$0xff] }
 0x3c5   :  { %4236 = vmatprep.subr.mxu1 %v1410_v21  ;;  %4160 = vmatpush2.msra.mxu0 %v1281_v22  ;;  %v1613_v19 = vld [vmem:[#allocation5 + $0x2cb0] sm:$0xff]  ;;  %v1610_v21 = vld [vmem:[#allocation5 + $0x2c98] sm:$0xff] }
 0x3c6   :  { %4237 = vmatpush2.msra.mxu1 %v1409_v23  ;;  %4161 = vmatprep.subr.mxu0 %v1278_v24  ;;  %v1481_v22 = vld [vmem:[#allocation5 + $0x2890] sm:$0xff]  ;;  %v1478_v24 = vld [vmem:[#allocation5 + $0x2878] sm:$0xff] }
 0x3c7   :  { %4238 = vmatprep.subr.mxu1 %v1406_v25  ;;  %4162 = vmatpush2.msra.mxu0 %v1277_v26  ;;  %v1609_v23 = vld [vmem:[#allocation5 + $0x2c90] sm:$0xff]  ;;  %v1606_v25 = vld [vmem:[#allocation5 + $0x2c78] sm:$0xff] }
 0x3c8   :  { %4239 = vmatpush2.msra.mxu1 %v1405_v27  ;;  %4163 = vmatprep.subr.mxu0 %v1274_v28  ;;  %v1477_v26 = vld [vmem:[#allocation5 + $0x2870] sm:$0xff]  ;;  %v1474_v28 = vld [vmem:[#allocation5 + $0x2858] sm:$0xff] }
 0x3c9   :  { %4240 = vmatprep.subr.mxu1 %v1402_v29  ;;  %4164 = vmatpush2.msra.mxu0 %v1273_v30  ;;  %v1605_v27 = vld [vmem:[#allocation5 + $0x2c70] sm:$0xff]  ;;  %v1602_v29 = vld [vmem:[#allocation5 + $0x2c58] sm:$0xff] }
 0x3ca   :  { %4165 = vmatprep.mubr.f32.mxu0 %v5261_v33  ;;  %4241 = vmatpush2.msra.mxu1 %v1401_v31  ;;  %v1473_v30 = vld [vmem:[#allocation5 + $0x2850] sm:$0xff]  ;;  %v1598_v33 = vld [vmem:[#allocation5 + $0x2c38] sm:$0xff] }
 0x3cb   :  { %4166 = vmatmul.mubr.f32.vlgmr.msra.gmra.mxu0 %v5262_v35  ;;  %4242 = vmatprep.mubr.f32.mxu1 %v5263_v38  ;;  %v1601_v31 = vld [vmem:[#allocation5 + $0x2c50] sm:$0xff] }
 0x3cc   :  { %4255 = vmatprep.subr.mxu0 %v1526_v32  ;;  %4332 = vmatprep.subr.mxu1 %v1654_v34  ;;  %v1470_v32 = vld [vmem:[#allocation5 + $0x2838] sm:$0xff]  ;;  %v1469_v34 = vld [vmem:[#allocation5 + $0x2830] sm:$0xff] }
 0x3cd   :  { %4243 = vmatmul.mubr.f32.vlgmr.msra.gmra.mxu1 %v5264_v41  ;;  %4256 = vmatpush1.msra.mxu0 %v1525_v36  ;;  %v1597_v35 = vld [vmem:[#allocation5 + $0x2c30] sm:$0xff]  ;;  %v1466_v36 = vld [vmem:[#allocation5 + $0x2818] sm:$0xff] }
 0x3ce   :  { %4333 = vmatpush1.msra.mxu1 %v1653_v37  ;;  %4257 = vmatprep.subr.mxu0 %v1522_v39  ;;  %v1594_v37 = vld [vmem:[#allocation5 + $0x2c18] sm:$0xff]  ;;  %v1465_v38 = vld [vmem:[#allocation5 + $0x2810] sm:$0xff] }
 0x3cf   :  { %4334 = vmatprep.subr.mxu1 %v1650_v40  ;;  %4171 = vmatprep.mubr.f32.mxu0 %v5265_v46  ;;  %v1593_v39 = vld [vmem:[#allocation5 + $0x2c10] sm:$0xff]  ;;  %v1590_v40 = vld [vmem:[#allocation5 + $0x2bf8] sm:$0xff] }
 0x3d0   :  { %4258 = vmatpush1.msra.mxu0 %v1521_v42  ;;  %4335 = vmatpush1.msra.mxu1 %v1649_v43  ;;  %v1718_v41 = vld [vmem:[#allocation5 + $0x2ff8] sm:$0xff]  ;;  %v1589_v42 = vld [vmem:[#allocation5 + $0x2bf0] sm:$0xff] }
 0x3d1   :  { %4172 = vmatmul.mubr.f32.gmra.mxu0 %v5266_v48  ;;  %4259 = vmatprep.subr.mxu0 %v1518_v44  ;;  %v1717_v43 = vld [vmem:[#allocation5 + $0x2ff0] sm:$0xff]  ;;  %v1586_v44 = vld [vmem:[#allocation5 + $0x2bd8] sm:$0xff] }
 0x3d2   :  { %4336 = vmatprep.subr.mxu1 %v1646_v45  ;;  %4248 = vmatprep.mubr.f32.mxu1 %v5267_v52  ;;  %v1714_v45 = vld [vmem:[#allocation5 + $0x2fd8] sm:$0xff]  ;;  %v1585_v46 = vld [vmem:[#allocation5 + $0x2bd0] sm:$0xff] }
 0x3d3   :  { %4260 = vmatpush1.msra.mxu0 %v1517_v47  ;;  %4337 = vmatpush1.msra.mxu1 %v1645_v49  ;;  %v1713_v47 = vld [vmem:[#allocation5 + $0x2fd0] sm:$0xff]  ;;  %v1582_v48 = vld [vmem:[#allocation5 + $0x2bb8] sm:$0xff] }
 0x3d4   :  { %4261 = vmatprep.subr.mxu0 %v1514_v50  ;;  %4249 = vmatmul.mubr.f32.gmra.mxu1 %v5268_v57  ;;  %v1710_v49 = vld [vmem:[#allocation5 + $0x2fb8] sm:$0xff]  ;;  %v1581_v50 = vld [vmem:[#allocation5 + $0x2bb0] sm:$0xff] }
 0x3d5   :  { %4338 = vmatprep.subr.mxu1 %v1642_v51  ;;  %4262 = vmatpush1.msra.mxu0 %v1513_v53  ;;  %v1709_v51 = vld [vmem:[#allocation5 + $0x2fb0] sm:$0xff]  ;;  %v1578_v52 = vld [vmem:[#allocation5 + $0x2b98] sm:$0xff] }
 0x3d6   :  { %4339 = vmatpush1.msra.mxu1 %v1641_v54  ;;  %4263 = vmatprep.subr.mxu0 %v1510_v55  ;;  %v1706_v53 = vld [vmem:[#allocation5 + $0x2f98] sm:$0xff]  ;;  %v1577_v54 = vld [vmem:[#allocation5 + $0x2b90] sm:$0xff] }
 0x3d7   :  { %4340 = vmatprep.subr.mxu1 %v1638_v56  ;;  %4264 = vmatpush1.msra.mxu0 %v1509_v58  ;;  %v1705_v55 = vld [vmem:[#allocation5 + $0x2f90] sm:$0xff]  ;;  %v1574_v56 = vld [vmem:[#allocation5 + $0x2b78] sm:$0xff] }
 0x3d8   :  { %4341 = vmatpush1.msra.mxu1 %v1637_v59  ;;  %4265 = vmatprep.subr.mxu0 %v1506_v60  ;;  %v1702_v57 = vld [vmem:[#allocation5 + $0x2f78] sm:$0xff]  ;;  %v1573_v58 = vld [vmem:[#allocation5 + $0x2b70] sm:$0xff] }
 0x3d9   :  { %4342 = vmatprep.subr.mxu1 %v1634_v61  ;;  %4266 = vmatpush1.msra.mxu0 %v1505_v62  ;;  %v1701_v59 = vld [vmem:[#allocation5 + $0x2f70] sm:$0xff]  ;;  %v1570_v60 = vld [vmem:[#allocation5 + $0x2b58] sm:$0xff] }
 0x3da   :  { %4343 = vmatpush1.msra.mxu1 %v1633_v63  ;;  %4267 = vmatprep.subr.mxu0 %v1502_v0  ;;  %v1698_v61 = vld [vmem:[#allocation5 + $0x2f58] sm:$0xff]  ;;  %v1569_v62 = vld [vmem:[#allocation5 + $0x2b50] sm:$0xff] }
 0x3db   :  { %4344 = vmatprep.subr.mxu1 %v1630_v1  ;;  %4268 = vmatpush1.msra.mxu0 %v1501_v2  ;;  %v1697_v63 = vld [vmem:[#allocation5 + $0x2f50] sm:$0xff]  ;;  %v1566_v0 = vld [vmem:[#allocation5 + $0x2b38] sm:$0xff] }
 0x3dc   :  { %4345 = vmatpush1.msra.mxu1 %v1629_v3  ;;  %4269 = vmatprep.subr.mxu0 %v1498_v4  ;;  %v1694_v1 = vld [vmem:[#allocation5 + $0x2f38] sm:$0xff]  ;;  %v1565_v2 = vld [vmem:[#allocation5 + $0x2b30] sm:$0xff] }
 0x3dd   :  { %4346 = vmatprep.subr.mxu1 %v1626_v5  ;;  %4270 = vmatpush1.msra.mxu0 %v1497_v6  ;;  %v1693_v3 = vld [vmem:[#allocation5 + $0x2f30] sm:$0xff]  ;;  %v1562_v4 = vld [vmem:[#allocation5 + $0x2b18] sm:$0xff] }
 0x3de   :  { %4347 = vmatpush1.msra.mxu1 %v1625_v7  ;;  %4271 = vmatprep.subr.mxu0 %v1494_v8  ;;  %v1690_v5 = vld [vmem:[#allocation5 + $0x2f18] sm:$0xff]  ;;  %v1561_v6 = vld [vmem:[#allocation5 + $0x2b10] sm:$0xff] }
 0x3df   :  { %4348 = vmatprep.subr.mxu1 %v1622_v9  ;;  %4272 = vmatpush1.msra.mxu0 %v1493_v10  ;;  %v1689_v7 = vld [vmem:[#allocation5 + $0x2f10] sm:$0xff]  ;;  %v1558_v8 = vld [vmem:[#allocation5 + $0x2af8] sm:$0xff] }
 0x3e0   :  { %4349 = vmatpush1.msra.mxu1 %v1621_v11  ;;  %4273 = vmatprep.subr.mxu0 %v1490_v12  ;;  %v1686_v9 = vld [vmem:[#allocation5 + $0x2ef8] sm:$0xff]  ;;  %v1557_v10 = vld [vmem:[#allocation5 + $0x2af0] sm:$0xff] }
 0x3e1   :  { %4350 = vmatprep.subr.mxu1 %v1618_v13  ;;  %4274 = vmatpush1.msra.mxu0 %v1489_v14  ;;  %v1685_v11 = vld [vmem:[#allocation5 + $0x2ef0] sm:$0xff]  ;;  %v1554_v12 = vld [vmem:[#allocation5 + $0x2ad8] sm:$0xff] }
 0x3e2   :  { %4351 = vmatpush1.msra.mxu1 %v1617_v15  ;;  %4275 = vmatprep.subr.mxu0 %v1486_v16  ;;  %v1682_v13 = vld [vmem:[#allocation5 + $0x2ed8] sm:$0xff]  ;;  %v1553_v14 = vld [vmem:[#allocation5 + $0x2ad0] sm:$0xff] }
 0x3e3   :  { %4352 = vmatprep.subr.mxu1 %v1614_v17  ;;  %4276 = vmatpush1.msra.mxu0 %v1485_v18  ;;  %v1681_v15 = vld [vmem:[#allocation5 + $0x2ed0] sm:$0xff]  ;;  %v1550_v16 = vld [vmem:[#allocation5 + $0x2ab8] sm:$0xff] }
 0x3e4   :  { %4353 = vmatpush1.msra.mxu1 %v1613_v19  ;;  %4277 = vmatprep.subr.mxu0 %v1482_v20  ;;  %v1678_v17 = vld [vmem:[#allocation5 + $0x2eb8] sm:$0xff]  ;;  %v1549_v18 = vld [vmem:[#allocation5 + $0x2ab0] sm:$0xff] }
 0x3e5   :  { %4354 = vmatprep.subr.mxu1 %v1610_v21  ;;  %4278 = vmatpush1.msra.mxu0 %v1481_v22  ;;  %v1677_v19 = vld [vmem:[#allocation5 + $0x2eb0] sm:$0xff]  ;;  %v1546_v20 = vld [vmem:[#allocation5 + $0x2a98] sm:$0xff] }
 0x3e6   :  { %4355 = vmatpush1.msra.mxu1 %v1609_v23  ;;  %4279 = vmatprep.subr.mxu0 %v1478_v24  ;;  %v1674_v21 = vld [vmem:[#allocation5 + $0x2e98] sm:$0xff]  ;;  %v1545_v22 = vld [vmem:[#allocation5 + $0x2a90] sm:$0xff] }
 0x3e7   :  { %4356 = vmatprep.subr.mxu1 %v1606_v25  ;;  %4280 = vmatpush1.msra.mxu0 %v1477_v26  ;;  %v1673_v23 = vld [vmem:[#allocation5 + $0x2e90] sm:$0xff]  ;;  %v1542_v24 = vld [vmem:[#allocation5 + $0x2a78] sm:$0xff] }
 0x3e8   :  { %4357 = vmatpush1.msra.mxu1 %v1605_v27  ;;  %4281 = vmatprep.subr.mxu0 %v1474_v28  ;;  %v1670_v25 = vld [vmem:[#allocation5 + $0x2e78] sm:$0xff]  ;;  %v1541_v26 = vld [vmem:[#allocation5 + $0x2a70] sm:$0xff] }
 0x3e9   :  { %4358 = vmatprep.subr.mxu1 %v1602_v29  ;;  %4282 = vmatpush1.msra.mxu0 %v1473_v30  ;;  %v1669_v27 = vld [vmem:[#allocation5 + $0x2e70] sm:$0xff]  ;;  %v1538_v28 = vld [vmem:[#allocation5 + $0x2a58] sm:$0xff] }
 0x3ea   :  { %4359 = vmatpush1.msra.mxu1 %v1601_v31  ;;  %4283 = vmatprep.subr.mxu0 %v1470_v32  ;;  %v1666_v29 = vld [vmem:[#allocation5 + $0x2e58] sm:$0xff]  ;;  %v1537_v30 = vld [vmem:[#allocation5 + $0x2a50] sm:$0xff] }
 0x3eb   :  { %4360 = vmatprep.subr.mxu1 %v1598_v33  ;;  %4284 = vmatpush1.msra.mxu0 %v1469_v34  ;;  %v1665_v31 = vld [vmem:[#allocation5 + $0x2e50] sm:$0xff]  ;;  %v1534_v32 = vld [vmem:[#allocation5 + $0x2a38] sm:$0xff] }
 0x3ec   :  { %4361 = vmatpush1.msra.mxu1 %v1597_v35  ;;  %4285 = vmatprep.subr.mxu0 %v1466_v36  ;;  %v1662_v33 = vld [vmem:[#allocation5 + $0x2e38] sm:$0xff]  ;;  %v1533_v34 = vld [vmem:[#allocation5 + $0x2a30] sm:$0xff] }
 0x3ed   :  { %4362 = vmatprep.subr.mxu1 %v1594_v37  ;;  %4286 = vmatpush1.msra.mxu0 %v1465_v38  ;;  %v1661_v35 = vld [vmem:[#allocation5 + $0x2e30] sm:$0xff]  ;;  %v1530_v36 = vld [vmem:[#allocation5 + $0x2a18] sm:$0xff] }
 0x3ee   :  { %4363 = vmatpush1.msra.mxu1 %v1593_v39  ;;  %4287 = vmatprep.subr.mxu0 %v1590_v40  ;;  %v1658_v37 = vld [vmem:[#allocation5 + $0x2e18] sm:$0xff]  ;;  %v1529_v38 = vld [vmem:[#allocation5 + $0x2a10] sm:$0xff] }
 0x3ef   :  { %4364 = vmatprep.subr.mxu1 %v1718_v41  ;;  %4288 = vmatpush2.msra.mxu0 %v1589_v42  ;;  %v1657_v39 = vld [vmem:[#allocation5 + $0x2e10] sm:$0xff]  ;;  %v1782_v40 = vld [vmem:[#allocation5 + $0x31f8] sm:$0xff]  ;;  %v5269_v41 = vld [vmem:[#allocation2 + $0xa8] sm:$0xff] }
 0x3f0   :  { %4365 = vmatpush2.msra.mxu1 %v1717_v43  ;;  %4289 = vmatprep.subr.mxu0 %v1586_v44  ;;  %v1910_v42 = vld [vmem:[#allocation5 + $0x35f8] sm:$0xff]  ;;  %v5270_v43 = vld [vmem:[#allocation2 + $0xa0] sm:$0xff]  ;;  %v1781_v44 = vld [vmem:[#allocation5 + $0x31f0] sm:$0xff] }
 0x3f1   :  { %4366 = vmatprep.subr.mxu1 %v1714_v45  ;;  %4290 = vmatpush2.msra.mxu0 %v1585_v46  ;;  %v1909_v45 = vld [vmem:[#allocation5 + $0x35f0] sm:$0xff]  ;;  %v5271_v46 = vld [vmem:[#allocation2 + $0xb8] sm:$0xff] }
 0x3f2   :  { %4367 = vmatpush2.msra.mxu1 %v1713_v47  ;;  %4291 = vmatprep.subr.mxu0 %v1582_v48  ;;  %v1778_v47 = vld [vmem:[#allocation5 + $0x31d8] sm:$0xff] }
 0x3f3   :  { %4368 = vmatprep.subr.mxu1 %v1710_v49  ;;  %4292 = vmatpush2.msra.mxu0 %v1581_v50  ;;  %v1906_v48 = vld [vmem:[#allocation5 + $0x35d8] sm:$0xff]  ;;  %v5272_v49 = vld [vmem:[#allocation2 + $0xb0] sm:$0xff] }
 0x3f4   :  { %4369 = vmatpush2.msra.mxu1 %v1709_v51  ;;  %4293 = vmatprep.subr.mxu0 %v1578_v52  ;;  %v1777_v50 = vld [vmem:[#allocation5 + $0x31d0] sm:$0xff]  ;;  %v1774_v52 = vld [vmem:[#allocation5 + $0x31b8] sm:$0xff] }
 0x3f5   :  { %4370 = vmatprep.subr.mxu1 %v1706_v53  ;;  %4294 = vmatpush2.msra.mxu0 %v1577_v54  ;;  %v1905_v51 = vld [vmem:[#allocation5 + $0x35d0] sm:$0xff]  ;;  %v1902_v53 = vld [vmem:[#allocation5 + $0x35b8] sm:$0xff]  ;;  %v5273_v54 = vld [vmem:[#allocation2 + $0x1a8] sm:$0xff] }
 0x3f6   :  { %4371 = vmatpush2.msra.mxu1 %v1705_v55  ;;  %4295 = vmatprep.subr.mxu0 %v1574_v56  ;;  %v1773_v55 = vld [vmem:[#allocation5 + $0x31b0] sm:$0xff]  ;;  %v5274_v56 = vld [vmem:[#allocation2 + $0x1a0] sm:$0xff] }
 0x3f7   :  { %4372 = vmatprep.subr.mxu1 %v1702_v57  ;;  %4296 = vmatpush2.msra.mxu0 %v1573_v58  ;;  %v1901_v57 = vld [vmem:[#allocation5 + $0x35b0] sm:$0xff]  ;;  %v1770_v58 = vld [vmem:[#allocation5 + $0x3198] sm:$0xff] }
 0x3f8   :  { %4373 = vmatpush2.msra.mxu1 %v1701_v59  ;;  %4297 = vmatprep.subr.mxu0 %v1570_v60  ;;  %v1898_v59 = vld [vmem:[#allocation5 + $0x3598] sm:$0xff] }
 0x3f9   :  { %4374 = vmatprep.subr.mxu1 %v1698_v61  ;;  %4298 = vmatpush2.msra.mxu0 %v1569_v62  ;;  %v5275_v60 = vld [vmem:[#allocation2 + $0x1b8] sm:$0xff]  ;;  %v1769_v61 = vld [vmem:[#allocation5 + $0x3190] sm:$0xff] }
 0x3fa   :  { %4375 = vmatpush2.msra.mxu1 %v1697_v63  ;;  %4299 = vmatprep.subr.mxu0 %v1566_v0  ;;  %v1897_v62 = vld [vmem:[#allocation5 + $0x3590] sm:$0xff]  ;;  %v1766_v63 = vld [vmem:[#allocation5 + $0x3178] sm:$0xff] }
 0x3fb   :  { %4376 = vmatprep.subr.mxu1 %v1694_v1  ;;  %4300 = vmatpush2.msra.mxu0 %v1565_v2  ;;  %v1894_v0 = vld [vmem:[#allocation5 + $0x3578] sm:$0xff]  ;;  %v5276_v1 = vld [vmem:[#allocation2 + $0x1b0] sm:$0xff] }
 0x3fc   :  { %4377 = vmatpush2.msra.mxu1 %v1693_v3  ;;  %4301 = vmatprep.subr.mxu0 %v1562_v4  ;;  %v1765_v2 = vld [vmem:[#allocation5 + $0x3170] sm:$0xff]  ;;  %v1762_v4 = vld [vmem:[#allocation5 + $0x3158] sm:$0xff] }
 0x3fd   :  { %4378 = vmatprep.subr.mxu1 %v1690_v5  ;;  %4302 = vmatpush2.msra.mxu0 %v1561_v6  ;;  %v1893_v3 = vld [vmem:[#allocation5 + $0x3570] sm:$0xff]  ;;  %v1890_v5 = vld [vmem:[#allocation5 + $0x3558] sm:$0xff] }
 0x3fe   :  { %4379 = vmatpush2.msra.mxu1 %v1689_v7  ;;  %4303 = vmatprep.subr.mxu0 %v1558_v8  ;;  %v1761_v6 = vld [vmem:[#allocation5 + $0x3150] sm:$0xff]  ;;  %v1758_v8 = vld [vmem:[#allocation5 + $0x3138] sm:$0xff] }
 0x3ff   :  { %4380 = vmatprep.subr.mxu1 %v1686_v9  ;;  %4304 = vmatpush2.msra.mxu0 %v1557_v10  ;;  %v1889_v7 = vld [vmem:[#allocation5 + $0x3550] sm:$0xff]  ;;  %v1886_v9 = vld [vmem:[#allocation5 + $0x3538] sm:$0xff] }
 0x400   :  { %4381 = vmatpush2.msra.mxu1 %v1685_v11  ;;  %4305 = vmatprep.subr.mxu0 %v1554_v12  ;;  %v1757_v10 = vld [vmem:[#allocation5 + $0x3130] sm:$0xff]  ;;  %v1754_v12 = vld [vmem:[#allocation5 + $0x3118] sm:$0xff] }
 0x401   :  { %4382 = vmatprep.subr.mxu1 %v1682_v13  ;;  %4306 = vmatpush2.msra.mxu0 %v1553_v14  ;;  %v1885_v11 = vld [vmem:[#allocation5 + $0x3530] sm:$0xff]  ;;  %v1882_v13 = vld [vmem:[#allocation5 + $0x3518] sm:$0xff] }
 0x402   :  { %4383 = vmatpush2.msra.mxu1 %v1681_v15  ;;  %4307 = vmatprep.subr.mxu0 %v1550_v16  ;;  %v1753_v14 = vld [vmem:[#allocation5 + $0x3110] sm:$0xff]  ;;  %v1750_v16 = vld [vmem:[#allocation5 + $0x30f8] sm:$0xff] }
 0x403   :  { %4384 = vmatprep.subr.mxu1 %v1678_v17  ;;  %4308 = vmatpush2.msra.mxu0 %v1549_v18  ;;  %v1881_v15 = vld [vmem:[#allocation5 + $0x3510] sm:$0xff]  ;;  %v1878_v17 = vld [vmem:[#allocation5 + $0x34f8] sm:$0xff] }
 0x404   :  { %4385 = vmatpush2.msra.mxu1 %v1677_v19  ;;  %4309 = vmatprep.subr.mxu0 %v1546_v20  ;;  %v1749_v18 = vld [vmem:[#allocation5 + $0x30f0] sm:$0xff]  ;;  %v1746_v20 = vld [vmem:[#allocation5 + $0x30d8] sm:$0xff] }
 0x405   :  { %4386 = vmatprep.subr.mxu1 %v1674_v21  ;;  %4310 = vmatpush2.msra.mxu0 %v1545_v22  ;;  %v1877_v19 = vld [vmem:[#allocation5 + $0x34f0] sm:$0xff]  ;;  %v1874_v21 = vld [vmem:[#allocation5 + $0x34d8] sm:$0xff] }
 0x406   :  { %4387 = vmatpush2.msra.mxu1 %v1673_v23  ;;  %4311 = vmatprep.subr.mxu0 %v1542_v24  ;;  %v1745_v22 = vld [vmem:[#allocation5 + $0x30d0] sm:$0xff]  ;;  %v1742_v24 = vld [vmem:[#allocation5 + $0x30b8] sm:$0xff] }
 0x407   :  { %4388 = vmatprep.subr.mxu1 %v1670_v25  ;;  %4312 = vmatpush2.msra.mxu0 %v1541_v26  ;;  %v1873_v23 = vld [vmem:[#allocation5 + $0x34d0] sm:$0xff]  ;;  %v1870_v25 = vld [vmem:[#allocation5 + $0x34b8] sm:$0xff] }
 0x408   :  { %4389 = vmatpush2.msra.mxu1 %v1669_v27  ;;  %4313 = vmatprep.subr.mxu0 %v1538_v28  ;;  %v1741_v26 = vld [vmem:[#allocation5 + $0x30b0] sm:$0xff]  ;;  %v1738_v28 = vld [vmem:[#allocation5 + $0x3098] sm:$0xff] }
 0x409   :  { %4390 = vmatprep.subr.mxu1 %v1666_v29  ;;  %4314 = vmatpush2.msra.mxu0 %v1537_v30  ;;  %v1869_v27 = vld [vmem:[#allocation5 + $0x34b0] sm:$0xff]  ;;  %v1866_v29 = vld [vmem:[#allocation5 + $0x3498] sm:$0xff] }
 0x40a   :  { %4391 = vmatpush2.msra.mxu1 %v1665_v31  ;;  %4315 = vmatprep.subr.mxu0 %v1534_v32  ;;  %v1737_v30 = vld [vmem:[#allocation5 + $0x3090] sm:$0xff]  ;;  %v1734_v32 = vld [vmem:[#allocation5 + $0x3078] sm:$0xff] }
 0x40b   :  { %4392 = vmatprep.subr.mxu1 %v1662_v33  ;;  %4316 = vmatpush2.msra.mxu0 %v1533_v34  ;;  %v1865_v31 = vld [vmem:[#allocation5 + $0x3490] sm:$0xff]  ;;  %v1862_v33 = vld [vmem:[#allocation5 + $0x3478] sm:$0xff] }
 0x40c   :  { %4393 = vmatpush2.msra.mxu1 %v1661_v35  ;;  %4317 = vmatprep.subr.mxu0 %v1530_v36  ;;  %v1733_v34 = vld [vmem:[#allocation5 + $0x3070] sm:$0xff]  ;;  %v1730_v36 = vld [vmem:[#allocation5 + $0x3058] sm:$0xff] }
 0x40d   :  { %4394 = vmatprep.subr.mxu1 %v1658_v37  ;;  %4318 = vmatpush2.msra.mxu0 %v1529_v38  ;;  %v1861_v35 = vld [vmem:[#allocation5 + $0x3470] sm:$0xff]  ;;  %v1858_v37 = vld [vmem:[#allocation5 + $0x3458] sm:$0xff]  ;;  %v5551_v38 = vpop.f32.mrf.mxu0 }
 0x40e   :  { %4319 = vmatprep.mubr.f32.mxu0 %v5269_v41  ;;  %4395 = vmatpush2.msra.mxu1 %v1657_v39  ;;  %v1729_v39 = vld [vmem:[#allocation5 + $0x3050] sm:$0xff]  ;;  %v1726_v41 = vld [vmem:[#allocation5 + $0x3038] sm:$0xff] }
 0x40f   :  { %4320 = vmatmul.mubr.f32.vlgmr.msra.gmra.mxu0 %v5270_v43  ;;  %4396 = vmatprep.mubr.f32.mxu1 %v5271_v46  ;;  %v1725_v43 = vld [vmem:[#allocation5 + $0x3030] sm:$0xff]  ;;  %v1850_v46 = vld [vmem:[#allocation5 + $0x3418] sm:$0xff] }
 0x410   :  { %4409 = vmatprep.subr.mxu0 %v1782_v40  ;;  %4486 = vmatprep.subr.mxu1 %v1910_v42  ;;  %v1857_v40 = vld [vmem:[#allocation5 + $0x3450] sm:$0xff]  ;;  %v1854_v42 = vld [vmem:[#allocation5 + $0x3438] sm:$0xff] }
 0x411   :  { %4397 = vmatmul.mubr.f32.vlgmr.msra.gmra.mxu1 %v5272_v49  ;;  %4410 = vmatpush1.msra.mxu0 %v1781_v44  ;;  %v1853_v44 = vld [vmem:[#allocation5 + $0x3430] sm:$0xff] }
 0x412   :  { %4487 = vmatpush1.msra.mxu1 %v1909_v45  ;;  %4411 = vmatprep.subr.mxu0 %v1778_v47  ;;  %v1722_v45 = vld [vmem:[#allocation5 + $0x3018] sm:$0xff]  ;;  %v5553_v47 = vpop.f32.mrf.mxu1  ;;  %v1721_v49 = vld [vmem:[#allocation5 + $0x3010] sm:$0xff] }
 0x413   :  { %4488 = vmatprep.subr.mxu1 %v1906_v48  ;;  %4325 = vmatprep.mubr.f32.mxu0 %v5273_v54  ;;  %v5555_v48 = vpop.f32.mrf.mxu0  ;;  %v1845_v54 = vld [vmem:[#allocation5 + $0x33f0] sm:$0xff] }
 0x414   :  { %4412 = vmatpush1.msra.mxu0 %v1777_v50  ;;  %4489 = vmatpush1.msra.mxu1 %v1905_v51  ;;  %v1849_v50 = vld [vmem:[#allocation5 + $0x3410] sm:$0xff]  ;;  %v1846_v51 = vld [vmem:[#allocation5 + $0x33f8] sm:$0xff] }
 0x415   :  { %4326 = vmatmul.mubr.f32.gmra.mxu0 %v5274_v56  ;;  %4413 = vmatprep.subr.mxu0 %v1774_v52  ;;  %v1974_v52 = vld [vmem:[#allocation5 + $0x37f8] sm:$0xff] }
 0x416   :  { %4490 = vmatprep.subr.mxu1 %v1902_v53  ;;  %4402 = vmatprep.mubr.f32.mxu1 %v5275_v60  ;;  %v5557_v53 = vpop.f32.mrf.mxu0  ;;  %v1842_v56 = vld [vmem:[#allocation5 + $0x33d8] sm:$0xff]  ;;  %v1969_v60 = vld [vmem:[#allocation5 + $0x37d0] sm:$0xff] }
 0x417   :  { %4414 = vmatpush1.msra.mxu0 %v1773_v55  ;;  %4491 = vmatpush1.msra.mxu1 %v1901_v57  ;;  %v1973_v55 = vld [vmem:[#allocation5 + $0x37f0] sm:$0xff]  ;;  %v1970_v57 = vld [vmem:[#allocation5 + $0x37d8] sm:$0xff] }
 0x418   :  { %4415 = vmatprep.subr.mxu0 %v1770_v58  ;;  %4403 = vmatmul.mubr.f32.gmra.mxu1 %v5276_v1  ;;  %v5559_v58 = vpop.f32.mrf.mxu1  ;;  %v1837_v1 = vld [vmem:[#allocation5 + $0x33b0] sm:$0xff] }
 0x419   :  { %4492 = vmatprep.subr.mxu1 %v1898_v59  ;;  %4416 = vmatpush1.msra.mxu0 %v1769_v61  ;;  %v1841_v59 = vld [vmem:[#allocation5 + $0x33d0] sm:$0xff]  ;;  %v1838_v61 = vld [vmem:[#allocation5 + $0x33b8] sm:$0xff] }
 0x41a   :  { %4493 = vmatpush1.msra.mxu1 %v1897_v62  ;;  %4417 = vmatprep.subr.mxu0 %v1766_v63  ;;  %v1966_v62 = vld [vmem:[#allocation5 + $0x37b8] sm:$0xff]  ;;  %v5561_v63 = vpop.f32.mrf.mxu0 }
 0x41b   :  { %4494 = vmatprep.subr.mxu1 %v1894_v0  ;;  %4418 = vmatpush1.msra.mxu0 %v1765_v2  ;;  %v5563_v0 = vpop.f32.mrf.mxu1  ;;  %v1965_v2 = vld [vmem:[#allocation5 + $0x37b0] sm:$0xff] }
 0x41c   :  { %4495 = vmatpush1.msra.mxu1 %v1893_v3  ;;  %4419 = vmatprep.subr.mxu0 %v1762_v4  ;;  %v1834_v3 = vld [vmem:[#allocation5 + $0x3398] sm:$0xff] }
 0x41d   :  { %4496 = vmatprep.subr.mxu1 %v1890_v5  ;;  %4420 = vmatpush1.msra.mxu0 %v1761_v6  ;;  %v1962_v4 = vld [vmem:[#allocation5 + $0x3798] sm:$0xff]  ;;  %v1833_v5 = vld [vmem:[#allocation5 + $0x3390] sm:$0xff] }
 0x41e   :  { %4497 = vmatpush1.msra.mxu1 %v1889_v7  ;;  %4421 = vmatprep.subr.mxu0 %v1758_v8  ;;  %v1961_v6 = vld [vmem:[#allocation5 + $0x3790] sm:$0xff]  ;;  %v1830_v7 = vld [vmem:[#allocation5 + $0x3378] sm:$0xff] }
 0x41f   :  { %4498 = vmatprep.subr.mxu1 %v1886_v9  ;;  %4422 = vmatpush1.msra.mxu0 %v1757_v10  ;;  %v1958_v8 = vld [vmem:[#allocation5 + $0x3778] sm:$0xff]  ;;  %v5565_v9 = vpop.f32.mrf.mxu1  ;;  %v5567_v10 = vpop.f32.mrf.mxu0 }
 0x420   :  { %4499 = vmatpush1.msra.mxu1 %v1885_v11  ;;  %4423 = vmatprep.subr.mxu0 %v1754_v12  ;;  %v1829_v11 = vld [vmem:[#allocation5 + $0x3370] sm:$0xff] }
 0x421   :  { %4500 = vmatprep.subr.mxu1 %v1882_v13  ;;  %4424 = vmatpush1.msra.mxu0 %v1753_v14  ;;  %v1957_v12 = vld [vmem:[#allocation5 + $0x3770] sm:$0xff]  ;;  %v1826_v13 = vld [vmem:[#allocation5 + $0x3358] sm:$0xff] }
 0x422   :  { %4501 = vmatpush1.msra.mxu1 %v1881_v15  ;;  %4425 = vmatprep.subr.mxu0 %v1750_v16  ;;  %v1954_v14 = vld [vmem:[#allocation5 + $0x3758] sm:$0xff]  ;;  %v1825_v15 = vld [vmem:[#allocation5 + $0x3350] sm:$0xff] }
 0x423   :  { %4502 = vmatprep.subr.mxu1 %v1878_v17  ;;  %4426 = vmatpush1.msra.mxu0 %v1749_v18  ;;  %v1953_v16 = vld [vmem:[#allocation5 + $0x3750] sm:$0xff]  ;;  %v1822_v17 = vld [vmem:[#allocation5 + $0x3338] sm:$0xff] }
 0x424   :  { %4503 = vmatpush1.msra.mxu1 %v1877_v19  ;;  %4427 = vmatprep.subr.mxu0 %v1746_v20  ;;  %v1950_v18 = vld [vmem:[#allocation5 + $0x3738] sm:$0xff]  ;;  %v5569_v19 = vpop.f32.mrf.mxu1  ;;  %v5571_v20 = vpop.f32.mrf.mxu0 }
 0x425   :  { %4504 = vmatprep.subr.mxu1 %v1874_v21  ;;  %4428 = vmatpush1.msra.mxu0 %v1745_v22  ;;  %v1821_v21 = vld [vmem:[#allocation5 + $0x3330] sm:$0xff] }
 0x426   :  { %4505 = vmatpush1.msra.mxu1 %v1873_v23  ;;  %4429 = vmatprep.subr.mxu0 %v1742_v24  ;;  %v1949_v22 = vld [vmem:[#allocation5 + $0x3730] sm:$0xff]  ;;  %v1818_v23 = vld [vmem:[#allocation5 + $0x3318] sm:$0xff] }
 0x427   :  { %4506 = vmatprep.subr.mxu1 %v1870_v25  ;;  %4430 = vmatpush1.msra.mxu0 %v1741_v26  ;;  %v1946_v24 = vld [vmem:[#allocation5 + $0x3718] sm:$0xff]  ;;  %v1817_v25 = vld [vmem:[#allocation5 + $0x3310] sm:$0xff] }
 0x428   :  { %4507 = vmatpush1.msra.mxu1 %v1869_v27  ;;  %4431 = vmatprep.subr.mxu0 %v1738_v28  ;;  %v1945_v26 = vld [vmem:[#allocation5 + $0x3710] sm:$0xff]  ;;  %v1814_v27 = vld [vmem:[#allocation5 + $0x32f8] sm:$0xff] }
 0x429   :  { %4508 = vmatprep.subr.mxu1 %v1866_v29  ;;  %4432 = vmatpush1.msra.mxu0 %v1737_v30  ;;  %v1942_v28 = vld [vmem:[#allocation5 + $0x36f8] sm:$0xff]  ;;  %v5573_v29 = vpop.f32.mrf.mxu1  ;;  %v5575_v30 = vpop.f32.mrf.mxu0 }
 0x42a   :  { %4509 = vmatpush1.msra.mxu1 %v1865_v31  ;;  %4433 = vmatprep.subr.mxu0 %v1734_v32  ;;  %v1813_v31 = vld [vmem:[#allocation5 + $0x32f0] sm:$0xff] }
 0x42b   :  { %4510 = vmatprep.subr.mxu1 %v1862_v33  ;;  %4434 = vmatpush1.msra.mxu0 %v1733_v34  ;;  %v1941_v32 = vld [vmem:[#allocation5 + $0x36f0] sm:$0xff]  ;;  %v1810_v33 = vld [vmem:[#allocation5 + $0x32d8] sm:$0xff] }
 0x42c   :  { %4511 = vmatpush1.msra.mxu1 %v1861_v35  ;;  %4435 = vmatprep.subr.mxu0 %v1730_v36  ;;  %v1938_v34 = vld [vmem:[#allocation5 + $0x36d8] sm:$0xff]  ;;  %v1809_v35 = vld [vmem:[#allocation5 + $0x32d0] sm:$0xff] }
 0x42d   :  { %4512 = vmatprep.subr.mxu1 %v1858_v37  ;;  %4436 = vmatpush1.msra.mxu0 %v1729_v39  ;;  %v1937_v36 = vld [vmem:[#allocation5 + $0x36d0] sm:$0xff]  ;;  %v1806_v37 = vld [vmem:[#allocation5 + $0x32b8] sm:$0xff] }
 0x42e   :  { %4513 = vmatpush1.msra.mxu1 %v1857_v40  ;;  %4437 = vmatprep.subr.mxu0 %v1726_v41  ;;  %v1934_v39 = vld [vmem:[#allocation5 + $0x36b8] sm:$0xff]  ;;  %v5577_v40 = vpop.f32.mrf.mxu0  ;;  %v5579_v41 = vpop.f32.mrf.mxu1 }
 0x42f   :  { %4514 = vmatprep.subr.mxu1 %v1854_v42  ;;  %4438 = vmatpush1.msra.mxu0 %v1725_v43  ;;  %v1805_v42 = vld [vmem:[#allocation5 + $0x32b0] sm:$0xff] }
 0x430   :  { %4515 = vmatpush1.msra.mxu1 %v1853_v44  ;;  %4439 = vmatprep.subr.mxu0 %v1722_v45  ;;  %v1933_v43 = vld [vmem:[#allocation5 + $0x36b0] sm:$0xff]  ;;  %v1802_v44 = vld [vmem:[#allocation5 + $0x3298] sm:$0xff] }
 0x431   :  { %4516 = vmatprep.subr.mxu1 %v1850_v46  ;;  %4440 = vmatpush1.msra.mxu0 %v1721_v49  ;;  %v1930_v45 = vld [vmem:[#allocation5 + $0x3698] sm:$0xff]  ;;  %v5581_v46 = vpop.f32.mrf.mxu0  ;;  %v1801_v49 = vld [vmem:[#allocation5 + $0x3290] sm:$0xff] }
 0x432   :  { %4517 = vmatpush1.msra.mxu1 %v1849_v50  ;;  %4441 = vmatprep.subr.mxu0 %v1846_v51  ;;  %v1929_v50 = vld [vmem:[#allocation5 + $0x3690] sm:$0xff]  ;;  %v1798_v51 = vld [vmem:[#allocation5 + $0x3278] sm:$0xff] }
 0x433   :  { %4518 = vmatprep.subr.mxu1 %v1974_v52  ;;  %4442 = vmatpush2.msra.mxu0 %v1845_v54  ;;  %v1926_v52 = vld [vmem:[#allocation5 + $0x3678] sm:$0xff]  ;;  %v5583_v54 = vpop.f32.mrf.mxu1 }
 0x434   :  { %4519 = vmatpush2.msra.mxu1 %v1973_v55  ;;  %4443 = vmatprep.subr.mxu0 %v1842_v56  ;;  %v1797_v55 = vld [vmem:[#allocation5 + $0x3270] sm:$0xff] }
 0x435   :  { %4520 = vmatprep.subr.mxu1 %v1970_v57  ;;  %4444 = vmatpush2.msra.mxu0 %v1841_v59  ;;  %v1925_v56 = vld [vmem:[#allocation5 + $0x3670] sm:$0xff]  ;;  %v1794_v57 = vld [vmem:[#allocation5 + $0x3258] sm:$0xff] }
 0x436   :  { %4521 = vmatpush2.msra.mxu1 %v1969_v60  ;;  %4445 = vmatprep.subr.mxu0 %v1838_v61  ;;  %v1922_v59 = vld [vmem:[#allocation5 + $0x3658] sm:$0xff]  ;;  %v5585_v60 = vpop.f32.mrf.mxu1  ;;  %v5587_v61 = vpop.f32.mrf.mxu0 }
 0x437   :  { %4522 = vmatprep.subr.mxu1 %v1966_v62  ;;  %4446 = vmatpush2.msra.mxu0 %v1837_v1  ;;  %v1793_v62 = vld [vmem:[#allocation5 + $0x3250] sm:$0xff] }
 0x438   :  { %4523 = vmatpush2.msra.mxu1 %v1965_v2  ;;  %4447 = vmatprep.subr.mxu0 %v1834_v3  ;;  %v1921_v1 = vld [vmem:[#allocation5 + $0x3650] sm:$0xff]  ;;  %v1790_v2 = vld [vmem:[#allocation5 + $0x3238] sm:$0xff] }
 0x439   :  { %4524 = vmatprep.subr.mxu1 %v1962_v4  ;;  %4448 = vmatpush2.msra.mxu0 %v1833_v5  ;;  %v1918_v3 = vld [vmem:[#allocation5 + $0x3638] sm:$0xff]  ;;  %v1789_v4 = vld [vmem:[#allocation5 + $0x3230] sm:$0xff] }
 0x43a   :  { %4525 = vmatpush2.msra.mxu1 %v1961_v6  ;;  %4449 = vmatprep.subr.mxu0 %v1830_v7  ;;  %v1917_v5 = vld [vmem:[#allocation5 + $0x3630] sm:$0xff]  ;;  %v1786_v6 = vld [vmem:[#allocation5 + $0x3218] sm:$0xff] }
 0x43b   :  { %4526 = vmatprep.subr.mxu1 %v1958_v8  ;;  %4450 = vmatpush2.msra.mxu0 %v1829_v11  ;;  %v1914_v7 = vld [vmem:[#allocation5 + $0x3618] sm:$0xff]  ;;  %v5589_v8 = vpop.f32.mrf.mxu1  ;;  %v5591_v11 = vpop.f32.mrf.mxu0 }
 0x43c   :  { %4527 = vmatpush2.msra.mxu1 %v1957_v12  ;;  %4451 = vmatprep.subr.mxu0 %v1826_v13  ;;  %v1785_v12 = vld [vmem:[#allocation5 + $0x3210] sm:$0xff] }
 0x43d   :  { %4528 = vmatprep.subr.mxu1 %v1954_v14  ;;  %4452 = vmatpush2.msra.mxu0 %v1825_v15  ;;  %v1913_v13 = vld [vmem:[#allocation5 + $0x3610] sm:$0xff]  ;;  %v2038_v14 = vld [vmem:[#allocation5 + $0x39f8] sm:$0xff]  ;;  %v5277_v15 = vld [vmem:[#allocation2 + $0xc8] sm:$0xff] }
 0x43e   :  { %4529 = vmatpush2.msra.mxu1 %v1953_v16  ;;  %4453 = vmatprep.subr.mxu0 %v1822_v17  ;;  %v2166_v16 = vld [vmem:[#allocation5 + $0x3df8] sm:$0xff]  ;;  %v5593_v17 = vpop.f32.mrf.mxu0 }
 0x43f   :  { %4530 = vmatprep.subr.mxu1 %v1950_v18  ;;  %4454 = vmatpush2.msra.mxu0 %v1821_v21  ;;  %v5595_v18 = vpop.f32.mrf.mxu1  ;;  %v5278_v21 = vld [vmem:[#allocation2 + $0xc0] sm:$0xff] }
 0x440   :  { %4531 = vmatpush2.msra.mxu1 %v1949_v22  ;;  %4455 = vmatprep.subr.mxu0 %v1818_v23  ;;  %v2037_v22 = vld [vmem:[#allocation5 + $0x39f0] sm:$0xff] }
 0x441   :  { %4532 = vmatprep.subr.mxu1 %v1946_v24  ;;  %4456 = vmatpush2.msra.mxu0 %v1817_v25  ;;  %v2165_v23 = vld [vmem:[#allocation5 + $0x3df0] sm:$0xff]  ;;  %v5279_v24 = vld [vmem:[#allocation2 + $0xd8] sm:$0xff] }
 0x442   :  { %4533 = vmatpush2.msra.mxu1 %v1945_v26  ;;  %4457 = vmatprep.subr.mxu0 %v1814_v27  ;;  %v2034_v25 = vld [vmem:[#allocation5 + $0x39d8] sm:$0xff]  ;;  %v5597_v27 = vpop.f32.mrf.mxu0 }
 0x443   :  { %4534 = vmatprep.subr.mxu1 %v1942_v28  ;;  %4458 = vmatpush2.msra.mxu0 %v1813_v31  ;;  %v2162_v26 = vld [vmem:[#allocation5 + $0x3dd8] sm:$0xff]  ;;  %v5280_v28 = vld [vmem:[#allocation2 + $0xd0] sm:$0xff] }
 0x444   :  { %4535 = vmatpush2.msra.mxu1 %v1941_v32  ;;  %4459 = vmatprep.subr.mxu0 %v1810_v33  ;;  %v2033_v31 = vld [vmem:[#allocation5 + $0x39d0] sm:$0xff]  ;;  %v5599_v33 = vpop.f32.mrf.mxu1 }
 0x445   :  { %4536 = vmatprep.subr.mxu1 %v1938_v34  ;;  %4460 = vmatpush2.msra.mxu0 %v1809_v35  ;;  %v2161_v32 = vld [vmem:[#allocation5 + $0x3dd0] sm:$0xff]  ;;  %v2030_v34 = vld [vmem:[#allocation5 + $0x39b8] sm:$0xff] }
 0x446   :  { %4537 = vmatpush2.msra.mxu1 %v1937_v36  ;;  %4461 = vmatprep.subr.mxu0 %v1806_v37  ;;  %v2158_v35 = vld [vmem:[#allocation5 + $0x3db8] sm:$0xff]  ;;  %v5281_v36 = vld [vmem:[#allocation2 + $0x1c8] sm:$0xff]  ;;  %v2029_v37 = vld [vmem:[#allocation5 + $0x39b0] sm:$0xff] }
 0x447   :  { %4538 = vmatprep.subr.mxu1 %v1934_v39  ;;  %4462 = vmatpush2.msra.mxu0 %v1805_v42  ;;  %v5601_v39 = vpop.f32.mrf.mxu1  ;;  %v5603_v42 = vpop.f32.mrf.mxu0 }
 0x448   :  { %4539 = vmatpush2.msra.mxu1 %v1933_v43  ;;  %4463 = vmatprep.subr.mxu0 %v1802_v44  ;;  %v5282_v43 = vld [vmem:[#allocation2 + $0x1c0] sm:$0xff]  ;;  %v2157_v44 = vld [vmem:[#allocation5 + $0x3db0] sm:$0xff] }
 0x449   :  { %4540 = vmatprep.subr.mxu1 %v1930_v45  ;;  %4464 = vmatpush2.msra.mxu0 %v1801_v49  ;;  %v2026_v45 = vld [vmem:[#allocation5 + $0x3998] sm:$0xff]  ;;  %v2233_v49 = vlaneseq }
 0x44a   :  { %4541 = vmatpush2.msra.mxu1 %v1929_v50  ;;  %4465 = vmatprep.subr.mxu0 %v1798_v51  ;;  %v2154_v50 = vld [vmem:[#allocation5 + $0x3d98] sm:$0xff] }
 0x44b   :  { %4542 = vmatprep.subr.mxu1 %v1926_v52  ;;  %4466 = vmatpush2.msra.mxu0 %v1797_v55  ;;  %v5283_v51 = vld [vmem:[#allocation2 + $0x1d8] sm:$0xff]  ;;  %v2025_v52 = vld [vmem:[#allocation5 + $0x3990] sm:$0xff] }
 0x44c   :  { %4543 = vmatpush2.msra.mxu1 %v1925_v56  ;;  %4467 = vmatprep.subr.mxu0 %v1794_v57  ;;  %v2153_v55 = vld [vmem:[#allocation5 + $0x3d90] sm:$0xff]  ;;  %v2022_v56 = vld [vmem:[#allocation5 + $0x3978] sm:$0xff] }
 0x44d   :  { %4544 = vmatprep.subr.mxu1 %v1922_v59  ;;  %4468 = vmatpush2.msra.mxu0 %v1793_v62  ;;  %v2150_v57 = vld [vmem:[#allocation5 + $0x3d78] sm:$0xff]  ;;  %v5605_v59 = vpop.f32.mrf.mxu1  ;;  %v5607_v62 = vpop.f32.mrf.mxu0 }
 0x44e   :  { %4545 = vmatpush2.msra.mxu1 %v1921_v1  ;;  %4469 = vmatprep.subr.mxu0 %v1790_v2  ;;  %v5284_v1 = vld [vmem:[#allocation2 + $0x1d0] sm:$0xff] }
 0x44f   :  { %4546 = vmatprep.subr.mxu1 %v1918_v3  ;;  %4470 = vmatpush2.msra.mxu0 %v1789_v4  ;;  %v2021_v2 = vld [vmem:[#allocation5 + $0x3970] sm:$0xff]  ;;  %v5609_v4 = vshrl.u32 %v2233_v49, 7  ;;  %v2130_v49 = vld [vmem:[#allocation5 + $0x3cd8] sm:$0xff] }
 0x450   :  { %4547 = vmatpush2.msra.mxu1 %v1917_v5  ;;  %4471 = vmatprep.subr.mxu0 %v1786_v6  ;;  %v2149_v3 = vld [vmem:[#allocation5 + $0x3d70] sm:$0xff]  ;;  %v2018_v5 = vld [vmem:[#allocation5 + $0x3958] sm:$0xff] }
 0x451   :  { %4548 = vmatprep.subr.mxu1 %v1914_v7  ;;  %4472 = vmatpush2.msra.mxu0 %v1785_v12  ;;  %v2146_v6 = vld [vmem:[#allocation5 + $0x3d58] sm:$0xff]  ;;  %v2017_v7 = vld [vmem:[#allocation5 + $0x3950] sm:$0xff] }
 0x452   :  { %4473 = vmatprep.mubr.f32.mxu0 %v5277_v15  ;;  %4549 = vmatpush2.msra.mxu1 %v1913_v13  ;;  %v2145_v12 = vld [vmem:[#allocation5 + $0x3d50] sm:$0xff]  ;;  %v2014_v13 = vld [vmem:[#allocation5 + $0x3938] sm:$0xff]  ;;  %v5611_v15 = vpop.f32.mrf.mxu0 }
 0x453   :  { %4474 = vmatmul.mubr.f32.vlgmr.msra.gmra.mxu0 %v5278_v21  ;;  %4550 = vmatprep.mubr.f32.mxu1 %v5279_v24  ;;  %v2013_v21 = vld [vmem:[#allocation5 + $0x3930] sm:$0xff]  ;;  %v2010_v24 = vld [vmem:[#allocation5 + $0x3918] sm:$0xff] }
 0x454   :  { %4563 = vmatprep.subr.mxu0 %v2038_v14  ;;  %4640 = vmatprep.subr.mxu1 %v2166_v16  ;;  %v2142_v14 = vld [vmem:[#allocation5 + $0x3d38] sm:$0xff]  ;;  %v5613_v16 = vpop.f32.mrf.mxu1 }
 0x455   :  { %4551 = vmatmul.mubr.f32.vlgmr.msra.gmra.mxu1 %v5280_v28  ;;  %4564 = vmatpush1.msra.mxu0 %v2037_v22  ;;  %v2141_v22 = vld [vmem:[#allocation5 + $0x3d30] sm:$0xff]  ;;  %v5618_v28 = vpop.f32.mrf.mxu0 }
 0x456   :  { %4641 = vmatpush1.msra.mxu1 %v2165_v23  ;;  %4565 = vmatprep.subr.mxu0 %v2034_v25  ;;  %v2239_v23 = vsub.s32 1, %v5609_v4  ;;  %v2138_v25 = vld [vmem:[#allocation5 + $0x3d18] sm:$0xff] }
 0x457   :  { %4642 = vmatprep.subr.mxu1 %v2162_v26  ;;  %4479 = vmatprep.mubr.f32.mxu0 %v5281_v36  ;;  %v5616_v26 = vld [vmem:[#allocation7] sm:$0xf]  ;;  %v5620_v36 = vpop.f32.mrf.mxu1 }
 0x458   :  { %4566 = vmatpush1.msra.mxu0 %v2033_v31  ;;  %4643 = vmatpush1.msra.mxu1 %v2161_v32  ;;  %v2009_v31 = vld [vmem:[#allocation5 + $0x3910] sm:$0xff] }
 0x459   :  { %4480 = vmatmul.mubr.f32.gmra.mxu0 %v5282_v43  ;;  %4567 = vmatprep.subr.mxu0 %v2030_v34  ;;  %v2137_v32 = vld [vmem:[#allocation5 + $0x3d10] sm:$0xff]  ;;  %v2006_v34 = vld [vmem:[#allocation5 + $0x38f8] sm:$0xff] }
 0x45a   :  { %4644 = vmatprep.subr.mxu1 %v2158_v35  ;;  %4556 = vmatprep.mubr.f32.mxu1 %v5283_v51  ;;  %v2134_v35 = vld [vmem:[#allocation5 + $0x3cf8] sm:$0xff]  ;;  %v2133_v43 = vld [vmem:[#allocation5 + $0x3cf0] sm:$0xff]  ;;  %v5627_v51 = vpop.f32.mrf.mxu0 }
 0x45b   :  { %4568 = vmatpush1.msra.mxu0 %v2029_v37  ;;  %4645 = vmatpush1.msra.mxu1 %v2157_v44  ;;  %v2005_v37 = vld [vmem:[#allocation5 + $0x38f0] sm:$0xff]  ;;  %v5623_v44 = vrot.slane %v5616_v26, %v2239_v23 }
 0x45c   :  { %4569 = vmatprep.subr.mxu0 %v2026_v45  ;;  %4557 = vmatmul.mubr.f32.gmra.mxu1 %v5284_v1  ;;  %v2002_v45 = vld [vmem:[#allocation5 + $0x38d8] sm:$0xff]  ;;  %v1997_v1 = vld [vmem:[#allocation5 + $0x38b0] sm:$0xff] }
 0x45d   :  { %4646 = vmatprep.subr.mxu1 %v2154_v50  ;;  %4570 = vmatpush1.msra.mxu0 %v2025_v52  ;;  %v5625_v50 = vpop.f32.mrf.mxu1  ;;  %v2001_v52 = vld [vmem:[#allocation5 + $0x38d0] sm:$0xff] }
 0x45e   :  { %4647 = vmatpush1.msra.mxu1 %v2153_v55  ;;  %4571 = vmatprep.subr.mxu0 %v2022_v56  ;;  %v2129_v55 = vld [vmem:[#allocation5 + $0x3cd0] sm:$0xff]  ;;  %v1998_v56 = vld [vmem:[#allocation5 + $0x38b8] sm:$0xff] }
 0x45f   :  { %4648 = vmatprep.subr.mxu1 %v2150_v57  ;;  %4572 = vmatpush1.msra.mxu0 %v2021_v2  ;;  %v2126_v57 = vld [vmem:[#allocation5 + $0x3cb8] sm:$0xff]  ;;  %v2125_v2 = vld [vmem:[#allocation5 + $0x3cb0] sm:$0xff] }
 0x460   :  { %4649 = vmatpush1.msra.mxu1 %v2149_v3  ;;  %4573 = vmatprep.subr.mxu0 %v2018_v5  ;;  %v2322_v3 = vadd.f32 %v5555_v48, %v5623_v44  ;;  %v1994_v5 = vld [vmem:[#allocation5 + $0x3898] sm:$0xff]  ;;  %v1989_v23 = vld [vmem:[#allocation5 + $0x3870] sm:$0xff] }
 0x461   :  { %4650 = vmatprep.subr.mxu1 %v2146_v6  ;;  %4574 = vmatpush1.msra.mxu0 %v2017_v7  ;;  %v2122_v6 = vld [vmem:[#allocation5 + $0x3c98] sm:$0xff]  ;;  %v5631_v7 = vpop.f32.mrf.mxu1  ;;  %v2117_v48 = vld [vmem:[#allocation5 + $0x3c70] sm:$0xff] }
 0x462   :  { %4651 = vmatpush1.msra.mxu1 %v2145_v12  ;;  %4575 = vmatprep.subr.mxu0 %v2014_v13  ;;  %v5633_v12 = vpop.f32.mrf.mxu0  ;;  %v1993_v13 = vld [vmem:[#allocation5 + $0x3890] sm:$0xff] }
 0x463   :  { %4652 = vmatprep.subr.mxu1 %v2142_v14  ;;  %4576 = vmatpush1.msra.mxu0 %v2013_v21  ;;  %v2121_v14 = vld [vmem:[#allocation5 + $0x3c90] sm:$0xff]  ;;  %v1990_v21 = vld [vmem:[#allocation5 + $0x3878] sm:$0xff] }
 0x464   :  { %4653 = vmatpush1.msra.mxu1 %v2141_v22  ;;  %4577 = vmatprep.subr.mxu0 %v2010_v24  ;;  %v2118_v22 = vld [vmem:[#allocation5 + $0x3c78] sm:$0xff]  ;;  %v2399_v24 = vadd.f32 %v5559_v58, %v2322_v3  ;;  %v1981_v58 = vld [vmem:[#allocation5 + $0x3830] sm:$0xff] }
 0x465   :  { %4654 = vmatprep.subr.mxu1 %v2138_v25  ;;  %4578 = vmatpush1.msra.mxu0 %v2009_v31  ;;  %v1986_v25 = vld [vmem:[#allocation5 + $0x3858] sm:$0xff] }
 0x466   :  { %4655 = vmatpush1.msra.mxu1 %v2137_v32  ;;  %4579 = vmatprep.subr.mxu0 %v2006_v34  ;;  %v2114_v31 = vld [vmem:[#allocation5 + $0x3c58] sm:$0xff]  ;;  %v5636_v32 = vpop.f32.mrf.mxu0  ;;  %v5638_v34 = vpop.f32.mrf.mxu1 }
 0x467   :  { %4656 = vmatprep.subr.mxu1 %v2134_v35  ;;  %4580 = vmatpush1.msra.mxu0 %v2005_v37  ;;  %v1985_v35 = vld [vmem:[#allocation5 + $0x3850] sm:$0xff] }
 0x468   :  { %4657 = vmatpush1.msra.mxu1 %v2133_v43  ;;  %4581 = vmatprep.subr.mxu0 %v2002_v45  ;;  %v2113_v37 = vld [vmem:[#allocation5 + $0x3c50] sm:$0xff]  ;;  %v2476_v43 = vadd.f32 %v5571_v20, %v2399_v24  ;;  %v1982_v45 = vld [vmem:[#allocation5 + $0x3838] sm:$0xff] }
 0x469   :  { %4658 = vmatprep.subr.mxu1 %v2130_v49  ;;  %4582 = vmatpush1.msra.mxu0 %v2001_v52  ;;  %v2110_v49 = vld [vmem:[#allocation5 + $0x3c38] sm:$0xff]  ;;  %v5641_v52 = vpop.f32.mrf.mxu0  ;;  %v2105_v20 = vld [vmem:[#allocation5 + $0x3c10] sm:$0xff] }
 0x46a   :  { %4659 = vmatpush1.msra.mxu1 %v2129_v55  ;;  %4583 = vmatprep.subr.mxu0 %v1998_v56  ;;  %v2109_v55 = vld [vmem:[#allocation5 + $0x3c30] sm:$0xff]  ;;  %v1978_v56 = vld [vmem:[#allocation5 + $0x3818] sm:$0xff]  ;;  %v2553_v3 = vadd.f32 %v5573_v29, %v2476_v43 }
 0x46b   :  { %4660 = vmatprep.subr.mxu1 %v2126_v57  ;;  %4584 = vmatpush1.msra.mxu0 %v1997_v1  ;;  %v2106_v57 = vld [vmem:[#allocation5 + $0x3c18] sm:$0xff]  ;;  %v5643_v1 = vpop.f32.mrf.mxu1  ;;  %v2097_v29 = vld [vmem:[#allocation5 + $0x3bd0] sm:$0xff] }
 0x46c   :  { %4661 = vmatpush1.msra.mxu1 %v2125_v2  ;;  %4585 = vmatprep.subr.mxu0 %v1994_v5  ;;  %v1977_v2 = vld [vmem:[#allocation5 + $0x3810] sm:$0xff]  ;;  %v2102_v5 = vld [vmem:[#allocation5 + $0x3bf8] sm:$0xff] }
 0x46d   :  { %4662 = vmatprep.subr.mxu1 %v2122_v6  ;;  %4586 = vmatpush1.msra.mxu0 %v1993_v13  ;;  %v2230_v6 = vld [vmem:[#allocation5 + $0x3ff8] sm:$0xff]  ;;  %v5646_v13 = vpop.f32.mrf.mxu1 }
 0x46e   :  { %4663 = vmatpush1.msra.mxu1 %v2121_v14  ;;  %4587 = vmatprep.subr.mxu0 %v1990_v21  ;;  %v5648_v14 = vpop.f32.mrf.mxu0  ;;  %v2101_v21 = vld [vmem:[#allocation5 + $0x3bf0] sm:$0xff]  ;;  %v2226_v24 = vld [vmem:[#allocation5 + $0x3fd8] sm:$0xff] }
 0x46f   :  { %4664 = vmatprep.subr.mxu1 %v2118_v22  ;;  %4588 = vmatpush1.msra.mxu0 %v1989_v23  ;;  %v2229_v22 = vld [vmem:[#allocation5 + $0x3ff0] sm:$0xff]  ;;  %v2630_v23 = vadd.f32 %v5587_v61, %v2553_v3  ;;  %v2214_v3 = vld [vmem:[#allocation5 + $0x3f78] sm:$0xff] }
 0x470   :  { %4665 = vmatpush1.msra.mxu1 %v2117_v48  ;;  %4589 = vmatprep.subr.mxu0 %v1986_v25  ;;  %v2098_v48 = vld [vmem:[#allocation5 + $0x3bd8] sm:$0xff]  ;;  %v2225_v25 = vld [vmem:[#allocation5 + $0x3fd0] sm:$0xff]  ;;  %v5653_v43 = vpop.f32.mrf.mxu0 }
 0x471   :  { %4666 = vmatprep.subr.mxu1 %v2114_v31  ;;  %4590 = vmatpush1.msra.mxu0 %v1985_v35  ;;  %v2094_v31 = vld [vmem:[#allocation5 + $0x3bb8] sm:$0xff]  ;;  %v2221_v61 = vld [vmem:[#allocation5 + $0x3fb0] sm:$0xff] }
 0x472   :  { %4667 = vmatpush1.msra.mxu1 %v2113_v37  ;;  %4591 = vmatprep.subr.mxu0 %v1982_v45  ;;  %v2222_v35 = vld [vmem:[#allocation5 + $0x3fb8] sm:$0xff]  ;;  %v5651_v37 = vpop.f32.mrf.mxu1  ;;  %v2093_v45 = vld [vmem:[#allocation5 + $0x3bb0] sm:$0xff] }
 0x473   :  { %4668 = vmatprep.subr.mxu1 %v2110_v49  ;;  %4592 = vmatpush1.msra.mxu0 %v1981_v58  ;;  %v2707_v49 = vadd.f32 %v5589_v8, %v2630_v23  ;;  %v2090_v58 = vld [vmem:[#allocation5 + $0x3b98] sm:$0xff]  ;;  %v2085_v8 = vld [vmem:[#allocation5 + $0x3b70] sm:$0xff] }
 0x474   :  { %4669 = vmatpush1.msra.mxu1 %v2109_v55  ;;  %4593 = vmatprep.subr.mxu0 %v1978_v56  ;;  %v2218_v55 = vld [vmem:[#allocation5 + $0x3f98] sm:$0xff]  ;;  %v2089_v56 = vld [vmem:[#allocation5 + $0x3b90] sm:$0xff] }
 0x475   :  { %4670 = vmatprep.subr.mxu1 %v2106_v57  ;;  %4594 = vmatpush1.msra.mxu0 %v1977_v2  ;;  %v2217_v57 = vld [vmem:[#allocation5 + $0x3f90] sm:$0xff]  ;;  %v2784_v2 = vadd.f32 %v5603_v42, %v2707_v49  ;;  %v2082_v23 = vld [vmem:[#allocation5 + $0x3b58] sm:$0xff] }
 0x476   :  { %4671 = vmatpush1.msra.mxu1 %v2105_v20  ;;  %4595 = vmatprep.subr.mxu0 %v2102_v5  ;;  %v2086_v20 = vld [vmem:[#allocation5 + $0x3b78] sm:$0xff]  ;;  %v2235_v5 = vsub.s32 0, %v5609_v4  ;;  %v2081_v42 = vld [vmem:[#allocation5 + $0x3b50] sm:$0xff] }
 0x477   :  { %4672 = vmatprep.subr.mxu1 %v2230_v6  ;;  %4596 = vmatpush2.msra.mxu0 %v2101_v21  ;;  %v5658_v6 = vpop.f32.mrf.mxu0  ;;  %v5660_v21 = vpop.f32.mrf.mxu1  ;;  %v2077_v49 = vld [vmem:[#allocation5 + $0x3b30] sm:$0xff] }
 0x478   :  { %4673 = vmatpush2.msra.mxu1 %v2229_v22  ;;  %4597 = vmatprep.subr.mxu0 %v2098_v48  ;;  %v2213_v22 = vld [vmem:[#allocation5 + $0x3f70] sm:$0xff]  ;;  %v2210_v48 = vld [vmem:[#allocation5 + $0x3f58] sm:$0xff] }
 0x479   :  { %4674 = vmatprep.subr.mxu1 %v2226_v24  ;;  %4598 = vmatpush2.msra.mxu0 %v2097_v29  ;;  %v5662_v24 = vpop.f32.mrf.mxu0  ;;  %v2209_v29 = vld [vmem:[#allocation5 + $0x3f50] sm:$0xff] }
 0x47a   :  { %4675 = vmatpush2.msra.mxu1 %v2225_v25  ;;  %4599 = vmatprep.subr.mxu0 %v2094_v31  ;;  %v2861_v25 = vadd.f32 %v5605_v59, %v2784_v2  ;;  %v2078_v31 = vld [vmem:[#allocation5 + $0x3b38] sm:$0xff]  ;;  %v2073_v2 = vld [vmem:[#allocation5 + $0x3b10] sm:$0xff] }
 0x47b   :  { %4676 = vmatprep.subr.mxu1 %v2222_v35  ;;  %4600 = vmatpush2.msra.mxu0 %v2093_v45  ;;  %v2206_v35 = vld [vmem:[#allocation5 + $0x3f38] sm:$0xff]  ;;  %v2236_v45 = vrot.slane %v5616_v26, %v2235_v5  ;;  %v3245_v59 = vpop.f32.mrf.mxu0 }
 0x47c   :  { %4677 = vmatpush2.msra.mxu1 %v2221_v61  ;;  %4601 = vmatprep.subr.mxu0 %v2090_v58  ;;  %v5666_v61 = vpop.f32.mrf.mxu1  ;;  %v2205_v58 = vld [vmem:[#allocation5 + $0x3f30] sm:$0xff]  ;;  %v2070_v26 = vld [vmem:[#allocation5 + $0x3af8] sm:$0xff] }
 0x47d   :  { %4678 = vmatprep.subr.mxu1 %v2218_v55  ;;  %4602 = vmatpush2.msra.mxu0 %v2089_v56  ;;  %v2938_v55 = vadd.f32 %v5627_v51, %v2861_v25  ;;  %v2074_v56 = vld [vmem:[#allocation5 + $0x3b18] sm:$0xff]  ;;  %v2069_v51 = vld [vmem:[#allocation5 + $0x3af0] sm:$0xff] }
 0x47e   :  { %4679 = vmatpush2.msra.mxu1 %v2217_v57  ;;  %4603 = vmatprep.subr.mxu0 %v2086_v20  ;;  %v2202_v57 = vld [vmem:[#allocation5 + $0x3f18] sm:$0xff]  ;;  %v5669_v20 = vpop.f32.mrf.mxu1 }
 0x47f   :  { %4680 = vmatprep.subr.mxu1 %v2214_v3  ;;  %4604 = vmatpush2.msra.mxu0 %v2085_v8  ;;  %v2201_v3 = vld [vmem:[#allocation5 + $0x3f10] sm:$0xff]  ;;  %v2198_v5 = vld [vmem:[#allocation5 + $0x3ef8] sm:$0xff]  ;;  %v2320_v8 = vadd.f32 %v5551_v38, %v2236_v45 }
 0x480   :  { %4681 = vmatpush2.msra.mxu1 %v2213_v22  ;;  %4605 = vmatprep.subr.mxu0 %v2082_v23  ;;  %v2197_v22 = vld [vmem:[#allocation5 + $0x3ef0] sm:$0xff]  ;;  %v2328_v23 = vadd.f32 %v5561_v63, %v5623_v44  ;;  %v5675_v25 = vpop.f32.mrf.mxu1  ;;  %v2190_v63 = vld [vmem:[#allocation5 + $0x3eb8] sm:$0xff] }
 0x481   :  { %4682 = vmatprep.subr.mxu1 %v2210_v48  ;;  %4606 = vmatpush2.msra.mxu0 %v2081_v42  ;;  %v3015_v48 = vadd.f32 %v5631_v7, %v2938_v55  ;;  %v2066_v42 = vld [vmem:[#allocation5 + $0x3ad8] sm:$0xff]  ;;  %v2065_v38 = vld [vmem:[#allocation5 + $0x3ad0] sm:$0xff]  ;;  %v2397_v44 = vadd.f32 %v5553_v47, %v2320_v8  ;;  %v2326_v7 = vadd.f32 %v5557_v53, %v2236_v45 }
 0x482   :  { %4683 = vmatpush2.msra.mxu1 %v2209_v29  ;;  %4607 = vmatprep.subr.mxu0 %v2078_v31  ;;  %v2194_v29 = vld [vmem:[#allocation5 + $0x3ed8] sm:$0xff]  ;;  %v5677_v31 = vpop.f32.mrf.mxu0  ;;  %v2061_v55 = vld [vmem:[#allocation5 + $0x3ab0] sm:$0xff] }
 0x483   :  { %4684 = vmatprep.subr.mxu1 %v2206_v35  ;;  %4608 = vmatpush2.msra.mxu0 %v2077_v49  ;;  %v2193_v35 = vld [vmem:[#allocation5 + $0x3ed0] sm:$0xff]  ;;  %v3092_v49 = vadd.f32 %v5648_v14, %v3015_v48  ;;  %v2474_v14 = vadd.f32 %v5567_v10, %v2397_v44 }
 0x484   :  { %4685 = vmatpush2.msra.mxu1 %v2205_v58  ;;  %4609 = vmatprep.subr.mxu0 %v2074_v56  ;;  %v2062_v58 = vld [vmem:[#allocation5 + $0x3ab8] sm:$0xff]  ;;  %v2189_v56 = vld [vmem:[#allocation5 + $0x3eb0] sm:$0xff] }
 0x485   :  { %4686 = vmatprep.subr.mxu1 %v2202_v57  ;;  %4610 = vmatpush2.msra.mxu0 %v2073_v2  ;;  %v2405_v57 = vadd.f32 %v5565_v9, %v2328_v23  ;;  %v2058_v2 = vld [vmem:[#allocation5 + $0x3a98] sm:$0xff]  ;;  %v2057_v47 = vld [vmem:[#allocation5 + $0x3a90] sm:$0xff]  ;;  %v3169_v8 = vadd.f32 %v5651_v37, %v3092_v49 }
 0x486   :  { %4687 = vmatpush2.msra.mxu1 %v2201_v3  ;;  %4611 = vmatprep.subr.mxu0 %v2070_v26  ;;  %v2186_v3 = vld [vmem:[#allocation5 + $0x3e98] sm:$0xff]  ;;  %v5684_v26 = vpop.f32.mrf.mxu0  ;;  %v2185_v53 = vld [vmem:[#allocation5 + $0x3e90] sm:$0xff] }
 0x487   :  { %4688 = vmatprep.subr.mxu1 %v2198_v5  ;;  %4612 = vmatpush2.msra.mxu0 %v2069_v51  ;;  %v5686_v5 = vpop.f32.mrf.mxu1  ;;  %v2482_v45 = vadd.f32 %v5577_v40, %v2405_v57  ;;  %v2054_v9 = vld [vmem:[#allocation5 + $0x3a78] sm:$0xff]  ;;  %v2053_v10 = vld [vmem:[#allocation5 + $0x3a70] sm:$0xff]  ;;  %v2551_v40 = vadd.f32 %v5569_v19, %v2474_v14 }
 0x488   :  { %4689 = vmatpush2.msra.mxu1 %v2197_v22  ;;  %4613 = vmatprep.subr.mxu0 %v2066_v42  ;;  %v2182_v51 = vld [vmem:[#allocation5 + $0x3e78] sm:$0xff]  ;;  %v2403_v22 = vadd.f32 %v5563_v0, %v2326_v7  ;;  %v5691_v23 = vpop.f32.mrf.mxu0  ;;  %v2181_v48 = vld [vmem:[#allocation5 + $0x3e70] sm:$0xff]  ;;  %v3246_v42 = vadd.f32 %v3245_v59, %v3169_v8  ;;  %v5285_v8 = vld [vmem:[#allocation2 + $0xe8] sm:$0xff] }
 0x489   :  { %4690 = vmatprep.subr.mxu1 %v2194_v29  ;;  %4614 = vmatpush2.msra.mxu0 %v2065_v38  ;;  %v2050_v29 = vld [vmem:[#allocation5 + $0x3a58] sm:$0xff]  ;;  %v2049_v0 = vld [vmem:[#allocation5 + $0x3a50] sm:$0xff]  ;;  %v2628_v44 = vadd.f32 %v5581_v46, %v2551_v40 }
 0x48a   :  { %4691 = vmatpush2.msra.mxu1 %v2193_v35  ;;  %4615 = vmatprep.subr.mxu0 %v2062_v58  ;;  %v2178_v38 = vld [vmem:[#allocation5 + $0x3e58] sm:$0xff]  ;;  %v2480_v37 = vadd.f32 %v5575_v30, %v2403_v22  ;;  %v5695_v35 = vpop.f32.mrf.mxu1  ;;  %v2177_v49 = vld [vmem:[#allocation5 + $0x3e50] sm:$0xff]  ;;  %v2559_v58 = vadd.f32 %v5583_v54, %v2482_v45  ;;  %v3323_v57 = vadd.f32 %v5675_v25, %v3246_v42 }
 0x48b   :  { %4692 = vmatprep.subr.mxu1 %v2190_v63  ;;  %4616 = vmatpush2.msra.mxu0 %v2061_v55  ;;  %v2046_v63 = vld [vmem:[#allocation5 + $0x3a38] sm:$0xff]  ;;  %v3399_v55 = vpop.f32.mrf.mxu0  ;;  %v2045_v19 = vld [vmem:[#allocation5 + $0x3a30] sm:$0xff] }
 0x48c   :  { %4693 = vmatpush2.msra.mxu1 %v2189_v56  ;;  %4617 = vmatprep.subr.mxu0 %v2058_v2  ;;  %v2174_v59 = vld [vmem:[#allocation5 + $0x3e38] sm:$0xff]  ;;  %v5699_v7 = vpop.f32.mrf.mxu1  ;;  %v2173_v30 = vld [vmem:[#allocation5 + $0x3e30] sm:$0xff]  ;;  %v2636_v56 = vadd.f32 %v5593_v17, %v2559_v58  ;;  %v3400_v14 = vadd.f32 %v3399_v55, %v3323_v57  ;;  %v4737_v55 = vld [vmem:[#allocation8 + $0x60] sm:$0xff] }
 0x48d   :  { %4694 = vmatprep.subr.mxu1 %v2186_v3  ;;  %4618 = vmatpush2.msra.mxu0 %v2057_v47  ;;  %v2042_v54 = vld [vmem:[#allocation5 + $0x3a18] sm:$0xff]  ;;  %v2557_v3 = vadd.f32 %v5579_v41, %v2480_v37  ;;  %v2041_v46 = vld [vmem:[#allocation5 + $0x3a10] sm:$0xff] }
 0x48e   :  { %4695 = vmatpush2.msra.mxu1 %v2185_v53  ;;  %4619 = vmatprep.subr.mxu0 %v2054_v9  ;;  %v2170_v2 = vld [vmem:[#allocation5 + $0x3e18] sm:$0xff]  ;;  %v2169_v47 = vld [vmem:[#allocation5 + $0x3e10] sm:$0xff]  ;;  %v2705_v53 = vadd.f32 %v5585_v60, %v2628_v44  ;;  %v3476_v17 = vpop.f32.mrf.mxu1  ;;  %v2713_v25 = vadd.f32 %v5599_v33, %v2636_v56  ;;  %v5292_v44 = vld [vmem:[#allocation2 + $0x1e0] sm:$0xff] }
 0x48f   :  { %4696 = vmatprep.subr.mxu1 %v2182_v51  ;;  %4620 = vmatpush2.msra.mxu0 %v2053_v10  ;;  %v2634_v45 = vadd.f32 %v5591_v11, %v2557_v3  ;;  %v4756_v41 = vld [vmem:[#allocation8 + $0xf8] sm:$0xff]  ;;  %v3477_v60 = vadd.f32 %v3476_v17, %v3400_v14  ;;  %v5288_v11 = vld [vmem:[#allocation2 + $0xf0] sm:$0xff]  ;;  %v4785_v17 = vld [vmem:[#allocation8 + $0x1e0] sm:$0xff] }
 0x490   :  { %4697 = vmatpush2.msra.mxu1 %v2181_v48  ;;  %4621 = vmatprep.subr.mxu0 %v2050_v29  ;;  %v2782_v9 = vadd.f32 %v5597_v27, %v2705_v53  ;;  %v5286_v51 = vld [vmem:[#allocation2 + $0xf8] sm:$0xff]  ;;  %v2790_v10 = vadd.f32 %v5611_v15, %v2713_v25  ;;  %v5287_v48 = vld [vmem:[#allocation2 + $0xe0] sm:$0xff]  ;;  %v5289_v29 = vld [vmem:[#allocation2 + $0x1e8] sm:$0xff] }
 0x491   :  { %4698 = vmatprep.subr.mxu1 %v2178_v38  ;;  %4622 = vmatpush2.msra.mxu0 %v2049_v0  ;;  %v4740_v22 = vld [vmem:[#allocation8 + $0x78] sm:$0xff]  ;;  %v4755_v42 = vld [vmem:[#allocation8 + $0xf0] sm:$0xff]  ;;  %v2711_v33 = vadd.f32 %v5595_v18, %v2634_v45  ;;  %v4754_v40 = vld [vmem:[#allocation8 + $0xe8] sm:$0xff]  ;;  %v4718_v58 = vmax.f32 %v3477_v60, 0.0 }
 0x492   :  { %4699 = vmatpush2.msra.mxu1 %v2177_v49  ;;  %4623 = vmatprep.subr.mxu0 %v2046_v63  ;;  %v4739_v38 = vld [vmem:[#allocation8 + $0x70] sm:$0xff]  ;;  %v2859_v37 = vadd.f32 %v5601_v39, %v2782_v9  ;;  %v4738_v0 = vld [vmem:[#allocation8 + $0x68] sm:$0xff]  ;;  %v2867_v49 = vadd.f32 %v5620_v36, %v2790_v10  ;;  %v4753_v18 = vld [vmem:[#allocation8 + $0xe0] sm:$0xff] }
 0x493   :  { %4700 = vmatprep.subr.mxu1 %v2174_v59  ;;  %4624 = vmatpush2.msra.mxu0 %v2045_v19  ;;  %v5290_v27 = vld [vmem:[#allocation2 + $0x1f8] sm:$0xff]  ;;  %v2788_v15 = vadd.f32 %v5607_v62, %v2711_v33  ;;  %v5291_v63 = vld [vmem:[#allocation2 + $0x1f0] sm:$0xff] }
 0x494   :  { %4701 = vmatpush2.msra.mxu1 %v2173_v30  ;;  %4625 = vmatprep.subr.mxu0 %v2042_v54  ;;  %v2936_v59 = vadd.f32 %v5618_v28, %v2859_v37  ;;  %v2944_v19 = vadd.f32 %v5636_v32, %v2867_v49  ;;  %v4752_v39 = vld [vmem:[#allocation8 + $0xd8] sm:$0xff]  ;;  %v4751_v30 = vld [vmem:[#allocation8 + $0xd0] sm:$0xff]  ;;  %v4750_v14 = vld [vmem:[#allocation8 + $0xc8] sm:$0xff] }
 0x495   :  { %4702 = vmatprep.subr.mxu1 %v2170_v2  ;;  %4626 = vmatpush2.msra.mxu0 %v2041_v46  ;;  %v2865_v62 = vadd.f32 %v5613_v16, %v2788_v15  ;;  %v4736_v36 = vld [vmem:[#allocation8 + $0x58] sm:$0xff]  ;;  %v4787_v54 = vld [vmem:[#allocation8 + $0x1f0] sm:$0xff]  ;;  %v4786_v16 = vld [vmem:[#allocation8 + $0x1e8] sm:$0xff] }
 0x496   :  { %4627 = vmatprep.mubr.f32.mxu0 %v5285_v8  ;;  %4703 = vmatpush2.msra.mxu1 %v2169_v47  ;;  %v4788_v56 = vld [vmem:[#allocation8 + $0x1f8] sm:$0xff]  ;;  %v3013_v28 = vadd.f32 %v5625_v50, %v2936_v59  ;;  %v4735_v3 = vld [vmem:[#allocation8 + $0x50] sm:$0xff]  ;;  %v3021_v46 = vadd.f32 %v5643_v1, %v2944_v19  ;;  %v4734_v53 = vld [vmem:[#allocation8 + $0x48] sm:$0xff] }
 0x497   :  { %4704 = vmatprep.mubr.f32.mxu1 %v5286_v51  ;;  %4628 = vmatmul.mubr.f32.vlgmr.msra.gmra.mxu0 %v5287_v48  ;;  %v4772_v57 = vld [vmem:[#allocation8 + $0x178] sm:$0xff]  ;;  %v2942_v2 = vadd.f32 %v5633_v12, %v2865_v62  ;;  %v4771_v32 = vld [vmem:[#allocation8 + $0x170] sm:$0xff]  ;;  %v4770_v45 = vld [vmem:[#allocation8 + $0x168] sm:$0xff] }
 0x498   :  { %4705 = vmatmul.mubr.f32.vlgmr.msra.gmra.mxu1 %v5288_v11  ;;  %5084 = vmatprep.subr.mxu0 %v4756_v41  ;;  %v3090_v47 = vadd.f32 %v5641_v52, %v3013_v28  ;;  %v3098_v50 = vadd.f32 %v5658_v6, %v3021_v46  ;;  %v4749_v12 = vld [vmem:[#allocation8 + $0xc0] sm:$0xff]  ;;  %v4748_v41 = vld [vmem:[#allocation8 + $0xb8] sm:$0xff]  ;;  %v4783_v60 = vld [vmem:[#allocation8 + $0x1d0] sm:$0xff]  ;;  %v3403_v11 = vpop.f32.mrf.mxu0 }
 0x499   :  { %4633 = vmatprep.mubr.f32.mxu0 %v5289_v29  ;;  %5085 = vmatpush3.msra.mxu0 %v4740_v22  ;;  %v3019_v25 = vadd.f32 %v5638_v34, %v2942_v2  ;;  %v4733_v1 = vld [vmem:[#allocation8 + $0x40] sm:$0xff]  ;;  %v4784_v52 = vld [vmem:[#allocation8 + $0x1d8] sm:$0xff]  ;;  %v4747_v34 = vld [vmem:[#allocation8 + $0xb0] sm:$0xff] }
 0x49a   :  { %4710 = vmatprep.mubr.f32.mxu1 %v5290_v27  ;;  %5086 = vmatprep.subr.mxu0 %v4755_v42  ;;  %v4769_v8 = vld [vmem:[#allocation8 + $0x160] sm:$0xff]  ;;  %v3167_v9 = vadd.f32 %v5646_v13, %v3090_v47  ;;  %v4732_v6 = vld [vmem:[#allocation8 + $0x38] sm:$0xff]  ;;  %v3175_v10 = vadd.f32 %v5666_v61, %v3098_v50  ;;  %v4731_v42 = vld [vmem:[#allocation8 + $0x30] sm:$0xff] }
 0x49b   :  { %5087 = vmatpush3.msra.mxu0 %v4739_v38  ;;  %5122 = vmatprep.subr.mxu1 %v4788_v56  ;;  %v3096_v51 = vadd.f32 %v5653_v43, %v3019_v25  ;;  %v4768_v22 = vld [vmem:[#allocation8 + $0x158] sm:$0xff]  ;;  %v4767_v33 = vld [vmem:[#allocation8 + $0x150] sm:$0xff]  ;;  %v4746_v43 = vld [vmem:[#allocation8 + $0xa8] sm:$0xff] }
 0x49c   :  { %4711 = vmatmul.mubr.f32.gmra.mxu1 %v5291_v63  ;;  %4634 = vmatmul.mubr.f32.gmra.mxu0 %v5292_v44  ;;  %v3244_v48 = vadd.f32 %v5662_v24, %v3167_v9  ;;  %v3252_v13 = vadd.f32 %v5684_v26, %v3175_v10  ;;  %v4782_v29 = vld [vmem:[#allocation8 + $0x1c8] sm:$0xff]  ;;  %v4781_v24 = vld [vmem:[#allocation8 + $0x1c0] sm:$0xff]  ;;  %v3480_v26 = vpop.f32.mrf.mxu1  ;;  %v4744_v63 = vld [vmem:[#allocation8 + $0x98] sm:$0xff] }
 0x49d   :  { %5088 = vmatprep.subr.mxu0 %v4754_v40  ;;  %4860 = vmatprep.mubr.f32.mxu0 %v4718_v58  ;;  %v3173_v38 = vadd.f32 %v5660_v21, %v3096_v51  ;;  %v4730_v61 = vld [vmem:[#allocation8 + $0x28] sm:$0xff]  ;;  %v4745_v40 = vld [vmem:[#allocation8 + $0xa0] sm:$0xff]  ;;  %v4728_v44 = vld [vmem:[#allocation8 + $0x18] sm:$0xff] }
 0x49e   :  { %5089 = vmatpush3.msra.mxu0 %v4738_v0  ;;  %5123 = vmatpush3.msra.mxu1 %v4772_v57  ;;  %v4766_v27 = vld [vmem:[#allocation8 + $0x148] sm:$0xff]  ;;  %v3321_v37 = vadd.f32 %v5669_v20, %v3244_v48  ;;  %v3405_v0 = vpop.f32.mrf.mxu0  ;;  %v4729_v49 = vld [vmem:[#allocation8 + $0x20] sm:$0xff]  ;;  %v3329_v21 = vadd.f32 %v5695_v35, %v3252_v13  ;;  %v4764_v20 = vld [vmem:[#allocation8 + $0x138] sm:$0xff]  ;;  %v3482_v62 = vpop.f32.mrf.mxu1 }
 0x49f   :  { %5090 = vmatprep.subr.mxu0 %v4753_v18  ;;  %5124 = vmatprep.subr.mxu1 %v4787_v54  ;;  %v3250_v15 = vadd.f32 %v5677_v31, %v3173_v38  ;;  %v4765_v58 = vld [vmem:[#allocation8 + $0x140] sm:$0xff]  ;;  %v4780_v18 = vld [vmem:[#allocation8 + $0x1b8] sm:$0xff]  ;;  %v4743_v31 = vld [vmem:[#allocation8 + $0x90] sm:$0xff] }
 0x4a0   :  { %5091 = vmatpush3.msra.mxu0 %v4737_v55  ;;  %5125 = vmatpush3.msra.mxu1 %v4771_v32  ;;  %v3398_v59 = vadd.f32 %v5691_v23, %v3321_v37  ;;  %v3406_v55 = vadd.f32 %v3405_v0, %v3329_v21  ;;  %v4779_v19 = vld [vmem:[#allocation8 + $0x1b0] sm:$0xff]  ;;  %v4778_v23 = vld [vmem:[#allocation8 + $0x1a8] sm:$0xff]  ;;  %v4761_v47 = vld [vmem:[#allocation8 + $0x120] sm:$0xff] }
 0x4a1   :  { %5092 = vmatprep.subr.mxu0 %v4752_v39  ;;  %5126 = vmatprep.subr.mxu1 %v4786_v16  ;;  %v3327_v39 = vadd.f32 %v5686_v5, %v3250_v15  ;;  %v4727_v35 = vld [vmem:[#allocation8 + $0x10] sm:$0xff]  ;;  %v4726_v54 = vld [vmem:[#allocation8 + $0x8] sm:$0xff]  ;;  %v4725_v5 = vld [vmem:[#allocation8] sm:$0xff] }
 0x4a2   :  { %5093 = vmatpush3.msra.mxu0 %v4736_v36  ;;  %5127 = vmatpush3.msra.mxu1 %v4770_v45  ;;  %v4763_v36 = vld [vmem:[#allocation8 + $0x130] sm:$0xff]  ;;  %v3475_v56 = vadd.f32 %v5699_v7, %v3398_v59  ;;  %v4762_v28 = vld [vmem:[#allocation8 + $0x128] sm:$0xff]  ;;  %v3483_v2 = vadd.f32 %v3482_v62, %v3406_v55  ;;  %v4777_v16 = vld [vmem:[#allocation8 + $0x1a0] sm:$0xff] }
 0x4a3   :  { %5094 = vmatprep.subr.mxu0 %v4751_v30  ;;  %5128 = vmatprep.subr.mxu1 %v4785_v17  ;;  %v4742_v30 = vld [vmem:[#allocation8 + $0x88] sm:$0xff]  ;;  %v3404_v57 = vadd.f32 %v3403_v11, %v3327_v39  ;;  %v4760_v45 = vld [vmem:[#allocation8 + $0x118] sm:$0xff]  ;;  %v4775_v50 = vld [vmem:[#allocation8 + $0x190] sm:$0xff]  ;;  %v5477_v11 = vmov 0  }
 0x4a4   :  { %5095 = vmatpush3.msra.mxu0 %v4735_v3  ;;  %5129 = vmatpush3.msra.mxu1 %v4769_v8  ;;  %v4741_v3 = vld [vmem:[#allocation8 + $0x80] sm:$0xff]  ;;  %v4717_v32 = vmax.f32 %v3475_v56, 0.0  ;;  %v4774_v17 = vld [vmem:[#allocation8 + $0x188] sm:$0xff] }
 0x4a5   :  { %5096 = vmatprep.subr.mxu0 %v4750_v14  ;;  %5130 = vmatprep.subr.mxu1 %v4784_v52  ;;  %v3481_v46 = vadd.f32 %v3480_v26, %v3404_v57  ;;  %v4722_v14 = vmax.f32 %v3483_v2, 0.0  ;;  %v4758_v25 = vld [vmem:[#allocation8 + $0x108] sm:$0xff]  ;;  %v4757_v8 = vld [vmem:[#allocation8 + $0x100] sm:$0xff]  ;;  %v5736_v52 = vpop.f32.mrf.mxu1  ;;  %v2247_v57 = vsub.s32 3, %v5609_v4 }
 0x4a6   :  { %5097 = vmatpush3.msra.mxu0 %v4734_v53  ;;  %5131 = vmatpush3.msra.mxu1 %v4768_v22  ;;  %v4776_v53 = vld [vmem:[#allocation8 + $0x198] sm:$0xff]  ;;  %v4974_v38 = vld [vmem:[#allocation11 + $0x60] sm:$0xff]  ;;  %v4971_v0 = vld [vmem:[#allocation11 + $0x48] sm:$0xff] }
 0x4a7   :  { %5098 = vmatprep.subr.mxu0 %v4749_v12  ;;  %5132 = vmatprep.subr.mxu1 %v4783_v60  ;;  %v4721_v7 = vmax.f32 %v3481_v46, 0.0  ;;  %v4759_v12 = vld [vmem:[#allocation8 + $0x110] sm:$0xff]  ;;  %v5740_v51 = vpop.f32.mrf.mxu1  ;;  %v4948_v60 = vld [vmem:[%s5782_s1] sm:$0xff] }
 0x4a8   :  { %5099 = vmatpush3.msra.mxu0 %v4733_v1  ;;  %5133 = vmatpush3.msra.mxu1 %v4767_v33  ;;  %v4773_v1 = vld [vmem:[#allocation8 + $0x180] sm:$0xff] }
 0x4a9   :  { %5100 = vmatprep.subr.mxu0 %v4748_v41  ;;  %5134 = vmatprep.subr.mxu1 %v4782_v29  ;;  %v5734_v41 = vpop.f32.mrf.mxu0  ;;  %v5744_v22 = vpop.f32.mrf.mxu1  ;;  %v4977_v48 = vld [vmem:[#allocation11 + $0x78] sm:$0xff]  ;;  %v4949_v29 = vld [vmem:[%s5782_s1 + $0x8] sm:$0xff]  ;;  %s5478_s1 = smov [#allocation14]  }
 0x4aa   :  { %5101 = vmatpush3.msra.mxu0 %v4732_v6  ;;  %5135 = vmatpush3.msra.mxu1 %v4766_v27  ;;  %v4970_v26 = vld [vmem:[#allocation11 + $0x40] sm:$0xff]  ;;  %v4969_v21 = vld [vmem:[#allocation11 + $0x38] sm:$0xff]  ;;  %s5067_s24 = sshll.u32 %s5478_s1, 4  ;;  %s5068_s24 = int_to_ptr.vmem [resolvable:$true] %s5067_s24 }
 0x4ab   :  { %5102 = vmatprep.subr.mxu0 %v4747_v34  ;;  %5136 = vmatprep.subr.mxu1 %v4781_v24  ;;  %v5738_v9 = vpop.f32.mrf.mxu0  ;;  %v5748_v34 = vpop.f32.mrf.mxu1  ;;  %v4972_v24 = vld [vmem:[#allocation11 + $0x50] sm:$0xff]  ;;  %s5434_s4 = scalar_lea.vmem %s5068_s24, 256  ;;  %p5439_p8 = scmp.lt.s32.totalorder %s5068_s24, %s5068_s24 }
 0x4ac   :  { %5103 = vmatpush3.msra.mxu0 %v4731_v42  ;;  %5137 = vmatpush3.msra.mxu1 %v4765_v58  ;;  %v4976_v42 = vld [vmem:[#allocation11 + $0x70] sm:$0xff]  ;;  %p5435_p7 = scmp.ne.s32.totalorder %s5068_s24, %s5434_s4  ;;  %p5440_p9 = scmp.lt.s32.totalorder %s5434_s4, %s5434_s4 }
 0x4ad   :  { %5104 = vmatprep.subr.mxu0 %v4746_v43  ;;  %5138 = vmatprep.subr.mxu1 %v4780_v18  ;;  %v5742_v6 = vpop.f32.mrf.mxu0  ;;  %v5755_v13 = vpop.f32.mrf.mxu1  ;;  %v4975_v43 = vld [vmem:[#allocation11 + $0x68] sm:$0xff] }
 0x4ae   :  { %5105 = vmatpush3.msra.mxu0 %v4730_v61  ;;  %5139 = vmatpush3.msra.mxu1 %v4764_v20  ;;  %p5441_p10 = por %p5440_p9, %p5439_p8 }
 0x4af   :  { %5106 = vmatprep.subr.mxu0 %v4745_v40  ;;  %5140 = vmatprep.subr.mxu1 %v4779_v19  ;;  %v5746_v10 = vpop.f32.mrf.mxu0  ;;  %v5760_v27 = vpop.f32.mrf.mxu1  ;;  %v4973_v40 = vld [vmem:[#allocation11 + $0x58] sm:$0xff] }
 0x4b0   :  { %5107 = vmatpush3.msra.mxu0 %v4729_v49  ;;  %5141 = vmatpush3.msra.mxu1 %v4763_v36  ;;  %p5442_p11 = pnand %p5441_p10, %p5435_p7 }
 0x4b1   :  { %5108 = vmatprep.subr.mxu0 %v4744_v63  ;;  %5142 = vmatprep.subr.mxu1 %v4778_v23  ;;  %v5753_v33 = vpop.f32.mrf.mxu0  ;;  %v3788_v15 = vpop.f32.mrf.mxu1 }
 0x4b2   :  { %5109 = vmatpush3.msra.mxu0 %v4728_v44  ;;  %5143 = vmatpush3.msra.mxu1 %v4762_v28 }
 0x4b3   :  { %5110 = vmatprep.subr.mxu0 %v4743_v31  ;;  %5144 = vmatprep.subr.mxu1 %v4777_v16  ;;  %v3707_v61 = vpop.f32.mrf.mxu0  ;;  %v3790_v58 = vpop.f32.mrf.mxu1 }
 0x4b4   :  { %5111 = vmatpush3.msra.mxu0 %v4727_v35  ;;  %5145 = vmatpush3.msra.mxu1 %v4761_v47 }
 0x4b5   :  { %5112 = vmatprep.subr.mxu0 %v4742_v30  ;;  %5146 = vmatprep.subr.mxu1 %v4776_v53  ;;  %v3711_v37 = vpop.f32.mrf.mxu0  ;;  %v3936_v18 = vpop.f32.mrf.mxu1  ;;  %v2243_v30 = vsub.s32 2, %v5609_v4 }
 0x4b6   :  { %5113 = vmatpush3.msra.mxu0 %v4726_v54  ;;  %5147 = vmatpush3.msra.mxu1 %v4760_v45  ;;  %v5293_v54 = vld [vmem:[#allocation7] sm:$0xf] }
 0x4b7   :  { %5114 = vmatprep.subr.mxu0 %v4741_v3  ;;  %5148 = vmatprep.subr.mxu1 %v4775_v50  ;;  %v3713_v49 = vpop.f32.mrf.mxu0  ;;  %v3938_v44 = vpop.f32.mrf.mxu1  ;;  %v2244_v28 = vrot.slane %v5293_v54, %v2243_v30 }
 0x4b8   :  { %5115 = vmatpush3.msra.mxu0 %v4725_v5  ;;  %5149 = vmatpush3.msra.mxu1 %v4759_v12  ;;  %v2248_v5 = vrot.slane %v5293_v54, %v2247_v57 }
 0x4b9   :  { %4861 = vmatmul.mubr.f32.vlgmr.msra.gmra.mxu0 %v4717_v32  ;;  %5150 = vmatprep.subr.mxu1 %v4774_v17  ;;  %v3859_v63 = vpop.f32.mrf.mxu0  ;;  %v3942_v55 = vpop.f32.mrf.mxu1  ;;  %v3558_v45 = vadd.f32 %v5742_v6, %v2244_v28 }
 0x4ba   :  { %4865 = vmatprep.mubr.f32.mxu0 %v4722_v14  ;;  %5151 = vmatpush3.msra.mxu1 %v4758_v25  ;;  %v3552_v14 = vadd.f32 %v5734_v41, %v2244_v28  ;;  %v3560_v12 = vadd.f32 %v5746_v10, %v2248_v5 }
 0x4bb   :  { %5152 = vmatprep.subr.mxu1 %v4773_v1  ;;  %5228 = vset.pattern.permute.xlu0 %v5477_v11  ;;  %v3861_v59 = vpop.f32.mrf.mxu0  ;;  %v3944_v19 = vpop.f32.mrf.mxu1 }
 0x4bc   :  { %5153 = vmatpush3.msra.mxu1 %v4757_v8  ;;  %5178 = vmatprep.subr.mxu0 %v4977_v48  ;;  %v3629_v53 = vadd.f32 %v5736_v52, %v3552_v14  ;;  %v3635_v8 = vadd.f32 %v5744_v22, %v3558_v45 }
 0x4bd   :  { %4866 = vmatmul.mubr.f32.gmra.mxu0 %v4721_v7  ;;  %4952 = vperm.xlu0 %5228, %v4948_v60   ;;  %v3865_v20 = vpop.f32.mrf.mxu0  ;;  %v4090_v62 = vpop.f32.mrf.mxu1  ;;  %v3554_v7 = vadd.f32 %v5738_v9, %v2248_v5  ;;  %v3637_v9 = vadd.f32 %v5748_v34, %v3560_v12 }
 0x4be   :  { %5179 = vmatpush3.msra.mxu0 %v4977_v48  ;;  %v3706_v4 = vadd.f32 %v5753_v33, %v3629_v53  ;;  %v3712_v60 = vadd.f32 %v3711_v37, %v3635_v8 }
 0x4bf   :  { %5180 = vmatprep.subr.mxu0 %v4976_v42  ;;  %v3867_v31 = vpop.f32.mrf.mxu0  ;;  %v4092_v36 = vpop.f32.mrf.mxu1  ;;  %v3631_v50 = vadd.f32 %v5740_v51, %v3554_v7  ;;  %v3714_v51 = vadd.f32 %v3713_v49, %v3637_v9 }
 0x4c0   :  { %5181 = vmatpush3.msra.mxu0 %v4976_v42  ;;  %v3783_v41 = vadd.f32 %v5755_v13, %v3706_v4  ;;  %v3789_v10 = vadd.f32 %v3788_v15, %v3712_v60 }
 0x4c1   :  { %5182 = vmatprep.subr.mxu0 %v4975_v43  ;;  %4957 = vperm.xlu0 %5228, %v4949_v29   ;;  %v4013_v39 = vpop.f32.mrf.mxu0  ;;  %v4096_v56 = vpop.f32.mrf.mxu1  ;;  %v3708_v1 = vadd.f32 %v3707_v61, %v3631_v50 }
 0x4c2   :  { %5183 = vmatpush3.msra.mxu0 %v4975_v43  ;;  %v3860_v11 = vadd.f32 %v3859_v63, %v3783_v41  ;;  %v3866_v61 = vadd.f32 %v3865_v20, %v3789_v10 }
 0x4c3   :  { %5184 = vmatprep.subr.mxu0 %v4974_v38  ;;  %v4015_v35 = vpop.f32.mrf.mxu0  ;;  %v4098_v3 = vpop.f32.mrf.mxu1  ;;  %v3785_v6 = vadd.f32 %v5760_v27, %v3708_v1 }
 0x4c4   :  { %5185 = vmatpush3.msra.mxu0 %v4974_v38  ;;  %v3937_v29 = vadd.f32 %v3936_v18, %v3860_v11  ;;  %v3791_v38 = vadd.f32 %v3790_v58, %v3714_v51  ;;  %v3943_v37 = vadd.f32 %v3942_v55, %v3866_v61 }
 0x4c5   :  { %5186 = vmatprep.subr.mxu0 %v4973_v40  ;;  %v4019_v23 = vpop.f32.mrf.mxu0  ;;  %v4244_v46 = vpop.f32.mrf.mxu1  ;;  %v3862_v43 = vadd.f32 %v3861_v59, %v3785_v6 }
 0x4c6   :  { %5187 = vmatpush3.msra.mxu0 %v4973_v40  ;;  %v4014_v13 = vadd.f32 %v4013_v39, %v3937_v29  ;;  %v4020_v63 = vadd.f32 %v4019_v23, %v3943_v37  ;;  %v4968_v37 = vld [vmem:[#allocation11 + $0x30] sm:$0xff] }
 0x4c7   :  { %5188 = vmatprep.subr.mxu0 %v4972_v24  ;;  %v4021_v2 = vpop.f32.mrf.mxu0  ;;  %v4246_v47 = vpop.f32.mrf.mxu1 }
 0x4c8   :  { %5189 = vmatpush3.msra.mxu0 %v4972_v24  ;;  %v3939_v24 = vadd.f32 %v3938_v44, %v3862_v43  ;;  %v4091_v30 = vadd.f32 %v4090_v62, %v4014_v13  ;;  %v4097_v58 = vadd.f32 %v4096_v56, %v4020_v63  ;;  %v4963_v63 = vld [vmem:[#allocation11 + $0x8] sm:$0xff] }
 0x4c9   :  { %5190 = vmatprep.subr.mxu0 %v4971_v0  ;;  %v4167_v32 = vpop.f32.mrf.mxu0  ;;  %v4250_v25 = vpop.f32.mrf.mxu1 }
 0x4ca   :  { %5191 = vmatpush3.msra.mxu0 %v4971_v0  ;;  %v3868_v0 = vadd.f32 %v3867_v31, %v3791_v38  ;;  %v4016_v34 = vadd.f32 %v4015_v35, %v3939_v24  ;;  %v4168_v57 = vadd.f32 %v4167_v32, %v4091_v30  ;;  %v4965_v30 = vld [vmem:[#allocation11 + $0x18] sm:$0xff] }
 0x4cb   :  { %5192 = vmatprep.subr.mxu0 %v4970_v26  ;;  %v4169_v16 = vpop.f32.mrf.mxu0  ;;  %v4252_v52 = vpop.f32.mrf.mxu1 }
 0x4cc   :  { %5193 = vmatpush3.msra.mxu0 %v4970_v26  ;;  %v3945_v27 = vadd.f32 %v3944_v19, %v3868_v0  ;;  %v4093_v49 = vadd.f32 %v4092_v36, %v4016_v34  ;;  %v4245_v5 = vadd.f32 %v4244_v46, %v4168_v57 }
 0x4cd   :  { %5194 = vmatprep.subr.mxu0 %v4969_v21  ;;  %v4173_v17 = vpop.f32.mrf.mxu0 }
 0x4ce   :  { %5195 = vmatpush3.msra.mxu0 %v4969_v21  ;;  %v4022_v54 = vadd.f32 %v4021_v2, %v3945_v27  ;;  %v4170_v18 = vadd.f32 %v4169_v16, %v4093_v49  ;;  %v4174_v39 = vadd.f32 %v4173_v17, %v4097_v58  ;;  %v4964_v27 = vld [vmem:[#allocation11 + $0x10] sm:$0xff]  ;;  %v4962_v49 = vld [vmem:[#allocation11] sm:$0xff] }
 0x4cf   :  { %v4175_v48 = vpop.f32.mrf.mxu0  ;;  %5196 = vmatprep.subr.mxu0 %v4968_v37 }
 0x4d0   :  { %v4099_v44 = vadd.f32 %v4098_v3, %v4022_v54  ;;  %v4247_v31 = vadd.f32 %v4246_v47, %v4170_v18  ;;  %v4251_v19 = vadd.f32 %v4250_v25, %v4174_v39  ;;  %5197 = vmatpush3.msra.mxu0 %v4968_v37  ;;  %v5082_v18 = vld [vmem:[#allocation10] ss:$0 sm:$0xff] }
 0x4d1   :  { %v4321_v42 = vpop.f32.mrf.mxu0  ;;  %v4398_v33 = vpop.f32.mrf.mxu1 }
 0x4d2   :  { %v4322_v35 = vadd.f32 %v4321_v42, %v4245_v5  ;;  %v4176_v55 = vadd.f32 %v4175_v48, %v4099_v44 }
 0x4d3   :  { %v4323_v40 = vpop.f32.mrf.mxu0  ;;  %v4400_v22 = vpop.f32.mrf.mxu1 }
 0x4d4   :  { %v4324_v62 = vadd.f32 %v4323_v40, %v4247_v31  ;;  %v4399_v23 = vadd.f32 %v4398_v33, %v4322_v35  ;;  %v4253_v36 = vadd.f32 %v4252_v52, %v4176_v55 }
 0x4d5   :  { %v4327_v26 = vpop.f32.mrf.mxu0 }
 0x4d6   :  { %v4328_v32 = vadd.f32 %v4327_v26, %v4251_v19  ;;  %v4401_v45 = vadd.f32 %v4400_v22, %v4324_v62  ;;  %v4967_v26 = vld [vmem:[#allocation11 + $0x28] sm:$0xff] }
 0x4d7   :  { %v4329_v59 = vpop.f32.mrf.mxu0  ;;  %5198 = vmatprep.subr.mxu0 %v4967_v26 }
 0x4d8   :  { %v4404_v21 = vpop.f32.mrf.mxu1  ;;  %v4330_v56 = vadd.f32 %v4329_v59, %v4253_v36  ;;  %5199 = vmatpush3.msra.mxu0 %v4967_v26 }
 0x4d9   :  { %v4405_v4 = vadd.f32 %v4404_v21, %v4328_v32  ;;  %v4966_v21 = vld [vmem:[#allocation11 + $0x20] sm:$0xff] }
 0x4da   :  { %v4406_v15 = vpop.f32.mrf.mxu1  ;;  %5200 = vmatprep.subr.mxu0 %v4966_v21 }
 0x4db   :  { %v4407_v47 = vadd.f32 %v4406_v15, %v4330_v56  ;;  %5201 = vmatpush3.msra.mxu0 %v4966_v21 }
 0x4dc   :  { %5202 = vmatprep.subr.mxu0 %v4965_v30 }
 0x4dd   :  { %5203 = vmatpush3.msra.mxu0 %v4965_v30 }
 0x4de   :  { %5204 = vmatprep.subr.mxu0 %v4964_v27 }
 0x4df   :  { %5205 = vmatpush3.msra.mxu0 %v4964_v27 }
 0x4e0   :  { %5206 = vmatprep.subr.mxu0 %v4963_v63 }
 0x4e1   :  { %5207 = vmatpush3.msra.mxu0 %v4963_v63 }
 0x4e2   :  { %5208 = vmatprep.subr.mxu0 %v4962_v49 }
 0x4e3   :  { %5209 = vmatpush3.msra.mxu0 %v4962_v49 }
 0x513   :  { %v4475_v20 = vpop.f32.mrf.mxu0 }
 0x514   :  { %v4476_v16 = vadd.f32 %v4475_v20, %v4399_v23 }
 0x515   :  { %v4552_v28 = vpop.f32.mrf.mxu1  ;;  %v4477_v14 = vpop.f32.mrf.mxu0 }
 0x516   :  { %v4478_v50 = vadd.f32 %v4477_v14, %v4401_v45  ;;  %v4553_v12 = vadd.f32 %v4552_v28, %v4476_v16  ;;  %v5083_v45 = vld [vmem:[#allocation13] ss:$0 sm:$0xff] }
 0x517   :  { %v4554_v7 = vpop.f32.mrf.mxu1 }
 0x518   :  { %v4555_v41 = vadd.f32 %v4554_v7, %v4478_v50 }
 0x519   :  { %v4481_v2 = vpop.f32.mrf.mxu0 }
 0x51a   :  { %v4482_v17 = vadd.f32 %v4481_v2, %v4405_v4 }
 0x51b   :  { %v4483_v46 = vpop.f32.mrf.mxu0 }
 0x51c   :  { %v4558_v53 = vpop.f32.mrf.mxu1  ;;  %v4484_v25 = vadd.f32 %v4483_v46, %v4407_v47 }
 0x51d   :  { %v4559_v6 = vadd.f32 %v4558_v53, %v4482_v17 }
 0x51e   :  { %v4560_v3 = vpop.f32.mrf.mxu1 }
 0x51f   :  { %v4561_v43 = vadd.f32 %v4560_v3, %v4484_v25 }
 0x538   :  { %v4953_v55 = vpop.permute.xlu0 %4952 }
 0x53c   :  { %v4958_v2 = vpop.permute.xlu0 %4957 }
 0x557   :  { %v4629_v1 = vpop.f32.mrf.mxu0 }
 0x558   :  { %v4706_v8 = vpop.f32.mrf.mxu1  ;;  %v4630_v9 = vadd.f32 %v4629_v1, %v4553_v12 }
 0x559   :  { %v4631_v60 = vpop.f32.mrf.mxu0 }
 0x55a   :  { %v4708_v48 = vpop.f32.mrf.mxu1  ;;  %v4632_v52 = vadd.f32 %v4631_v60, %v4555_v41  ;;  %v4707_v11 = vadd.f32 %v4706_v8, %v4630_v9 }
 0x55c   :  { %v4709_v51 = vadd.f32 %v4708_v48, %v4632_v52  ;;  %v4635_v42 = vpop.f32.mrf.mxu0  ;;  %v4712_v33 = vpop.f32.mrf.mxu1  ;;  %v4719_v61 = vmax.f32 %v4707_v11, 0.0 }
 0x55d   :  { %v4636_v10 = vadd.f32 %v4635_v42, %v4559_v6 }
 0x55e   :  { %v4720_v29 = vmax.f32 %v4709_v51, 0.0  ;;  %v4637_v38 = vpop.f32.mrf.mxu0  ;;  %v4714_v24 = vpop.f32.mrf.mxu1 }
 0x55f   :  { %v4638_v40 = vadd.f32 %v4637_v38, %v4561_v43  ;;  %v4713_v22 = vadd.f32 %v4712_v33, %v4636_v10 }
 0x560   :  { %4935 = vmatprep.mubr.f32.mxu1 %v4720_v29 }
 0x561   :  { %v4715_v13 = vadd.f32 %v4714_v24, %v4638_v40  ;;  %4936 = vmatmul.mubr.f32.vlgmr.msra.gmra.mxu1 %v4719_v61  ;;  %v4723_v34 = vmax.f32 %v4713_v22, 0.0 }
 0x563   :  { %v4724_v0 = vmax.f32 %v4715_v13, 0.0 }
 0x565   :  { %4940 = vmatprep.mubr.f32.mxu1 %v4724_v0 }
 0x566   :  { %4941 = vmatmul.mubr.f32.gmra.mxu1 %v4723_v34 }
 0x579   :  { %v5116_v57 = vpop.f32.mrf.mxu0 }
 0x57b   :  { %v5117_v54 = vpop.f32.mrf.mxu0 }
 0x57c   :  { %v5118_v15 = vadd.f32 %v5117_v54, %v5116_v57 }
 0x57d   :  { %v5119_v59 = vpop.f32.mrf.mxu0 }
 0x57e   :  { %v4863_v5 = vadd.f32 %v5118_v15, %v5082_v18 }
 0x57f   :  { %v5120_v20 = vpop.f32.mrf.mxu0 }
 0x580   :  { %v5121_v39 = vadd.f32 %v5120_v20, %v5119_v59 }
 0x582   :  { %v4868_v62 = vadd.f32 %v5121_v39, %v5082_v18 }
 0x621   :  { %v5154_v58 = vpop.f32.mrf.mxu1 }
 0x623   :  { %v5155_v28 = vpop.f32.mrf.mxu1 }
 0x624   :  { %v5156_v44 = vadd.f32 %v5155_v28, %v5154_v58 }
 0x626   :  { %v4938_v31 = vadd.f32 %v5156_v44, %v4863_v5  ;;  %v5157_v35 = vpop.f32.mrf.mxu1 }
 0x628   :  { %v4946_v14 = vmax.f32 %v4938_v31, 0.0  ;;  %v5158_v7 = vpop.f32.mrf.mxu1 }
 0x629   :  { %v5159_v19 = vadd.f32 %v5158_v7, %v5157_v35 }
 0x62a   :  { %v4960_v23 = vadd.f32 %v4953_v55, %v4946_v14 }
 0x62b   :  { %v4943_v36 = vadd.f32 %v5159_v19, %v4868_v62 }
 0x62c   :  { %5210 = vmatprep.mubr.f32.mxu0 %v4960_v23 }
 0x62d   :  { %v4947_v32 = vmax.f32 %v4943_v36, 0.0 }
 0x62f   :  { %v4961_v53 = vadd.f32 %v4958_v2, %v4947_v32 }
 0x631   :  { %5211 = vmatmul.mubr.f32.vlgmr.msra.gmra.mxu0 %v4961_v53 }
 0x6f1   :  { %v5212_v16 = vpop.f32.mrf.mxu0 }
 0x6f2   :  { %v5057_v56 = vadd.f32 %v5212_v16, %v5083_v45 }
 0x6f3   :  { %v5051_v50 = vpop.f32.mrf.mxu0 }
 0x6f4   :  { %5061 = vst [vmem:[#allocation14 + $0x8] sm:$0xff] %v5057_v56  ;;  %v5052_v4 = vadd.f32 %v5083_v45, %v5051_v50 }
 0x6f6   :  { %5060 = vst [vmem:[#allocation14] sm:$0xff] %v5052_v4 }
 0x6f7   :  { %5445 = shalt.err (!%p5442_p11)
}
 0x6f8   :  { %5073 = dma.vmem_to_hbm [thread:$0]  %s5068_s24, 256, %s5789_s8, [#allocation4], %s5468_s15, %s5468_s15, %s5469_s16  }
 0x6f9   :  { %5462 = dma.done.wait [#allocation4], 256  }
 0x6fa   :  { %5463 = vsyncadd [#allocation4], 4294967040 }
 0x6fb   :  { %5077 = vsyncpa [#allocation3], 1 }
 0x6fc   :  { %5078 = vsyncpa [#allocation6], 1 }
 0x6fd   :  { %5079 = vsyncpa [#allocation9], 1 }
 0x6fe   :  { %5080 = vsyncpa [#allocation12], 1 }
 0x6ff   :  { %5081 = vsyncpa [#allocation4], 1 }

</bundles_post_ra>
